<compile_context>
chip_gen: v7x
topology: tpu7x:2x2x1
jax: 0.10.0
libtpu: 0.0.40
codegen_flags: <defaults>
</compile_context>

<pallas_src>
import functools

import jax
import jax.numpy as jnp
from jax.experimental import pallas as pl
from jax.experimental.pallas import tpu as pltpu


def _generator_kernel(
    z_ref,
    w0_hbm, w1_hbm, w2_hbm, w3_hbm, w4_hbm,
    b0_ref, b4_ref,
    g1_ref, be1_ref, g2_ref, be2_ref, g3_ref, be3_ref,
    o_ref,
    w0_v, w1_v, w2_v, w3_v, w4_v, sem,
    *, eps,
):
    """Fused Generator forward: 5x (Linear [+BN] [+LeakyReLU/Tanh]) in one body."""
    hbm = (w0_hbm, w1_hbm, w2_hbm, w3_hbm, w4_hbm)
    vmem = (w0_v, w1_v, w2_v, w3_v, w4_v)

    # Kick off all weight DMAs immediately so the HBM stream runs back-to-back
    # and the (tiny) per-layer compute hides underneath it.
    copies = [pltpu.make_async_copy(hbm[i], vmem[i], sem.at[i]) for i in range(5)]
    for cp in copies:
        cp.start()

    def leaky(y):
        # Equivalent to LeakyReLU(0.2) for 0 < slope < 1; one fewer VALU op.
        return jnp.maximum(y, 0.2 * y)

    def batchnorm(y, gamma, beta):
        # Training-mode BatchNorm1d: batch mean / biased variance, eps=0.8.
        # Affine is folded into `scale` on the (1, N) row before the (B, N)
        # broadcast -> only 2 broadcast ops on the big tensor.
        mean = jnp.mean(y, axis=0, keepdims=True)
        diff = y - mean
        var = jnp.mean(diff * diff, axis=0, keepdims=True)
        scale = gamma * jax.lax.rsqrt(var + eps)
        return diff * scale + beta

    # layer 0: Linear + bias -> LeakyReLU   (no BN).  Kept fully f32 (tiny).
    copies[0].wait()
    y = jnp.dot(z_ref[...], w0_v[...], preferred_element_type=jnp.float32) + b0_ref[...]
    x = leaky(y).astype(jnp.bfloat16)

    # layers 1..3: Linear (bias cancelled by BN) -> BN(eps) -> LeakyReLU
    bn_params = ((g1_ref, be1_ref), (g2_ref, be2_ref), (g3_ref, be3_ref))
    for i, (g_ref, be_ref) in enumerate(bn_params, start=1):
        copies[i].wait()
        y = jnp.dot(x, vmem[i][...], preferred_element_type=jnp.float32)
        x = leaky(batchnorm(y, g_ref[...], be_ref[...])).astype(jnp.bfloat16)

    # layer 4: Linear + bias -> Tanh   (output last dim is lane-padded to 128k)
    copies[4].wait()
    y = jnp.dot(x, w4_v[...], preferred_element_type=jnp.float32) + b4_ref[...]
    o_ref[...] = jnp.tanh(y).astype(o_ref.dtype)


def init_generator_params(key, latent_dim, img_shape):
    """Parameter init matching the PyTorch module's shapes.

    w0 is kept f32 (tiny, better fidelity); w1..w4 are stored bf16 (MXU input).
    """
    out_dim = 1
    for d in img_shape:
        out_dim *= d
    dims = [latent_dim, 128, 256, 512, 1024, out_dim]

    params = []
    for i in range(len(dims) - 1):
        key, kw, kb = jax.random.split(key, 3)
        fan_in, fan_out = dims[i], dims[i + 1]
        bound = 1.0 / jnp.sqrt(fan_in)
        w = jax.random.uniform(kw, (fan_in, fan_out), jnp.float32, -bound, bound)
        b = jax.random.uniform(kb, (1, fan_out), jnp.float32, -bound, bound)
        gamma = jnp.ones((1, fan_out), jnp.float32)   # BatchNorm weight init
        beta = jnp.zeros((1, fan_out), jnp.float32)   # BatchNorm bias init
        w = w if i == 0 else w.astype(jnp.bfloat16)
        params.append((w, b, gamma, beta))
    return params


def generator_forward(params, z, img_shape):
    """Full Generator forward pass as a single fused Pallas kernel."""
    B, latent = z.shape
    out_dim = 1
    for d in img_shape:
        out_dim *= d

    (w0, b0, _, _) = params[0]
    (w1, _, g1, be1) = params[1]
    (w2, _, g2, be2) = params[2]
    (w3, _, g3, be3) = params[3]
    (w4, b4, _, _) = params[4]

    # Lane-align the output / last weight so the largest store is dense
    # (unmasked vst).  Padded columns are bias=0 -> tanh(0)=0 -> sliced away.
    pad = (-out_dim) % 128
    if pad:
        w4 = jnp.pad(w4, ((0, 0), (0, pad)))
        b4 = jnp.pad(b4, ((0, 0), (0, pad)))
    padded_out = out_dim + pad

    vmem_full = lambda shape: pl.BlockSpec(shape, lambda: (0,) * len(shape))
    hbm_spec = pl.BlockSpec(memory_space=pl.ANY)

    kernel = functools.partial(_generator_kernel, eps=0.8)

    dims = [latent, 128, 256, 512, 1024, padded_out]
    flops = 2 * B * sum(dims[i] * dims[i + 1] for i in range(5))
    transcendentals = B * padded_out + (256 + 512 + 1024)  # tanh + BN rsqrt
    bytes_accessed = (
        w0.size * 4
        + (w1.size + w2.size + w3.size + w4.size) * 2
        + (b0.size + b4.size + g1.size + be1.size
           + g2.size + be2.size + g3.size + be3.size) * 4
        + z.size * 4
        + B * padded_out * 4
    )

    out = pl.pallas_call(
        kernel,
        out_shape=jax.ShapeDtypeStruct((B, padded_out), jnp.float32),
        in_specs=[
            vmem_full((B, latent)),                             # z (f32)
            hbm_spec, hbm_spec, hbm_spec, hbm_spec, hbm_spec,   # w0..w4 stay in HBM
            vmem_full((1, 128)), vmem_full((1, padded_out)),    # b0, b4
            vmem_full((1, 256)), vmem_full((1, 256)),           # g1, beta1
            vmem_full((1, 512)), vmem_full((1, 512)),           # g2, beta2
            vmem_full((1, 1024)), vmem_full((1, 1024)),         # g3, beta3
        ],
        out_specs=vmem_full((B, padded_out)),
        scratch_shapes=[
            pltpu.VMEM(w0.shape, jnp.float32),
            pltpu.VMEM(w1.shape, jnp.bfloat16),
            pltpu.VMEM(w2.shape, jnp.bfloat16),
            pltpu.VMEM(w3.shape, jnp.bfloat16),
            pltpu.VMEM(w4.shape, jnp.bfloat16),
            pltpu.SemaphoreType.DMA((5,)),
        ],
        cost_estimate=pl.CostEstimate(
            flops=flops,
            transcendentals=transcendentals,
            bytes_accessed=bytes_accessed,
        ),
    )(z, w0, w1, w2, w3, w4, b0, b4, g1, be1, g2, be2, g3, be3)

    return out[:, :out_dim].reshape((B,) + tuple(img_shape))


def _reference_forward(params, z, img_shape, eps=0.8):
    """Pure-JAX reference mirroring the kernel's dtype choices (for validation)."""
    def leaky(y):
        return jnp.maximum(y, 0.2 * y)

    def bn(y, g, be):
        mean = jnp.mean(y, axis=0, keepdims=True)
        diff = y - mean
        var = jnp.mean(diff * diff, axis=0, keepdims=True)
        scale = g * jax.lax.rsqrt(var + eps)
        return diff * scale + be

    (w0, b0, _, _), (w1, _, g1, be1), (w2, _, g2, be2), (w3, _, g3, be3), (w4, b4, _, _) = params
    x = leaky(jnp.dot(z, w0, preferred_element_type=jnp.float32) + b0).astype(jnp.bfloat16)
    for w, g, be in ((w1, g1, be1), (w2, g2, be2), (w3, g3, be3)):
        y = jnp.dot(x, w, preferred_element_type=jnp.float32)
        x = leaky(bn(y, g, be)).astype(jnp.bfloat16)
    y = jnp.dot(x, w4, preferred_element_type=jnp.float32) + b4
    return jnp.tanh(y).reshape((z.shape[0],) + tuple(img_shape))


if __name__ == "__main__":
    # Module-consistent shapes; batch=128 fills bf16 sublane packing and the
    # MXU M dimension (the weight stream per call is constant, so bigger B is
    # strictly better throughput).
    batch = 128
    latent_dim = 64
    img_shape = (1, 16, 16)   # prod = 256 (already lane-aligned; padding path is generic)

    key = jax.random.PRNGKey(0)
    key, kz, kp = jax.random.split(key, 3)
    z = jax.random.normal(kz, (batch, latent_dim), jnp.float32)
    params = init_generator_params(kp, latent_dim, img_shape)

    img = generator_forward(params, z, img_shape)
    img = jax.block_until_ready(img)

    assert img.shape == (batch,) + img_shape
    assert bool(jnp.all(jnp.isfinite(img)))
    assert bool(jnp.all(jnp.abs(img) <= 1.0))  # tanh output range

    ref = _reference_forward(params, z, img_shape)
    assert bool(jnp.allclose(img, ref, atol=5e-2)), "kernel/reference mismatch"

    print("KERNEL_OK")
</pallas_src>

<mosaic_0001>
module attributes {stable_mosaic.version = 11 : i64} {
  func.func @_generator_kernel(%arg0: memref<128x64xf32, #tpu.memory_space<vmem>>, %arg1: memref<64x128xf32, #tpu.memory_space<any>>, %arg2: memref<128x256xbf16, #tpu.memory_space<any>>, %arg3: memref<256x512xbf16, #tpu.memory_space<any>>, %arg4: memref<512x1024xbf16, #tpu.memory_space<any>>, %arg5: memref<1024x256xbf16, #tpu.memory_space<any>>, %arg6: memref<1x128xf32, #tpu.memory_space<vmem>>, %arg7: memref<1x256xf32, #tpu.memory_space<vmem>>, %arg8: memref<1x256xf32, #tpu.memory_space<vmem>>, %arg9: memref<1x256xf32, #tpu.memory_space<vmem>>, %arg10: memref<1x512xf32, #tpu.memory_space<vmem>>, %arg11: memref<1x512xf32, #tpu.memory_space<vmem>>, %arg12: memref<1x1024xf32, #tpu.memory_space<vmem>>, %arg13: memref<1x1024xf32, #tpu.memory_space<vmem>>, %arg14: memref<128x256xf32, #tpu.memory_space<vmem>>, %arg15: memref<64x128xf32, #tpu.memory_space<vmem>>, %arg16: memref<128x256xbf16, #tpu.memory_space<vmem>>, %arg17: memref<256x512xbf16, #tpu.memory_space<vmem>>, %arg18: memref<512x1024xbf16, #tpu.memory_space<vmem>>, %arg19: memref<1024x256xbf16, #tpu.memory_space<vmem>>, %arg20: memref<5x!tpu.dma_semaphore, #tpu.memory_space<semaphore_mem>>) attributes {dimension_semantics = [], scalar_prefetch = 0 : i64, scratch_operands = 6 : i64, tpu.core_type = #tpu.core_type<tc>} {
    %c0_i32 = arith.constant 0 : i32
    %0 = tpu.memref_slice %arg20[%c0_i32] : memref<5x!tpu.dma_semaphore, #tpu.memory_space<semaphore_mem>> -> memref<1x!tpu.dma_semaphore, #tpu.memory_space<semaphore_mem>>
    %1 = tpu.memref_squeeze %0 : memref<1x!tpu.dma_semaphore, #tpu.memory_space<semaphore_mem>> -> memref<!tpu.dma_semaphore, #tpu.memory_space<semaphore_mem>>
    tpu.enqueue_dma source(%arg1 : memref<64x128xf32, #tpu.memory_space<any>>) target(%arg15 : memref<64x128xf32, #tpu.memory_space<vmem>>) target_semaphore(%1 : memref<!tpu.dma_semaphore, #tpu.memory_space<semaphore_mem>>)
    %c1_i32 = arith.constant 1 : i32
    %2 = tpu.memref_slice %arg20[%c1_i32] : memref<5x!tpu.dma_semaphore, #tpu.memory_space<semaphore_mem>> -> memref<1x!tpu.dma_semaphore, #tpu.memory_space<semaphore_mem>>
    %3 = tpu.memref_squeeze %2 : memref<1x!tpu.dma_semaphore, #tpu.memory_space<semaphore_mem>> -> memref<!tpu.dma_semaphore, #tpu.memory_space<semaphore_mem>>
    tpu.enqueue_dma source(%arg2 : memref<128x256xbf16, #tpu.memory_space<any>>) target(%arg16 : memref<128x256xbf16, #tpu.memory_space<vmem>>) target_semaphore(%3 : memref<!tpu.dma_semaphore, #tpu.memory_space<semaphore_mem>>)
    %c2_i32 = arith.constant 2 : i32
    %4 = tpu.memref_slice %arg20[%c2_i32] : memref<5x!tpu.dma_semaphore, #tpu.memory_space<semaphore_mem>> -> memref<1x!tpu.dma_semaphore, #tpu.memory_space<semaphore_mem>>
    %5 = tpu.memref_squeeze %4 : memref<1x!tpu.dma_semaphore, #tpu.memory_space<semaphore_mem>> -> memref<!tpu.dma_semaphore, #tpu.memory_space<semaphore_mem>>
    tpu.enqueue_dma source(%arg3 : memref<256x512xbf16, #tpu.memory_space<any>>) target(%arg17 : memref<256x512xbf16, #tpu.memory_space<vmem>>) target_semaphore(%5 : memref<!tpu.dma_semaphore, #tpu.memory_space<semaphore_mem>>)
    %c3_i32 = arith.constant 3 : i32
    %6 = tpu.memref_slice %arg20[%c3_i32] : memref<5x!tpu.dma_semaphore, #tpu.memory_space<semaphore_mem>> -> memref<1x!tpu.dma_semaphore, #tpu.memory_space<semaphore_mem>>
    %7 = tpu.memref_squeeze %6 : memref<1x!tpu.dma_semaphore, #tpu.memory_space<semaphore_mem>> -> memref<!tpu.dma_semaphore, #tpu.memory_space<semaphore_mem>>
    tpu.enqueue_dma source(%arg4 : memref<512x1024xbf16, #tpu.memory_space<any>>) target(%arg18 : memref<512x1024xbf16, #tpu.memory_space<vmem>>) target_semaphore(%7 : memref<!tpu.dma_semaphore, #tpu.memory_space<semaphore_mem>>)
    %c4_i32 = arith.constant 4 : i32
    %8 = tpu.memref_slice %arg20[%c4_i32] : memref<5x!tpu.dma_semaphore, #tpu.memory_space<semaphore_mem>> -> memref<1x!tpu.dma_semaphore, #tpu.memory_space<semaphore_mem>>
    %9 = tpu.memref_squeeze %8 : memref<1x!tpu.dma_semaphore, #tpu.memory_space<semaphore_mem>> -> memref<!tpu.dma_semaphore, #tpu.memory_space<semaphore_mem>>
    tpu.enqueue_dma source(%arg5 : memref<1024x256xbf16, #tpu.memory_space<any>>) target(%arg19 : memref<1024x256xbf16, #tpu.memory_space<vmem>>) target_semaphore(%9 : memref<!tpu.dma_semaphore, #tpu.memory_space<semaphore_mem>>)
    %c0_i32_0 = arith.constant 0 : i32
    %10 = tpu.memref_slice %arg20[%c0_i32_0] : memref<5x!tpu.dma_semaphore, #tpu.memory_space<semaphore_mem>> -> memref<1x!tpu.dma_semaphore, #tpu.memory_space<semaphore_mem>>
    %11 = tpu.memref_squeeze %10 : memref<1x!tpu.dma_semaphore, #tpu.memory_space<semaphore_mem>> -> memref<!tpu.dma_semaphore, #tpu.memory_space<semaphore_mem>>
    tpu.wait_dma2 semaphore(%11 : memref<!tpu.dma_semaphore, #tpu.memory_space<semaphore_mem>>) src(%arg1 : memref<64x128xf32, #tpu.memory_space<any>>) dst(%arg15 : memref<64x128xf32, #tpu.memory_space<vmem>>)
    %c0 = arith.constant 0 : index
    %c0_1 = arith.constant 0 : index
    %12 = vector.load %arg0[%c0, %c0_1] : memref<128x64xf32, #tpu.memory_space<vmem>>, vector<128x64xf32>
    %c0_2 = arith.constant 0 : index
    %c0_3 = arith.constant 0 : index
    %13 = vector.load %arg15[%c0_2, %c0_3] : memref<64x128xf32, #tpu.memory_space<vmem>>, vector<64x128xf32>
    %cst = arith.constant dense<0.000000e+00> : vector<128x128xf32>
    %14 = tpu.matmul %12, %13, %cst {dimension_numbers = #tpu.dot_dimension_numbers<[1], [0], [0], [1], [0, 0, 1, 1], [], []>} : vector<128x64xf32>, vector<64x128xf32>, vector<128x128xf32> -> vector<128x128xf32>
    %c0_4 = arith.constant 0 : index
    %c0_5 = arith.constant 0 : index
    %15 = vector.load %arg6[%c0_4, %c0_5] : memref<1x128xf32, #tpu.memory_space<vmem>>, vector<1x128xf32>
    %16 = vector.broadcast %15 : vector<1x128xf32> to vector<128x128xf32>
    %17 = arith.addf %14, %16 : vector<128x128xf32>
    %cst_6 = arith.constant 2.000000e-01 : f32
    %18 = vector.broadcast %cst_6 : f32 to vector<128x128xf32>
    %19 = arith.mulf %18, %17 : vector<128x128xf32>
    %20 = arith.maximumf %17, %19 : vector<128x128xf32>
    %21 = arith.truncf %20 : vector<128x128xf32> to vector<128x128xbf16>
    %c1_i32_7 = arith.constant 1 : i32
    %22 = tpu.memref_slice %arg20[%c1_i32_7] : memref<5x!tpu.dma_semaphore, #tpu.memory_space<semaphore_mem>> -> memref<1x!tpu.dma_semaphore, #tpu.memory_space<semaphore_mem>>
    %23 = tpu.memref_squeeze %22 : memref<1x!tpu.dma_semaphore, #tpu.memory_space<semaphore_mem>> -> memref<!tpu.dma_semaphore, #tpu.memory_space<semaphore_mem>>
    tpu.wait_dma2 semaphore(%23 : memref<!tpu.dma_semaphore, #tpu.memory_space<semaphore_mem>>) src(%arg2 : memref<128x256xbf16, #tpu.memory_space<any>>) dst(%arg16 : memref<128x256xbf16, #tpu.memory_space<vmem>>)
    %c0_8 = arith.constant 0 : index
    %c0_9 = arith.constant 0 : index
    %24 = vector.load %arg16[%c0_8, %c0_9] : memref<128x256xbf16, #tpu.memory_space<vmem>>, vector<128x256xbf16>
    %cst_10 = arith.constant dense<0.000000e+00> : vector<128x256xf32>
    %25 = tpu.matmul %21, %24, %cst_10 {dimension_numbers = #tpu.dot_dimension_numbers<[1], [0], [0], [1], [0, 0, 1, 1], [], []>} : vector<128x128xbf16>, vector<128x256xbf16>, vector<128x256xf32> -> vector<128x256xf32>
    %c0_11 = arith.constant 0 : index
    %c0_12 = arith.constant 0 : index
    %26 = vector.load %arg8[%c0_11, %c0_12] : memref<1x256xf32, #tpu.memory_space<vmem>>, vector<1x256xf32>
    %c0_13 = arith.constant 0 : index
    %c0_14 = arith.constant 0 : index
    %27 = vector.load %arg9[%c0_13, %c0_14] : memref<1x256xf32, #tpu.memory_space<vmem>>, vector<1x256xf32>
    %cst_15 = arith.constant dense<0.000000e+00> : vector<256xf32>
    %28 = vector.multi_reduction <add>, %25, %cst_15 [0] : vector<128x256xf32> to vector<256xf32>
    %29 = vector.shape_cast %28 : vector<256xf32> to vector<1x256xf32>
    %cst_16 = arith.constant 1.280000e+02 : f32
    %30 = vector.broadcast %cst_16 : f32 to vector<1x256xf32>
    %31 = arith.divf %29, %30 : vector<1x256xf32>
    %32 = vector.broadcast %31 : vector<1x256xf32> to vector<128x256xf32>
    %33 = arith.subf %25, %32 : vector<128x256xf32>
    %34 = arith.mulf %33, %33 : vector<128x256xf32>
    %cst_17 = arith.constant dense<0.000000e+00> : vector<256xf32>
    %35 = vector.multi_reduction <add>, %34, %cst_17 [0] : vector<128x256xf32> to vector<256xf32>
    %36 = vector.shape_cast %35 : vector<256xf32> to vector<1x256xf32>
    %cst_18 = arith.constant 1.280000e+02 : f32
    %37 = vector.broadcast %cst_18 : f32 to vector<1x256xf32>
    %38 = arith.divf %36, %37 : vector<1x256xf32>
    %cst_19 = arith.constant 8.000000e-01 : f32
    %39 = vector.broadcast %cst_19 : f32 to vector<1x256xf32>
    %40 = arith.addf %38, %39 : vector<1x256xf32>
    %41 = math.rsqrt %40 : vector<1x256xf32>
    %42 = arith.mulf %26, %41 : vector<1x256xf32>
    %43 = vector.broadcast %42 : vector<1x256xf32> to vector<128x256xf32>
    %44 = arith.mulf %33, %43 : vector<128x256xf32>
    %45 = vector.broadcast %27 : vector<1x256xf32> to vector<128x256xf32>
    %46 = arith.addf %44, %45 : vector<128x256xf32>
    %cst_20 = arith.constant 2.000000e-01 : f32
    %47 = vector.broadcast %cst_20 : f32 to vector<128x256xf32>
    %48 = arith.mulf %47, %46 : vector<128x256xf32>
    %49 = arith.maximumf %46, %48 : vector<128x256xf32>
    %50 = arith.truncf %49 : vector<128x256xf32> to vector<128x256xbf16>
    %c2_i32_21 = arith.constant 2 : i32
    %51 = tpu.memref_slice %arg20[%c2_i32_21] : memref<5x!tpu.dma_semaphore, #tpu.memory_space<semaphore_mem>> -> memref<1x!tpu.dma_semaphore, #tpu.memory_space<semaphore_mem>>
    %52 = tpu.memref_squeeze %51 : memref<1x!tpu.dma_semaphore, #tpu.memory_space<semaphore_mem>> -> memref<!tpu.dma_semaphore, #tpu.memory_space<semaphore_mem>>
    tpu.wait_dma2 semaphore(%52 : memref<!tpu.dma_semaphore, #tpu.memory_space<semaphore_mem>>) src(%arg3 : memref<256x512xbf16, #tpu.memory_space<any>>) dst(%arg17 : memref<256x512xbf16, #tpu.memory_space<vmem>>)
    %c0_22 = arith.constant 0 : index
    %c0_23 = arith.constant 0 : index
    %53 = vector.load %arg17[%c0_22, %c0_23] : memref<256x512xbf16, #tpu.memory_space<vmem>>, vector<256x512xbf16>
    %cst_24 = arith.constant dense<0.000000e+00> : vector<128x512xf32>
    %54 = tpu.matmul %50, %53, %cst_24 {dimension_numbers = #tpu.dot_dimension_numbers<[1], [0], [0], [1], [0, 0, 1, 1], [], []>} : vector<128x256xbf16>, vector<256x512xbf16>, vector<128x512xf32> -> vector<128x512xf32>
    %c0_25 = arith.constant 0 : index
    %c0_26 = arith.constant 0 : index
    %55 = vector.load %arg10[%c0_25, %c0_26] : memref<1x512xf32, #tpu.memory_space<vmem>>, vector<1x512xf32>
    %c0_27 = arith.constant 0 : index
    %c0_28 = arith.constant 0 : index
    %56 = vector.load %arg11[%c0_27, %c0_28] : memref<1x512xf32, #tpu.memory_space<vmem>>, vector<1x512xf32>
    %cst_29 = arith.constant dense<0.000000e+00> : vector<512xf32>
    %57 = vector.multi_reduction <add>, %54, %cst_29 [0] : vector<128x512xf32> to vector<512xf32>
    %58 = vector.shape_cast %57 : vector<512xf32> to vector<1x512xf32>
    %cst_30 = arith.constant 1.280000e+02 : f32
    %59 = vector.broadcast %cst_30 : f32 to vector<1x512xf32>
    %60 = arith.divf %58, %59 : vector<1x512xf32>
    %61 = vector.broadcast %60 : vector<1x512xf32> to vector<128x512xf32>
    %62 = arith.subf %54, %61 : vector<128x512xf32>
    %63 = arith.mulf %62, %62 : vector<128x512xf32>
    %cst_31 = arith.constant dense<0.000000e+00> : vector<512xf32>
    %64 = vector.multi_reduction <add>, %63, %cst_31 [0] : vector<128x512xf32> to vector<512xf32>
    %65 = vector.shape_cast %64 : vector<512xf32> to vector<1x512xf32>
    %cst_32 = arith.constant 1.280000e+02 : f32
    %66 = vector.broadcast %cst_32 : f32 to vector<1x512xf32>
    %67 = arith.divf %65, %66 : vector<1x512xf32>
    %cst_33 = arith.constant 8.000000e-01 : f32
    %68 = vector.broadcast %cst_33 : f32 to vector<1x512xf32>
    %69 = arith.addf %67, %68 : vector<1x512xf32>
    %70 = math.rsqrt %69 : vector<1x512xf32>
    %71 = arith.mulf %55, %70 : vector<1x512xf32>
    %72 = vector.broadcast %71 : vector<1x512xf32> to vector<128x512xf32>
    %73 = arith.mulf %62, %72 : vector<128x512xf32>
    %74 = vector.broadcast %56 : vector<1x512xf32> to vector<128x512xf32>
    %75 = arith.addf %73, %74 : vector<128x512xf32>
    %cst_34 = arith.constant 2.000000e-01 : f32
    %76 = vector.broadcast %cst_34 : f32 to vector<128x512xf32>
    %77 = arith.mulf %76, %75 : vector<128x512xf32>
    %78 = arith.maximumf %75, %77 : vector<128x512xf32>
    %79 = arith.truncf %78 : vector<128x512xf32> to vector<128x512xbf16>
    %c3_i32_35 = arith.constant 3 : i32
    %80 = tpu.memref_slice %arg20[%c3_i32_35] : memref<5x!tpu.dma_semaphore, #tpu.memory_space<semaphore_mem>> -> memref<1x!tpu.dma_semaphore, #tpu.memory_space<semaphore_mem>>
    %81 = tpu.memref_squeeze %80 : memref<1x!tpu.dma_semaphore, #tpu.memory_space<semaphore_mem>> -> memref<!tpu.dma_semaphore, #tpu.memory_space<semaphore_mem>>
    tpu.wait_dma2 semaphore(%81 : memref<!tpu.dma_semaphore, #tpu.memory_space<semaphore_mem>>) src(%arg4 : memref<512x1024xbf16, #tpu.memory_space<any>>) dst(%arg18 : memref<512x1024xbf16, #tpu.memory_space<vmem>>)
    %c0_36 = arith.constant 0 : index
    %c0_37 = arith.constant 0 : index
    %82 = vector.load %arg18[%c0_36, %c0_37] : memref<512x1024xbf16, #tpu.memory_space<vmem>>, vector<512x1024xbf16>
    %cst_38 = arith.constant dense<0.000000e+00> : vector<128x1024xf32>
    %83 = tpu.matmul %79, %82, %cst_38 {dimension_numbers = #tpu.dot_dimension_numbers<[1], [0], [0], [1], [0, 0, 1, 1], [], []>} : vector<128x512xbf16>, vector<512x1024xbf16>, vector<128x1024xf32> -> vector<128x1024xf32>
    %c0_39 = arith.constant 0 : index
    %c0_40 = arith.constant 0 : index
    %84 = vector.load %arg12[%c0_39, %c0_40] : memref<1x1024xf32, #tpu.memory_space<vmem>>, vector<1x1024xf32>
    %c0_41 = arith.constant 0 : index
    %c0_42 = arith.constant 0 : index
    %85 = vector.load %arg13[%c0_41, %c0_42] : memref<1x1024xf32, #tpu.memory_space<vmem>>, vector<1x1024xf32>
    %cst_43 = arith.constant dense<0.000000e+00> : vector<1024xf32>
    %86 = vector.multi_reduction <add>, %83, %cst_43 [0] : vector<128x1024xf32> to vector<1024xf32>
    %87 = vector.shape_cast %86 : vector<1024xf32> to vector<1x1024xf32>
    %cst_44 = arith.constant 1.280000e+02 : f32
    %88 = vector.broadcast %cst_44 : f32 to vector<1x1024xf32>
    %89 = arith.divf %87, %88 : vector<1x1024xf32>
    %90 = vector.broadcast %89 : vector<1x1024xf32> to vector<128x1024xf32>
    %91 = arith.subf %83, %90 : vector<128x1024xf32>
    %92 = arith.mulf %91, %91 : vector<128x1024xf32>
    %cst_45 = arith.constant dense<0.000000e+00> : vector<1024xf32>
    %93 = vector.multi_reduction <add>, %92, %cst_45 [0] : vector<128x1024xf32> to vector<1024xf32>
    %94 = vector.shape_cast %93 : vector<1024xf32> to vector<1x1024xf32>
    %cst_46 = arith.constant 1.280000e+02 : f32
    %95 = vector.broadcast %cst_46 : f32 to vector<1x1024xf32>
    %96 = arith.divf %94, %95 : vector<1x1024xf32>
    %cst_47 = arith.constant 8.000000e-01 : f32
    %97 = vector.broadcast %cst_47 : f32 to vector<1x1024xf32>
    %98 = arith.addf %96, %97 : vector<1x1024xf32>
    %99 = math.rsqrt %98 : vector<1x1024xf32>
    %100 = arith.mulf %84, %99 : vector<1x1024xf32>
    %101 = vector.broadcast %100 : vector<1x1024xf32> to vector<128x1024xf32>
    %102 = arith.mulf %91, %101 : vector<128x1024xf32>
    %103 = vector.broadcast %85 : vector<1x1024xf32> to vector<128x1024xf32>
    %104 = arith.addf %102, %103 : vector<128x1024xf32>
    %cst_48 = arith.constant 2.000000e-01 : f32
    %105 = vector.broadcast %cst_48 : f32 to vector<128x1024xf32>
    %106 = arith.mulf %105, %104 : vector<128x1024xf32>
    %107 = arith.maximumf %104, %106 : vector<128x1024xf32>
    %108 = arith.truncf %107 : vector<128x1024xf32> to vector<128x1024xbf16>
    %c4_i32_49 = arith.constant 4 : i32
    %109 = tpu.memref_slice %arg20[%c4_i32_49] : memref<5x!tpu.dma_semaphore, #tpu.memory_space<semaphore_mem>> -> memref<1x!tpu.dma_semaphore, #tpu.memory_space<semaphore_mem>>
    %110 = tpu.memref_squeeze %109 : memref<1x!tpu.dma_semaphore, #tpu.memory_space<semaphore_mem>> -> memref<!tpu.dma_semaphore, #tpu.memory_space<semaphore_mem>>
    tpu.wait_dma2 semaphore(%110 : memref<!tpu.dma_semaphore, #tpu.memory_space<semaphore_mem>>) src(%arg5 : memref<1024x256xbf16, #tpu.memory_space<any>>) dst(%arg19 : memref<1024x256xbf16, #tpu.memory_space<vmem>>)
    %c0_50 = arith.constant 0 : index
    %c0_51 = arith.constant 0 : index
    %111 = vector.load %arg19[%c0_50, %c0_51] : memref<1024x256xbf16, #tpu.memory_space<vmem>>, vector<1024x256xbf16>
    %cst_52 = arith.constant dense<0.000000e+00> : vector<128x256xf32>
    %112 = tpu.matmul %108, %111, %cst_52 {dimension_numbers = #tpu.dot_dimension_numbers<[1], [0], [0], [1], [0, 0, 1, 1], [], []>} : vector<128x1024xbf16>, vector<1024x256xbf16>, vector<128x256xf32> -> vector<128x256xf32>
    %c0_53 = arith.constant 0 : index
    %c0_54 = arith.constant 0 : index
    %113 = vector.load %arg7[%c0_53, %c0_54] : memref<1x256xf32, #tpu.memory_space<vmem>>, vector<1x256xf32>
    %114 = vector.broadcast %113 : vector<1x256xf32> to vector<128x256xf32>
    %115 = arith.addf %112, %114 : vector<128x256xf32>
    %116 = math.tanh %115 : vector<128x256xf32>
    %c0_55 = arith.constant 0 : index
    %c0_56 = arith.constant 0 : index
    %117 = vector.load %arg14[%c0_55, %c0_56] : memref<128x256xf32, #tpu.memory_space<vmem>>, vector<128x256xf32>
    tpu.vector_store %arg14[%c0_55, %c0_56], %116 {strides = array<i32>} : memref<128x256xf32, #tpu.memory_space<vmem>>, vector<128x256xf32>,
    return
  }
}

</mosaic_0001>

<bundles_post_ra>
// kernel: tpu_custom_call.1
= control target key start
LH: loop header
LB: loop body
LE: loop exit
PB: predicated region body
PF: predicated region fallthrough
CT: control target
= control target key end

     0   :  { %19 = vsyncpa [#allocation9], 0  ;;  %s11942_s0 = inlined_call_operand.vmem [shape: f32[128,64], index: 0, kind: input, shape index: {}]   ;;  %s11943_s1 = inlined_call_operand.vmem [shape: f32[64,128], index: 1, kind: input, shape index: {}]   ;;  %s11944_s2 = inlined_call_operand.vmem [shape: bf16[128,256], index: 2, kind: input, shape index: {}]   ;;  %s11945_s3 = inlined_call_operand.hbm [shape: bf16[256,512], index: 3, kind: input, shape index: {}]   ;;  %s11946_s4 = inlined_call_operand.hbm [shape: bf16[512,1024], index: 4, kind: input, shape index: {}]   ;;  %s11947_s5 = inlined_call_operand.hbm [shape: bf16[1024,256], index: 5, kind: input, shape index: {}]   ;;  %s11948_s6 = inlined_call_operand.hbm [shape: f32[1,128], index: 6, kind: input, shape index: {}]   ;;  %s11949_s7 = inlined_call_operand.vmem [shape: f32[1,256], index: 7, kind: input, shape index: {}]   ;;  %s11950_s8 = inlined_call_operand.vmem [shape: f32[1,256], index: 8, kind: input, shape index: {}]   ;;  %s11951_s9 = inlined_call_operand.vmem [shape: f32[1,256], index: 9, kind: input, shape index: {}]   ;;  %s11952_s10 = inlined_call_operand.vmem [shape: f32[1,512], index: 10, kind: input, shape index: {}]   ;;  %s11953_s11 = inlined_call_operand.vmem [shape: f32[1,512], index: 11, kind: input, shape index: {}]   ;;  %s11954_s12 = inlined_call_operand.vmem [shape: f32[1,1024], index: 12, kind: input, shape index: {}]   ;;  %s11955_s13 = inlined_call_operand.vmem [shape: f32[1,1024], index: 13, kind: input, shape index: {}]   ;;  %s11956_s14 = inlined_call_operand.hbm [shape: f32[128,256], index: 14, kind: output, shape index: {}]  }
   0x1   :  { %20 = vsyncpa [#allocation10], 0  ;;  %s5911_s29 = smov [#allocation8]   ;;  %s5853_s17 = scalar_lea.hbm %s11948_s6, 16 }
   0x2   :  { %s29_s30 = sshll.u32 %s5911_s29, 4  ;;  %p5854_p0 = scmp.ne.s32.totalorder %s11948_s6, %s5853_s17  ;;  %s30_s30 = int_to_ptr.vmem [resolvable:$true] %s29_s30 }
   0x3   :  { %p5857_p1 = scmp.lt.u32.totalorder %s5853_s17, %s11948_s6 }
   0x5   :  { %p5859_p2 = pnand %p5857_p1, %p5854_p0 }
   0x7   :  { %5862 = shalt.err (!%p5859_p2)
}
   0x8   :  { %s5863_s22 = scalar_lea.vmem %s30_s30, 16  ;;  %s5867_s23 = scalar_lea.vmem %s30_s30, 32 }
   0x9   :  { %p5864_p3 = scmp.ne.s32.totalorder %s30_s30, %s5863_s22  ;;  %p5868_p4 = scmp.lt.s32.totalorder %s30_s30, %s30_s30 }
   0xa   :  { %p5869_p5 = scmp.lt.s32.totalorder %s5867_s23, %s5863_s22 }
   0xc   :  { %p5870_p6 = por %p5869_p5, %p5868_p4 }
   0xe   :  { %p5871_p7 = pnand %p5870_p6, %p5864_p3 }
  0x10   :  { %5874 = shalt.err (!%p5871_p7)
}
  0x11   :  { %32 = dma.hbm_to_vmem [thread:$0]  %s11948_s6, 16, %s30_s30, [#allocation9]  }
  0x12   :  { %5897 = dma.done.wait [#allocation9], 16  }
  0x13   :  { %5898 = vsyncadd [#allocation9], 4294967280  ;;  %v6023_v0 = vld [vmem:[%s11943_s1] sm:$0xff]  ;;  %v6028_v1 = vld [vmem:[%s11943_s1 + $0x8] sm:$0xff] }
  0x14   :  { %v6033_v2 = vld [vmem:[%s11943_s1 + $0x10] sm:$0xff]  ;;  %v6038_v3 = vld [vmem:[%s11943_s1 + $0x18] sm:$0xff]  ;;  %v6043_v4 = vld [vmem:[%s11943_s1 + $0x20] sm:$0xff] }
  0x15   :  { %v6048_v5 = vld [vmem:[%s11943_s1 + $0x28] sm:$0xff]  ;;  %v6053_v6 = vld [vmem:[%s11943_s1 + $0x30] sm:$0xff]  ;;  %v6058_v7 = vld [vmem:[%s11943_s1 + $0x38] sm:$0xff] }
  0x16   :  { %106 = vsyncadd [#allocation7], 1024  ;;  %v125_v8 = vld [vmem:[%s11944_s2] sm:$0xf]  ;;  %v127_v9 = vld [vmem:[%s11944_s2 + $0x8] sm:$0xf] }
  0x17   :  { %126 = vst [vmem:[#allocation3] sm:$0xf] %v125_v8  ;;  %128 = vst [vmem:[#allocation3 + $0x4] sm:$0xf] %v127_v9  ;;  %v129_v10 = vld [vmem:[%s11944_s2 + $0x4] sm:$0xf] }
  0x18   :  { %v131_v11 = vld [vmem:[%s11944_s2 + $0xc] sm:$0xff]   ;;  %v135_v12 = vld [vmem:[%s11944_s2 + $0x18] sm:$0xf]  ;;  %130 = vst [vmem:[#allocation3 + $0x8] sm:$0xf] %v129_v10  ;;  %v139_v14 = vld [vmem:[%s11944_s2 + $0x1c] sm:$0xff]  }
  0x19   :  { %132 = vst [vmem:[#allocation3 + $0xc] sm:$0xff] %v131_v11   ;;  %136 = vst [vmem:[#allocation3 + $0x14] sm:$0xf] %v135_v12  ;;  %v137_v13 = vld [vmem:[%s11944_s2 + $0x14] sm:$0xf]  ;;  %v147_v17 = vld [vmem:[%s11944_s2 + $0x2c] sm:$0xff]  }
  0x1a   :  { %v143_v15 = vld [vmem:[%s11944_s2 + $0x28] sm:$0xf]  ;;  %138 = vst [vmem:[#allocation3 + $0x18] sm:$0xf] %v137_v13  ;;  %140 = vst [vmem:[#allocation3 + $0x1c] sm:$0xff] %v139_v14   ;;  %v155_v20 = vld [vmem:[%s11944_s2 + $0x3c] sm:$0xff]  }
  0x1b   :  { %144 = vst [vmem:[#allocation3 + $0x24] sm:$0xf] %v143_v15  ;;  %v145_v16 = vld [vmem:[%s11944_s2 + $0x24] sm:$0xf]  ;;  %v151_v18 = vld [vmem:[%s11944_s2 + $0x38] sm:$0xf] }
  0x1c   :  { %146 = vst [vmem:[#allocation3 + $0x28] sm:$0xf] %v145_v16  ;;  %148 = vst [vmem:[#allocation3 + $0x2c] sm:$0xff] %v147_v17   ;;  %v153_v19 = vld [vmem:[%s11944_s2 + $0x34] sm:$0xf]  ;;  %v163_v23 = vld [vmem:[%s11944_s2 + $0x4c] sm:$0xff]  }
  0x1d   :  { %152 = vst [vmem:[#allocation3 + $0x34] sm:$0xf] %v151_v18  ;;  %v159_v21 = vld [vmem:[%s11944_s2 + $0x48] sm:$0xf]  ;;  %154 = vst [vmem:[#allocation3 + $0x38] sm:$0xf] %v153_v19 }
  0x1e   :  { %156 = vst [vmem:[#allocation3 + $0x3c] sm:$0xff] %v155_v20   ;;  %160 = vst [vmem:[#allocation3 + $0x44] sm:$0xf] %v159_v21  ;;  %v161_v22 = vld [vmem:[%s11944_s2 + $0x44] sm:$0xf]  ;;  %v171_v26 = vld [vmem:[%s11944_s2 + $0x5c] sm:$0xff]  }
  0x1f   :  { %v167_v24 = vld [vmem:[%s11944_s2 + $0x58] sm:$0xf]  ;;  %162 = vst [vmem:[#allocation3 + $0x48] sm:$0xf] %v161_v22  ;;  %164 = vst [vmem:[#allocation3 + $0x4c] sm:$0xff] %v163_v23   ;;  %v179_v29 = vld [vmem:[%s11944_s2 + $0x6c] sm:$0xff]  }
  0x20   :  { %168 = vst [vmem:[#allocation3 + $0x54] sm:$0xf] %v167_v24  ;;  %v169_v25 = vld [vmem:[%s11944_s2 + $0x54] sm:$0xf]  ;;  %v175_v27 = vld [vmem:[%s11944_s2 + $0x68] sm:$0xf] }
  0x21   :  { %170 = vst [vmem:[#allocation3 + $0x58] sm:$0xf] %v169_v25  ;;  %172 = vst [vmem:[#allocation3 + $0x5c] sm:$0xff] %v171_v26   ;;  %v177_v28 = vld [vmem:[%s11944_s2 + $0x64] sm:$0xf] }
  0x22   :  { %176 = vst [vmem:[#allocation3 + $0x64] sm:$0xf] %v175_v27  ;;  %v183_v30 = vld [vmem:[%s11944_s2 + $0x78] sm:$0xf]  ;;  %178 = vst [vmem:[#allocation3 + $0x68] sm:$0xf] %v177_v28 }
  0x23   :  { %180 = vst [vmem:[#allocation3 + $0x6c] sm:$0xff] %v179_v29   ;;  %184 = vst [vmem:[#allocation3 + $0x74] sm:$0xf] %v183_v30  ;;  %v185_v31 = vld [vmem:[%s11944_s2 + $0x74] sm:$0xf] }
  0x24   :  { %v187_v32 = vld [vmem:[%s11944_s2 + $0x7c] sm:$0xf]  ;;  %186 = vst [vmem:[#allocation3 + $0x78] sm:$0xf] %v185_v31 }
  0x25   :  { %188 = vst [vmem:[#allocation3 + $0x7c] sm:$0xf] %v187_v32 }
  0x26   :  { %283 = vsyncadd [#allocation7 + $0x1], 2048  ;;  %s289_s21 = sld [smem:[#allocation0]]   ;;  %s5912_s22 = smov [#allocation4]   ;;  %v5435_v33 = vpack.c.bf16 %v6028_v1, %v6023_v0  ;;  %v5439_v34 = vpack.c.bf16 %v6038_v3, %v6033_v2 }
  0x27   :  { %s297_s23 = sshll.u32 %s5912_s22, 4  ;;  %s5913_s24 = smov 512   ;;  %s298_s23 = int_to_ptr.vmem [resolvable:$true] %s297_s23 }
  0x28   :  { %301 = sst [smem:[#allocation15]] %s5913_s24  ;;  %s5914_s25 = smov 4  }
  0x29   :  { %303 = sst [smem:[#allocation15 + $0x1]] %s5913_s24  ;;  %s5915_s26 = smov 64  }
  0x2a   :  { %305 = sst [smem:[#allocation15 + $0x2]] %s5914_s25  ;;  %s5916_s2 = smov 128  }
  0x2b   :  { %307 = sst [smem:[#allocation15 + $0x3]] %s5915_s26  ;;  %s5917_s29 = smov 2  }
  0x2c   :  { %s5343_s27 = sshll.u32 %s289_s21, 26  ;;  %309 = sst [smem:[#allocation15 + $0x4]] %s5916_s2 }
  0x2d   :  { %s6140_s28 = sadd.s32 134217728, %s5343_s27  ;;  %311 = sst [smem:[#allocation15 + $0x5]] %s5917_s29 }
  0x2e   :  { %s5918_s15 = smov 256   ;;  %315 = sst [smem:[#allocation15 + $0x7]] %s5915_s26 }
  0x2f   :  { %313 = sst [smem:[#allocation15 + $0x6]] %s5918_s15  ;;  %s5919_s16 = smov [#allocation7 + $0x2]  }
  0x30   :  { %317 = sst [smem:[#allocation15 + $0x8]] %s5914_s25  ;;  %s5920_s17 = smov [#allocation14]  }
  0x31   :  { %319 = dma.general %s11945_s3, 8192, %s298_s23, %s5919_s16, %s5920_s17, [#allocation15], %s6140_s28, 0  }
  0x32   :  { %s5921_s6 = smov 1024   ;;  %s5922_s30 = smov 8  }
  0x33   :  { %336 = sst [smem:[#allocation17]] %s5921_s6  ;;  %s5923_s19 = smov [#allocation5]  }
  0x34   :  { %338 = sst [smem:[#allocation17 + $0x1]] %s5921_s6  ;;  %s332_s20 = sshll.u32 %s5923_s19, 4  ;;  %s333_s20 = int_to_ptr.vmem [resolvable:$true] %s332_s20 }
  0x35   :  { %340 = sst [smem:[#allocation17 + $0x2]] %s5922_s30  ;;  %s5924_s3 = smov [#allocation7 + $0x3]  }
  0x36   :  { %342 = sst [smem:[#allocation17 + $0x3]] %s5915_s26  ;;  %s5925_s21 = smov [#allocation16]  }
  0x37   :  { %344 = sst [smem:[#allocation17 + $0x4]] %s5916_s2  ;;  %s5926_s27 = smov [#allocation6]  }
  0x38   :  { %346 = sst [smem:[#allocation17 + $0x5]] %s5917_s29  ;;  %s367_s16 = sshll.u32 %s5926_s27, 4  ;;  %s368_s16 = int_to_ptr.vmem [resolvable:$true] %s367_s16 }
  0x39   :  { %348 = sst [smem:[#allocation17 + $0x6]] %s5913_s24  ;;  %s5928_s24 = smov [#allocation18]  }
  0x3a   :  { %350 = sst [smem:[#allocation17 + $0x7]] %s5915_s26 }
  0x3b   :  { %352 = sst [smem:[#allocation17 + $0x8]] %s5914_s25 }
  0x3c   :  { %354 = dma.general %s11946_s4, 32768, %s333_s20, %s5924_s3, %s5925_s21, [#allocation17], %s6140_s28, 0  }
  0x3d   :  { %371 = sst [smem:[#allocation19]] %s5918_s15  ;;  %s5927_s4 = smov [#allocation7 + $0x4]  }
  0x3e   :  { %373 = sst [smem:[#allocation19 + $0x1]] %s5918_s15 }
  0x3f   :  { %375 = sst [smem:[#allocation19 + $0x2]] %s5917_s29 }
  0x40   :  { %377 = sst [smem:[#allocation19 + $0x3]] %s5915_s26 }
  0x41   :  { %379 = sst [smem:[#allocation19 + $0x4]] %s5916_s2 }
  0x42   :  { %381 = sst [smem:[#allocation19 + $0x5]] %s5917_s29 }
  0x43   :  { %383 = sst [smem:[#allocation19 + $0x6]] %s5916_s2 }
  0x44   :  { %385 = sst [smem:[#allocation19 + $0x7]] %s5915_s26 }
  0x45   :  { %387 = sst [smem:[#allocation19 + $0x8]] %s5914_s25 }
  0x46   :  { %389 = dma.general %s11947_s5, 16384, %s368_s16, %s5927_s4, %s5928_s24, [#allocation19], %s6140_s28, 0  }
  0x47   :  { %5899 = dma.done.wait [#allocation7], 1024 }
  0x48   :  { %5900 = vsyncadd [#allocation7], 4294966272  ;;  %5436 = vmatprep.subr.bf16.mxu0 %v5435_v33  ;;  %v5443_v35 = vpack.c.bf16 %v6048_v5, %v6043_v4  ;;  %vm424_vm0 = vcmask 523264   ;;  %v393_v36 = vld [vmem:[%s11942_s0] sm:$0xff]  ;;  %v5447_v37 = vpack.c.bf16 %v6058_v7, %v6053_v6  ;;  %v394_v38 = vld [vmem:[%s11942_s0 + $0x8] sm:$0xff] }
  0x49   :  { %5438 = vmatpush3.bf16.msra.mxu0 %v5435_v33  ;;  %5411 = vmatprep.mubr.msk.f32.mxu0 %vm424_vm0, %v393_v36  ;;  %v395_v39 = vld [vmem:[%s11942_s0 + $0x10] sm:$0xff]  ;;  %v396_v40 = vld [vmem:[%s11942_s0 + $0x18] sm:$0xff]  ;;  %v397_v41 = vld [vmem:[%s11942_s0 + $0x20] sm:$0xff] }
  0x4a   :  { %5440 = vmatprep.subr.bf16.mxu0 %v5439_v34  ;;  %v398_v42 = vld [vmem:[%s11942_s0 + $0x28] sm:$0xff]  ;;  %v399_v43 = vld [vmem:[%s11942_s0 + $0x30] sm:$0xff]  ;;  %v400_v44 = vld [vmem:[%s11942_s0 + $0x38] sm:$0xff] }
  0x4b   :  { %v401_v45 = vld [vmem:[%s11942_s0 + $0x40] sm:$0xff]  ;;  %v402_v46 = vld [vmem:[%s11942_s0 + $0x48] sm:$0xff]  ;;  %v403_v47 = vld [vmem:[%s11942_s0 + $0x50] sm:$0xff] }
  0x4c   :  { %v404_v48 = vld [vmem:[%s11942_s0 + $0x58] sm:$0xff]  ;;  %v405_v49 = vld [vmem:[%s11942_s0 + $0x60] sm:$0xff]  ;;  %v406_v50 = vld [vmem:[%s11942_s0 + $0x68] sm:$0xff] }
  0x4d   :  { %5442 = vmatpush3.bf16.msra.mxu0 %v5439_v34  ;;  %v407_v51 = vld [vmem:[%s11942_s0 + $0x70] sm:$0xff]  ;;  %v408_v52 = vld [vmem:[%s11942_s0 + $0x78] sm:$0xff]  ;;  %v6245_v53 = vld [vmem:[#allocation8] ss:$0 sm:$0xff] }
  0x4e   :  { %5444 = vmatprep.subr.bf16.mxu0 %v5443_v35 }
  0x51   :  { %5446 = vmatpush3.bf16.msra.mxu0 %v5443_v35 }
  0x52   :  { %5448 = vmatprep.subr.bf16.mxu0 %v5447_v37 }
  0x55   :  { %5450 = vmatpush3.bf16.msra.mxu0 %v5447_v37 }
  0x58   :  { %5412 = vmatmul.mubr.msk.f32.vlgmr.msra.gmra.mrb[0].mxu0 %vm424_vm0, %v394_v38 }
  0x59   :  { %5414 = vmatprep.mubr.msk.f32.mxu0 %vm424_vm0, %v395_v39 }
  0x5c   :  { %5415 = vmatmul.mubr.msk.f32.gmra.mrb[2].mxu0 %vm424_vm0, %v396_v40 }
  0x5d   :  { %5417 = vmatprep.mubr.msk.f32.mxu0 %vm424_vm0, %v397_v41 }
  0x60   :  { %5418 = vmatmul.mubr.msk.f32.gmra.mrb[4].mxu0 %vm424_vm0, %v398_v42 }
  0x61   :  { %5420 = vmatprep.mubr.msk.f32.mxu0 %vm424_vm0, %v399_v43 }
  0x64   :  { %5421 = vmatmul.mubr.msk.f32.gmra.mrb[6].mxu0 %vm424_vm0, %v400_v44 }
  0x65   :  { %5423 = vmatprep.mubr.msk.f32.mxu0 %vm424_vm0, %v401_v45 }
  0x68   :  { %5424 = vmatmul.mubr.msk.f32.gmra.mrb[8].mxu0 %vm424_vm0, %v402_v46 }
  0x69   :  { %5426 = vmatprep.mubr.msk.f32.mxu0 %vm424_vm0, %v403_v47 }
  0x6c   :  { %5427 = vmatmul.mubr.msk.f32.gmra.mrb[10].mxu0 %vm424_vm0, %v404_v48 }
  0x6d   :  { %5429 = vmatprep.mubr.msk.f32.mxu0 %vm424_vm0, %v405_v49 }
  0x70   :  { %5430 = vmatmul.mubr.msk.f32.gmra.mrb[12].mxu0 %vm424_vm0, %v406_v50 }
  0x71   :  { %5432 = vmatprep.mubr.msk.f32.mxu0 %vm424_vm0, %v407_v51 }
  0x74   :  { %5433 = vmatmul.mubr.msk.f32.gmra.mrb[14].mxu0 %vm424_vm0, %v408_v52 }
 0x12b   :  { %v5413_v54 = vpop.f32.mrb[0].mxu0 }
 0x12c   :  { %v545_v55 = vadd.f32 %v5413_v54, %v6245_v53  ;;  %v539_v56 = vpop.f32.mrb[1].mxu0 }
 0x12d   :  { %v540_v57 = vadd.f32 %v6245_v53, %v539_v56 }
 0x12e   :  { %v619_v58 = vmul.f32 0.2, %v545_v55 }
 0x12f   :  { %v618_v59 = vmul.f32 0.2, %v540_v57  ;;  %v5416_v60 = vpop.f32.mrb[2].mxu0 }
 0x130   :  { %v635_v61 = vmax.f32 %v545_v55, %v619_v58  ;;  %v555_v62 = vadd.f32 %v5416_v60, %v6245_v53  ;;  %v549_v63 = vpop.f32.mrb[3].mxu0 }
 0x131   :  { %v634_v0 = vmax.f32 %v540_v57, %v618_v59  ;;  %v550_v1 = vadd.f32 %v6245_v53, %v549_v63 }
 0x132   :  { %v621_v2 = vmul.f32 0.2, %v555_v62 }
 0x133   :  { %v6251_v3 = vpack.c.bf16 %v635_v61, %v634_v0  ;;  %v620_v4 = vmul.f32 0.2, %v550_v1  ;;  %v5419_v5 = vpop.f32.mrb[4].mxu0 }
 0x134   :  { %v637_v6 = vmax.f32 %v555_v62, %v621_v2  ;;  %v565_v7 = vadd.f32 %v5419_v5, %v6245_v53  ;;  %v559_v8 = vpop.f32.mrb[5].mxu0 }
 0x135   :  { %v636_v9 = vmax.f32 %v550_v1, %v620_v4  ;;  %v560_v10 = vadd.f32 %v6245_v53, %v559_v8 }
 0x136   :  { %v623_v11 = vmul.f32 0.2, %v565_v7 }
 0x137   :  { %v6255_v12 = vpack.c.bf16 %v637_v6, %v636_v9  ;;  %v622_v13 = vmul.f32 0.2, %v560_v10  ;;  %v5422_v14 = vpop.f32.mrb[6].mxu0 }
 0x138   :  { %v639_v15 = vmax.f32 %v565_v7, %v623_v11  ;;  %v575_v16 = vadd.f32 %v5422_v14, %v6245_v53  ;;  %v569_v17 = vpop.f32.mrb[7].mxu0 }
 0x139   :  { %v638_v18 = vmax.f32 %v560_v10, %v622_v13  ;;  %v570_v19 = vadd.f32 %v6245_v53, %v569_v17 }
 0x13a   :  { %v625_v20 = vmul.f32 0.2, %v575_v16 }
 0x13b   :  { %v6259_v21 = vpack.c.bf16 %v639_v15, %v638_v18  ;;  %v624_v22 = vmul.f32 0.2, %v570_v19  ;;  %v5425_v23 = vpop.f32.mrb[8].mxu0 }
 0x13c   :  { %v641_v24 = vmax.f32 %v575_v16, %v625_v20  ;;  %v585_v25 = vadd.f32 %v5425_v23, %v6245_v53  ;;  %v579_v26 = vpop.f32.mrb[9].mxu0 }
 0x13d   :  { %v640_v27 = vmax.f32 %v570_v19, %v624_v22  ;;  %v580_v28 = vadd.f32 %v6245_v53, %v579_v26 }
 0x13e   :  { %v627_v29 = vmul.f32 0.2, %v585_v25 }
 0x13f   :  { %v6263_v30 = vpack.c.bf16 %v641_v24, %v640_v27  ;;  %v626_v31 = vmul.f32 0.2, %v580_v28  ;;  %v5428_v32 = vpop.f32.mrb[10].mxu0 }
 0x140   :  { %v643_v33 = vmax.f32 %v585_v25, %v627_v29  ;;  %v595_v34 = vadd.f32 %v5428_v32, %v6245_v53  ;;  %v589_v35 = vpop.f32.mrb[11].mxu0 }
 0x141   :  { %v642_v36 = vmax.f32 %v580_v28, %v626_v31  ;;  %v590_v37 = vadd.f32 %v6245_v53, %v589_v35 }
 0x142   :  { %v629_v38 = vmul.f32 0.2, %v595_v34 }
 0x143   :  { %v6267_v39 = vpack.c.bf16 %v643_v33, %v642_v36  ;;  %v628_v40 = vmul.f32 0.2, %v590_v37  ;;  %v5431_v41 = vpop.f32.mrb[12].mxu0 }
 0x144   :  { %v645_v42 = vmax.f32 %v595_v34, %v629_v38  ;;  %v605_v43 = vadd.f32 %v5431_v41, %v6245_v53  ;;  %v599_v44 = vpop.f32.mrb[13].mxu0 }
 0x145   :  { %v644_v45 = vmax.f32 %v590_v37, %v628_v40  ;;  %v600_v46 = vadd.f32 %v6245_v53, %v599_v44 }
 0x146   :  { %v631_v47 = vmul.f32 0.2, %v605_v43 }
 0x147   :  { %v655_v48 = vpack.c.bf16 %v645_v42, %v644_v45  ;;  %v630_v49 = vmul.f32 0.2, %v600_v46  ;;  %v5434_v50 = vpop.f32.mrb[14].mxu0 }
 0x148   :  { %v647_v51 = vmax.f32 %v605_v43, %v631_v47  ;;  %v615_v52 = vadd.f32 %v5434_v50, %v6245_v53  ;;  %v609_v54 = vpop.f32.mrb[15].mxu0 }
 0x149   :  { %v646_v55 = vmax.f32 %v600_v46, %v630_v49  ;;  %v610_v56 = vadd.f32 %v6245_v53, %v609_v54 }
 0x14a   :  { %v633_v57 = vmul.f32 0.2, %v615_v52 }
 0x14b   :  { %v656_v58 = vpack.c.bf16 %v647_v51, %v646_v55  ;;  %v632_v59 = vmul.f32 0.2, %v610_v56 }
 0x14c   :  { %v649_v60 = vmax.f32 %v615_v52, %v633_v57 }
 0x14d   :  { %v648_v61 = vmax.f32 %v610_v56, %v632_v59 }
 0x14f   :  { %v657_v62 = vpack.c.bf16 %v649_v60, %v648_v61 }
 0x150   :  { %5901 = dma.done.wait [#allocation7 + $0x1], 2048 }
 0x151   :  { %5902 = vsyncadd [#allocation7 + $0x1], 4294965248  ;;  %v5929_v63 = vmov 0   ;;  %v663_v0 = vld [vmem:[#allocation3 + $0x8] sm:$0xff]  ;;  %v662_v1 = vld [vmem:[#allocation3] sm:$0xff] }
 0x152   :  { %710 = vmatprep.mubr.bf16.mxu1 %v5929_v63  ;;  %v665_v2 = vld [vmem:[#allocation3 + $0x18] sm:$0xff]  ;;  %678 = vmatprep.subr.bf16.mxu1 %v663_v0  ;;  %v664_v4 = vld [vmem:[#allocation3 + $0x10] sm:$0xff]  ;;  %v667_v5 = vld [vmem:[#allocation3 + $0x28] sm:$0xff] }
 0x153   :  { %679 = vmatpush1.bf16.msra.mxu1 %v662_v1  ;;  %v666_v53 = vld [vmem:[#allocation3 + $0x20] sm:$0xff]  ;;  %v669_v6 = vld [vmem:[#allocation3 + $0x38] sm:$0xff]  ;;  %v668_v7 = vld [vmem:[#allocation3 + $0x30] sm:$0xff] }
 0x154   :  { %680 = vmatprep.subr.bf16.mxu1 %v665_v2  ;;  %v671_v8 = vld [vmem:[#allocation3 + $0x48] sm:$0xff]  ;;  %v670_v9 = vld [vmem:[#allocation3 + $0x40] sm:$0xff]  ;;  %v673_v10 = vld [vmem:[#allocation3 + $0x58] sm:$0xff] }
 0x155   :  { %v672_v11 = vld [vmem:[#allocation3 + $0x50] sm:$0xff]  ;;  %v675_v13 = vld [vmem:[#allocation3 + $0x68] sm:$0xff]  ;;  %v674_v14 = vld [vmem:[#allocation3 + $0x60] sm:$0xff] }
 0x156   :  { %v677_v15 = vld [vmem:[#allocation3 + $0x78] sm:$0xff]  ;;  %v676_v16 = vld [vmem:[#allocation3 + $0x70] sm:$0xff] }
 0x157   :  { %681 = vmatpush1.bf16.msra.mxu1 %v664_v4 }
 0x158   :  { %682 = vmatprep.subr.bf16.mxu1 %v667_v5 }
 0x15b   :  { %683 = vmatpush1.bf16.msra.mxu1 %v666_v53 }
 0x15c   :  { %684 = vmatprep.subr.bf16.mxu1 %v669_v6 }
 0x15f   :  { %685 = vmatpush1.bf16.msra.mxu1 %v668_v7 }
 0x160   :  { %686 = vmatprep.subr.bf16.mxu1 %v671_v8 }
 0x163   :  { %687 = vmatpush1.bf16.msra.mxu1 %v670_v9 }
 0x164   :  { %688 = vmatprep.subr.bf16.mxu1 %v673_v10 }
 0x167   :  { %689 = vmatpush1.bf16.msra.mxu1 %v672_v11 }
 0x168   :  { %690 = vmatprep.subr.bf16.mxu1 %v675_v13 }
 0x16b   :  { %691 = vmatpush1.bf16.msra.mxu1 %v674_v14 }
 0x16c   :  { %692 = vmatprep.subr.bf16.mxu1 %v677_v15 }
 0x16f   :  { %693 = vmatpush1.bf16.msra.mxu1 %v676_v16 }
 0x172   :  { %711 = vmatmul.mubr.bf16.vlgmr.msra.gmra.mrb[0].mxu1 %v6251_v3 }
 0x173   :  { %720 = vmatprep.mubr.bf16.mxu1 %v5929_v63 }
 0x17a   :  { %721 = vmatmul.mubr.bf16.gmra.mrb[4].mxu1 %v6255_v12 }
 0x17b   :  { %730 = vmatprep.mubr.bf16.mxu1 %v5929_v63 }
 0x182   :  { %731 = vmatmul.mubr.bf16.gmra.mrb[8].mxu1 %v6259_v21 }
 0x183   :  { %740 = vmatprep.mubr.bf16.mxu1 %v5929_v63 }
 0x18a   :  { %741 = vmatmul.mubr.bf16.gmra.mrb[12].mxu1 %v6263_v30 }
 0x18b   :  { %750 = vmatprep.mubr.bf16.mxu1 %v5929_v63 }
 0x192   :  { %751 = vmatmul.mubr.bf16.gmra.mrb[16].mxu1 %v6267_v39 }
 0x193   :  { %760 = vmatprep.mubr.bf16.mxu1 %v5929_v63 }
 0x19a   :  { %761 = vmatmul.mubr.bf16.gmra.mrb[20].mxu1 %v655_v48 }
 0x19b   :  { %770 = vmatprep.mubr.bf16.mxu1 %v5929_v63 }
 0x1a2   :  { %771 = vmatmul.mubr.bf16.gmra.mrb[24].mxu1 %v656_v58 }
 0x1a3   :  { %780 = vmatprep.mubr.bf16.mxu1 %v5929_v63 }
 0x1aa   :  { %781 = vmatmul.mubr.bf16.gmra.mrb[28].mxu1 %v657_v62 }
 0x245   :  { %v6278_v17 = vpop.f32.mrb[0].mxu1 }
 0x246   :  { %v6280_v3 = vpop.f32.mrb[1].mxu1 }
 0x247   :  { %v6282_v12 = vpop.f32.mrb[2].mxu1 }
 0x248   :  { %v793_v18 = vadd.f32 %v6282_v12, %v6278_v17  ;;  %v6286_v19 = vpop.f32.mrb[3].mxu1 }
 0x249   :  { %v814_v20 = vadd.f32 %v6286_v19, %v6280_v3 }
 0x24d   :  { %v6290_v21 = vpop.f32.mrb[4].mxu1 }
 0x24e   :  { %v794_v22 = vadd.f32 %v793_v18, %v6290_v21  ;;  %v6293_v23 = vpop.f32.mrb[5].mxu1 }
 0x24f   :  { %v815_v24 = vadd.f32 %v814_v20, %v6293_v23  ;;  %v6296_v25 = vpop.f32.mrb[6].mxu1 }
 0x250   :  { %v795_v26 = vadd.f32 %v794_v22, %v6296_v25  ;;  %v6299_v27 = vpop.f32.mrb[7].mxu1 }
 0x251   :  { %v816_v28 = vadd.f32 %v815_v24, %v6299_v27 }
 0x255   :  { %v6302_v29 = vpop.f32.mrb[8].mxu1 }
 0x256   :  { %v796_v30 = vadd.f32 %v795_v26, %v6302_v29  ;;  %v6305_v31 = vpop.f32.mrb[9].mxu1 }
 0x257   :  { %v817_v32 = vadd.f32 %v816_v28, %v6305_v31  ;;  %v736_v33 = vpop.f32.mrb[10].mxu1 }
 0x258   :  { %v797_v34 = vadd.f32 %v796_v30, %v736_v33  ;;  %v6308_v35 = vpop.f32.mrb[11].mxu1 }
 0x259   :  { %v818_v36 = vadd.f32 %v817_v32, %v6308_v35 }
 0x25d   :  { %v742_v37 = vpop.f32.mrb[12].mxu1 }
 0x25e   :  { %v798_v38 = vadd.f32 %v797_v34, %v742_v37  ;;  %v6311_v39 = vpop.f32.mrb[13].mxu1 }
 0x25f   :  { %v819_v40 = vadd.f32 %v818_v36, %v6311_v39  ;;  %v746_v41 = vpop.f32.mrb[14].mxu1 }
 0x260   :  { %v799_v42 = vadd.f32 %v798_v38, %v746_v41  ;;  %v6314_v43 = vpop.f32.mrb[15].mxu1 }
 0x261   :  { %v820_v44 = vadd.f32 %v819_v40, %v6314_v43 }
 0x265   :  { %v752_v45 = vpop.f32.mrb[16].mxu1 }
 0x266   :  { %v800_v46 = vadd.f32 %v799_v42, %v752_v45  ;;  %v6317_v47 = vpop.f32.mrb[17].mxu1 }
 0x267   :  { %v821_v48 = vadd.f32 %v820_v44, %v6317_v47  ;;  %v756_v49 = vpop.f32.mrb[18].mxu1 }
 0x268   :  { %v801_v50 = vadd.f32 %v800_v46, %v756_v49  ;;  %v6320_v51 = vpop.f32.mrb[19].mxu1 }
 0x269   :  { %v822_v52 = vadd.f32 %v821_v48, %v6320_v51 }
 0x26d   :  { %v762_v54 = vpop.f32.mrb[20].mxu1 }
 0x26e   :  { %v802_v55 = vadd.f32 %v801_v50, %v762_v54  ;;  %v6323_v56 = vpop.f32.mrb[21].mxu1 }
 0x26f   :  { %v823_v57 = vadd.f32 %v822_v52, %v6323_v56  ;;  %v766_v58 = vpop.f32.mrb[22].mxu1 }
 0x270   :  { %v803_v59 = vadd.f32 %v802_v55, %v766_v58  ;;  %v6326_v60 = vpop.f32.mrb[23].mxu1 }
 0x271   :  { %v824_v61 = vadd.f32 %v823_v57, %v6326_v60 }
 0x275   :  { %v772_v62 = vpop.f32.mrb[24].mxu1 }
 0x276   :  { %v804_v63 = vadd.f32 %v803_v59, %v772_v62  ;;  %v774_v0 = vpop.f32.mrb[25].mxu1 }
 0x277   :  { %v825_v1 = vadd.f32 %v824_v61, %v774_v0  ;;  %v776_v2 = vpop.f32.mrb[26].mxu1 }
 0x278   :  { %v805_v4 = vadd.f32 %v804_v63, %v776_v2  ;;  %v778_v5 = vpop.f32.mrb[27].mxu1 }
 0x279   :  { %v826_v53 = vadd.f32 %v825_v1, %v778_v5 }
 0x27d   :  { %v782_v6 = vpop.f32.mrb[28].mxu1 }
 0x27e   :  { %v806_v7 = vadd.f32 %v805_v4, %v782_v6  ;;  %v784_v8 = vpop.f32.mrb[29].mxu1 }
 0x27f   :  { %v827_v9 = vadd.f32 %v826_v53, %v784_v8  ;;  %v786_v10 = vpop.f32.mrb[30].mxu1 }
 0x280   :  { %v807_v11 = vadd.f32 %v806_v7, %v786_v10  ;;  %v788_v13 = vpop.f32.mrb[31].mxu1 }
 0x281   :  { %v828_v14 = vadd.f32 %v827_v9, %v788_v13 }
 0x282   :  { %v808_v15 = vrot.slane %v807_v11, 4 }
 0x283   :  { %v829_v16 = vrot.slane %v828_v14, 4 }
 0x284   :  { %v809_v18 = vadd.f32 %v808_v15, %v807_v11 }
 0x285   :  { %v830_v20 = vadd.f32 %v829_v16, %v828_v14 }
 0x286   :  { %v810_v22 = vrot.slane %v809_v18, 2 }
 0x287   :  { %v831_v24 = vrot.slane %v830_v20, 2 }
 0x288   :  { %v811_v26 = vadd.f32 %v810_v22, %v809_v18 }
 0x289   :  { %v832_v28 = vadd.f32 %v831_v24, %v830_v20 }
 0x28a   :  { %v812_v30 = vrot.slane %v811_v26, 1 }
 0x28b   :  { %v833_v32 = vrot.slane %v832_v28, 1 }
 0x28c   :  { %v813_v34 = vadd.f32 %v812_v30, %v811_v26 }
 0x28d   :  { %v834_v38 = vadd.f32 %v833_v32, %v832_v28 }
 0x28e   :  { %v836_v36 = vmul.f32 0.0078125, %v813_v34 }
 0x290   :  { %v6330_v40 = vsub.f32 %v6278_v17, %v836_v36  ;;  %v6333_v42 = vsub.f32 %v6282_v12, %v836_v36  ;;  %v6336_v44 = vsub.f32 %v6290_v21, %v836_v36  ;;  %v6339_v46 = vsub.f32 %v6296_v25, %v836_v36 }
 0x291   :  { %v6342_v48 = vsub.f32 %v6302_v29, %v836_v36  ;;  %v6344_v50 = vsub.f32 %v736_v33, %v836_v36  ;;  %v6346_v52 = vsub.f32 %v742_v37, %v836_v36  ;;  %v6348_v55 = vsub.f32 %v746_v41, %v836_v36 }
 0x292   :  { %v6350_v17 = vsub.f32 %v752_v45, %v836_v36  ;;  %v6352_v57 = vsub.f32 %v756_v49, %v836_v36  ;;  %v6354_v12 = vsub.f32 %v762_v54, %v836_v36  ;;  %v6356_v21 = vsub.f32 %v766_v58, %v836_v36 }
 0x293   :  { %v6358_v59 = vsub.f32 %v772_v62, %v836_v36  ;;  %v6360_v25 = vsub.f32 %v776_v2, %v836_v36  ;;  %v6362_v29 = vsub.f32 %v782_v6, %v836_v36  ;;  %v6364_v33 = vsub.f32 %v786_v10, %v836_v36 }
 0x294   :  { %v870_v37 = vmul.f32 %v6330_v40, %v6330_v40  ;;  %v872_v41 = vmul.f32 %v6333_v42, %v6333_v42  ;;  %v837_v45 = vmul.f32 0.0078125, %v834_v38  ;;  %v874_v49 = vmul.f32 %v6336_v44, %v6336_v44 }
 0x295   :  { %v876_v54 = vmul.f32 %v6339_v46, %v6339_v46  ;;  %v886_v18 = vmul.f32 %v6350_v17, %v6350_v17  ;;  %v888_v26 = vmul.f32 %v6352_v57, %v6352_v57  ;;  %v890_v34 = vmul.f32 %v6354_v12, %v6354_v12 }
 0x296   :  { %v902_v58 = vadd.f32 %v872_v41, %v870_v37  ;;  %v6375_v61 = vsub.f32 %v6280_v3, %v837_v45  ;;  %v6378_v62 = vsub.f32 %v6286_v19, %v837_v45  ;;  %v6381_v63 = vsub.f32 %v6293_v23, %v837_v45 }
 0x297   :  { %v6384_v1 = vsub.f32 %v6299_v27, %v837_v45  ;;  %v6387_v2 = vsub.f32 %v6305_v31, %v837_v45  ;;  %v6390_v4 = vsub.f32 %v6308_v35, %v837_v45  ;;  %v6393_v53 = vsub.f32 %v6311_v39, %v837_v45 }
 0x298   :  { %v903_v3 = vadd.f32 %v902_v58, %v874_v49  ;;  %v6396_v6 = vsub.f32 %v6314_v43, %v837_v45  ;;  %v6399_v19 = vsub.f32 %v6317_v47, %v837_v45  ;;  %v6402_v23 = vsub.f32 %v6320_v51, %v837_v45 }
 0x299   :  { %v6405_v27 = vsub.f32 %v6323_v56, %v837_v45  ;;  %v6408_v31 = vsub.f32 %v6326_v60, %v837_v45  ;;  %v6410_v35 = vsub.f32 %v774_v0, %v837_v45  ;;  %v6412_v39 = vsub.f32 %v778_v5, %v837_v45 }
 0x29a   :  { %v878_v43 = vmul.f32 %v6342_v48, %v6342_v48  ;;  %v904_v7 = vadd.f32 %v903_v3, %v876_v54  ;;  %v6416_v9 = vsub.f32 %v784_v8, %v837_v45  ;;  %v6418_v47 = vsub.f32 %v788_v13, %v837_v45 }
 0x29b   :  { %v871_v51 = vmul.f32 %v6375_v61, %v6375_v61  ;;  %v873_v56 = vmul.f32 %v6378_v62, %v6378_v62  ;;  %v880_v60 = vmul.f32 %v6344_v50, %v6344_v50  ;;  %v882_v5 = vmul.f32 %v6346_v52, %v6346_v52 }
 0x29c   :  { %v905_v0 = vadd.f32 %v904_v7, %v878_v43  ;;  %v875_v8 = vmul.f32 %v6381_v63, %v6381_v63  ;;  %v884_v13 = vmul.f32 %v6348_v55, %v6348_v55  ;;  %v877_v15 = vmul.f32 %v6384_v1, %v6384_v1 }
 0x29d   :  { %v923_v11 = vadd.f32 %v873_v56, %v871_v51  ;;  %v879_v22 = vmul.f32 %v6387_v2, %v6387_v2  ;;  %v881_v30 = vmul.f32 %v6390_v4, %v6390_v4  ;;  %v883_v38 = vmul.f32 %v6393_v53, %v6393_v53 }
 0x29e   :  { %v906_v10 = vadd.f32 %v905_v0, %v880_v60  ;;  %v892_v41 = vmul.f32 %v6356_v21, %v6356_v21  ;;  %v885_v49 = vmul.f32 %v6396_v6, %v6396_v6  ;;  %v894_v58 = vmul.f32 %v6358_v59, %v6358_v59 }
 0x29f   :  { %v924_v16 = vadd.f32 %v923_v11, %v875_v8  ;;  %v887_v43 = vmul.f32 %v6399_v19, %v6399_v19  ;;  %v896_v51 = vmul.f32 %v6360_v25, %v6360_v25  ;;  %v889_v60 = vmul.f32 %v6402_v23, %v6402_v23 }
 0x2a0   :  { %v907_v14 = vadd.f32 %v906_v10, %v882_v5  ;;  %v898_v5 = vmul.f32 %v6362_v29, %v6362_v29  ;;  %v891_v8 = vmul.f32 %v6405_v27, %v6405_v27 }
 0x2a1   :  { %v925_v24 = vadd.f32 %v924_v16, %v877_v15  ;;  %v893_v15 = vmul.f32 %v6408_v31, %v6408_v31 }
 0x2a2   :  { %v908_v20 = vadd.f32 %v907_v14, %v884_v13  ;;  %v900_v13 = vmul.f32 %v6364_v33, %v6364_v33 }
 0x2a3   :  { %v926_v32 = vadd.f32 %v925_v24, %v879_v22 }
 0x2a4   :  { %v909_v28 = vadd.f32 %v908_v20, %v886_v18  ;;  %v895_v20 = vmul.f32 %v6410_v35, %v6410_v35 }
 0x2a5   :  { %v927_v37 = vadd.f32 %v926_v32, %v881_v30  ;;  %v899_v32 = vmul.f32 %v6416_v9, %v6416_v9 }
 0x2a6   :  { %v910_v36 = vadd.f32 %v909_v28, %v888_v26  ;;  %v897_v26 = vmul.f32 %v6412_v39, %v6412_v39 }
 0x2a7   :  { %v928_v54 = vadd.f32 %v927_v37, %v883_v38  ;;  %v901_v38 = vmul.f32 %v6418_v47, %v6418_v47 }
 0x2a8   :  { %v911_v45 = vadd.f32 %v910_v36, %v890_v34 }
 0x2a9   :  { %v929_v7 = vadd.f32 %v928_v54, %v885_v49 }
 0x2aa   :  { %v912_v3 = vadd.f32 %v911_v45, %v892_v41 }
 0x2ab   :  { %v930_v0 = vadd.f32 %v929_v7, %v887_v43 }
 0x2ac   :  { %v913_v56 = vadd.f32 %v912_v3, %v894_v58 }
 0x2ad   :  { %v931_v11 = vadd.f32 %v930_v0, %v889_v60 }
 0x2ae   :  { %v914_v10 = vadd.f32 %v913_v56, %v896_v51 }
 0x2af   :  { %v932_v16 = vadd.f32 %v931_v11, %v891_v8  ;;  %v5930_v8 = vmov 1966171168  }
 0x2b0   :  { %v915_v14 = vadd.f32 %v914_v10, %v898_v5  ;;  %v954_v11 = vunpack.c.l.s4 %v5930_v8 }
 0x2b1   :  { %v933_v22 = vadd.f32 %v932_v16, %v893_v15 }
 0x2b2   :  { %v916_v18 = vadd.f32 %v915_v14, %v900_v13  ;;  %v956_v13 = vlaneseq  ;;  %v955_v14 = vunpack.c.0.s8 %v954_v11 }
 0x2b3   :  { %v934_v28 = vadd.f32 %v933_v22, %v895_v20 }
 0x2b4   :  { %v917_v24 = vrot.slane %v916_v18, 4  ;;  %v6474_v15 = vshrl.u32 %v956_v13, 7 }
 0x2b5   :  { %v935_v34 = vadd.f32 %v934_v28, %v897_v26  ;;  %v791_v26 = vld [vmem:[%s11950_s8] sm:$0x3] }
 0x2b6   :  { %v918_v30 = vadd.f32 %v917_v24, %v916_v18  ;;  %12525 = vst [vmem:[#allocation27_spill] sm:$0xff] %v6474_v15  ;;  %v6477_v18 = vsub.s32 %v955_v14, %v6474_v15 }
 0x2b7   :  { %v936_v37 = vadd.f32 %v935_v34, %v899_v32  ;;  %v6488_v32 = vsub.s32 1, %v6474_v15  ;;  %v792_v34 = vld [vmem:[%s11951_s9] sm:$0x3] }
 0x2b8   :  { %v919_v36 = vrot.slane %v918_v30, 2  ;;  %12526 = vst [vmem:[#allocation28_spill] sm:$0xff] %v6477_v18 }
 0x2b9   :  { %v937_v45 = vadd.f32 %v936_v37, %v901_v38  ;;  %12528 = vst [vmem:[#allocation30_spill] sm:$0xff] %v6488_v32 }
 0x2ba   :  { %v920_v41 = vadd.f32 %v919_v36, %v918_v30  ;;  %v6485_v30 = vsub.s32 0, %v6474_v15 }
 0x2bb   :  { %v938_v54 = vrot.slane %v937_v45, 4 }
 0x2bc   :  { %v921_v49 = vrot.slane %v920_v41, 1  ;;  %12527 = vst [vmem:[#allocation29_spill] sm:$0xff] %v6485_v30 }
 0x2bd   :  { %v939_v3 = vadd.f32 %v938_v54, %v937_v45  ;;  %v6499_v45 = vrot.slane %v792_v34, %v6488_v32 }
 0x2be   :  { %v922_v58 = vadd.f32 %v921_v49, %v920_v41  ;;  %v6496_v41 = vrot.slane %v792_v34, %v6485_v30 }
 0x2bf   :  { %v940_v43 = vrot.slane %v939_v3, 2 }
 0x2c0   :  { %v944_v7 = vmul.f32 0.0078125, %v922_v58 }
 0x2c1   :  { %v941_v51 = vadd.f32 %v940_v43, %v939_v3 }
 0x2c2   :  { %v946_v60 = vadd.f32 0.8, %v944_v7 }
 0x2c3   :  { %v942_v56 = vrot.slane %v941_v51, 1 }
 0x2c4   :  { %5761 = vrsqrt.f32 %v946_v60 }
 0x2c5   :  { %v943_v0 = vadd.f32 %v942_v56, %v941_v51 }
 0x2c7   :  { %v945_v5 = vmul.f32 0.0078125, %v943_v0 }
 0x2c9   :  { %v947_v10 = vadd.f32 0.8, %v945_v5 }
 0x2cb   :  { %5763 = vrsqrt.f32 %v947_v10 }
 0x2ce   :  { %v5762_v16 = vpop.eup %5761 }
 0x2d5   :  { %v5764_v20 = vpop.eup %5763 }
 0x2d6   :  { %v952_v22 = vcombine.low %v5762_v16, %v5764_v20 }
 0x2d8   :  { %v959_v24 = vrot.slane %v952_v22, %v6477_v18 }
 0x2da   :  { %v966_v28 = vrot.slane %v959_v24, %v6477_v18 }
 0x2dc   :  { %v968_v36 = vmul.f32 %v966_v28, %v791_v26 }
 0x2de   :  { %v973_v38 = vrot.slane %v968_v36, %v6485_v30  ;;  %v977_v37 = vrot.slane %v968_v36, %v6488_v32 }
 0x2e0   :  { %v980_v49 = vmul.f32 %v973_v38, %v6330_v40  ;;  %v981_v54 = vmul.f32 %v977_v37, %v6375_v61  ;;  %v982_v58 = vmul.f32 %v973_v38, %v6333_v42  ;;  %v983_v3 = vmul.f32 %v977_v37, %v6378_v62 }
 0x2e1   :  { %v984_v43 = vmul.f32 %v973_v38, %v6336_v44  ;;  %v985_v7 = vmul.f32 %v977_v37, %v6381_v63  ;;  %v986_v51 = vmul.f32 %v973_v38, %v6339_v46  ;;  %v987_v56 = vmul.f32 %v977_v37, %v6384_v1 }
 0x2e2   :  { %v988_v60 = vmul.f32 %v973_v38, %v6342_v48  ;;  %v989_v0 = vmul.f32 %v977_v37, %v6387_v2  ;;  %v990_v40 = vmul.f32 %v973_v38, %v6344_v50  ;;  %v991_v61 = vmul.f32 %v977_v37, %v6390_v4 }
 0x2e3   :  { %v992_v42 = vmul.f32 %v973_v38, %v6346_v52  ;;  %v993_v62 = vmul.f32 %v977_v37, %v6393_v53  ;;  %v994_v44 = vmul.f32 %v973_v38, %v6348_v55  ;;  %v995_v63 = vmul.f32 %v977_v37, %v6396_v6 }
 0x2e4   :  { %v996_v46 = vmul.f32 %v973_v38, %v6350_v17  ;;  %v997_v1 = vmul.f32 %v977_v37, %v6399_v19  ;;  %v998_v48 = vmul.f32 %v973_v38, %v6352_v57  ;;  %v999_v2 = vmul.f32 %v977_v37, %v6402_v23 }
 0x2e5   :  { %v1000_v50 = vmul.f32 %v973_v38, %v6354_v12  ;;  %v1001_v4 = vmul.f32 %v977_v37, %v6405_v27  ;;  %v1002_v52 = vmul.f32 %v973_v38, %v6356_v21  ;;  %v1003_v53 = vmul.f32 %v977_v37, %v6408_v31 }
 0x2e6   :  { %v1004_v55 = vmul.f32 %v973_v38, %v6358_v59  ;;  %v1005_v6 = vmul.f32 %v977_v37, %v6410_v35  ;;  %v1006_v17 = vmul.f32 %v973_v38, %v6360_v25  ;;  %v1007_v19 = vmul.f32 %v977_v37, %v6412_v39 }
 0x2e7   :  { %v1008_v57 = vmul.f32 %v973_v38, %v6362_v29  ;;  %v1009_v23 = vmul.f32 %v977_v37, %v6416_v9  ;;  %v1010_v12 = vmul.f32 %v973_v38, %v6364_v33  ;;  %v1011_v27 = vmul.f32 %v977_v37, %v6418_v47 }
 0x2e8   :  { %v6534_v21 = vadd.f32 %v6496_v41, %v980_v49  ;;  %v6537_v31 = vadd.f32 %v6499_v45, %v981_v54  ;;  %v6540_v59 = vadd.f32 %v6496_v41, %v982_v58  ;;  %v6543_v25 = vadd.f32 %v6499_v45, %v983_v3 }
 0x2e9   :  { %v6546_v29 = vadd.f32 %v6496_v41, %v984_v43  ;;  %v6549_v35 = vadd.f32 %v6499_v45, %v985_v7  ;;  %v6552_v33 = vadd.f32 %v6496_v41, %v986_v51  ;;  %v6555_v39 = vadd.f32 %v6499_v45, %v987_v56 }
 0x2ea   :  { %v6558_v9 = vadd.f32 %v6496_v41, %v988_v60  ;;  %v6561_v47 = vadd.f32 %v6499_v45, %v989_v0  ;;  %v6564_v5 = vadd.f32 %v6496_v41, %v990_v40  ;;  %v6567_v10 = vadd.f32 %v6499_v45, %v991_v61 }
 0x2eb   :  { %v6570_v8 = vadd.f32 %v6496_v41, %v992_v42  ;;  %v6573_v11 = vadd.f32 %v6499_v45, %v993_v62  ;;  %v6576_v13 = vadd.f32 %v6496_v41, %v994_v44  ;;  %v6579_v14 = vadd.f32 %v6499_v45, %v995_v63 }
 0x2ec   :  { %v6582_v16 = vadd.f32 %v6496_v41, %v996_v46  ;;  %v6585_v20 = vadd.f32 %v6499_v45, %v997_v1  ;;  %v6588_v22 = vadd.f32 %v6496_v41, %v998_v48  ;;  %v6591_v24 = vadd.f32 %v6499_v45, %v999_v2 }
 0x2ed   :  { %v6594_v26 = vadd.f32 %v6496_v41, %v1000_v50  ;;  %v6597_v28 = vadd.f32 %v6499_v45, %v1001_v4  ;;  %v6600_v34 = vadd.f32 %v6496_v41, %v1002_v52  ;;  %v6603_v36 = vadd.f32 %v6499_v45, %v1003_v53 }
 0x2ee   :  { %v6606_v38 = vadd.f32 %v6496_v41, %v1004_v55  ;;  %v6609_v37 = vadd.f32 %v6499_v45, %v1005_v6  ;;  %v6612_v49 = vadd.f32 %v6496_v41, %v1006_v17  ;;  %v6615_v54 = vadd.f32 %v6499_v45, %v1007_v19 }
 0x2ef   :  { %v6618_v58 = vadd.f32 %v6496_v41, %v1008_v57  ;;  %v6621_v3 = vadd.f32 %v6499_v45, %v1009_v23  ;;  %v6624_v43 = vadd.f32 %v6496_v41, %v1010_v12  ;;  %v6627_v7 = vmul.f32 0.2, %v6534_v21 }
 0x2f0   :  { %v6630_v51 = vmul.f32 0.2, %v6537_v31  ;;  %v6633_v56 = vmul.f32 0.2, %v6540_v59  ;;  %v6636_v60 = vadd.f32 %v6499_v45, %v1011_v27  ;;  %v6639_v0 = vmul.f32 0.2, %v6543_v25 }
 0x2f1   :  { %12529 = vst [vmem:[#allocation31_spill] sm:$0xff] %v6621_v3  ;;  %v6642_v40 = vmul.f32 0.2, %v6546_v29  ;;  %v6645_v41 = vmul.f32 0.2, %v6549_v35  ;;  %v1087_v44 = vmax.f32 %v6534_v21, %v6627_v7 }
 0x2f2   :  { %12530 = vst [vmem:[#allocation32_spill] sm:$0xff] %v6636_v60  ;;  %v1061_v61 = vmul.f32 0.2, %v6552_v33  ;;  %v1062_v42 = vmul.f32 0.2, %v6555_v39  ;;  %v1088_v1 = vmax.f32 %v6537_v31, %v6630_v51  ;;  %v1089_v4 = vmax.f32 %v6540_v59, %v6633_v56 }
 0x2f3   :  { %v1063_v62 = vmul.f32 0.2, %v6558_v9  ;;  %v1064_v45 = vmul.f32 0.2, %v6561_v47  ;;  %v1065_v63 = vmul.f32 0.2, %v6564_v5  ;;  %v1090_v6 = vmax.f32 %v6543_v25, %v6639_v0 }
 0x2f4   :  { %v1066_v46 = vmul.f32 0.2, %v6567_v10  ;;  %v1067_v48 = vmul.f32 0.2, %v6570_v8  ;;  %v1068_v2 = vmul.f32 0.2, %v6573_v11  ;;  %v1091_v23 = vmax.f32 %v6546_v29, %v6642_v40 }
 0x2f5   :  { %v1069_v50 = vmul.f32 0.2, %v6576_v13  ;;  %v1070_v52 = vmul.f32 0.2, %v6579_v14  ;;  %v1071_v53 = vmul.f32 0.2, %v6582_v16  ;;  %v1092_v31 = vmax.f32 %v6549_v35, %v6645_v41 }
 0x2f6   :  { %v1072_v55 = vmul.f32 0.2, %v6585_v20  ;;  %v1073_v17 = vmul.f32 0.2, %v6588_v22  ;;  %v1074_v19 = vmul.f32 0.2, %v6591_v24  ;;  %v1093_v51 = vmax.f32 %v6552_v33, %v1061_v61 }
 0x2f7   :  { %v1075_v57 = vmul.f32 0.2, %v6594_v26  ;;  %v1076_v12 = vmul.f32 0.2, %v6597_v28  ;;  %v1077_v27 = vmul.f32 0.2, %v6600_v34  ;;  %v1094_v40 = vmax.f32 %v6555_v39, %v1062_v42 }
 0x2f8   :  { %v1078_v21 = vmul.f32 0.2, %v6603_v36  ;;  %v1079_v59 = vmul.f32 0.2, %v6606_v38  ;;  %v1080_v25 = vmul.f32 0.2, %v6609_v37  ;;  %v1095_v41 = vmax.f32 %v6558_v9, %v1063_v62 }
 0x2f9   :  { %v1081_v7 = vmul.f32 0.2, %v6612_v49  ;;  %v1082_v56 = vmul.f32 0.2, %v6615_v54  ;;  %v1083_v29 = vmul.f32 0.2, %v6618_v58  ;;  %v1096_v30 = vmax.f32 %v6561_v47, %v1064_v45 }
 0x2fa   :  { %v1084_v0 = vmul.f32 0.2, %v6621_v3  ;;  %v1085_v32 = vmul.f32 0.2, %v6624_v43  ;;  %v1086_v35 = vmul.f32 0.2, %v6636_v60  ;;  %v1097_v15 = vmax.f32 %v6564_v5, %v1065_v63 }
 0x2fb   :  { %v1098_v33 = vmax.f32 %v6567_v10, %v1066_v46  ;;  %v1099_v61 = vmax.f32 %v6570_v8, %v1067_v48  ;;  %v1100_v18 = vmax.f32 %v6573_v11, %v1068_v2  ;;  %v1101_v3 = vmax.f32 %v6576_v13, %v1069_v50  ;;  %v12531_v62 = vld [vmem:[#allocation31_spill] sm:$0xff]  ;;  %v12532_v45 = vld [vmem:[#allocation32_spill] sm:$0xff] }
 0x2fc   :  { %v1102_v39 = vmax.f32 %v6579_v14, %v1070_v52  ;;  %v1103_v42 = vmax.f32 %v6582_v16, %v1071_v53  ;;  %v1104_v60 = vmax.f32 %v6585_v20, %v1072_v55  ;;  %v1105_v9 = vmax.f32 %v6588_v22, %v1073_v17 }
 0x2fd   :  { %v1106_v47 = vmax.f32 %v6591_v24, %v1074_v19  ;;  %v1107_v5 = vmax.f32 %v6594_v26, %v1075_v57  ;;  %v1108_v10 = vmax.f32 %v6597_v28, %v1076_v12  ;;  %v1109_v8 = vmax.f32 %v6600_v34, %v1077_v27 }
 0x2fe   :  { %v1110_v11 = vmax.f32 %v6603_v36, %v1078_v21  ;;  %v1111_v13 = vmax.f32 %v6606_v38, %v1079_v59  ;;  %v1112_v14 = vmax.f32 %v6609_v37, %v1080_v25  ;;  %v1113_v16 = vmax.f32 %v6612_v49, %v1081_v7 }
 0x2ff   :  { %v1114_v20 = vmax.f32 %v6615_v54, %v1082_v56  ;;  %v1115_v22 = vmax.f32 %v6618_v58, %v1083_v29  ;;  %v1116_v24 = vmax.f32 %v12531_v62, %v1084_v0  ;;  %v1117_v26 = vmax.f32 %v6624_v43, %v1085_v32 }
 0x300   :  { %v1118_v28 = vmax.f32 %v12532_v45, %v1086_v35  ;;  %v6711_v63 = vpack.c.bf16 %v1089_v4, %v1087_v44  ;;  %v6713_v34 = vpack.c.bf16 %v1090_v6, %v1088_v1  ;;  %v6715_v36 = vpack.c.bf16 %v1093_v51, %v1091_v23 }
 0x301   :  { %v6717_v38 = vpack.c.bf16 %v1094_v40, %v1092_v31  ;;  %v6719_v37 = vpack.c.bf16 %v1097_v15, %v1095_v41  ;;  %v6721_v49 = vpack.c.bf16 %v1098_v33, %v1096_v30  ;;  %v6723_v54 = vpack.c.bf16 %v1101_v3, %v1099_v61 }
 0x302   :  { %v6725_v58 = vpack.c.bf16 %v1102_v39, %v1100_v18  ;;  %v6727_v46 = vpack.c.bf16 %v1105_v9, %v1103_v42  ;;  %v6729_v32 = vpack.c.bf16 %v1106_v47, %v1104_v60  ;;  %v6731_v43 = vpack.c.bf16 %v1109_v8, %v1107_v5 }
 0x303   :  { %v6733_v44 = vpack.c.bf16 %v1110_v11, %v1108_v10  ;;  %v6735_v1 = vpack.c.bf16 %v1113_v16, %v1111_v13  ;;  %v6737_v48 = vpack.c.bf16 %v1114_v20, %v1112_v14  ;;  %v6739_v15 = vpack.c.bf16 %v1117_v26, %v1115_v22 }
 0x304   :  { %v6741_v30 = vpack.c.bf16 %v1118_v28, %v1116_v24 }
 0x305   :  { %5903 = dma.done.wait [#allocation7 + $0x2], 8192 }
 0x306   :  { %5904 = vsyncadd [#allocation7 + $0x2], 4294959104  ;;  %1235 = vmatprep.mubr.bf16.mxu1 %v6713_v34  ;;  %v1140_v18 = vld [vmem:[#allocation4 + $0x8] sm:$0xff]  ;;  %v1139_v3 = vld [vmem:[#allocation4] sm:$0xff] }
 0x307   :  { %v1144_v60 = vld [vmem:[#allocation4 + $0x28] sm:$0xff]  ;;  %1203 = vmatprep.subr.bf16.mxu1 %v1140_v18  ;;  %v1143_v2 = vld [vmem:[#allocation4 + $0x20] sm:$0xff]  ;;  %v1142_v9 = vld [vmem:[#allocation4 + $0x18] sm:$0xff] }
 0x308   :  { %1204 = vmatpush1.bf16.msra.mxu1 %v1139_v3  ;;  %v1148_v50 = vld [vmem:[#allocation4 + $0x48] sm:$0xff]  ;;  %v1147_v4 = vld [vmem:[#allocation4 + $0x40] sm:$0xff]  ;;  %v1141_v47 = vld [vmem:[#allocation4 + $0x10] sm:$0xff] }
 0x309   :  { %1205 = vmatprep.subr.bf16.mxu1 %v1144_v60  ;;  %v1152_v52 = vld [vmem:[#allocation4 + $0x68] sm:$0xff]  ;;  %v1151_v53 = vld [vmem:[#allocation4 + $0x60] sm:$0xff]  ;;  %v1146_v5 = vld [vmem:[#allocation4 + $0x38] sm:$0xff] }
 0x30a   :  { %v1156_v55 = vld [vmem:[#allocation4 + $0x88] sm:$0xff]  ;;  %v1155_v6 = vld [vmem:[#allocation4 + $0x80] sm:$0xff]  ;;  %v1145_v10 = vld [vmem:[#allocation4 + $0x30] sm:$0xff] }
 0x30b   :  { %v1160_v17 = vld [vmem:[#allocation4 + $0xa8] sm:$0xff]  ;;  %v1159_v19 = vld [vmem:[#allocation4 + $0xa0] sm:$0xff]  ;;  %v1150_v8 = vld [vmem:[#allocation4 + $0x58] sm:$0xff] }
 0x30c   :  { %1206 = vmatpush1.bf16.msra.mxu1 %v1143_v2  ;;  %v1164_v57 = vld [vmem:[#allocation4 + $0xc8] sm:$0xff]  ;;  %v1163_v23 = vld [vmem:[#allocation4 + $0xc0] sm:$0xff]  ;;  %v1149_v11 = vld [vmem:[#allocation4 + $0x50] sm:$0xff] }
 0x30d   :  { %1207 = vmatprep.subr.bf16.mxu1 %v1148_v50  ;;  %v1168_v12 = vld [vmem:[#allocation4 + $0xe8] sm:$0xff]  ;;  %v1167_v27 = vld [vmem:[#allocation4 + $0xe0] sm:$0xff]  ;;  %v1154_v13 = vld [vmem:[#allocation4 + $0x78] sm:$0xff] }
 0x30e   :  { %v1172_v21 = vld [vmem:[#allocation4 + $0x108] sm:$0xff]  ;;  %v1171_v31 = vld [vmem:[#allocation4 + $0x100] sm:$0xff]  ;;  %v1153_v14 = vld [vmem:[#allocation4 + $0x70] sm:$0xff] }
 0x30f   :  { %v1176_v59 = vld [vmem:[#allocation4 + $0x128] sm:$0xff]  ;;  %v1175_v25 = vld [vmem:[#allocation4 + $0x120] sm:$0xff]  ;;  %v1158_v16 = vld [vmem:[#allocation4 + $0x98] sm:$0xff] }
 0x310   :  { %1208 = vmatpush1.bf16.msra.mxu1 %v1147_v4  ;;  %v1180_v7 = vld [vmem:[#allocation4 + $0x148] sm:$0xff]  ;;  %v1179_v51 = vld [vmem:[#allocation4 + $0x140] sm:$0xff]  ;;  %v1157_v20 = vld [vmem:[#allocation4 + $0x90] sm:$0xff] }
 0x311   :  { %1209 = vmatprep.subr.bf16.mxu1 %v1152_v52  ;;  %v1184_v56 = vld [vmem:[#allocation4 + $0x168] sm:$0xff]  ;;  %v1183_v29 = vld [vmem:[#allocation4 + $0x160] sm:$0xff]  ;;  %v1162_v22 = vld [vmem:[#allocation4 + $0xb8] sm:$0xff] }
 0x312   :  { %v1188_v0 = vld [vmem:[#allocation4 + $0x188] sm:$0xff]  ;;  %v1187_v40 = vld [vmem:[#allocation4 + $0x180] sm:$0xff]  ;;  %v1161_v62 = vld [vmem:[#allocation4 + $0xb0] sm:$0xff] }
 0x313   :  { %v1192_v35 = vld [vmem:[#allocation4 + $0x1a8] sm:$0xff]  ;;  %v1191_v41 = vld [vmem:[#allocation4 + $0x1a0] sm:$0xff]  ;;  %v1166_v24 = vld [vmem:[#allocation4 + $0xd8] sm:$0xff] }
 0x314   :  { %1210 = vmatpush1.bf16.msra.mxu1 %v1151_v53  ;;  %v1196_v33 = vld [vmem:[#allocation4 + $0x1c8] sm:$0xff]  ;;  %v1195_v61 = vld [vmem:[#allocation4 + $0x1c0] sm:$0xff]  ;;  %v1165_v26 = vld [vmem:[#allocation4 + $0xd0] sm:$0xff] }
 0x315   :  { %1211 = vmatprep.subr.bf16.mxu1 %v1156_v55  ;;  %v1200_v39 = vld [vmem:[#allocation4 + $0x1e8] sm:$0xff]  ;;  %v1199_v42 = vld [vmem:[#allocation4 + $0x1e0] sm:$0xff]  ;;  %v1170_v45 = vld [vmem:[#allocation4 + $0xf8] sm:$0xff] }
 0x316   :  { %v1169_v28 = vld [vmem:[#allocation4 + $0xf0] sm:$0xff]  ;;  %v1174_v18 = vld [vmem:[#allocation4 + $0x118] sm:$0xff] }
 0x317   :  { %v1173_v3 = vld [vmem:[#allocation4 + $0x110] sm:$0xff]  ;;  %v1178_v60 = vld [vmem:[#allocation4 + $0x138] sm:$0xff] }
 0x318   :  { %1212 = vmatpush1.bf16.msra.mxu1 %v1155_v6  ;;  %v1177_v2 = vld [vmem:[#allocation4 + $0x130] sm:$0xff]  ;;  %v1182_v50 = vld [vmem:[#allocation4 + $0x158] sm:$0xff] }
 0x319   :  { %1213 = vmatprep.subr.bf16.mxu1 %v1160_v17  ;;  %v1181_v4 = vld [vmem:[#allocation4 + $0x150] sm:$0xff]  ;;  %v1186_v52 = vld [vmem:[#allocation4 + $0x178] sm:$0xff] }
 0x31a   :  { %v1185_v53 = vld [vmem:[#allocation4 + $0x170] sm:$0xff]  ;;  %v1190_v55 = vld [vmem:[#allocation4 + $0x198] sm:$0xff] }
 0x31b   :  { %v1189_v6 = vld [vmem:[#allocation4 + $0x190] sm:$0xff]  ;;  %v1194_v17 = vld [vmem:[#allocation4 + $0x1b8] sm:$0xff] }
 0x31c   :  { %1214 = vmatpush1.bf16.msra.mxu1 %v1159_v19  ;;  %v1193_v19 = vld [vmem:[#allocation4 + $0x1b0] sm:$0xff] }
 0x31d   :  { %1215 = vmatprep.subr.bf16.mxu1 %v1164_v57  ;;  %v1198_v57 = vld [vmem:[#allocation4 + $0x1d8] sm:$0xff] }
 0x320   :  { %1216 = vmatpush1.bf16.msra.mxu1 %v1163_v23  ;;  %v1197_v23 = vld [vmem:[#allocation4 + $0x1d0] sm:$0xff] }
 0x321   :  { %1217 = vmatprep.subr.bf16.mxu1 %v1168_v12  ;;  %v1202_v12 = vld [vmem:[#allocation4 + $0x1f8] sm:$0xff] }
 0x324   :  { %1218 = vmatpush1.bf16.msra.mxu1 %v1167_v27  ;;  %v1201_v27 = vld [vmem:[#allocation4 + $0x1f0] sm:$0xff] }
 0x325   :  { %1219 = vmatprep.subr.bf16.mxu1 %v1172_v21 }
 0x328   :  { %1220 = vmatpush1.bf16.msra.mxu1 %v1171_v31 }
 0x329   :  { %1221 = vmatprep.subr.bf16.mxu1 %v1176_v59 }
 0x32c   :  { %1222 = vmatpush1.bf16.msra.mxu1 %v1175_v25 }
 0x32d   :  { %1223 = vmatprep.subr.bf16.mxu1 %v1180_v7 }
 0x330   :  { %1224 = vmatpush1.bf16.msra.mxu1 %v1179_v51 }
 0x331   :  { %1225 = vmatprep.subr.bf16.mxu1 %v1184_v56 }
 0x334   :  { %1226 = vmatpush1.bf16.msra.mxu1 %v1183_v29 }
 0x335   :  { %1227 = vmatprep.subr.bf16.mxu1 %v1188_v0 }
 0x338   :  { %1228 = vmatpush1.bf16.msra.mxu1 %v1187_v40 }
 0x339   :  { %1229 = vmatprep.subr.bf16.mxu1 %v1192_v35 }
 0x33c   :  { %1230 = vmatpush1.bf16.msra.mxu1 %v1191_v41 }
 0x33d   :  { %1231 = vmatprep.subr.bf16.mxu1 %v1196_v33 }
 0x340   :  { %1232 = vmatpush1.bf16.msra.mxu1 %v1195_v61 }
 0x341   :  { %1233 = vmatprep.subr.bf16.mxu1 %v1200_v39 }
 0x344   :  { %1234 = vmatpush1.bf16.msra.mxu1 %v1199_v42 }
 0x345   :  { %1316 = vmatprep.subr.bf16.mxu1 %v1142_v9 }
 0x347   :  { %1236 = vmatmul.mubr.bf16.vlgmr.msra.gmra.mrb[32].mxu1 %v6711_v63 }
 0x348   :  { %1317 = vmatpush1.bf16.msra.mxu1 %v1141_v47  ;;  %1245 = vmatprep.mubr.bf16.mxu1 %v6717_v38 }
 0x349   :  { %1318 = vmatprep.subr.bf16.mxu1 %v1146_v5 }
 0x34c   :  { %1319 = vmatpush1.bf16.msra.mxu1 %v1145_v10 }
 0x34d   :  { %1320 = vmatprep.subr.bf16.mxu1 %v1150_v8 }
 0x34f   :  { %1246 = vmatmul.mubr.bf16.gmra.mrb[36].mxu1 %v6715_v36 }
 0x350   :  { %1321 = vmatpush1.bf16.msra.mxu1 %v1149_v11  ;;  %1255 = vmatprep.mubr.bf16.mxu1 %v6721_v49 }
 0x351   :  { %1322 = vmatprep.subr.bf16.mxu1 %v1154_v13 }
 0x354   :  { %1323 = vmatpush1.bf16.msra.mxu1 %v1153_v14 }
 0x355   :  { %1324 = vmatprep.subr.bf16.mxu1 %v1158_v16 }
 0x357   :  { %1256 = vmatmul.mubr.bf16.gmra.mrb[40].mxu1 %v6719_v37 }
 0x358   :  { %1325 = vmatpush1.bf16.msra.mxu1 %v1157_v20  ;;  %1265 = vmatprep.mubr.bf16.mxu1 %v6725_v58 }
 0x359   :  { %1326 = vmatprep.subr.bf16.mxu1 %v1162_v22 }
 0x35c   :  { %1327 = vmatpush1.bf16.msra.mxu1 %v1161_v62 }
 0x35d   :  { %1328 = vmatprep.subr.bf16.mxu1 %v1166_v24 }
 0x35f   :  { %1266 = vmatmul.mubr.bf16.gmra.mrb[44].mxu1 %v6723_v54 }
 0x360   :  { %1329 = vmatpush1.bf16.msra.mxu1 %v1165_v26  ;;  %1275 = vmatprep.mubr.bf16.mxu1 %v6729_v32 }
 0x361   :  { %1330 = vmatprep.subr.bf16.mxu1 %v1170_v45 }
 0x364   :  { %1331 = vmatpush1.bf16.msra.mxu1 %v1169_v28 }
 0x365   :  { %1332 = vmatprep.subr.bf16.mxu1 %v1174_v18 }
 0x367   :  { %1276 = vmatmul.mubr.bf16.gmra.mrb[48].mxu1 %v6727_v46 }
 0x368   :  { %1333 = vmatpush1.bf16.msra.mxu1 %v1173_v3  ;;  %1285 = vmatprep.mubr.bf16.mxu1 %v6733_v44 }
 0x369   :  { %1334 = vmatprep.subr.bf16.mxu1 %v1178_v60 }
 0x36c   :  { %1335 = vmatpush1.bf16.msra.mxu1 %v1177_v2 }
 0x36d   :  { %1336 = vmatprep.subr.bf16.mxu1 %v1182_v50 }
 0x36f   :  { %1286 = vmatmul.mubr.bf16.gmra.mrb[52].mxu1 %v6731_v43 }
 0x370   :  { %1337 = vmatpush1.bf16.msra.mxu1 %v1181_v4  ;;  %1295 = vmatprep.mubr.bf16.mxu1 %v6737_v48 }
 0x371   :  { %1338 = vmatprep.subr.bf16.mxu1 %v1186_v52 }
 0x374   :  { %1339 = vmatpush1.bf16.msra.mxu1 %v1185_v53 }
 0x375   :  { %1340 = vmatprep.subr.bf16.mxu1 %v1190_v55 }
 0x377   :  { %1296 = vmatmul.mubr.bf16.gmra.mrb[56].mxu1 %v6735_v1 }
 0x378   :  { %1341 = vmatpush1.bf16.msra.mxu1 %v1189_v6  ;;  %1305 = vmatprep.mubr.bf16.mxu1 %v6741_v30 }
 0x379   :  { %1342 = vmatprep.subr.bf16.mxu1 %v1194_v17 }
 0x37c   :  { %1343 = vmatpush1.bf16.msra.mxu1 %v1193_v19 }
 0x37d   :  { %1344 = vmatprep.subr.bf16.mxu1 %v1198_v57 }
 0x37f   :  { %1306 = vmatmul.mubr.bf16.gmra.mrb[60].mxu1 %v6739_v15 }
 0x380   :  { %1345 = vmatpush1.bf16.msra.mxu1 %v1197_v23  ;;  %1348 = vmatprep.mubr.bf16.mxu1 %v6713_v34 }
 0x381   :  { %1346 = vmatprep.subr.bf16.mxu1 %v1202_v12 }
 0x384   :  { %1347 = vmatpush1.bf16.msra.mxu1 %v1201_v27 }
 0x387   :  { %1349 = vmatmul.mubr.bf16.vlgmr.msra.gmra.mrb[64].mxu1 %v6711_v63 }
 0x388   :  { %1358 = vmatprep.mubr.bf16.mxu1 %v6717_v38 }
 0x38f   :  { %1359 = vmatmul.mubr.bf16.gmra.mrb[68].mxu1 %v6715_v36 }
 0x390   :  { %1368 = vmatprep.mubr.bf16.mxu1 %v6721_v49 }
 0x397   :  { %1369 = vmatmul.mubr.bf16.gmra.mrb[72].mxu1 %v6719_v37 }
 0x398   :  { %1378 = vmatprep.mubr.bf16.mxu1 %v6725_v58 }
 0x39f   :  { %1379 = vmatmul.mubr.bf16.gmra.mrb[76].mxu1 %v6723_v54 }
 0x3a0   :  { %1388 = vmatprep.mubr.bf16.mxu1 %v6729_v32 }
 0x3a7   :  { %1389 = vmatmul.mubr.bf16.gmra.mrb[80].mxu1 %v6727_v46 }
 0x3a8   :  { %1398 = vmatprep.mubr.bf16.mxu1 %v6733_v44 }
 0x3af   :  { %1399 = vmatmul.mubr.bf16.gmra.mrb[84].mxu1 %v6731_v43 }
 0x3b0   :  { %1408 = vmatprep.mubr.bf16.mxu1 %v6737_v48 }
 0x3b7   :  { %1409 = vmatmul.mubr.bf16.gmra.mrb[88].mxu1 %v6735_v1 }
 0x3b8   :  { %1418 = vmatprep.mubr.bf16.mxu1 %v6741_v30 }
 0x3bf   :  { %1419 = vmatmul.mubr.bf16.gmra.mrb[92].mxu1 %v6739_v15 }
 0x41a   :  { %v6775_v63 = vpop.f32.mrb[32].mxu1 }
 0x41b   :  { %v6777_v34 = vpop.f32.mrb[33].mxu1 }
 0x41c   :  { %v6779_v36 = vpop.f32.mrb[34].mxu1 }
 0x41d   :  { %v1431_v38 = vadd.f32 %v6779_v36, %v6775_v63  ;;  %v6783_v37 = vpop.f32.mrb[35].mxu1 }
 0x41e   :  { %v1452_v49 = vadd.f32 %v6783_v37, %v6777_v34 }
 0x422   :  { %v6787_v54 = vpop.f32.mrb[36].mxu1 }
 0x423   :  { %v1432_v58 = vadd.f32 %v1431_v38, %v6787_v54  ;;  %v6790_v46 = vpop.f32.mrb[37].mxu1 }
 0x424   :  { %v1453_v32 = vadd.f32 %v1452_v49, %v6790_v46  ;;  %v6793_v43 = vpop.f32.mrb[38].mxu1 }
 0x425   :  { %v1433_v44 = vadd.f32 %v1432_v58, %v6793_v43  ;;  %v6796_v1 = vpop.f32.mrb[39].mxu1 }
 0x426   :  { %v1454_v48 = vadd.f32 %v1453_v32, %v6796_v1 }
 0x42a   :  { %v6799_v15 = vpop.f32.mrb[40].mxu1 }
 0x42b   :  { %v1434_v30 = vadd.f32 %v1433_v44, %v6799_v15  ;;  %v6802_v21 = vpop.f32.mrb[41].mxu1 }
 0x42c   :  { %v1455_v31 = vadd.f32 %v1454_v48, %v6802_v21  ;;  %v6805_v59 = vpop.f32.mrb[42].mxu1 }
 0x42d   :  { %v1435_v25 = vadd.f32 %v1434_v30, %v6805_v59  ;;  %v6808_v7 = vpop.f32.mrb[43].mxu1 }
 0x42e   :  { %v1456_v51 = vadd.f32 %v1455_v31, %v6808_v7 }
 0x432   :  { %v6811_v56 = vpop.f32.mrb[44].mxu1 }
 0x433   :  { %v1436_v29 = vadd.f32 %v1435_v25, %v6811_v56  ;;  %v6814_v0 = vpop.f32.mrb[45].mxu1 }
 0x434   :  { %v1457_v40 = vadd.f32 %v1456_v51, %v6814_v0  ;;  %v6817_v35 = vpop.f32.mrb[46].mxu1 }
 0x435   :  { %v1437_v41 = vadd.f32 %v1436_v29, %v6817_v35  ;;  %v6820_v33 = vpop.f32.mrb[47].mxu1 }
 0x436   :  { %v1458_v61 = vadd.f32 %v1457_v40, %v6820_v33 }
 0x43a   :  { %v6823_v39 = vpop.f32.mrb[48].mxu1 }
 0x43b   :  { %v1438_v42 = vadd.f32 %v1437_v41, %v6823_v39  ;;  %v6826_v9 = vpop.f32.mrb[49].mxu1 }
 0x43c   :  { %v1459_v47 = vadd.f32 %v1458_v61, %v6826_v9  ;;  %v1281_v5 = vpop.f32.mrb[50].mxu1 }
 0x43d   :  { %v1439_v10 = vadd.f32 %v1438_v42, %v1281_v5  ;;  %v6829_v8 = vpop.f32.mrb[51].mxu1 }
 0x43e   :  { %v1460_v11 = vadd.f32 %v1459_v47, %v6829_v8 }
 0x442   :  { %v1287_v13 = vpop.f32.mrb[52].mxu1 }
 0x443   :  { %v1440_v14 = vadd.f32 %v1439_v10, %v1287_v13  ;;  %v6832_v16 = vpop.f32.mrb[53].mxu1 }
 0x444   :  { %v1461_v20 = vadd.f32 %v1460_v11, %v6832_v16  ;;  %v1291_v22 = vpop.f32.mrb[54].mxu1 }
 0x445   :  { %v1441_v62 = vadd.f32 %v1440_v14, %v1291_v22  ;;  %v6835_v24 = vpop.f32.mrb[55].mxu1 }
 0x446   :  { %v1462_v26 = vadd.f32 %v1461_v20, %v6835_v24 }
 0x44a   :  { %v1297_v45 = vpop.f32.mrb[56].mxu1 }
 0x44b   :  { %v1442_v28 = vadd.f32 %v1441_v62, %v1297_v45  ;;  %v6838_v18 = vpop.f32.mrb[57].mxu1 }
 0x44c   :  { %v1463_v3 = vadd.f32 %v1462_v26, %v6838_v18  ;;  %v1301_v60 = vpop.f32.mrb[58].mxu1 }
 0x44d   :  { %v1443_v2 = vadd.f32 %v1442_v28, %v1301_v60  ;;  %v6841_v50 = vpop.f32.mrb[59].mxu1 }
 0x44e   :  { %v1464_v4 = vadd.f32 %v1463_v3, %v6841_v50 }
 0x452   :  { %v1307_v52 = vpop.f32.mrb[60].mxu1 }
 0x453   :  { %v1444_v53 = vadd.f32 %v1443_v2, %v1307_v52  ;;  %v6844_v55 = vpop.f32.mrb[61].mxu1 }
 0x454   :  { %v1465_v6 = vadd.f32 %v1464_v4, %v6844_v55  ;;  %v1311_v17 = vpop.f32.mrb[62].mxu1 }
 0x455   :  { %v1445_v19 = vadd.f32 %v1444_v53, %v1311_v17  ;;  %v6847_v57 = vpop.f32.mrb[63].mxu1 }
 0x456   :  { %v1466_v23 = vadd.f32 %v1465_v6, %v6847_v57 }
 0x457   :  { %v1446_v12 = vrot.slane %v1445_v19, 4 }
 0x458   :  { %v1467_v27 = vrot.slane %v1466_v23, 4 }
 0x459   :  { %v1447_v38 = vadd.f32 %v1446_v12, %v1445_v19 }
 0x45a   :  { %v1468_v49 = vadd.f32 %v1467_v27, %v1466_v23  ;;  %v6850_v58 = vpop.f32.mrb[64].mxu1 }
 0x45b   :  { %v1448_v32 = vrot.slane %v1447_v38, 2  ;;  %v6852_v44 = vpop.f32.mrb[65].mxu1 }
 0x45c   :  { %v1469_v48 = vrot.slane %v1468_v49, 2  ;;  %v6854_v30 = vpop.f32.mrb[66].mxu1 }
 0x45d   :  { %v1449_v31 = vadd.f32 %v1448_v32, %v1447_v38  ;;  %v1473_v25 = vadd.f32 %v6854_v30, %v6850_v58  ;;  %v6858_v51 = vpop.f32.mrb[67].mxu1 }
 0x45e   :  { %v1470_v29 = vadd.f32 %v1469_v48, %v1468_v49  ;;  %v1494_v40 = vadd.f32 %v6858_v51, %v6852_v44 }
 0x45f   :  { %v1450_v41 = vrot.slane %v1449_v31, 1 }
 0x460   :  { %v1471_v61 = vrot.slane %v1470_v29, 1 }
 0x461   :  { %v1451_v42 = vadd.f32 %v1450_v41, %v1449_v31 }
 0x462   :  { %v6862_v47 = vpop.f32.mrb[68].mxu1  ;;  %v1472_v20 = vadd.f32 %v1471_v61, %v1470_v29 }
 0x463   :  { %v1515_v10 = vmul.f32 0.0078125, %v1451_v42  ;;  %v6865_v11 = vadd.f32 %v1473_v25, %v6862_v47  ;;  %v6867_v14 = vpop.f32.mrb[69].mxu1 }
 0x464   :  { %v1495_v62 = vadd.f32 %v1494_v40, %v6867_v14  ;;  %v6870_v26 = vpop.f32.mrb[70].mxu1 }
 0x465   :  { %v6873_v28 = vsub.f32 %v6775_v63, %v1515_v10  ;;  %v6876_v3 = vsub.f32 %v6779_v36, %v1515_v10  ;;  %v6879_v2 = vsub.f32 %v6787_v54, %v1515_v10  ;;  %v6882_v4 = vsub.f32 %v6793_v43, %v1515_v10  ;;  %v6884_v53 = vpop.f32.mrb[71].mxu1 }
 0x466   :  { %v6887_v6 = vsub.f32 %v6799_v15, %v1515_v10  ;;  %v6890_v19 = vsub.f32 %v6805_v59, %v1515_v10  ;;  %v6893_v63 = vsub.f32 %v6811_v56, %v1515_v10  ;;  %v6896_v36 = vsub.f32 %v6817_v35, %v1515_v10 }
 0x467   :  { %v6899_v54 = vsub.f32 %v6823_v39, %v1515_v10  ;;  %v6901_v23 = vsub.f32 %v1281_v5, %v1515_v10  ;;  %v6903_v43 = vsub.f32 %v1287_v13, %v1515_v10  ;;  %v6905_v12 = vsub.f32 %v1291_v22, %v1515_v10 }
 0x468   :  { %12533 = vst [vmem:[#allocation31_spill] sm:$0xff] %v6887_v6  ;;  %12534 = vst [vmem:[#allocation32_spill] sm:$0xff] %v6890_v19  ;;  %v6907_v15 = vsub.f32 %v1297_v45, %v1515_v10  ;;  %v6909_v27 = vsub.f32 %v1301_v60, %v1515_v10  ;;  %v6911_v59 = vsub.f32 %v1307_v52, %v1515_v10  ;;  %v1516_v5 = vmul.f32 0.0078125, %v1472_v20 }
 0x469   :  { %12535 = vst [vmem:[#allocation33_spill] sm:$0xff] %v6893_v63  ;;  %12536 = vst [vmem:[#allocation34_spill] sm:$0xff] %v6896_v36  ;;  %v6913_v56 = vsub.f32 %v1311_v17, %v1515_v10  ;;  %v1583_v35 = vmul.f32 %v6873_v28, %v6873_v28  ;;  %v1587_v39 = vmul.f32 %v6876_v3, %v6876_v3 }
 0x46a   :  { %12537 = vst [vmem:[#allocation35_spill] sm:$0xff] %v6899_v54  ;;  %12538 = vst [vmem:[#allocation36_spill] sm:$0xff] %v6901_v23  ;;  %v6919_v38 = vpop.f32.mrb[72].mxu1  ;;  %v1591_v22 = vmul.f32 %v6879_v2, %v6879_v2  ;;  %v1595_v45 = vmul.f32 %v6882_v4, %v6882_v4  ;;  %v6930_v17 = vsub.f32 %v6777_v34, %v1516_v5 }
 0x46b   :  { %12539 = vst [vmem:[#allocation37_spill] sm:$0xff] %v6903_v43  ;;  %12540 = vst [vmem:[#allocation38_spill] sm:$0xff] %v6905_v12  ;;  %v6921_v13 = vpop.f32.mrb[73].mxu1  ;;  %v1647_v52 = vadd.f32 %v1587_v39, %v1583_v35  ;;  %v6933_v49 = vsub.f32 %v6783_v37, %v1516_v5  ;;  %v6936_v32 = vsub.f32 %v6790_v46, %v1516_v5 }
 0x46c   :  { %12541 = vst [vmem:[#allocation39_spill] sm:$0xff] %v6907_v15  ;;  %12542 = vst [vmem:[#allocation40_spill] sm:$0xff] %v6909_v27  ;;  %v6927_v60 = vpop.f32.mrb[74].mxu1  ;;  %v6941_v31 = vsub.f32 %v6796_v1, %v1516_v5  ;;  %v6944_v25 = vsub.f32 %v6802_v21, %v1516_v5  ;;  %v6947_v29 = vsub.f32 %v6808_v7, %v1516_v5 }
 0x46d   :  { %12543 = vst [vmem:[#allocation41_spill] sm:$0xff] %v6911_v59  ;;  %12544 = vst [vmem:[#allocation42_spill] sm:$0xff] %v6913_v56  ;;  %v6938_v48 = vpop.f32.mrb[75].mxu1  ;;  %v6950_v34 = vsub.f32 %v6814_v0, %v1516_v5  ;;  %v1648_v40 = vadd.f32 %v1647_v52, %v1591_v22  ;;  %v6953_v37 = vsub.f32 %v6820_v33, %v1516_v5 }
 0x46e   :  { %12545 = vst [vmem:[#allocation43_spill] sm:$0xff] %v6941_v31  ;;  %12546 = vst [vmem:[#allocation44_spill] sm:$0xff] %v6944_v25  ;;  %v6956_v46 = vsub.f32 %v6826_v9, %v1516_v5  ;;  %v6959_v41 = vsub.f32 %v6829_v8, %v1516_v5  ;;  %v6962_v1 = vsub.f32 %v6832_v16, %v1516_v5 }
 0x46f   :  { %12547 = vst [vmem:[#allocation45_spill] sm:$0xff] %v6947_v29  ;;  %12548 = vst [vmem:[#allocation46_spill] sm:$0xff] %v6950_v34  ;;  %v6965_v21 = vsub.f32 %v6835_v24, %v1516_v5  ;;  %v6968_v7 = vsub.f32 %v6838_v18, %v1516_v5  ;;  %v6971_v0 = vsub.f32 %v6841_v50, %v1516_v5 }
 0x470   :  { %12549 = vst [vmem:[#allocation47_spill] sm:$0xff] %v6953_v37  ;;  %12550 = vst [vmem:[#allocation48_spill] sm:$0xff] %v6956_v46  ;;  %v1599_v33 = vmul.f32 %v6887_v6, %v6887_v6  ;;  %v1649_v9 = vadd.f32 %v1648_v40, %v1595_v45  ;;  %v6976_v61 = vsub.f32 %v6844_v55, %v1516_v5 }
 0x471   :  { %12551 = vst [vmem:[#allocation49_spill] sm:$0xff] %v6959_v41  ;;  %12552 = vst [vmem:[#allocation50_spill] sm:$0xff] %v6962_v1  ;;  %v6979_v8 = vsub.f32 %v6847_v57, %v1516_v5  ;;  %v1584_v16 = vmul.f32 %v6930_v17, %v6930_v17  ;;  %v1588_v24 = vmul.f32 %v6933_v49, %v6933_v49 }
 0x472   :  { %12553 = vst [vmem:[#allocation51_spill] sm:$0xff] %v6965_v21  ;;  %12554 = vst [vmem:[#allocation52_spill] sm:$0xff] %v6968_v7  ;;  %v6985_v18 = vpop.f32.mrb[76].mxu1  ;;  %v1603_v50 = vmul.f32 %v6890_v19, %v6890_v19  ;;  %v1650_v42 = vadd.f32 %v1649_v9, %v1599_v33  ;;  %v1607_v55 = vmul.f32 %v6893_v63, %v6893_v63 }
 0x473   :  { %12555 = vst [vmem:[#allocation53_spill] sm:$0xff] %v6971_v0  ;;  %12556 = vst [vmem:[#allocation54_spill] sm:$0xff] %v6976_v61  ;;  %v6989_v10 = vpop.f32.mrb[77].mxu1  ;;  %v1592_v39 = vmul.f32 %v6936_v32, %v6936_v32  ;;  %v1668_v5 = vadd.f32 %v1588_v24, %v1584_v16  ;;  %v1475_v22 = vadd.f32 %v6865_v11, %v6870_v26 }
 0x474   :  { %12557 = vst [vmem:[#allocation55_spill] sm:$0xff] %v6979_v8  ;;  %v6991_v20 = vpop.f32.mrb[78].mxu1  ;;  %v1651_v57 = vadd.f32 %v1650_v42, %v1603_v50  ;;  %v1496_v45 = vadd.f32 %v1495_v62, %v6884_v53  ;;  %v1611_v52 = vmul.f32 %v6896_v36, %v6896_v36  ;;  %v1596_v33 = vmul.f32 %v6941_v31, %v6941_v31 }
 0x475   :  { %v6995_v35 = vpop.f32.mrb[79].mxu1  ;;  %v1669_v9 = vadd.f32 %v1668_v5, %v1592_v39  ;;  %v1476_v50 = vadd.f32 %v1475_v22, %v6919_v38  ;;  %v1615_v16 = vmul.f32 %v6899_v54, %v6899_v54  ;;  %v1600_v11 = vmul.f32 %v6944_v25, %v6944_v25 }
 0x476   :  { %v1652_v40 = vadd.f32 %v1651_v57, %v1607_v55  ;;  %v1497_v42 = vadd.f32 %v1496_v45, %v6921_v13  ;;  %v1619_v39 = vmul.f32 %v6901_v23, %v6901_v23  ;;  %v1604_v45 = vmul.f32 %v6947_v29, %v6947_v29 }
 0x477   :  { %v1670_v62 = vadd.f32 %v1669_v9, %v1596_v33  ;;  %v1477_v63 = vadd.f32 %v1476_v50, %v6927_v60  ;;  %v1623_v50 = vmul.f32 %v6903_v43, %v6903_v43  ;;  %v1631_v43 = vmul.f32 %v6907_v15, %v6907_v15 }
 0x478   :  { %v1653_v24 = vadd.f32 %v1652_v40, %v1611_v52  ;;  %v1498_v55 = vadd.f32 %v1497_v42, %v6938_v48 }
 0x479   :  { %v1671_v52 = vadd.f32 %v1670_v62, %v1600_v11  ;;  %v1478_v40 = vadd.f32 %v1477_v63, %v6985_v18  ;;  %v1627_v63 = vmul.f32 %v6905_v12, %v6905_v12 }
 0x47a   :  { %v7014_v57 = vpop.f32.mrb[80].mxu1  ;;  %v1654_v5 = vadd.f32 %v1653_v24, %v1615_v16  ;;  %v1499_v33 = vadd.f32 %v1498_v55, %v6989_v10  ;;  %v1608_v16 = vmul.f32 %v6950_v34, %v6950_v34  ;;  %v1612_v55 = vmul.f32 %v6953_v37, %v6953_v37 }
 0x47b   :  { %v7018_v22 = vpop.f32.mrb[81].mxu1  ;;  %v1672_v24 = vadd.f32 %v1671_v52, %v1604_v45  ;;  %v1479_v23 = vadd.f32 %v1478_v40, %v6991_v20  ;;  %v1616_v52 = vmul.f32 %v6956_v46, %v6956_v46 }
 0x47c   :  { %v7024_v9 = vpop.f32.mrb[82].mxu1  ;;  %v1655_v42 = vadd.f32 %v1654_v5, %v1619_v39  ;;  %v1500_v11 = vadd.f32 %v1499_v33, %v6995_v35 }
 0x47d   :  { %v7028_v54 = vpop.f32.mrb[83].mxu1  ;;  %v1673_v36 = vadd.f32 %v1672_v24, %v1608_v16  ;;  %v1480_v39 = vadd.f32 %v1479_v23, %v7014_v57  ;;  %v1635_v16 = vmul.f32 %v6909_v27, %v6909_v27 }
 0x47e   :  { %v1656_v62 = vadd.f32 %v1655_v42, %v1623_v50  ;;  %v1501_v5 = vadd.f32 %v1500_v11, %v7018_v22  ;;  %v1620_v11 = vmul.f32 %v6959_v41, %v6959_v41 }
 0x47f   :  { %v1674_v40 = vadd.f32 %v1673_v36, %v1612_v55  ;;  %v1481_v33 = vadd.f32 %v1480_v39, %v7024_v9  ;;  %v1639_v39 = vmul.f32 %v6911_v59, %v6911_v59 }
 0x480   :  { %v1657_v45 = vadd.f32 %v1656_v62, %v1627_v63  ;;  %v1502_v50 = vadd.f32 %v1501_v5, %v7028_v54 }
 0x481   :  { %v1675_v63 = vadd.f32 %v1674_v40, %v1616_v52  ;;  %v1643_v40 = vmul.f32 %v6913_v56, %v6913_v56 }
 0x482   :  { %v7046_v42 = vpop.f32.mrb[84].mxu1  ;;  %v1658_v23 = vadd.f32 %v1657_v45, %v1631_v43  ;;  %v1624_v43 = vmul.f32 %v6962_v1, %v6962_v1 }
 0x483   :  { %v7050_v24 = vpop.f32.mrb[85].mxu1  ;;  %v1482_v62 = vadd.f32 %v1481_v33, %v7046_v42  ;;  %v1676_v45 = vadd.f32 %v1675_v63, %v1620_v11 }
 0x484   :  { %v1503_v36 = vadd.f32 %v1502_v50, %v7050_v24  ;;  %v7056_v55 = vpop.f32.mrb[86].mxu1  ;;  %v1659_v5 = vadd.f32 %v1658_v23, %v1635_v16  ;;  %v1628_v50 = vmul.f32 %v6965_v21, %v6965_v21  ;;  %v1632_v16 = vmul.f32 %v6968_v7, %v6968_v7 }
 0x485   :  { %v7060_v15 = vpop.f32.mrb[87].mxu1  ;;  %v1483_v27 = vadd.f32 %v1482_v62, %v7056_v55  ;;  %v1677_v12 = vadd.f32 %v1676_v45, %v1624_v43  ;;  %v1644_v7 = vmul.f32 %v6979_v8, %v6979_v8 }
 0x486   :  { %v1504_v52 = vadd.f32 %v1503_v36, %v7060_v15  ;;  %v1660_v33 = vadd.f32 %v1659_v5, %v1639_v39  ;;  %v1636_v36 = vmul.f32 %v6971_v0, %v6971_v0 }
 0x487   :  { %v1678_v23 = vadd.f32 %v1677_v12, %v1628_v50  ;;  %v1640_v12 = vmul.f32 %v6976_v61, %v6976_v61 }
 0x488   :  { %v1661_v59 = vadd.f32 %v1660_v33, %v1643_v40 }
 0x489   :  { %v1679_v39 = vadd.f32 %v1678_v23, %v1632_v16 }
 0x48a   :  { %v7072_v41 = vpop.f32.mrb[88].mxu1  ;;  %v1662_v11 = vrot.slane %v1661_v59, 4 }
 0x48b   :  { %v1484_v63 = vadd.f32 %v1483_v27, %v7072_v41  ;;  %v7075_v62 = vpop.f32.mrb[89].mxu1  ;;  %v1680_v33 = vadd.f32 %v1679_v39, %v1636_v36 }
 0x48c   :  { %v1505_v5 = vadd.f32 %v1504_v52, %v7075_v62  ;;  %v1414_v56 = vpop.f32.mrb[90].mxu1  ;;  %v1663_v43 = vadd.f32 %v1662_v11, %v1661_v59 }
 0x48d   :  { %v1485_v45 = vadd.f32 %v1484_v63, %v1414_v56  ;;  %v7080_v40 = vpop.f32.mrb[91].mxu1  ;;  %v1681_v21 = vadd.f32 %v1680_v33, %v1640_v12 }
 0x48e   :  { %v1506_v50 = vadd.f32 %v1505_v5, %v7080_v40  ;;  %v1664_v27 = vrot.slane %v1663_v43, 2 }
 0x48f   :  { %v1682_v16 = vadd.f32 %v1681_v21, %v1644_v7 }
 0x490   :  { %v1665_v0 = vadd.f32 %v1664_v27, %v1663_v43 }
 0x491   :  { %v1683_v11 = vrot.slane %v1682_v16, 4 }
 0x492   :  { %v1420_v23 = vpop.f32.mrb[92].mxu1  ;;  %v1666_v52 = vrot.slane %v1665_v0, 1 }
 0x493   :  { %v1486_v1 = vadd.f32 %v1485_v45, %v1420_v23  ;;  %v7087_v59 = vpop.f32.mrb[93].mxu1  ;;  %v1684_v5 = vadd.f32 %v1683_v11, %v1682_v16 }
 0x494   :  { %v1507_v63 = vadd.f32 %v1506_v50, %v7087_v59  ;;  %v1424_v46 = vpop.f32.mrb[94].mxu1  ;;  %v1667_v39 = vadd.f32 %v1666_v52, %v1665_v0 }
 0x495   :  { %v1487_v61 = vadd.f32 %v1486_v1, %v1424_v46  ;;  %v7090_v36 = vpop.f32.mrb[95].mxu1  ;;  %v1685_v12 = vrot.slane %v1684_v5, 2 }
 0x496   :  { %v1508_v37 = vadd.f32 %v1507_v63, %v7090_v36  ;;  %v1731_v7 = vmul.f32 0.0078125, %v1667_v39 }
 0x497   :  { %v1488_v8 = vrot.slane %v1487_v61, 4  ;;  %v1686_v33 = vadd.f32 %v1685_v12, %v1684_v5 }
 0x498   :  { %v1509_v43 = vrot.slane %v1508_v37, 4  ;;  %v1735_v50 = vadd.f32 0.8, %v1731_v7 }
 0x499   :  { %v1489_v21 = vadd.f32 %v1488_v8, %v1487_v61  ;;  %v1687_v34 = vrot.slane %v1686_v33, 1 }
 0x49a   :  { %v1510_v45 = vadd.f32 %v1509_v43, %v1508_v37  ;;  %5765 = vrsqrt.f32 %v1735_v50 }
 0x49b   :  { %v1490_v27 = vrot.slane %v1489_v21, 2  ;;  %v1688_v25 = vadd.f32 %v1687_v34, %v1686_v33 }
 0x49c   :  { %v1511_v29 = vrot.slane %v1510_v45, 2 }
 0x49d   :  { %v1491_v19 = vadd.f32 %v1490_v27, %v1489_v21  ;;  %v1732_v31 = vmul.f32 0.0078125, %v1688_v25 }
 0x49e   :  { %v1512_v1 = vadd.f32 %v1511_v29, %v1510_v45 }
 0x49f   :  { %v1492_v6 = vrot.slane %v1491_v19, 1  ;;  %v1736_v52 = vadd.f32 0.8, %v1732_v31 }
 0x4a0   :  { %v1513_v0 = vrot.slane %v1512_v1, 1 }
 0x4a1   :  { %v1493_v16 = vadd.f32 %v1492_v6, %v1491_v19  ;;  %5767 = vrsqrt.f32 %v1736_v52 }
 0x4a2   :  { %v1514_v63 = vadd.f32 %v1513_v0, %v1512_v1 }
 0x4a3   :  { %v1517_v11 = vmul.f32 0.0078125, %v1493_v16 }
 0x4a5   :  { %v7094_v61 = vsub.f32 %v6850_v58, %v1517_v11  ;;  %v7097_v37 = vsub.f32 %v6854_v30, %v1517_v11  ;;  %v7100_v8 = vsub.f32 %v6862_v47, %v1517_v11  ;;  %v7103_v29 = vsub.f32 %v6870_v26, %v1517_v11 }
 0x4a6   :  { %v7106_v25 = vsub.f32 %v6919_v38, %v1517_v11  ;;  %v7109_v6 = vsub.f32 %v6927_v60, %v1517_v11  ;;  %v7112_v19 = vsub.f32 %v6985_v18, %v1517_v11  ;;  %v7115_v58 = vsub.f32 %v6991_v20, %v1517_v11 }
 0x4a7   :  { %v7118_v30 = vsub.f32 %v7014_v57, %v1517_v11  ;;  %v7121_v47 = vsub.f32 %v7024_v9, %v1517_v11  ;;  %v7124_v26 = vsub.f32 %v7046_v42, %v1517_v11  ;;  %v7127_v38 = vsub.f32 %v7056_v55, %v1517_v11  ;;  %v7142_v42 = vpop.eup %5765 }
 0x4a8   :  { %v7130_v60 = vsub.f32 %v7072_v41, %v1517_v11  ;;  %v7132_v31 = vsub.f32 %v1414_v56, %v1517_v11  ;;  %v7134_v34 = vsub.f32 %v1420_v23, %v1517_v11  ;;  %v7136_v18 = vsub.f32 %v1424_v46, %v1517_v11 }
 0x4a9   :  { %v1585_v20 = vmul.f32 %v7094_v61, %v7094_v61  ;;  %v1589_v57 = vmul.f32 %v7097_v37, %v7097_v37  ;;  %v1518_v9 = vmul.f32 0.0078125, %v1514_v63  ;;  %v1593_v55 = vmul.f32 %v7100_v8, %v7100_v8 }
 0x4aa   :  { %v1597_v56 = vmul.f32 %v7103_v29, %v7103_v29  ;;  %v1601_v45 = vmul.f32 %v7106_v25, %v7106_v25  ;;  %v1617_v63 = vmul.f32 %v7118_v30, %v7118_v30 }
 0x4ab   :  { %v1689_v41 = vadd.f32 %v1589_v57, %v1585_v20  ;;  %v7149_v23 = vsub.f32 %v6852_v44, %v1518_v9  ;;  %v7152_v46 = vsub.f32 %v6858_v51, %v1518_v9  ;;  %v7155_v39 = vsub.f32 %v6867_v14, %v1518_v9  ;;  %v7157_v5 = vpop.eup %5767 }
 0x4ac   :  { %v7160_v12 = vsub.f32 %v6884_v53, %v1518_v9  ;;  %v7163_v43 = vsub.f32 %v6921_v13, %v1518_v9  ;;  %v7166_v21 = vsub.f32 %v6938_v48, %v1518_v9  ;;  %v7169_v44 = vsub.f32 %v6989_v10, %v1518_v9 }
 0x4ad   :  { %v1690_v7 = vadd.f32 %v1689_v41, %v1593_v55  ;;  %v7174_v14 = vsub.f32 %v6995_v35, %v1518_v9  ;;  %v7177_v33 = vsub.f32 %v7018_v22, %v1518_v9  ;;  %v7180_v53 = vsub.f32 %v7028_v54, %v1518_v9 }
 0x4ae   :  { %v7183_v13 = vsub.f32 %v7050_v24, %v1518_v9  ;;  %v7186_v48 = vsub.f32 %v7060_v15, %v1518_v9  ;;  %v7189_v10 = vsub.f32 %v7075_v62, %v1518_v9  ;;  %v7194_v27 = vsub.f32 %v7080_v40, %v1518_v9 }
 0x4af   :  { %v1691_v35 = vadd.f32 %v1690_v7, %v1597_v56  ;;  %v7197_v22 = vsub.f32 %v7087_v59, %v1518_v9  ;;  %v7200_v54 = vsub.f32 %v7090_v36, %v1518_v9  ;;  %v1586_v15 = vmul.f32 %v7149_v23, %v7149_v23 }
 0x4b0   :  { %v1590_v24 = vmul.f32 %v7152_v46, %v7152_v46  ;;  %v1605_v62 = vmul.f32 %v7109_v6, %v7109_v6  ;;  %v1609_v40 = vmul.f32 %v7112_v19, %v7112_v19  ;;  %v1594_v59 = vmul.f32 %v7155_v39, %v7155_v39 }
 0x4b1   :  { %v1692_v50 = vadd.f32 %v1691_v35, %v1601_v45  ;;  %v1613_v36 = vmul.f32 %v7115_v58, %v7115_v58  ;;  %v1598_v52 = vmul.f32 %v7160_v12, %v7160_v12  ;;  %v1602_v57 = vmul.f32 %v7163_v43, %v7163_v43 }
 0x4b2   :  { %v1710_v0 = vadd.f32 %v1590_v24, %v1586_v15  ;;  %v1621_v55 = vmul.f32 %v7121_v47, %v7121_v47  ;;  %v1606_v41 = vmul.f32 %v7166_v21, %v7166_v21  ;;  %v1625_v45 = vmul.f32 %v7124_v26, %v7124_v26 }
 0x4b3   :  { %v1693_v1 = vadd.f32 %v1692_v50, %v1605_v62  ;;  %v1610_v15 = vmul.f32 %v7169_v44, %v7169_v44  ;;  %v1629_v62 = vmul.f32 %v7127_v38, %v7127_v38 }
 0x4b4   :  { %v1711_v11 = vadd.f32 %v1710_v0, %v1594_v59  ;;  %v1633_v59 = vmul.f32 %v7130_v60, %v7130_v60 }
 0x4b5   :  { %v1694_v16 = vadd.f32 %v1693_v1, %v1609_v40  ;;  %v1614_v40 = vmul.f32 %v7174_v14, %v7174_v14 }
 0x4b6   :  { %v1712_v9 = vadd.f32 %v1711_v11, %v1598_v52  ;;  %v1637_v52 = vmul.f32 %v7132_v31, %v7132_v31 }
 0x4b7   :  { %v1695_v20 = vadd.f32 %v1694_v16, %v1613_v36  ;;  %v1618_v36 = vmul.f32 %v7177_v33, %v7177_v33 }
 0x4b8   :  { %v1713_v7 = vadd.f32 %v1712_v9, %v1602_v57  ;;  %v1641_v57 = vmul.f32 %v7134_v34, %v7134_v34 }
 0x4b9   :  { %v1696_v56 = vadd.f32 %v1695_v20, %v1617_v63  ;;  %v1622_v63 = vmul.f32 %v7180_v53, %v7180_v53 }
 0x4ba   :  { %v1714_v24 = vadd.f32 %v1713_v7, %v1606_v41  ;;  %v1645_v41 = vmul.f32 %v7136_v18, %v7136_v18 }
 0x4bb   :  { %v1697_v35 = vadd.f32 %v1696_v56, %v1621_v55  ;;  %v1626_v55 = vmul.f32 %v7183_v13, %v7183_v13 }
 0x4bc   :  { %v1715_v1 = vadd.f32 %v1714_v24, %v1610_v15  ;;  %v1634_v24 = vmul.f32 %v7189_v10, %v7189_v10 }
 0x4bd   :  { %v1698_v50 = vadd.f32 %v1697_v35, %v1625_v45  ;;  %v1630_v45 = vmul.f32 %v7186_v48, %v7186_v48 }
 0x4be   :  { %v1716_v16 = vadd.f32 %v1715_v1, %v1614_v40  ;;  %v1638_v40 = vmul.f32 %v7194_v27, %v7194_v27 }
 0x4bf   :  { %v1699_v0 = vadd.f32 %v1698_v50, %v1629_v62 }
 0x4c0   :  { %v1717_v20 = vadd.f32 %v1716_v16, %v1618_v36 }
 0x4c1   :  { %v1700_v11 = vadd.f32 %v1699_v0, %v1633_v59  ;;  %v1642_v0 = vmul.f32 %v7197_v22, %v7197_v22 }
 0x4c2   :  { %v1718_v56 = vadd.f32 %v1717_v20, %v1622_v63 }
 0x4c3   :  { %v1701_v9 = vadd.f32 %v1700_v11, %v1637_v52  ;;  %v1646_v52 = vmul.f32 %v7200_v54, %v7200_v54 }
 0x4c4   :  { %v1719_v35 = vadd.f32 %v1718_v56, %v1626_v55 }
 0x4c5   :  { %v1702_v7 = vadd.f32 %v1701_v9, %v1641_v57 }
 0x4c6   :  { %v1720_v62 = vadd.f32 %v1719_v35, %v1630_v45 }
 0x4c7   :  { %v1703_v15 = vadd.f32 %v1702_v7, %v1645_v41 }
 0x4c8   :  { %v1721_v1 = vadd.f32 %v1720_v62, %v1634_v24 }
 0x4c9   :  { %v1704_v50 = vrot.slane %v1703_v15, 4 }
 0x4ca   :  { %v1722_v36 = vadd.f32 %v1721_v1, %v1638_v40 }
 0x4cb   :  { %v1705_v59 = vadd.f32 %v1704_v50, %v1703_v15 }
 0x4cc   :  { %v1723_v11 = vadd.f32 %v1722_v36, %v1642_v0  ;;  %v12558_v0 = vld [vmem:[#allocation28_spill] sm:$0xff] }
 0x4cd   :  { %v1706_v16 = vrot.slane %v1705_v59, 2 }
 0x4ce   :  { %v1724_v20 = vadd.f32 %v1723_v11, %v1646_v52  ;;  %v1429_v11 = vld [vmem:[%s11952_s10] sm:$0xf] }
 0x4cf   :  { %v1707_v63 = vadd.f32 %v1706_v16, %v1705_v59  ;;  %v12559_v59 = vcombine.low %v7142_v42, %v7157_v5  ;;  %v1430_v42 = vld [vmem:[%s11953_s11] sm:$0xf] }
 0x4d0   :  { %v1725_v9 = vrot.slane %v1724_v20, 4 }
 0x4d1   :  { %v1708_v57 = vrot.slane %v1707_v63, 1  ;;  %v1755_v36 = vrot.slane %v12559_v59, %v12558_v0 }
 0x4d2   :  { %v1726_v56 = vadd.f32 %v1725_v9, %v1724_v20  ;;  %v12560_v20 = vld [vmem:[#allocation27_spill] sm:$0xff] }
 0x4d3   :  { %v1709_v55 = vadd.f32 %v1708_v57, %v1707_v63  ;;  %v7266_v57 = vsub.s32 2, %v12560_v20  ;;  %v7269_v9 = vsub.s32 3, %v12560_v20  ;;  %v12576_v20 = vld [vmem:[#allocation48_spill] sm:$0xff] }
 0x4d4   :  { %v1727_v41 = vrot.slane %v1726_v56, 2 }
 0x4d5   :  { %v1733_v7 = vmul.f32 0.0078125, %v1709_v55  ;;  %12561 = vst [vmem:[#allocation56_spill] sm:$0xff] %v7266_v57  ;;  %12562 = vst [vmem:[#allocation57_spill] sm:$0xff] %v7269_v9  ;;  %v12563_v55 = vld [vmem:[#allocation29_spill] sm:$0xff] }
 0x4d6   :  { %v1728_v45 = vadd.f32 %v1727_v41, %v1726_v56  ;;  %v12564_v56 = vld [vmem:[#allocation30_spill] sm:$0xff] }
 0x4d7   :  { %v1737_v15 = vadd.f32 0.8, %v1733_v7 }
 0x4d8   :  { %v1729_v35 = vrot.slane %v1728_v45, 1 }
 0x4d9   :  { %5769 = vrsqrt.f32 %v1737_v15  ;;  %v7290_v15 = vrot.slane %v1430_v42, %v12564_v56 }
 0x4da   :  { %v1730_v24 = vadd.f32 %v1729_v35, %v1728_v45  ;;  %v7287_v35 = vrot.slane %v1430_v42, %v12563_v55 }
 0x4dc   :  { %v1734_v62 = vmul.f32 0.0078125, %v1730_v24 }
 0x4de   :  { %v1738_v50 = vadd.f32 0.8, %v1734_v62 }
 0x4e0   :  { %5771 = vrsqrt.f32 %v1738_v50  ;;  %v7301_v50 = vrot.slane %v1430_v42, %v7266_v57 }
 0x4e3   :  { %v5770_v40 = vpop.eup %5769 }
 0x4ea   :  { %v5772_v1 = vpop.eup %5771 }
 0x4eb   :  { %v1748_v51 = vcombine.low %v5770_v40, %v5772_v1  ;;  %v7304_v40 = vrot.slane %v1430_v42, %v7269_v9 }
 0x4ed   :  { %v1762_v16 = vrot.slane %v1748_v51, %v12558_v0 }
 0x4ef   :  { %v1763_v52 = vcombine.low %v1755_v36, %v1762_v16  ;;  %v12565_v16 = vld [vmem:[#allocation43_spill] sm:$0xff] }
 0x4f1   :  { %v1770_v63 = vrot.slane %v1763_v52, %v12558_v0  ;;  %v12566_v52 = vld [vmem:[#allocation31_spill] sm:$0xff]  ;;  %v12579_v0 = vld [vmem:[#allocation36_spill] sm:$0xff] }
 0x4f3   :  { %v1772_v5 = vmul.f32 %v1770_v63, %v1429_v11  ;;  %v12567_v11 = vld [vmem:[#allocation44_spill] sm:$0xff] }
 0x4f4   :  { %v12568_v63 = vld [vmem:[#allocation32_spill] sm:$0xff] }
 0x4f5   :  { %v7275_v51 = vrot.slane %v1772_v5, %v12563_v55  ;;  %v7278_v41 = vrot.slane %v1772_v5, %v12564_v56  ;;  %v7281_v7 = vrot.slane %v1772_v5, %v7266_v57  ;;  %v7284_v45 = vrot.slane %v1772_v5, %v7269_v9  ;;  %v12569_v5 = vld [vmem:[#allocation45_spill] sm:$0xff]  ;;  %v12571_v9 = vld [vmem:[#allocation46_spill] sm:$0xff]  ;;  %v12573_v56 = vld [vmem:[#allocation47_spill] sm:$0xff] }
 0x4f6   :  { %v12572_v57 = vld [vmem:[#allocation34_spill] sm:$0xff]  ;;  %v12575_v55 = vld [vmem:[#allocation35_spill] sm:$0xff] }
 0x4f7   :  { %v7294_v24 = vmul.f32 %v7275_v51, %v6873_v28  ;;  %v7298_v62 = vmul.f32 %v7278_v41, %v6930_v17  ;;  %v7308_v1 = vmul.f32 %v7281_v7, %v7094_v61  ;;  %v7312_v59 = vmul.f32 %v7284_v45, %v7149_v23 }
 0x4f8   :  { %v7316_v28 = vmul.f32 %v7275_v51, %v6876_v3  ;;  %v7320_v17 = vmul.f32 %v7278_v41, %v6933_v49  ;;  %v7324_v36 = vmul.f32 %v7281_v7, %v7097_v37  ;;  %v7328_v61 = vmul.f32 %v7284_v45, %v7152_v46 }
 0x4f9   :  { %v7332_v23 = vmul.f32 %v7275_v51, %v6879_v2  ;;  %v7336_v3 = vmul.f32 %v7278_v41, %v6936_v32  ;;  %v7340_v49 = vmul.f32 %v7281_v7, %v7100_v8  ;;  %v7344_v37 = vmul.f32 %v7284_v45, %v7155_v39 }
 0x4fa   :  { %v7348_v46 = vmul.f32 %v7275_v51, %v6882_v4  ;;  %v7352_v2 = vmul.f32 %v7278_v41, %v12565_v16  ;;  %v7356_v32 = vmul.f32 %v7281_v7, %v7103_v29  ;;  %v7360_v8 = vmul.f32 %v7284_v45, %v7160_v12 }
 0x4fb   :  { %v7364_v39 = vmul.f32 %v7275_v51, %v12566_v52  ;;  %v7368_v4 = vmul.f32 %v7278_v41, %v12567_v11  ;;  %v7372_v42 = vmul.f32 %v7275_v51, %v12568_v63  ;;  %v7376_v29 = vmul.f32 %v7278_v41, %v12569_v5  ;;  %v12570_v52 = vld [vmem:[#allocation33_spill] sm:$0xff] }
 0x4fc   :  { %v7380_v12 = vmul.f32 %v7281_v7, %v7109_v6  ;;  %v7384_v16 = vmul.f32 %v7284_v45, %v7166_v21  ;;  %v7388_v11 = vmul.f32 %v7275_v51, %v12570_v52  ;;  %v7392_v63 = vmul.f32 %v7278_v41, %v12571_v9 }
 0x4fd   :  { %v7396_v5 = vmul.f32 %v7281_v7, %v7112_v19  ;;  %v7400_v6 = vmul.f32 %v7284_v45, %v7169_v44  ;;  %v7404_v21 = vmul.f32 %v7275_v51, %v12572_v57  ;;  %v7408_v52 = vmul.f32 %v7278_v41, %v12573_v56 }
 0x4fe   :  { %v7412_v9 = vmul.f32 %v7281_v7, %v7115_v58  ;;  %v7416_v19 = vmul.f32 %v7284_v45, %v7174_v14  ;;  %v7420_v44 = vmul.f32 %v7275_v51, %v12575_v55  ;;  %v7424_v57 = vmul.f32 %v7278_v41, %v12576_v20 }
 0x4ff   :  { %v7428_v56 = vmul.f32 %v7281_v7, %v7118_v30  ;;  %v7432_v58 = vmul.f32 %v7284_v45, %v7177_v33  ;;  %v7436_v14 = vmul.f32 %v7275_v51, %v12579_v0  ;;  %v7444_v20 = vmul.f32 %v7281_v7, %v7121_v47 }
 0x500   :  { %12574 = vst [vmem:[#allocation43_spill] sm:$0xff] %v7416_v19  ;;  %v12580_v19 = vld [vmem:[#allocation49_spill] sm:$0xff]  ;;  %v7448_v30 = vmul.f32 %v7284_v45, %v7180_v53  ;;  %v7464_v47 = vmul.f32 %v7284_v45, %v7183_v13 }
 0x501   :  { %12577 = vst [vmem:[#allocation31_spill] sm:$0xff] %v7428_v56  ;;  %12578 = vst [vmem:[#allocation44_spill] sm:$0xff] %v7432_v58  ;;  %v7440_v55 = vmul.f32 %v7278_v41, %v12580_v19  ;;  %v12583_v56 = vld [vmem:[#allocation37_spill] sm:$0xff]  ;;  %v12584_v58 = vld [vmem:[#allocation50_spill] sm:$0xff]  ;;  %v7460_v19 = vmul.f32 %v7281_v7, %v7124_v26  ;;  %v7480_v26 = vmul.f32 %v7284_v45, %v7186_v48 }
 0x502   :  { %12581 = vst [vmem:[#allocation32_spill] sm:$0xff] %v7444_v20  ;;  %12582 = vst [vmem:[#allocation45_spill] sm:$0xff] %v7448_v30  ;;  %v7452_v33 = vmul.f32 %v7275_v51, %v12583_v56  ;;  %v7456_v0 = vmul.f32 %v7278_v41, %v12584_v58  ;;  %v12587_v20 = vld [vmem:[#allocation38_spill] sm:$0xff]  ;;  %v12588_v30 = vld [vmem:[#allocation51_spill] sm:$0xff]  ;;  %v7476_v58 = vmul.f32 %v7281_v7, %v7127_v38 }
 0x503   :  { %12585 = vst [vmem:[#allocation33_spill] sm:$0xff] %v7460_v19  ;;  %12586 = vst [vmem:[#allocation46_spill] sm:$0xff] %v7464_v47  ;;  %v7468_v53 = vmul.f32 %v7275_v51, %v12587_v20  ;;  %v7472_v56 = vmul.f32 %v7278_v41, %v12588_v30  ;;  %v12591_v19 = vld [vmem:[#allocation39_spill] sm:$0xff]  ;;  %v12592_v47 = vld [vmem:[#allocation52_spill] sm:$0xff]  ;;  %v7492_v30 = vmul.f32 %v7281_v7, %v7130_v60 }
 0x504   :  { %12589 = vst [vmem:[#allocation34_spill] sm:$0xff] %v7476_v58  ;;  %12590 = vst [vmem:[#allocation47_spill] sm:$0xff] %v7480_v26  ;;  %v7484_v13 = vmul.f32 %v7275_v51, %v12591_v19  ;;  %v7488_v20 = vmul.f32 %v7278_v41, %v12592_v47  ;;  %v7496_v38 = vmul.f32 %v7284_v45, %v7189_v10  ;;  %v12595_v58 = vld [vmem:[#allocation40_spill] sm:$0xff]  ;;  %v12596_v26 = vld [vmem:[#allocation53_spill] sm:$0xff] }
 0x505   :  { %12593 = vst [vmem:[#allocation35_spill] sm:$0xff] %v7492_v30  ;;  %v7500_v48 = vmul.f32 %v7275_v51, %v12595_v58  ;;  %v7504_v19 = vmul.f32 %v7278_v41, %v12596_v26  ;;  %v7508_v47 = vmul.f32 %v7281_v7, %v7132_v31  ;;  %v7512_v60 = vmul.f32 %v7284_v45, %v7194_v27  ;;  %v12599_v30 = vld [vmem:[#allocation41_spill] sm:$0xff] }
 0x506   :  { %12594 = vst [vmem:[#allocation48_spill] sm:$0xff] %v7496_v38  ;;  %v7516_v10 = vmul.f32 %v7275_v51, %v12599_v30  ;;  %v12600_v38 = vld [vmem:[#allocation54_spill] sm:$0xff]  ;;  %v7524_v26 = vmul.f32 %v7281_v7, %v7134_v34  ;;  %v7528_v31 = vmul.f32 %v7284_v45, %v7197_v22  ;;  %v7544_v34 = vmul.f32 %v7284_v45, %v7200_v54 }
 0x507   :  { %12597 = vst [vmem:[#allocation36_spill] sm:$0xff] %v7508_v47  ;;  %12598 = vst [vmem:[#allocation49_spill] sm:$0xff] %v7512_v60  ;;  %v7520_v58 = vmul.f32 %v7278_v41, %v12600_v38  ;;  %v12602_v47 = vld [vmem:[#allocation42_spill] sm:$0xff]  ;;  %v12603_v60 = vld [vmem:[#allocation55_spill] sm:$0xff]  ;;  %v7540_v38 = vmul.f32 %v7281_v7, %v7136_v18  ;;  %v1812_v22 = vmul.f32 %v7281_v7, %v7106_v25 }
 0x508   :  { %12601 = vst [vmem:[#allocation37_spill] sm:$0xff] %v7528_v31  ;;  %v7532_v27 = vmul.f32 %v7275_v51, %v12602_v47  ;;  %v7536_v30 = vmul.f32 %v7278_v41, %v12603_v60  ;;  %v1813_v31 = vmul.f32 %v7284_v45, %v7163_v43  ;;  %v7552_v51 = vadd.f32 %v7287_v35, %v7294_v24  ;;  %v12629_v47 = vld [vmem:[#allocation31_spill] sm:$0xff]  ;;  %v12631_v60 = vld [vmem:[#allocation44_spill] sm:$0xff] }
 0x509   :  { %v7556_v41 = vadd.f32 %v7290_v15, %v7298_v62  ;;  %v7560_v18 = vadd.f32 %v7301_v50, %v7308_v1  ;;  %v7564_v54 = vadd.f32 %v7304_v40, %v7312_v59  ;;  %v7568_v25 = vadd.f32 %v7287_v35, %v7316_v28 }
 0x50a   :  { %12604 = vst [vmem:[#allocation50_spill] sm:$0xff] %v7552_v51  ;;  %v7572_v43 = vadd.f32 %v7290_v15, %v7320_v17  ;;  %v7576_v7 = vadd.f32 %v7301_v50, %v7324_v36  ;;  %v7580_v45 = vadd.f32 %v7304_v40, %v7328_v61  ;;  %v7584_v24 = vadd.f32 %v7287_v35, %v7332_v23 }
 0x50b   :  { %12605 = vst [vmem:[#allocation38_spill] sm:$0xff] %v7556_v41  ;;  %12606 = vst [vmem:[#allocation51_spill] sm:$0xff] %v7560_v18  ;;  %v7588_v62 = vadd.f32 %v7290_v15, %v7336_v3  ;;  %v7592_v1 = vadd.f32 %v7301_v50, %v7340_v49  ;;  %v7596_v59 = vadd.f32 %v7304_v40, %v7344_v37 }
 0x50c   :  { %12607 = vst [vmem:[#allocation39_spill] sm:$0xff] %v7564_v54  ;;  %12608 = vst [vmem:[#allocation52_spill] sm:$0xff] %v7568_v25  ;;  %v7600_v28 = vadd.f32 %v7287_v35, %v7348_v46  ;;  %v7604_v17 = vadd.f32 %v7290_v15, %v7352_v2  ;;  %v7608_v36 = vadd.f32 %v7301_v50, %v7356_v32 }
 0x50d   :  { %12609 = vst [vmem:[#allocation40_spill] sm:$0xff] %v7572_v43  ;;  %12610 = vst [vmem:[#allocation53_spill] sm:$0xff] %v7576_v7  ;;  %v7612_v61 = vadd.f32 %v7304_v40, %v7360_v8  ;;  %v7616_v23 = vadd.f32 %v7287_v35, %v7364_v39  ;;  %v7620_v3 = vadd.f32 %v7290_v15, %v7368_v4 }
 0x50e   :  { %12611 = vst [vmem:[#allocation41_spill] sm:$0xff] %v7580_v45  ;;  %12612 = vst [vmem:[#allocation54_spill] sm:$0xff] %v7584_v24  ;;  %v7623_v49 = vadd.f32 %v7301_v50, %v1812_v22  ;;  %v7626_v37 = vadd.f32 %v7304_v40, %v1813_v31  ;;  %v7630_v46 = vadd.f32 %v7287_v35, %v7372_v42  ;;  %v12635_v22 = vld [vmem:[#allocation32_spill] sm:$0xff] }
 0x50f   :  { %12613 = vst [vmem:[#allocation42_spill] sm:$0xff] %v7588_v62  ;;  %12614 = vst [vmem:[#allocation55_spill] sm:$0xff] %v7592_v1  ;;  %v7634_v2 = vadd.f32 %v7290_v15, %v7376_v29  ;;  %v7638_v32 = vadd.f32 %v7301_v50, %v7380_v12  ;;  %v7642_v8 = vadd.f32 %v7304_v40, %v7384_v16 }
 0x510   :  { %12615 = vst [vmem:[#allocation58_spill] sm:$0xff] %v7596_v59  ;;  %12616 = vst [vmem:[#allocation59_spill] sm:$0xff] %v7600_v28  ;;  %v7646_v39 = vadd.f32 %v7287_v35, %v7388_v11  ;;  %v7650_v4 = vadd.f32 %v7290_v15, %v7392_v63  ;;  %v7654_v42 = vadd.f32 %v7301_v50, %v7396_v5  ;;  %v12626_v63 = vld [vmem:[#allocation43_spill] sm:$0xff] }
 0x511   :  { %12617 = vst [vmem:[#allocation60_spill] sm:$0xff] %v7604_v17  ;;  %12618 = vst [vmem:[#allocation61_spill] sm:$0xff] %v7608_v36  ;;  %v7658_v29 = vadd.f32 %v7304_v40, %v7400_v6  ;;  %v7662_v12 = vadd.f32 %v7287_v35, %v7404_v21  ;;  %v7666_v16 = vadd.f32 %v7290_v15, %v7408_v52 }
 0x512   :  { %12619 = vst [vmem:[#allocation62_spill] sm:$0xff] %v7612_v61  ;;  %12620 = vst [vmem:[#allocation63_spill] sm:$0xff] %v7616_v23  ;;  %v7670_v11 = vadd.f32 %v7301_v50, %v7412_v9  ;;  %v7674_v5 = vadd.f32 %v7304_v40, %v12626_v63  ;;  %v7678_v6 = vadd.f32 %v7287_v35, %v7420_v44  ;;  %v12637_v63 = vld [vmem:[#allocation45_spill] sm:$0xff] }
 0x513   :  { %12621 = vst [vmem:[#allocation64_spill] sm:$0xff] %v7620_v3  ;;  %12622 = vst [vmem:[#allocation65_spill] sm:$0xff] %v7630_v46  ;;  %v7682_v21 = vadd.f32 %v7290_v15, %v7424_v57  ;;  %v7686_v52 = vadd.f32 %v7301_v50, %v12629_v47  ;;  %v7690_v9 = vadd.f32 %v7304_v40, %v12631_v60 }
 0x514   :  { %12623 = vst [vmem:[#allocation66_spill] sm:$0xff] %v7642_v8  ;;  %12624 = vst [vmem:[#allocation67_spill] sm:$0xff] %v7654_v42  ;;  %v7694_v31 = vadd.f32 %v7287_v35, %v7436_v14  ;;  %v7698_v44 = vadd.f32 %v7290_v15, %v7440_v55  ;;  %v7702_v57 = vadd.f32 %v7301_v50, %v12635_v22 }
 0x515   :  { %12625 = vst [vmem:[#allocation68_spill] sm:$0xff] %v7666_v16  ;;  %12627 = vst [vmem:[#allocation43_spill] sm:$0xff] %v7674_v5  ;;  %v7706_v47 = vadd.f32 %v7304_v40, %v12637_v63  ;;  %v7710_v60 = vadd.f32 %v7287_v35, %v7452_v33  ;;  %v7714_v14 = vadd.f32 %v7290_v15, %v7456_v0 }
 0x516   :  { %12628 = vst [vmem:[#allocation69_spill] sm:$0xff] %v7678_v6  ;;  %12630 = vst [vmem:[#allocation31_spill] sm:$0xff] %v7686_v52  ;;  %v7726_v63 = vadd.f32 %v7287_v35, %v7468_v53  ;;  %v7730_v33 = vadd.f32 %v7290_v15, %v7472_v56  ;;  %v7746_v53 = vadd.f32 %v7290_v15, %v7488_v20 }
 0x517   :  { %12632 = vst [vmem:[#allocation44_spill] sm:$0xff] %v7690_v9  ;;  %12633 = vst [vmem:[#allocation70_spill] sm:$0xff] %v7694_v31  ;;  %v12640_v31 = vld [vmem:[#allocation33_spill] sm:$0xff] }
 0x518   :  { %12634 = vst [vmem:[#allocation71_spill] sm:$0xff] %v7698_v44  ;;  %12636 = vst [vmem:[#allocation32_spill] sm:$0xff] %v7702_v57  ;;  %v7718_v55 = vadd.f32 %v7301_v50, %v12640_v31  ;;  %v12641_v44 = vld [vmem:[#allocation46_spill] sm:$0xff] }
 0x519   :  { %12638 = vst [vmem:[#allocation45_spill] sm:$0xff] %v7710_v60  ;;  %12639 = vst [vmem:[#allocation72_spill] sm:$0xff] %v7714_v14  ;;  %v7722_v22 = vadd.f32 %v7304_v40, %v12641_v44  ;;  %v12645_v60 = vld [vmem:[#allocation34_spill] sm:$0xff]  ;;  %v12646_v14 = vld [vmem:[#allocation47_spill] sm:$0xff]  ;;  %v7742_v44 = vadd.f32 %v7287_v35, %v7484_v13  ;;  %v7762_v13 = vadd.f32 %v7290_v15, %v7504_v19 }
 0x51a   :  { %12643 = vst [vmem:[#allocation46_spill] sm:$0xff] %v7726_v63  ;;  %12644 = vst [vmem:[#allocation73_spill] sm:$0xff] %v7730_v33  ;;  %v7734_v0 = vadd.f32 %v7301_v50, %v12645_v60  ;;  %v7738_v31 = vadd.f32 %v7304_v40, %v12646_v14  ;;  %v12650_v63 = vld [vmem:[#allocation35_spill] sm:$0xff]  ;;  %v12652_v33 = vld [vmem:[#allocation48_spill] sm:$0xff]  ;;  %v7758_v14 = vadd.f32 %v7287_v35, %v7500_v48 }
 0x51b   :  { %12642 = vst [vmem:[#allocation33_spill] sm:$0xff] %v7722_v22  ;;  %12648 = vst [vmem:[#allocation47_spill] sm:$0xff] %v7742_v44  ;;  %v7750_v56 = vadd.f32 %v7301_v50, %v12650_v63  ;;  %v7754_v60 = vadd.f32 %v7304_v40, %v12652_v33  ;;  %v12655_v44 = vld [vmem:[#allocation36_spill] sm:$0xff]  ;;  %v7774_v33 = vadd.f32 %v7287_v35, %v7516_v10 }
 0x51c   :  { %12647 = vst [vmem:[#allocation34_spill] sm:$0xff] %v7738_v31  ;;  %12649 = vst [vmem:[#allocation74_spill] sm:$0xff] %v7746_v53  ;;  %v7766_v20 = vadd.f32 %v7301_v50, %v12655_v44  ;;  %v12657_v53 = vld [vmem:[#allocation49_spill] sm:$0xff]  ;;  %v7778_v48 = vadd.f32 %v7290_v15, %v7520_v58  ;;  %v7782_v19 = vadd.f32 %v7301_v50, %v7524_v26  ;;  %v7804_v26 = vmul.f32 0.2, %v7556_v41 }
 0x51d   :  { %12651 = vst [vmem:[#allocation35_spill] sm:$0xff] %v7750_v56  ;;  %12653 = vst [vmem:[#allocation48_spill] sm:$0xff] %v7758_v14  ;;  %v7770_v63 = vadd.f32 %v7304_v40, %v12657_v53  ;;  %v7790_v53 = vadd.f32 %v7287_v35, %v7532_v27  ;;  %v7794_v10 = vadd.f32 %v7290_v15, %v7536_v30  ;;  %v7814_v15 = vmul.f32 0.2, %v7564_v54 }
 0x51e   :  { %12654 = vst [vmem:[#allocation75_spill] sm:$0xff] %v7762_v13  ;;  %12656 = vst [vmem:[#allocation36_spill] sm:$0xff] %v7766_v20  ;;  %v12662_v13 = vld [vmem:[#allocation37_spill] sm:$0xff]  ;;  %v7798_v58 = vadd.f32 %v7301_v50, %v7540_v38  ;;  %v7811_v35 = vadd.f32 %v7304_v40, %v7544_v34  ;;  %v7817_v27 = vmul.f32 0.2, %v7568_v25 }
 0x51f   :  { %12658 = vst [vmem:[#allocation49_spill] sm:$0xff] %v7770_v63  ;;  %12659 = vst [vmem:[#allocation76_spill] sm:$0xff] %v7774_v33  ;;  %v7786_v44 = vadd.f32 %v7304_v40, %v12662_v13  ;;  %v7807_v13 = vmul.f32 0.2, %v7560_v18  ;;  %v7820_v50 = vmul.f32 0.2, %v7572_v43 }
 0x520   :  { %12660 = vst [vmem:[#allocation77_spill] sm:$0xff] %v7778_v48  ;;  %12661 = vst [vmem:[#allocation78_spill] sm:$0xff] %v7782_v19  ;;  %v7801_v48 = vmul.f32 0.2, %v7552_v51  ;;  %v7823_v30 = vmul.f32 0.2, %v7576_v7 }
 0x521   :  { %12663 = vst [vmem:[#allocation37_spill] sm:$0xff] %v7786_v44  ;;  %12664 = vst [vmem:[#allocation79_spill] sm:$0xff] %v7790_v53  ;;  %v7826_v38 = vmul.f32 0.2, %v7580_v45  ;;  %v7834_v34 = vmul.f32 0.2, %v7588_v62 }
 0x522   :  { %12665 = vst [vmem:[#allocation80_spill] sm:$0xff] %v7794_v10  ;;  %12666 = vst [vmem:[#allocation81_spill] sm:$0xff] %v7798_v58  ;;  %v7829_v58 = vmul.f32 0.2, %v7584_v24  ;;  %v7840_v10 = vmul.f32 0.2, %v7596_v59 }
 0x523   :  { %12667 = vst [vmem:[#allocation82_spill] sm:$0xff] %v7801_v48  ;;  %12668 = vst [vmem:[#allocation83_spill] sm:$0xff] %v7804_v26  ;;  %v7845_v44 = vmul.f32 0.2, %v7600_v28  ;;  %v7848_v19 = vmul.f32 0.2, %v7604_v17 }
 0x524   :  { %12669 = vst [vmem:[#allocation84_spill] sm:$0xff] %v7807_v13  ;;  %12670 = vst [vmem:[#allocation85_spill] sm:$0xff] %v7811_v35  ;;  %v7837_v35 = vmul.f32 0.2, %v7592_v1  ;;  %v7851_v40 = vmul.f32 0.2, %v7608_v36 }
 0x525   :  { %12671 = vst [vmem:[#allocation86_spill] sm:$0xff] %v7814_v15  ;;  %12672 = vst [vmem:[#allocation87_spill] sm:$0xff] %v7817_v27  ;;  %v7856_v51 = vmul.f32 0.2, %v7612_v61  ;;  %v7859_v33 = vmul.f32 0.2, %v7616_v23 }
 0x526   :  { %12673 = vst [vmem:[#allocation88_spill] sm:$0xff] %v7820_v50  ;;  %12674 = vst [vmem:[#allocation89_spill] sm:$0xff] %v7823_v30  ;;  %v7862_v53 = vmul.f32 0.2, %v7620_v3  ;;  %v7867_v41 = vmul.f32 0.2, %v7623_v49 }
 0x527   :  { %12675 = vst [vmem:[#allocation90_spill] sm:$0xff] %v7826_v38  ;;  %12676 = vst [vmem:[#allocation91_spill] sm:$0xff] %v7829_v58  ;;  %v7870_v63 = vmul.f32 0.2, %v7626_v37  ;;  %v7873_v48 = vmul.f32 0.2, %v7630_v46 }
 0x528   :  { %12677 = vst [vmem:[#allocation92_spill] sm:$0xff] %v7834_v34  ;;  %12678 = vst [vmem:[#allocation93_spill] sm:$0xff] %v7837_v35  ;;  %v7878_v18 = vmul.f32 0.2, %v7634_v2  ;;  %v7881_v3 = vmul.f32 0.2, %v7638_v32 }
 0x529   :  { %12679 = vst [vmem:[#allocation94_spill] sm:$0xff] %v7840_v10  ;;  %12680 = vst [vmem:[#allocation95_spill] sm:$0xff] %v7845_v44  ;;  %v7884_v26 = vmul.f32 0.2, %v7642_v8  ;;  %v7889_v54 = vmul.f32 0.2, %v7646_v39 }
 0x52a   :  { %12681 = vst [vmem:[#allocation96_spill] sm:$0xff] %v7848_v19  ;;  %12682 = vst [vmem:[#allocation97_spill] sm:$0xff] %v7851_v40  ;;  %v7892_v46 = vmul.f32 0.2, %v7650_v4  ;;  %v7895_v13 = vmul.f32 0.2, %v7654_v42 }
 0x52b   :  { %12683 = vst [vmem:[#allocation98_spill] sm:$0xff] %v7856_v51  ;;  %12684 = vst [vmem:[#allocation99_spill] sm:$0xff] %v7859_v33  ;;  %v7900_v25 = vmul.f32 0.2, %v7658_v29  ;;  %v7903_v8 = vmul.f32 0.2, %v7662_v12  ;;  %v2025_v33 = vmax.f32 %v7623_v49, %v7867_v41  ;;  %v2031_v41 = vmax.f32 %v7646_v39, %v7889_v54 }
 0x52c   :  { %v7906_v15 = vmul.f32 0.2, %v7666_v16  ;;  %v7911_v43 = vmul.f32 0.2, %v7670_v11  ;;  %v7914_v42 = vmul.f32 0.2, %v7674_v5  ;;  %v2032_v49 = vmax.f32 %v7650_v4, %v7892_v46 }
 0x52d   :  { %v7917_v27 = vmul.f32 0.2, %v7678_v6  ;;  %v7922_v7 = vmul.f32 0.2, %v7682_v21  ;;  %v7925_v16 = vmul.f32 0.2, %v7686_v52 }
 0x52e   :  { %v7928_v50 = vmul.f32 0.2, %v7690_v9  ;;  %v12687_v45 = vld [vmem:[#allocation70_spill] sm:$0xff]  ;;  %v12688_v6 = vld [vmem:[#allocation71_spill] sm:$0xff]  ;;  %v7939_v30 = vmul.f32 0.2, %v7702_v57 }
 0x52f   :  { %12685 = vst [vmem:[#allocation100_spill] sm:$0xff] %v7917_v27  ;;  %v7933_v5 = vmul.f32 0.2, %v12687_v45  ;;  %v7936_v27 = vmul.f32 0.2, %v12688_v6  ;;  %v12690_v9 = vld [vmem:[#allocation45_spill] sm:$0xff] }
 0x530   :  { %12686 = vst [vmem:[#allocation101_spill] sm:$0xff] %v7928_v50  ;;  %12689 = vst [vmem:[#allocation70_spill] sm:$0xff] %v7939_v30  ;;  %v7944_v24 = vmul.f32 0.2, %v7706_v47  ;;  %v7947_v50 = vmul.f32 0.2, %v12690_v9 }
 0x531   :  { %v12691_v52 = vld [vmem:[#allocation72_spill] sm:$0xff]  ;;  %v7955_v62 = vmul.f32 0.2, %v7718_v55  ;;  %v7958_v57 = vmul.f32 0.2, %v7722_v22  ;;  %v12692_v30 = vld [vmem:[#allocation46_spill] sm:$0xff] }
 0x532   :  { %v7950_v38 = vmul.f32 0.2, %v12691_v52  ;;  %v7961_v58 = vmul.f32 0.2, %v12692_v30  ;;  %v12694_v1 = vld [vmem:[#allocation73_spill] sm:$0xff]  ;;  %v12696_v59 = vld [vmem:[#allocation47_spill] sm:$0xff] }
 0x533   :  { %v7966_v9 = vmul.f32 0.2, %v12694_v1  ;;  %v7969_v52 = vmul.f32 0.2, %v7734_v0  ;;  %v7972_v34 = vmul.f32 0.2, %v7738_v31 }
 0x534   :  { %12693 = vst [vmem:[#allocation71_spill] sm:$0xff] %v7961_v58  ;;  %v7977_v22 = vmul.f32 0.2, %v12696_v59  ;;  %v12697_v30 = vld [vmem:[#allocation74_spill] sm:$0xff]  ;;  %v7983_v35 = vmul.f32 0.2, %v7750_v56 }
 0x535   :  { %12695 = vst [vmem:[#allocation73_spill] sm:$0xff] %v7972_v34  ;;  %v7980_v58 = vmul.f32 0.2, %v12697_v30  ;;  %v7988_v28 = vmul.f32 0.2, %v7754_v60  ;;  %v12700_v34 = vld [vmem:[#allocation75_spill] sm:$0xff] }
 0x536   :  { %12698 = vst [vmem:[#allocation47_spill] sm:$0xff] %v7983_v35  ;;  %v7991_v31 = vmul.f32 0.2, %v7758_v14  ;;  %v7994_v10 = vmul.f32 0.2, %v12700_v34  ;;  %v12702_v56 = vld [vmem:[#allocation49_spill] sm:$0xff] }
 0x537   :  { %v7999_v17 = vmul.f32 0.2, %v7766_v20  ;;  %v8002_v35 = vmul.f32 0.2, %v12702_v56  ;;  %v12704_v30 = vld [vmem:[#allocation76_spill] sm:$0xff]  ;;  %v12706_v36 = vld [vmem:[#allocation77_spill] sm:$0xff] }
 0x538   :  { %12699 = vst [vmem:[#allocation102_spill] sm:$0xff] %v7991_v31  ;;  %12701 = vst [vmem:[#allocation103_spill] sm:$0xff] %v7994_v10  ;;  %v8005_v44 = vmul.f32 0.2, %v12704_v30  ;;  %v8010_v14 = vmul.f32 0.2, %v12706_v36 }
 0x539   :  { %12703 = vst [vmem:[#allocation104_spill] sm:$0xff] %v8002_v35  ;;  %v12707_v34 = vld [vmem:[#allocation78_spill] sm:$0xff]  ;;  %v12708_v31 = vld [vmem:[#allocation37_spill] sm:$0xff]  ;;  %v12709_v51 = vld [vmem:[#allocation64_spill] sm:$0xff] }
 0x53a   :  { %12705 = vst [vmem:[#allocation105_spill] sm:$0xff] %v8005_v44  ;;  %v8013_v10 = vmul.f32 0.2, %v12707_v34  ;;  %v8016_v19 = vmul.f32 0.2, %v12708_v31  ;;  %v2024_v61 = vmax.f32 %v12709_v51, %v7862_v53  ;;  %v12710_v56 = vld [vmem:[#allocation79_spill] sm:$0xff]  ;;  %v2026_v31 = vmax.f32 %v7626_v37, %v7870_v63 }
 0x53b   :  { %v8021_v35 = vmul.f32 0.2, %v12710_v56  ;;  %v12711_v30 = vld [vmem:[#allocation80_spill] sm:$0xff]  ;;  %v12712_v20 = vld [vmem:[#allocation81_spill] sm:$0xff]  ;;  %v2028_v56 = vmax.f32 %v7634_v2, %v7878_v18  ;;  %v12717_v37 = vld [vmem:[#allocation67_spill] sm:$0xff]  ;;  %v2035_v18 = vmax.f32 %v7662_v12, %v7903_v8 }
 0x53c   :  { %v8024_v44 = vmul.f32 0.2, %v12711_v30  ;;  %v8027_v40 = vmul.f32 0.2, %v12712_v20  ;;  %v12714_v23 = vld [vmem:[#allocation85_spill] sm:$0xff]  ;;  %v2029_v30 = vmax.f32 %v7638_v32, %v7881_v3  ;;  %v12716_v20 = vld [vmem:[#allocation66_spill] sm:$0xff]  ;;  %v2033_v63 = vmax.f32 %v12717_v37, %v7895_v13 }
 0x53d   :  { %v8032_v34 = vmul.f32 0.2, %v12714_v23  ;;  %v12715_v51 = vld [vmem:[#allocation65_spill] sm:$0xff]  ;;  %v12718_v3 = vld [vmem:[#allocation68_spill] sm:$0xff]  ;;  %v2037_v32 = vmax.f32 %v7670_v11, %v7911_v43  ;;  %v12719_v54 = vld [vmem:[#allocation43_spill] sm:$0xff]  ;;  %v2044_v43 = vmax.f32 %v12688_v6, %v7936_v27  ;;  %v2046_v37 = vmax.f32 %v7706_v47, %v7944_v24 }
 0x53e   :  { %12713 = vst [vmem:[#allocation77_spill] sm:$0xff] %v8027_v40  ;;  %v2027_v53 = vmax.f32 %v12715_v51, %v7873_v48  ;;  %v2030_v40 = vmax.f32 %v12716_v20, %v7884_v26  ;;  %v2034_v48 = vmax.f32 %v7658_v29, %v7900_v25  ;;  %v2036_v2 = vmax.f32 %v12718_v3, %v7906_v15  ;;  %v12720_v20 = vld [vmem:[#allocation100_spill] sm:$0xff]  ;;  %v12721_v46 = vld [vmem:[#allocation69_spill] sm:$0xff]  ;;  %v12722_v25 = vld [vmem:[#allocation31_spill] sm:$0xff] }
 0x53f   :  { %v2038_v39 = vmax.f32 %v12719_v54, %v7914_v42  ;;  %v2039_v4 = vmax.f32 %v12721_v46, %v12720_v20  ;;  %v2040_v26 = vmax.f32 %v7682_v21, %v7922_v7  ;;  %v2041_v29 = vmax.f32 %v12722_v25, %v7925_v16  ;;  %v12723_v13 = vld [vmem:[#allocation101_spill] sm:$0xff]  ;;  %v12724_v8 = vld [vmem:[#allocation44_spill] sm:$0xff]  ;;  %v12725_v11 = vld [vmem:[#allocation70_spill] sm:$0xff] }
 0x540   :  { %v2042_v12 = vmax.f32 %v12724_v8, %v12723_v13  ;;  %v2043_v15 = vmax.f32 %v12687_v45, %v7933_v5  ;;  %v12726_v42 = vld [vmem:[#allocation32_spill] sm:$0xff]  ;;  %v12727_v7 = vld [vmem:[#allocation45_spill] sm:$0xff]  ;;  %v2049_v54 = vmax.f32 %v7718_v55, %v7955_v62  ;;  %v12730_v20 = vld [vmem:[#allocation71_spill] sm:$0xff]  ;;  %v2052_v46 = vmax.f32 %v12694_v1, %v7966_v9 }
 0x541   :  { %v2045_v51 = vmax.f32 %v12726_v42, %v12725_v11  ;;  %v2047_v21 = vmax.f32 %v12727_v7, %v7947_v50  ;;  %v12728_v16 = vld [vmem:[#allocation72_spill] sm:$0xff]  ;;  %v12729_v45 = vld [vmem:[#allocation33_spill] sm:$0xff]  ;;  %v12731_v6 = vld [vmem:[#allocation46_spill] sm:$0xff]  ;;  %v2053_v24 = vmax.f32 %v7734_v0, %v7969_v52  ;;  %v2058_v11 = vmax.f32 %v7754_v60, %v7988_v28 }
 0x542   :  { %v2048_v3 = vmax.f32 %v12728_v16, %v7950_v38  ;;  %v2050_v5 = vmax.f32 %v12729_v45, %v7958_v57  ;;  %v2051_v27 = vmax.f32 %v12731_v6, %v12730_v20  ;;  %v12732_v47 = vld [vmem:[#allocation73_spill] sm:$0xff]  ;;  %v12733_v50 = vld [vmem:[#allocation34_spill] sm:$0xff]  ;;  %v2055_v38 = vmax.f32 %v12696_v59, %v7977_v22  ;;  %v12735_v13 = vld [vmem:[#allocation47_spill] sm:$0xff] }
 0x543   :  { %v2054_v25 = vmax.f32 %v12733_v50, %v12732_v47  ;;  %v12734_v62 = vld [vmem:[#allocation74_spill] sm:$0xff]  ;;  %v12736_v57 = vld [vmem:[#allocation35_spill] sm:$0xff]  ;;  %v12738_v1 = vld [vmem:[#allocation48_spill] sm:$0xff]  ;;  %v2064_v50 = vmax.f32 %v12706_v36, %v8010_v14 }
 0x544   :  { %v2056_v55 = vmax.f32 %v12734_v62, %v7980_v58  ;;  %v2057_v8 = vmax.f32 %v12736_v57, %v12735_v13  ;;  %v12737_v42 = vld [vmem:[#allocation102_spill] sm:$0xff]  ;;  %v12739_v7 = vld [vmem:[#allocation103_spill] sm:$0xff]  ;;  %v12741_v16 = vld [vmem:[#allocation36_spill] sm:$0xff] }
 0x545   :  { %v2059_v9 = vmax.f32 %v12738_v1, %v12737_v42  ;;  %v12740_v52 = vld [vmem:[#allocation75_spill] sm:$0xff]  ;;  %v2061_v45 = vmax.f32 %v12741_v16, %v7999_v17  ;;  %v12742_v20 = vld [vmem:[#allocation104_spill] sm:$0xff]  ;;  %v12743_v59 = vld [vmem:[#allocation49_spill] sm:$0xff] }
 0x546   :  { %v2060_v0 = vmax.f32 %v12740_v52, %v12739_v7  ;;  %v2062_v22 = vmax.f32 %v12743_v59, %v12742_v20  ;;  %v12744_v6 = vld [vmem:[#allocation105_spill] sm:$0xff]  ;;  %v12745_v58 = vld [vmem:[#allocation76_spill] sm:$0xff]  ;;  %v12746_v28 = vld [vmem:[#allocation78_spill] sm:$0xff]  ;;  %v2070_v20 = vmax.f32 %v12714_v23, %v8032_v34 }
 0x547   :  { %v2063_v47 = vmax.f32 %v12745_v58, %v12744_v6  ;;  %v2065_v60 = vmax.f32 %v12746_v28, %v8013_v10  ;;  %v12747_v62 = vld [vmem:[#allocation37_spill] sm:$0xff]  ;;  %v12748_v57 = vld [vmem:[#allocation79_spill] sm:$0xff]  ;;  %v12749_v17 = vld [vmem:[#allocation80_spill] sm:$0xff] }
 0x548   :  { %v2066_v13 = vmax.f32 %v12747_v62, %v8016_v19  ;;  %v2067_v42 = vmax.f32 %v12748_v57, %v8021_v35  ;;  %v2068_v1 = vmax.f32 %v12749_v17, %v8024_v44  ;;  %v12750_v7 = vld [vmem:[#allocation77_spill] sm:$0xff]  ;;  %v12752_v59 = vld [vmem:[#allocation50_spill] sm:$0xff]  ;;  %v12755_v6 = vld [vmem:[#allocation52_spill] sm:$0xff] }
 0x549   :  { %v12751_v52 = vld [vmem:[#allocation81_spill] sm:$0xff]  ;;  %v12753_v36 = vld [vmem:[#allocation82_spill] sm:$0xff]  ;;  %v12756_v10 = vld [vmem:[#allocation87_spill] sm:$0xff] }
 0x54a   :  { %v2069_v16 = vmax.f32 %v12751_v52, %v12750_v7  ;;  %v12754_v14 = vmax.f32 %v12752_v59, %v12753_v36  ;;  %v12757_v58 = vmax.f32 %v12755_v6, %v12756_v10  ;;  %v12759_v19 = vld [vmem:[#allocation38_spill] sm:$0xff]  ;;  %v12760_v62 = vld [vmem:[#allocation83_spill] sm:$0xff]  ;;  %v12762_v57 = vld [vmem:[#allocation40_spill] sm:$0xff] }
 0x54b   :  { %v12761_v35 = vmax.f32 %v12759_v19, %v12760_v62  ;;  %v12763_v17 = vld [vmem:[#allocation88_spill] sm:$0xff]  ;;  %v12766_v52 = vld [vmem:[#allocation51_spill] sm:$0xff]  ;;  %v12769_v36 = vld [vmem:[#allocation53_spill] sm:$0xff] }
 0x54c   :  { %v8130_v28 = vpack.c.bf16 %v12757_v58, %v12754_v14  ;;  %v12764_v44 = vmax.f32 %v12762_v57, %v12763_v17  ;;  %v12767_v23 = vld [vmem:[#allocation84_spill] sm:$0xff]  ;;  %v12770_v59 = vld [vmem:[#allocation89_spill] sm:$0xff]  ;;  %v12773_v14 = vld [vmem:[#allocation39_spill] sm:$0xff] }
 0x54d   :  { %v12768_v34 = vmax.f32 %v12766_v52, %v12767_v23  ;;  %v12771_v6 = vmax.f32 %v12769_v36, %v12770_v59  ;;  %v12774_v58 = vld [vmem:[#allocation86_spill] sm:$0xff]  ;;  %v12776_v19 = vld [vmem:[#allocation41_spill] sm:$0xff]  ;;  %v12783_v23 = vld [vmem:[#allocation59_spill] sm:$0xff] }
 0x54e   :  { %12758 = vst [vmem:[#allocation64_spill] sm:$0xff] %v8130_v28  ;;  %v8138_v7 = vpack.c.bf16 %v12764_v44, %v12761_v35  ;;  %v12775_v28 = vmax.f32 %v12773_v14, %v12774_v58  ;;  %v12777_v62 = vld [vmem:[#allocation90_spill] sm:$0xff]  ;;  %v12781_v44 = vld [vmem:[#allocation91_spill] sm:$0xff]  ;;  %v12790_v14 = vld [vmem:[#allocation60_spill] sm:$0xff] }
 0x54f   :  { %v8146_v10 = vpack.c.bf16 %v12771_v6, %v12768_v34  ;;  %v12778_v17 = vmax.f32 %v12776_v19, %v12777_v62  ;;  %v12780_v35 = vld [vmem:[#allocation54_spill] sm:$0xff]  ;;  %v12784_v52 = vld [vmem:[#allocation95_spill] sm:$0xff]  ;;  %v12788_v34 = vld [vmem:[#allocation92_spill] sm:$0xff] }
 0x550   :  { %12765 = vst [vmem:[#allocation85_spill] sm:$0xff] %v8138_v7  ;;  %v12782_v7 = vmax.f32 %v12780_v35, %v12781_v44  ;;  %v12785_v36 = vmax.f32 %v12783_v23, %v12784_v52  ;;  %v12787_v6 = vld [vmem:[#allocation42_spill] sm:$0xff]  ;;  %v12791_v58 = vld [vmem:[#allocation96_spill] sm:$0xff]  ;;  %v12797_v35 = vld [vmem:[#allocation61_spill] sm:$0xff] }
 0x551   :  { %12772 = vst [vmem:[#allocation65_spill] sm:$0xff] %v8146_v10  ;;  %v8154_v57 = vpack.c.bf16 %v12778_v17, %v12775_v28  ;;  %v12789_v10 = vmax.f32 %v12787_v6, %v12788_v34  ;;  %v12792_v19 = vmax.f32 %v12790_v14, %v12791_v58  ;;  %v12794_v17 = vld [vmem:[#allocation55_spill] sm:$0xff]  ;;  %v12795_v28 = vld [vmem:[#allocation93_spill] sm:$0xff]  ;;  %v12803_v6 = vld [vmem:[#allocation62_spill] sm:$0xff] }
 0x552   :  { %v8162_v59 = vpack.c.bf16 %v12785_v36, %v12782_v7  ;;  %v12798_v44 = vld [vmem:[#allocation97_spill] sm:$0xff]  ;;  %v12800_v7 = vld [vmem:[#allocation58_spill] sm:$0xff] }
 0x553   :  { %12779 = vst [vmem:[#allocation66_spill] sm:$0xff] %v8154_v57  ;;  %v8170_v62 = vpack.c.bf16 %v12792_v19, %v12789_v10  ;;  %v12796_v57 = vmax.f32 %v12794_v17, %v12795_v28  ;;  %v12799_v23 = vmax.f32 %v12797_v35, %v12798_v44  ;;  %v12801_v36 = vld [vmem:[#allocation94_spill] sm:$0xff]  ;;  %v12806_v10 = vld [vmem:[#allocation63_spill] sm:$0xff]  ;;  %v8193_v28 = vpack.c.bf16 %v2028_v56, %v2024_v61 }
 0x554   :  { %12786 = vst [vmem:[#allocation67_spill] sm:$0xff] %v8162_v59  ;;  %v12802_v59 = vmax.f32 %v12800_v7, %v12801_v36  ;;  %v12804_v34 = vld [vmem:[#allocation98_spill] sm:$0xff]  ;;  %v12807_v19 = vld [vmem:[#allocation99_spill] sm:$0xff]  ;;  %v8195_v35 = vpack.c.bf16 %v2029_v30, %v2025_v33  ;;  %v8197_v44 = vpack.c.bf16 %v2030_v40, %v2026_v31  ;;  %v8203_v7 = vpack.c.bf16 %v2037_v32, %v2033_v63 }
 0x555   :  { %12793 = vst [vmem:[#allocation68_spill] sm:$0xff] %v8170_v62  ;;  %v8178_v52 = vpack.c.bf16 %v12799_v23, %v12796_v57  ;;  %v12805_v14 = vmax.f32 %v12803_v6, %v12804_v34  ;;  %v12808_v62 = vmax.f32 %v12806_v10, %v12807_v19  ;;  %v8199_v57 = vpack.c.bf16 %v2035_v18, %v2031_v41 }
 0x556   :  { %v8201_v23 = vpack.c.bf16 %v2036_v2, %v2032_v49  ;;  %v8205_v36 = vpack.c.bf16 %v2038_v39, %v2034_v48  ;;  %v8209_v6 = vpack.c.bf16 %v2044_v43, %v2040_v26  ;;  %v8213_v61 = vpack.c.bf16 %v2046_v37, %v2042_v12 }
 0x557   :  { %v8186_v58 = vpack.c.bf16 %v12805_v14, %v12802_v59  ;;  %v8191_v17 = vpack.c.bf16 %v2027_v53, %v12808_v62  ;;  %v8207_v59 = vpack.c.bf16 %v2043_v15, %v2039_v4  ;;  %v8211_v53 = vpack.c.bf16 %v2045_v51, %v2041_v29 }
 0x558   :  { %v8215_v56 = vpack.c.bf16 %v2051_v27, %v2047_v21  ;;  %v8217_v31 = vpack.c.bf16 %v2052_v46, %v2048_v3  ;;  %v8219_v33 = vpack.c.bf16 %v2053_v24, %v2049_v54  ;;  %v8221_v30 = vpack.c.bf16 %v2054_v25, %v2050_v5 }
 0x559   :  { %v8223_v40 = vpack.c.bf16 %v2059_v9, %v2055_v38  ;;  %v8225_v41 = vpack.c.bf16 %v2060_v0, %v2056_v55  ;;  %v8227_v49 = vpack.c.bf16 %v2061_v45, %v2057_v8  ;;  %v8229_v63 = vpack.c.bf16 %v2062_v22, %v2058_v11 }
 0x55a   :  { %v8231_v48 = vpack.c.bf16 %v2067_v42, %v2063_v47  ;;  %v8233_v18 = vpack.c.bf16 %v2068_v1, %v2064_v50  ;;  %v8235_v2 = vpack.c.bf16 %v2069_v16, %v2065_v60  ;;  %v8237_v32 = vpack.c.bf16 %v2070_v20, %v2066_v13 }
 0x55b   :  { %5905 = dma.done.wait [#allocation7 + $0x3], 32768 }
 0x55c   :  { %5906 = vsyncadd [#allocation7 + $0x3], 4294934528  ;;  %v12809_v39 = vld [vmem:[#allocation85_spill] sm:$0xff]  ;;  %v2108_v4 = vld [vmem:[#allocation5 + $0x8] sm:$0xff] }
 0x55d   :  { %2395 = vmatprep.mubr.bf16.mxu0 %v12809_v39  ;;  %2621 = vmatprep.mubr.bf16.mxu1 %v12809_v39  ;;  %v2110_v26 = vld [vmem:[#allocation5 + $0x18] sm:$0xff]  ;;  %v2107_v29 = vld [vmem:[#allocation5] sm:$0xff]  ;;  %v2109_v12 = vld [vmem:[#allocation5 + $0x10] sm:$0xff] }
 0x55e   :  { %2363 = vmatprep.subr.bf16.mxu0 %v2108_v4  ;;  %2589 = vmatprep.subr.bf16.mxu1 %v2110_v26  ;;  %v2116_v15 = vld [vmem:[#allocation5 + $0x48] sm:$0xff]  ;;  %v2118_v43 = vld [vmem:[#allocation5 + $0x58] sm:$0xff]  ;;  %v2115_v51 = vld [vmem:[#allocation5 + $0x40] sm:$0xff] }
 0x55f   :  { %2364 = vmatpush1.bf16.msra.mxu0 %v2107_v29  ;;  %2590 = vmatpush1.bf16.msra.mxu1 %v2109_v12  ;;  %v2117_v37 = vld [vmem:[#allocation5 + $0x50] sm:$0xff]  ;;  %v2124_v21 = vld [vmem:[#allocation5 + $0x88] sm:$0xff]  ;;  %v2126_v3 = vld [vmem:[#allocation5 + $0x98] sm:$0xff] }
 0x560   :  { %2365 = vmatprep.subr.bf16.mxu0 %v2116_v15  ;;  %2591 = vmatprep.subr.bf16.mxu1 %v2118_v43  ;;  %v2123_v54 = vld [vmem:[#allocation5 + $0x80] sm:$0xff]  ;;  %v2125_v5 = vld [vmem:[#allocation5 + $0x90] sm:$0xff]  ;;  %v2132_v27 = vld [vmem:[#allocation5 + $0xc8] sm:$0xff] }
 0x561   :  { %v2134_v46 = vld [vmem:[#allocation5 + $0xd8] sm:$0xff]  ;;  %v2131_v24 = vld [vmem:[#allocation5 + $0xc0] sm:$0xff]  ;;  %v2133_v25 = vld [vmem:[#allocation5 + $0xd0] sm:$0xff] }
 0x562   :  { %v2140_v38 = vld [vmem:[#allocation5 + $0x108] sm:$0xff]  ;;  %v2142_v55 = vld [vmem:[#allocation5 + $0x118] sm:$0xff]  ;;  %v2139_v8 = vld [vmem:[#allocation5 + $0x100] sm:$0xff] }
 0x563   :  { %2366 = vmatpush1.bf16.msra.mxu0 %v2115_v51  ;;  %2592 = vmatpush1.bf16.msra.mxu1 %v2117_v37  ;;  %v2141_v11 = vld [vmem:[#allocation5 + $0x110] sm:$0xff]  ;;  %v2148_v9 = vld [vmem:[#allocation5 + $0x148] sm:$0xff]  ;;  %v2150_v0 = vld [vmem:[#allocation5 + $0x158] sm:$0xff] }
 0x564   :  { %2367 = vmatprep.subr.bf16.mxu0 %v2124_v21  ;;  %2593 = vmatprep.subr.bf16.mxu1 %v2126_v3  ;;  %v2147_v45 = vld [vmem:[#allocation5 + $0x140] sm:$0xff]  ;;  %v2149_v22 = vld [vmem:[#allocation5 + $0x150] sm:$0xff]  ;;  %v2156_v47 = vld [vmem:[#allocation5 + $0x188] sm:$0xff] }
 0x565   :  { %v2158_v50 = vld [vmem:[#allocation5 + $0x198] sm:$0xff]  ;;  %v2155_v60 = vld [vmem:[#allocation5 + $0x180] sm:$0xff]  ;;  %v2157_v13 = vld [vmem:[#allocation5 + $0x190] sm:$0xff] }
 0x566   :  { %v2164_v42 = vld [vmem:[#allocation5 + $0x1c8] sm:$0xff]  ;;  %v2166_v1 = vld [vmem:[#allocation5 + $0x1d8] sm:$0xff]  ;;  %v2163_v16 = vld [vmem:[#allocation5 + $0x1c0] sm:$0xff] }
 0x567   :  { %2368 = vmatpush1.bf16.msra.mxu0 %v2123_v54  ;;  %2594 = vmatpush1.bf16.msra.mxu1 %v2125_v5  ;;  %v2165_v20 = vld [vmem:[#allocation5 + $0x1d0] sm:$0xff]  ;;  %v2172_v62 = vld [vmem:[#allocation5 + $0x208] sm:$0xff]  ;;  %v2174_v34 = vld [vmem:[#allocation5 + $0x218] sm:$0xff] }
 0x568   :  { %2369 = vmatprep.subr.bf16.mxu0 %v2132_v27  ;;  %2595 = vmatprep.subr.bf16.mxu1 %v2134_v46  ;;  %v2171_v14 = vld [vmem:[#allocation5 + $0x200] sm:$0xff]  ;;  %v2173_v10 = vld [vmem:[#allocation5 + $0x210] sm:$0xff]  ;;  %v2180_v19 = vld [vmem:[#allocation5 + $0x248] sm:$0xff] }
 0x569   :  { %v2182_v4 = vld [vmem:[#allocation5 + $0x258] sm:$0xff]  ;;  %v2179_v26 = vld [vmem:[#allocation5 + $0x240] sm:$0xff]  ;;  %v2181_v29 = vld [vmem:[#allocation5 + $0x250] sm:$0xff] }
 0x56a   :  { %v2188_v12 = vld [vmem:[#allocation5 + $0x288] sm:$0xff]  ;;  %v2190_v15 = vld [vmem:[#allocation5 + $0x298] sm:$0xff]  ;;  %v2187_v43 = vld [vmem:[#allocation5 + $0x280] sm:$0xff] }
 0x56b   :  { %2370 = vmatpush1.bf16.msra.mxu0 %v2131_v24  ;;  %2596 = vmatpush1.bf16.msra.mxu1 %v2133_v25  ;;  %v2189_v51 = vld [vmem:[#allocation5 + $0x290] sm:$0xff]  ;;  %v2196_v37 = vld [vmem:[#allocation5 + $0x2c8] sm:$0xff]  ;;  %v2198_v21 = vld [vmem:[#allocation5 + $0x2d8] sm:$0xff] }
 0x56c   :  { %2371 = vmatprep.subr.bf16.mxu0 %v2140_v38  ;;  %2597 = vmatprep.subr.bf16.mxu1 %v2142_v55  ;;  %v2195_v3 = vld [vmem:[#allocation5 + $0x2c0] sm:$0xff]  ;;  %v2197_v54 = vld [vmem:[#allocation5 + $0x2d0] sm:$0xff]  ;;  %v2204_v5 = vld [vmem:[#allocation5 + $0x308] sm:$0xff] }
 0x56d   :  { %v2206_v27 = vld [vmem:[#allocation5 + $0x318] sm:$0xff]  ;;  %v2203_v46 = vld [vmem:[#allocation5 + $0x300] sm:$0xff]  ;;  %v2205_v24 = vld [vmem:[#allocation5 + $0x310] sm:$0xff] }
 0x56e   :  { %v2212_v25 = vld [vmem:[#allocation5 + $0x348] sm:$0xff]  ;;  %v2214_v38 = vld [vmem:[#allocation5 + $0x358] sm:$0xff]  ;;  %v2211_v55 = vld [vmem:[#allocation5 + $0x340] sm:$0xff] }
 0x56f   :  { %2372 = vmatpush1.bf16.msra.mxu0 %v2139_v8  ;;  %2598 = vmatpush1.bf16.msra.mxu1 %v2141_v11  ;;  %v2213_v8 = vld [vmem:[#allocation5 + $0x350] sm:$0xff]  ;;  %v2220_v11 = vld [vmem:[#allocation5 + $0x388] sm:$0xff] }
 0x570   :  { %2373 = vmatprep.subr.bf16.mxu0 %v2148_v9  ;;  %2599 = vmatprep.subr.bf16.mxu1 %v2150_v0  ;;  %v2222_v9 = vld [vmem:[#allocation5 + $0x398] sm:$0xff]  ;;  %v2219_v0 = vld [vmem:[#allocation5 + $0x380] sm:$0xff] }
 0x573   :  { %2374 = vmatpush1.bf16.msra.mxu0 %v2147_v45  ;;  %2600 = vmatpush1.bf16.msra.mxu1 %v2149_v22  ;;  %v2221_v45 = vld [vmem:[#allocation5 + $0x390] sm:$0xff]  ;;  %v2228_v22 = vld [vmem:[#allocation5 + $0x3c8] sm:$0xff] }
 0x574   :  { %2375 = vmatprep.subr.bf16.mxu0 %v2156_v47  ;;  %2601 = vmatprep.subr.bf16.mxu1 %v2158_v50  ;;  %v2230_v47 = vld [vmem:[#allocation5 + $0x3d8] sm:$0xff]  ;;  %v2227_v50 = vld [vmem:[#allocation5 + $0x3c0] sm:$0xff] }
 0x577   :  { %2376 = vmatpush1.bf16.msra.mxu0 %v2155_v60  ;;  %2602 = vmatpush1.bf16.msra.mxu1 %v2157_v13  ;;  %v2229_v60 = vld [vmem:[#allocation5 + $0x3d0] sm:$0xff]  ;;  %v2236_v13 = vld [vmem:[#allocation5 + $0x408] sm:$0xff] }
 0x578   :  { %2377 = vmatprep.subr.bf16.mxu0 %v2164_v42  ;;  %2603 = vmatprep.subr.bf16.mxu1 %v2166_v1  ;;  %v2238_v42 = vld [vmem:[#allocation5 + $0x418] sm:$0xff]  ;;  %v2235_v1 = vld [vmem:[#allocation5 + $0x400] sm:$0xff] }
 0x57b   :  { %2378 = vmatpush1.bf16.msra.mxu0 %v2163_v16  ;;  %2604 = vmatpush1.bf16.msra.mxu1 %v2165_v20  ;;  %v2237_v16 = vld [vmem:[#allocation5 + $0x410] sm:$0xff]  ;;  %v2244_v20 = vld [vmem:[#allocation5 + $0x448] sm:$0xff] }
 0x57c   :  { %2379 = vmatprep.subr.bf16.mxu0 %v2172_v62  ;;  %2605 = vmatprep.subr.bf16.mxu1 %v2174_v34  ;;  %v2246_v62 = vld [vmem:[#allocation5 + $0x458] sm:$0xff]  ;;  %v12810_v34 = vld [vmem:[#allocation64_spill] sm:$0xff] }
 0x57f   :  { %2380 = vmatpush1.bf16.msra.mxu0 %v2171_v14  ;;  %2606 = vmatpush1.bf16.msra.mxu1 %v2173_v10  ;;  %v2243_v14 = vld [vmem:[#allocation5 + $0x440] sm:$0xff]  ;;  %v2245_v10 = vld [vmem:[#allocation5 + $0x450] sm:$0xff] }
 0x580   :  { %2381 = vmatprep.subr.bf16.mxu0 %v2180_v19  ;;  %2607 = vmatprep.subr.bf16.mxu1 %v2182_v4  ;;  %v12811_v19 = vld [vmem:[#allocation68_spill] sm:$0xff] }
 0x581   :  { %v2252_v4 = vld [vmem:[#allocation5 + $0x488] sm:$0xff] }
 0x583   :  { %2382 = vmatpush1.bf16.msra.mxu0 %v2179_v26  ;;  %2608 = vmatpush1.bf16.msra.mxu1 %v2181_v29  ;;  %v2254_v26 = vld [vmem:[#allocation5 + $0x498] sm:$0xff]  ;;  %v2251_v29 = vld [vmem:[#allocation5 + $0x480] sm:$0xff] }
 0x584   :  { %2383 = vmatprep.subr.bf16.mxu0 %v2188_v12  ;;  %2609 = vmatprep.subr.bf16.mxu1 %v2190_v15  ;;  %v2253_v12 = vld [vmem:[#allocation5 + $0x490] sm:$0xff]  ;;  %v2260_v15 = vld [vmem:[#allocation5 + $0x4c8] sm:$0xff] }
 0x587   :  { %2384 = vmatpush1.bf16.msra.mxu0 %v2187_v43  ;;  %2610 = vmatpush1.bf16.msra.mxu1 %v2189_v51  ;;  %v2262_v43 = vld [vmem:[#allocation5 + $0x4d8] sm:$0xff]  ;;  %v12812_v51 = vld [vmem:[#allocation67_spill] sm:$0xff] }
 0x588   :  { %2385 = vmatprep.subr.bf16.mxu0 %v2196_v37  ;;  %2611 = vmatprep.subr.bf16.mxu1 %v2198_v21  ;;  %v2259_v37 = vld [vmem:[#allocation5 + $0x4c0] sm:$0xff]  ;;  %v2261_v21 = vld [vmem:[#allocation5 + $0x4d0] sm:$0xff] }
 0x58b   :  { %2386 = vmatpush1.bf16.msra.mxu0 %v2195_v3  ;;  %2612 = vmatpush1.bf16.msra.mxu1 %v2197_v54  ;;  %v2268_v3 = vld [vmem:[#allocation5 + $0x508] sm:$0xff]  ;;  %v2270_v54 = vld [vmem:[#allocation5 + $0x518] sm:$0xff] }
 0x58c   :  { %2387 = vmatprep.subr.bf16.mxu0 %v2204_v5  ;;  %2613 = vmatprep.subr.bf16.mxu1 %v2206_v27  ;;  %v2267_v5 = vld [vmem:[#allocation5 + $0x500] sm:$0xff]  ;;  %v2269_v27 = vld [vmem:[#allocation5 + $0x510] sm:$0xff] }
 0x58f   :  { %2388 = vmatpush1.bf16.msra.mxu0 %v2203_v46  ;;  %2614 = vmatpush1.bf16.msra.mxu1 %v2205_v24  ;;  %v2276_v46 = vld [vmem:[#allocation5 + $0x548] sm:$0xff]  ;;  %v2278_v24 = vld [vmem:[#allocation5 + $0x558] sm:$0xff] }
 0x590   :  { %2389 = vmatprep.subr.bf16.mxu0 %v2212_v25  ;;  %2615 = vmatprep.subr.bf16.mxu1 %v2214_v38  ;;  %v2275_v25 = vld [vmem:[#allocation5 + $0x540] sm:$0xff]  ;;  %v2277_v38 = vld [vmem:[#allocation5 + $0x550] sm:$0xff] }
 0x593   :  { %2390 = vmatpush1.bf16.msra.mxu0 %v2211_v55  ;;  %2616 = vmatpush1.bf16.msra.mxu1 %v2213_v8  ;;  %v2284_v55 = vld [vmem:[#allocation5 + $0x588] sm:$0xff]  ;;  %v2286_v8 = vld [vmem:[#allocation5 + $0x598] sm:$0xff] }
 0x594   :  { %2391 = vmatprep.subr.bf16.mxu0 %v2220_v11  ;;  %2617 = vmatprep.subr.bf16.mxu1 %v2222_v9  ;;  %v2283_v11 = vld [vmem:[#allocation5 + $0x580] sm:$0xff]  ;;  %v2285_v9 = vld [vmem:[#allocation5 + $0x590] sm:$0xff] }
 0x597   :  { %2392 = vmatpush1.bf16.msra.mxu0 %v2219_v0  ;;  %2618 = vmatpush1.bf16.msra.mxu1 %v2221_v45  ;;  %v2292_v0 = vld [vmem:[#allocation5 + $0x5c8] sm:$0xff]  ;;  %v2294_v45 = vld [vmem:[#allocation5 + $0x5d8] sm:$0xff] }
 0x598   :  { %2393 = vmatprep.subr.bf16.mxu0 %v2228_v22  ;;  %2619 = vmatprep.subr.bf16.mxu1 %v2230_v47  ;;  %v2291_v22 = vld [vmem:[#allocation5 + $0x5c0] sm:$0xff]  ;;  %v2293_v47 = vld [vmem:[#allocation5 + $0x5d0] sm:$0xff] }
 0x59b   :  { %2394 = vmatpush1.bf16.msra.mxu0 %v2227_v50  ;;  %2620 = vmatpush1.bf16.msra.mxu1 %v2229_v60  ;;  %v2300_v50 = vld [vmem:[#allocation5 + $0x608] sm:$0xff]  ;;  %v2302_v60 = vld [vmem:[#allocation5 + $0x618] sm:$0xff] }
 0x59c   :  { %2476 = vmatprep.subr.bf16.mxu0 %v2236_v13  ;;  %2702 = vmatprep.subr.bf16.mxu1 %v2238_v42  ;;  %v2299_v13 = vld [vmem:[#allocation5 + $0x600] sm:$0xff]  ;;  %v2301_v42 = vld [vmem:[#allocation5 + $0x610] sm:$0xff] }
 0x59e   :  { %2396 = vmatmul.mubr.bf16.vlgmr.msra.gmra.mrb[16].mxu0 %v12810_v34  ;;  %2622 = vmatmul.mubr.bf16.vlgmr.msra.gmra.mrb[96].mxu1 %v12810_v34 }
 0x59f   :  { %2477 = vmatpush1.bf16.msra.mxu0 %v2235_v1  ;;  %2703 = vmatpush1.bf16.msra.mxu1 %v2237_v16  ;;  %v2308_v1 = vld [vmem:[#allocation5 + $0x648] sm:$0xff]  ;;  %v2310_v16 = vld [vmem:[#allocation5 + $0x658] sm:$0xff] }
 0x5a0   :  { %2478 = vmatprep.subr.bf16.mxu0 %v2244_v20  ;;  %2704 = vmatprep.subr.bf16.mxu1 %v2246_v62  ;;  %v2307_v20 = vld [vmem:[#allocation5 + $0x640] sm:$0xff]  ;;  %v2309_v62 = vld [vmem:[#allocation5 + $0x650] sm:$0xff] }
 0x5a1   :  { %2405 = vmatprep.mubr.bf16.mxu0 %v12811_v19  ;;  %2631 = vmatprep.mubr.bf16.mxu1 %v12811_v19 }
 0x5a3   :  { %2479 = vmatpush1.bf16.msra.mxu0 %v2243_v14  ;;  %2705 = vmatpush1.bf16.msra.mxu1 %v2245_v10  ;;  %v2316_v14 = vld [vmem:[#allocation5 + $0x688] sm:$0xff]  ;;  %v2318_v10 = vld [vmem:[#allocation5 + $0x698] sm:$0xff] }
 0x5a4   :  { %2480 = vmatprep.subr.bf16.mxu0 %v2252_v4  ;;  %2706 = vmatprep.subr.bf16.mxu1 %v2254_v26  ;;  %v2315_v4 = vld [vmem:[#allocation5 + $0x680] sm:$0xff]  ;;  %v2317_v26 = vld [vmem:[#allocation5 + $0x690] sm:$0xff] }
 0x5a6   :  { %2406 = vmatmul.mubr.bf16.gmra.mrb[20].mxu0 %v12812_v51  ;;  %2632 = vmatmul.mubr.bf16.gmra.mrb[100].mxu1 %v12812_v51 }
 0x5a7   :  { %2481 = vmatpush1.bf16.msra.mxu0 %v2251_v29  ;;  %2707 = vmatpush1.bf16.msra.mxu1 %v2253_v12  ;;  %v2324_v29 = vld [vmem:[#allocation5 + $0x6c8] sm:$0xff]  ;;  %v2326_v12 = vld [vmem:[#allocation5 + $0x6d8] sm:$0xff] }
 0x5a8   :  { %2482 = vmatprep.subr.bf16.mxu0 %v2260_v15  ;;  %2708 = vmatprep.subr.bf16.mxu1 %v2262_v43  ;;  %v2323_v15 = vld [vmem:[#allocation5 + $0x6c0] sm:$0xff]  ;;  %v2325_v43 = vld [vmem:[#allocation5 + $0x6d0] sm:$0xff] }
 0x5a9   :  { %2415 = vmatprep.mubr.bf16.mxu0 %v8193_v28  ;;  %2641 = vmatprep.mubr.bf16.mxu1 %v8193_v28 }
 0x5ab   :  { %2483 = vmatpush1.bf16.msra.mxu0 %v2259_v37  ;;  %2709 = vmatpush1.bf16.msra.mxu1 %v2261_v21  ;;  %v2332_v37 = vld [vmem:[#allocation5 + $0x708] sm:$0xff]  ;;  %v2334_v21 = vld [vmem:[#allocation5 + $0x718] sm:$0xff] }
 0x5ac   :  { %2484 = vmatprep.subr.bf16.mxu0 %v2268_v3  ;;  %2710 = vmatprep.subr.bf16.mxu1 %v2270_v54  ;;  %v2331_v3 = vld [vmem:[#allocation5 + $0x700] sm:$0xff]  ;;  %v2333_v54 = vld [vmem:[#allocation5 + $0x710] sm:$0xff] }
 0x5ae   :  { %2416 = vmatmul.mubr.bf16.gmra.mrb[24].mxu0 %v8191_v17  ;;  %2642 = vmatmul.mubr.bf16.gmra.mrb[104].mxu1 %v8191_v17 }
 0x5af   :  { %2485 = vmatpush1.bf16.msra.mxu0 %v2267_v5  ;;  %2711 = vmatpush1.bf16.msra.mxu1 %v2269_v27  ;;  %v2340_v5 = vld [vmem:[#allocation5 + $0x748] sm:$0xff]  ;;  %v2342_v27 = vld [vmem:[#allocation5 + $0x758] sm:$0xff] }
 0x5b0   :  { %2486 = vmatprep.subr.bf16.mxu0 %v2276_v46  ;;  %2712 = vmatprep.subr.bf16.mxu1 %v2278_v24  ;;  %v2339_v46 = vld [vmem:[#allocation5 + $0x740] sm:$0xff]  ;;  %v2341_v24 = vld [vmem:[#allocation5 + $0x750] sm:$0xff] }
 0x5b1   :  { %2425 = vmatprep.mubr.bf16.mxu0 %v8201_v23  ;;  %2651 = vmatprep.mubr.bf16.mxu1 %v8201_v23 }
 0x5b3   :  { %2487 = vmatpush1.bf16.msra.mxu0 %v2275_v25  ;;  %2713 = vmatpush1.bf16.msra.mxu1 %v2277_v38  ;;  %v2348_v25 = vld [vmem:[#allocation5 + $0x788] sm:$0xff]  ;;  %v2350_v38 = vld [vmem:[#allocation5 + $0x798] sm:$0xff] }
 0x5b4   :  { %2488 = vmatprep.subr.bf16.mxu0 %v2284_v55  ;;  %2714 = vmatprep.subr.bf16.mxu1 %v2286_v8  ;;  %v2347_v55 = vld [vmem:[#allocation5 + $0x780] sm:$0xff]  ;;  %v2349_v8 = vld [vmem:[#allocation5 + $0x790] sm:$0xff] }
 0x5b6   :  { %2426 = vmatmul.mubr.bf16.gmra.mrb[28].mxu0 %v8199_v57  ;;  %2652 = vmatmul.mubr.bf16.gmra.mrb[108].mxu1 %v8199_v57 }
 0x5b7   :  { %2489 = vmatpush1.bf16.msra.mxu0 %v2283_v11  ;;  %2715 = vmatpush1.bf16.msra.mxu1 %v2285_v9  ;;  %v2356_v11 = vld [vmem:[#allocation5 + $0x7c8] sm:$0xff]  ;;  %v2358_v9 = vld [vmem:[#allocation5 + $0x7d8] sm:$0xff] }
 0x5b8   :  { %2490 = vmatprep.subr.bf16.mxu0 %v2292_v0  ;;  %2716 = vmatprep.subr.bf16.mxu1 %v2294_v45  ;;  %v2355_v0 = vld [vmem:[#allocation5 + $0x7c0] sm:$0xff]  ;;  %v2357_v45 = vld [vmem:[#allocation5 + $0x7d0] sm:$0xff] }
 0x5b9   :  { %2435 = vmatprep.mubr.bf16.mxu0 %v8209_v6  ;;  %2661 = vmatprep.mubr.bf16.mxu1 %v8209_v6 }
 0x5bb   :  { %2491 = vmatpush1.bf16.msra.mxu0 %v2291_v22  ;;  %2717 = vmatpush1.bf16.msra.mxu1 %v2293_v47  ;;  %v12813_v22 = vld [vmem:[#allocation66_spill] sm:$0xff]  ;;  %v2112_v47 = vld [vmem:[#allocation5 + $0x28] sm:$0xff] }
 0x5bc   :  { %2492 = vmatprep.subr.bf16.mxu0 %v2300_v50  ;;  %2718 = vmatprep.subr.bf16.mxu1 %v2302_v60  ;;  %v2114_v50 = vld [vmem:[#allocation5 + $0x38] sm:$0xff]  ;;  %v2111_v60 = vld [vmem:[#allocation5 + $0x20] sm:$0xff] }
 0x5be   :  { %2436 = vmatmul.mubr.bf16.gmra.mrb[32].mxu0 %v8207_v59  ;;  %2662 = vmatmul.mubr.bf16.gmra.mrb[112].mxu1 %v8207_v59 }
 0x5bf   :  { %2493 = vmatpush1.bf16.msra.mxu0 %v2299_v13  ;;  %2719 = vmatpush1.bf16.msra.mxu1 %v2301_v42  ;;  %v2113_v13 = vld [vmem:[#allocation5 + $0x30] sm:$0xff]  ;;  %v2120_v42 = vld [vmem:[#allocation5 + $0x68] sm:$0xff] }
 0x5c0   :  { %2494 = vmatprep.subr.bf16.mxu0 %v2308_v1  ;;  %2720 = vmatprep.subr.bf16.mxu1 %v2310_v16  ;;  %v2122_v1 = vld [vmem:[#allocation5 + $0x78] sm:$0xff] }
 0x5c1   :  { %2445 = vmatprep.mubr.bf16.mxu0 %v8217_v31  ;;  %2671 = vmatprep.mubr.bf16.mxu1 %v8217_v31  ;;  %v12814_v16 = vld [vmem:[#allocation65_spill] sm:$0xff] }
 0x5c3   :  { %2495 = vmatpush1.bf16.msra.mxu0 %v2307_v20  ;;  %2721 = vmatpush1.bf16.msra.mxu1 %v2309_v62  ;;  %v2119_v20 = vld [vmem:[#allocation5 + $0x60] sm:$0xff]  ;;  %v2121_v62 = vld [vmem:[#allocation5 + $0x70] sm:$0xff] }
 0x5c4   :  { %2496 = vmatprep.subr.bf16.mxu0 %v2316_v14  ;;  %2722 = vmatprep.subr.bf16.mxu1 %v2318_v10  ;;  %v2128_v14 = vld [vmem:[#allocation5 + $0xa8] sm:$0xff]  ;;  %v2130_v10 = vld [vmem:[#allocation5 + $0xb8] sm:$0xff] }
 0x5c6   :  { %2446 = vmatmul.mubr.bf16.gmra.mrb[36].mxu0 %v8215_v56  ;;  %2672 = vmatmul.mubr.bf16.gmra.mrb[116].mxu1 %v8215_v56 }
 0x5c7   :  { %2497 = vmatpush1.bf16.msra.mxu0 %v2315_v4  ;;  %2723 = vmatpush1.bf16.msra.mxu1 %v2317_v26  ;;  %v2127_v4 = vld [vmem:[#allocation5 + $0xa0] sm:$0xff]  ;;  %v2129_v26 = vld [vmem:[#allocation5 + $0xb0] sm:$0xff] }
 0x5c8   :  { %2498 = vmatprep.subr.bf16.mxu0 %v2324_v29  ;;  %2724 = vmatprep.subr.bf16.mxu1 %v2326_v12  ;;  %v2136_v29 = vld [vmem:[#allocation5 + $0xe8] sm:$0xff]  ;;  %v2138_v12 = vld [vmem:[#allocation5 + $0xf8] sm:$0xff] }
 0x5c9   :  { %2455 = vmatprep.mubr.bf16.mxu0 %v8225_v41  ;;  %2681 = vmatprep.mubr.bf16.mxu1 %v8225_v41 }
 0x5cb   :  { %2499 = vmatpush1.bf16.msra.mxu0 %v2323_v15  ;;  %2725 = vmatpush1.bf16.msra.mxu1 %v2325_v43  ;;  %v2135_v15 = vld [vmem:[#allocation5 + $0xe0] sm:$0xff]  ;;  %v2137_v43 = vld [vmem:[#allocation5 + $0xf0] sm:$0xff] }
 0x5cc   :  { %2500 = vmatprep.subr.bf16.mxu0 %v2332_v37  ;;  %2726 = vmatprep.subr.bf16.mxu1 %v2334_v21  ;;  %v2144_v37 = vld [vmem:[#allocation5 + $0x128] sm:$0xff]  ;;  %v2146_v21 = vld [vmem:[#allocation5 + $0x138] sm:$0xff] }
 0x5ce   :  { %2456 = vmatmul.mubr.bf16.gmra.mrb[40].mxu0 %v8223_v40  ;;  %2682 = vmatmul.mubr.bf16.gmra.mrb[120].mxu1 %v8223_v40 }
 0x5cf   :  { %2501 = vmatpush1.bf16.msra.mxu0 %v2331_v3  ;;  %2727 = vmatpush1.bf16.msra.mxu1 %v2333_v54  ;;  %v2143_v3 = vld [vmem:[#allocation5 + $0x120] sm:$0xff]  ;;  %v2145_v54 = vld [vmem:[#allocation5 + $0x130] sm:$0xff] }
 0x5d0   :  { %2502 = vmatprep.subr.bf16.mxu0 %v2340_v5  ;;  %2728 = vmatprep.subr.bf16.mxu1 %v2342_v27  ;;  %v2152_v5 = vld [vmem:[#allocation5 + $0x168] sm:$0xff]  ;;  %v2154_v27 = vld [vmem:[#allocation5 + $0x178] sm:$0xff] }
 0x5d1   :  { %2465 = vmatprep.mubr.bf16.mxu0 %v8233_v18  ;;  %2691 = vmatprep.mubr.bf16.mxu1 %v8233_v18 }
 0x5d3   :  { %2503 = vmatpush1.bf16.msra.mxu0 %v2339_v46  ;;  %2729 = vmatpush1.bf16.msra.mxu1 %v2341_v24  ;;  %v2151_v46 = vld [vmem:[#allocation5 + $0x160] sm:$0xff]  ;;  %v2153_v24 = vld [vmem:[#allocation5 + $0x170] sm:$0xff] }
 0x5d4   :  { %2504 = vmatprep.subr.bf16.mxu0 %v2348_v25  ;;  %2730 = vmatprep.subr.bf16.mxu1 %v2350_v38  ;;  %v2160_v25 = vld [vmem:[#allocation5 + $0x1a8] sm:$0xff]  ;;  %v2162_v38 = vld [vmem:[#allocation5 + $0x1b8] sm:$0xff] }
 0x5d6   :  { %2466 = vmatmul.mubr.bf16.gmra.mrb[44].mxu0 %v8231_v48  ;;  %2692 = vmatmul.mubr.bf16.gmra.mrb[124].mxu1 %v8231_v48 }
 0x5d7   :  { %2505 = vmatpush1.bf16.msra.mxu0 %v2347_v55  ;;  %2731 = vmatpush1.bf16.msra.mxu1 %v2349_v8  ;;  %v2159_v55 = vld [vmem:[#allocation5 + $0x1a0] sm:$0xff]  ;;  %v2161_v8 = vld [vmem:[#allocation5 + $0x1b0] sm:$0xff] }
 0x5d8   :  { %2506 = vmatprep.subr.bf16.mxu0 %v2356_v11  ;;  %2732 = vmatprep.subr.bf16.mxu1 %v2358_v9  ;;  %v2168_v11 = vld [vmem:[#allocation5 + $0x1e8] sm:$0xff]  ;;  %v2170_v9 = vld [vmem:[#allocation5 + $0x1f8] sm:$0xff] }
 0x5d9   :  { %2508 = vmatprep.mubr.bf16.mxu0 %v12813_v22  ;;  %2734 = vmatprep.mubr.bf16.mxu1 %v12813_v22 }
 0x5db   :  { %2507 = vmatpush1.bf16.msra.mxu0 %v2355_v0  ;;  %2733 = vmatpush1.bf16.msra.mxu1 %v2357_v45  ;;  %v2167_v0 = vld [vmem:[#allocation5 + $0x1e0] sm:$0xff]  ;;  %v2169_v45 = vld [vmem:[#allocation5 + $0x1f0] sm:$0xff] }
 0x5dc   :  { %2815 = vmatprep.subr.bf16.mxu0 %v2112_v47  ;;  %3041 = vmatprep.subr.bf16.mxu1 %v2114_v50  ;;  %v2176_v47 = vld [vmem:[#allocation5 + $0x228] sm:$0xff]  ;;  %v2178_v50 = vld [vmem:[#allocation5 + $0x238] sm:$0xff] }
 0x5de   :  { %2509 = vmatmul.mubr.bf16.vlgmr.msra.gmra.mrb[16].mxu0 %v12814_v16  ;;  %2735 = vmatmul.mubr.bf16.vlgmr.msra.gmra.mrb[96].mxu1 %v12814_v16 }
 0x5df   :  { %2816 = vmatpush1.bf16.msra.mxu0 %v2111_v60  ;;  %3042 = vmatpush1.bf16.msra.mxu1 %v2113_v13  ;;  %v2175_v60 = vld [vmem:[#allocation5 + $0x220] sm:$0xff]  ;;  %v2177_v13 = vld [vmem:[#allocation5 + $0x230] sm:$0xff] }
 0x5e0   :  { %2817 = vmatprep.subr.bf16.mxu0 %v2120_v42  ;;  %3043 = vmatprep.subr.bf16.mxu1 %v2122_v1  ;;  %v2184_v42 = vld [vmem:[#allocation5 + $0x268] sm:$0xff]  ;;  %v2186_v1 = vld [vmem:[#allocation5 + $0x278] sm:$0xff] }
 0x5e1   :  { %2518 = vmatprep.mubr.bf16.mxu0 %v8186_v58  ;;  %2744 = vmatprep.mubr.bf16.mxu1 %v8186_v58 }
 0x5e3   :  { %2818 = vmatpush1.bf16.msra.mxu0 %v2119_v20  ;;  %3044 = vmatpush1.bf16.msra.mxu1 %v2121_v62  ;;  %v2183_v20 = vld [vmem:[#allocation5 + $0x260] sm:$0xff]  ;;  %v2185_v62 = vld [vmem:[#allocation5 + $0x270] sm:$0xff] }
 0x5e4   :  { %2819 = vmatprep.subr.bf16.mxu0 %v2128_v14  ;;  %3045 = vmatprep.subr.bf16.mxu1 %v2130_v10  ;;  %v2192_v14 = vld [vmem:[#allocation5 + $0x2a8] sm:$0xff]  ;;  %v2194_v10 = vld [vmem:[#allocation5 + $0x2b8] sm:$0xff] }
 0x5e6   :  { %2519 = vmatmul.mubr.bf16.gmra.mrb[20].mxu0 %v8178_v52  ;;  %2745 = vmatmul.mubr.bf16.gmra.mrb[100].mxu1 %v8178_v52 }
 0x5e7   :  { %2820 = vmatpush1.bf16.msra.mxu0 %v2127_v4  ;;  %3046 = vmatpush1.bf16.msra.mxu1 %v2129_v26  ;;  %v2191_v4 = vld [vmem:[#allocation5 + $0x2a0] sm:$0xff]  ;;  %v2193_v26 = vld [vmem:[#allocation5 + $0x2b0] sm:$0xff] }
 0x5e8   :  { %2821 = vmatprep.subr.bf16.mxu0 %v2136_v29  ;;  %3047 = vmatprep.subr.bf16.mxu1 %v2138_v12  ;;  %v2200_v29 = vld [vmem:[#allocation5 + $0x2e8] sm:$0xff]  ;;  %v2202_v12 = vld [vmem:[#allocation5 + $0x2f8] sm:$0xff] }
 0x5e9   :  { %2528 = vmatprep.mubr.bf16.mxu0 %v8197_v44  ;;  %2754 = vmatprep.mubr.bf16.mxu1 %v8197_v44 }
 0x5eb   :  { %2822 = vmatpush1.bf16.msra.mxu0 %v2135_v15  ;;  %3048 = vmatpush1.bf16.msra.mxu1 %v2137_v43  ;;  %v2199_v15 = vld [vmem:[#allocation5 + $0x2e0] sm:$0xff]  ;;  %v2201_v43 = vld [vmem:[#allocation5 + $0x2f0] sm:$0xff] }
 0x5ec   :  { %2823 = vmatprep.subr.bf16.mxu0 %v2144_v37  ;;  %3049 = vmatprep.subr.bf16.mxu1 %v2146_v21  ;;  %v2208_v37 = vld [vmem:[#allocation5 + $0x328] sm:$0xff]  ;;  %v2210_v21 = vld [vmem:[#allocation5 + $0x338] sm:$0xff] }
 0x5ee   :  { %2529 = vmatmul.mubr.bf16.gmra.mrb[24].mxu0 %v8195_v35  ;;  %2755 = vmatmul.mubr.bf16.gmra.mrb[104].mxu1 %v8195_v35 }
 0x5ef   :  { %2824 = vmatpush1.bf16.msra.mxu0 %v2143_v3  ;;  %3050 = vmatpush1.bf16.msra.mxu1 %v2145_v54  ;;  %v2207_v3 = vld [vmem:[#allocation5 + $0x320] sm:$0xff]  ;;  %v2209_v54 = vld [vmem:[#allocation5 + $0x330] sm:$0xff] }
 0x5f0   :  { %2825 = vmatprep.subr.bf16.mxu0 %v2152_v5  ;;  %3051 = vmatprep.subr.bf16.mxu1 %v2154_v27  ;;  %v2216_v5 = vld [vmem:[#allocation5 + $0x368] sm:$0xff]  ;;  %v2218_v27 = vld [vmem:[#allocation5 + $0x378] sm:$0xff] }
 0x5f1   :  { %2538 = vmatprep.mubr.bf16.mxu0 %v8205_v36  ;;  %2764 = vmatprep.mubr.bf16.mxu1 %v8205_v36 }
 0x5f3   :  { %2826 = vmatpush1.bf16.msra.mxu0 %v2151_v46  ;;  %3052 = vmatpush1.bf16.msra.mxu1 %v2153_v24  ;;  %v2215_v46 = vld [vmem:[#allocation5 + $0x360] sm:$0xff]  ;;  %v2217_v24 = vld [vmem:[#allocation5 + $0x370] sm:$0xff] }
 0x5f4   :  { %2827 = vmatprep.subr.bf16.mxu0 %v2160_v25  ;;  %3053 = vmatprep.subr.bf16.mxu1 %v2162_v38  ;;  %v2224_v25 = vld [vmem:[#allocation5 + $0x3a8] sm:$0xff]  ;;  %v2226_v38 = vld [vmem:[#allocation5 + $0x3b8] sm:$0xff] }
 0x5f6   :  { %2539 = vmatmul.mubr.bf16.gmra.mrb[28].mxu0 %v8203_v7  ;;  %2765 = vmatmul.mubr.bf16.gmra.mrb[108].mxu1 %v8203_v7 }
 0x5f7   :  { %2828 = vmatpush1.bf16.msra.mxu0 %v2159_v55  ;;  %3054 = vmatpush1.bf16.msra.mxu1 %v2161_v8  ;;  %v2223_v55 = vld [vmem:[#allocation5 + $0x3a0] sm:$0xff]  ;;  %v2225_v8 = vld [vmem:[#allocation5 + $0x3b0] sm:$0xff] }
 0x5f8   :  { %2829 = vmatprep.subr.bf16.mxu0 %v2168_v11  ;;  %3055 = vmatprep.subr.bf16.mxu1 %v2170_v9  ;;  %v2232_v11 = vld [vmem:[#allocation5 + $0x3e8] sm:$0xff]  ;;  %v2234_v9 = vld [vmem:[#allocation5 + $0x3f8] sm:$0xff] }
 0x5f9   :  { %2548 = vmatprep.mubr.bf16.mxu0 %v8213_v61  ;;  %2774 = vmatprep.mubr.bf16.mxu1 %v8213_v61 }
 0x5fb   :  { %2830 = vmatpush1.bf16.msra.mxu0 %v2167_v0  ;;  %3056 = vmatpush1.bf16.msra.mxu1 %v2169_v45  ;;  %v2231_v0 = vld [vmem:[#allocation5 + $0x3e0] sm:$0xff]  ;;  %v2233_v45 = vld [vmem:[#allocation5 + $0x3f0] sm:$0xff] }
 0x5fc   :  { %2831 = vmatprep.subr.bf16.mxu0 %v2176_v47  ;;  %3057 = vmatprep.subr.bf16.mxu1 %v2178_v50  ;;  %v2240_v47 = vld [vmem:[#allocation5 + $0x428] sm:$0xff]  ;;  %v2242_v50 = vld [vmem:[#allocation5 + $0x438] sm:$0xff] }
 0x5fe   :  { %2549 = vmatmul.mubr.bf16.gmra.mrb[32].mxu0 %v8211_v53  ;;  %2775 = vmatmul.mubr.bf16.gmra.mrb[112].mxu1 %v8211_v53 }
 0x5ff   :  { %2832 = vmatpush1.bf16.msra.mxu0 %v2175_v60  ;;  %3058 = vmatpush1.bf16.msra.mxu1 %v2177_v13  ;;  %v2239_v60 = vld [vmem:[#allocation5 + $0x420] sm:$0xff]  ;;  %v2241_v13 = vld [vmem:[#allocation5 + $0x430] sm:$0xff] }
 0x600   :  { %2833 = vmatprep.subr.bf16.mxu0 %v2184_v42  ;;  %3059 = vmatprep.subr.bf16.mxu1 %v2186_v1  ;;  %v2248_v42 = vld [vmem:[#allocation5 + $0x468] sm:$0xff]  ;;  %v2250_v1 = vld [vmem:[#allocation5 + $0x478] sm:$0xff] }
 0x601   :  { %2558 = vmatprep.mubr.bf16.mxu0 %v8221_v30  ;;  %2784 = vmatprep.mubr.bf16.mxu1 %v8221_v30 }
 0x603   :  { %2834 = vmatpush1.bf16.msra.mxu0 %v2183_v20  ;;  %3060 = vmatpush1.bf16.msra.mxu1 %v2185_v62  ;;  %v2247_v20 = vld [vmem:[#allocation5 + $0x460] sm:$0xff]  ;;  %v2256_v62 = vld [vmem:[#allocation5 + $0x4a8] sm:$0xff] }
 0x604   :  { %2835 = vmatprep.subr.bf16.mxu0 %v2192_v14  ;;  %3061 = vmatprep.subr.bf16.mxu1 %v2194_v10  ;;  %v2258_v14 = vld [vmem:[#allocation5 + $0x4b8] sm:$0xff]  ;;  %v2255_v10 = vld [vmem:[#allocation5 + $0x4a0] sm:$0xff] }
 0x606   :  { %2559 = vmatmul.mubr.bf16.gmra.mrb[36].mxu0 %v8219_v33  ;;  %2785 = vmatmul.mubr.bf16.gmra.mrb[116].mxu1 %v8219_v33 }
 0x607   :  { %2836 = vmatpush1.bf16.msra.mxu0 %v2191_v4  ;;  %3062 = vmatpush1.bf16.msra.mxu1 %v2193_v26  ;;  %v2257_v4 = vld [vmem:[#allocation5 + $0x4b0] sm:$0xff]  ;;  %v2264_v26 = vld [vmem:[#allocation5 + $0x4e8] sm:$0xff] }
 0x608   :  { %2837 = vmatprep.subr.bf16.mxu0 %v2200_v29  ;;  %3063 = vmatprep.subr.bf16.mxu1 %v2202_v12  ;;  %v2263_v29 = vld [vmem:[#allocation5 + $0x4e0] sm:$0xff]  ;;  %v2272_v12 = vld [vmem:[#allocation5 + $0x528] sm:$0xff] }
 0x609   :  { %2568 = vmatprep.mubr.bf16.mxu0 %v8229_v63  ;;  %2794 = vmatprep.mubr.bf16.mxu1 %v8229_v63 }
 0x60b   :  { %2838 = vmatpush1.bf16.msra.mxu0 %v2199_v15  ;;  %3064 = vmatpush1.bf16.msra.mxu1 %v2201_v43  ;;  %v2274_v15 = vld [vmem:[#allocation5 + $0x538] sm:$0xff]  ;;  %v2271_v43 = vld [vmem:[#allocation5 + $0x520] sm:$0xff] }
 0x60c   :  { %2839 = vmatprep.subr.bf16.mxu0 %v2208_v37  ;;  %3065 = vmatprep.subr.bf16.mxu1 %v2210_v21  ;;  %v2273_v37 = vld [vmem:[#allocation5 + $0x530] sm:$0xff]  ;;  %v2280_v21 = vld [vmem:[#allocation5 + $0x568] sm:$0xff] }
 0x60e   :  { %2569 = vmatmul.mubr.bf16.gmra.mrb[40].mxu0 %v8227_v49  ;;  %2795 = vmatmul.mubr.bf16.gmra.mrb[120].mxu1 %v8227_v49 }
 0x60f   :  { %2840 = vmatpush1.bf16.msra.mxu0 %v2207_v3  ;;  %3066 = vmatpush1.bf16.msra.mxu1 %v2209_v54  ;;  %v2279_v3 = vld [vmem:[#allocation5 + $0x560] sm:$0xff]  ;;  %v2288_v54 = vld [vmem:[#allocation5 + $0x5a8] sm:$0xff] }
 0x610   :  { %2841 = vmatprep.subr.bf16.mxu0 %v2216_v5  ;;  %3067 = vmatprep.subr.bf16.mxu1 %v2218_v27  ;;  %v2290_v5 = vld [vmem:[#allocation5 + $0x5b8] sm:$0xff]  ;;  %v2287_v27 = vld [vmem:[#allocation5 + $0x5a0] sm:$0xff] }
 0x611   :  { %2578 = vmatprep.mubr.bf16.mxu0 %v8237_v32  ;;  %2804 = vmatprep.mubr.bf16.mxu1 %v8237_v32 }
 0x613   :  { %2842 = vmatpush1.bf16.msra.mxu0 %v2215_v46  ;;  %3068 = vmatpush1.bf16.msra.mxu1 %v2217_v24  ;;  %v2289_v46 = vld [vmem:[#allocation5 + $0x5b0] sm:$0xff]  ;;  %v2296_v24 = vld [vmem:[#allocation5 + $0x5e8] sm:$0xff] }
 0x614   :  { %2843 = vmatprep.subr.bf16.mxu0 %v2224_v25  ;;  %3069 = vmatprep.subr.bf16.mxu1 %v2226_v38  ;;  %v2295_v25 = vld [vmem:[#allocation5 + $0x5e0] sm:$0xff]  ;;  %v2304_v38 = vld [vmem:[#allocation5 + $0x628] sm:$0xff] }
 0x616   :  { %2579 = vmatmul.mubr.bf16.gmra.mrb[44].mxu0 %v8235_v2  ;;  %2805 = vmatmul.mubr.bf16.gmra.mrb[124].mxu1 %v8235_v2 }
 0x617   :  { %2844 = vmatpush1.bf16.msra.mxu0 %v2223_v55  ;;  %3070 = vmatpush1.bf16.msra.mxu1 %v2225_v8  ;;  %v2306_v55 = vld [vmem:[#allocation5 + $0x638] sm:$0xff]  ;;  %v2303_v8 = vld [vmem:[#allocation5 + $0x620] sm:$0xff] }
 0x618   :  { %2845 = vmatprep.subr.bf16.mxu0 %v2232_v11  ;;  %3071 = vmatprep.subr.bf16.mxu1 %v2234_v9  ;;  %v2305_v11 = vld [vmem:[#allocation5 + $0x630] sm:$0xff]  ;;  %v2312_v9 = vld [vmem:[#allocation5 + $0x668] sm:$0xff] }
 0x619   :  { %2847 = vmatprep.mubr.bf16.mxu0 %v12809_v39  ;;  %3073 = vmatprep.mubr.bf16.mxu1 %v12809_v39  ;;  %v2249_v39 = vld [vmem:[#allocation5 + $0x470] sm:$0xff] }
 0x61b   :  { %2846 = vmatpush1.bf16.msra.mxu0 %v2231_v0  ;;  %3072 = vmatpush1.bf16.msra.mxu1 %v2233_v45  ;;  %v2311_v0 = vld [vmem:[#allocation5 + $0x660] sm:$0xff]  ;;  %v2320_v45 = vld [vmem:[#allocation5 + $0x6a8] sm:$0xff] }
 0x61c   :  { %2928 = vmatprep.subr.bf16.mxu0 %v2240_v47  ;;  %3154 = vmatprep.subr.bf16.mxu1 %v2242_v50  ;;  %v2322_v47 = vld [vmem:[#allocation5 + $0x6b8] sm:$0xff]  ;;  %v2319_v50 = vld [vmem:[#allocation5 + $0x6a0] sm:$0xff] }
 0x61e   :  { %2848 = vmatmul.mubr.bf16.vlgmr.msra.gmra.mrb[48].mxu0 %v12810_v34  ;;  %3074 = vmatmul.mubr.bf16.vlgmr.msra.gmra.mrb[128].mxu1 %v12810_v34  ;;  %v2266_v34 = vld [vmem:[#allocation5 + $0x4f8] sm:$0xff] }
 0x61f   :  { %2929 = vmatpush1.bf16.msra.mxu0 %v2239_v60  ;;  %3155 = vmatpush1.bf16.msra.mxu1 %v2241_v13  ;;  %v2321_v60 = vld [vmem:[#allocation5 + $0x6b0] sm:$0xff]  ;;  %v2328_v13 = vld [vmem:[#allocation5 + $0x6e8] sm:$0xff] }
 0x620   :  { %2930 = vmatprep.subr.bf16.mxu0 %v2248_v42  ;;  %3156 = vmatprep.subr.bf16.mxu1 %v2250_v1  ;;  %v2327_v42 = vld [vmem:[#allocation5 + $0x6e0] sm:$0xff]  ;;  %v2336_v1 = vld [vmem:[#allocation5 + $0x728] sm:$0xff] }
 0x621   :  { %2857 = vmatprep.mubr.bf16.mxu0 %v12811_v19  ;;  %3083 = vmatprep.mubr.bf16.mxu1 %v12811_v19  ;;  %v2265_v19 = vld [vmem:[#allocation5 + $0x4f0] sm:$0xff] }
 0x623   :  { %2931 = vmatpush1.bf16.msra.mxu0 %v2247_v20  ;;  %3157 = vmatpush1.bf16.msra.mxu1 %v2249_v39  ;;  %v2338_v20 = vld [vmem:[#allocation5 + $0x738] sm:$0xff]  ;;  %v2335_v39 = vld [vmem:[#allocation5 + $0x720] sm:$0xff] }
 0x624   :  { %2932 = vmatprep.subr.bf16.mxu0 %v2256_v62  ;;  %3158 = vmatprep.subr.bf16.mxu1 %v2258_v14  ;;  %v2337_v62 = vld [vmem:[#allocation5 + $0x730] sm:$0xff]  ;;  %v2344_v14 = vld [vmem:[#allocation5 + $0x768] sm:$0xff] }
 0x626   :  { %2858 = vmatmul.mubr.bf16.gmra.mrb[52].mxu0 %v12812_v51  ;;  %3084 = vmatmul.mubr.bf16.gmra.mrb[132].mxu1 %v12812_v51  ;;  %v2282_v51 = vld [vmem:[#allocation5 + $0x578] sm:$0xff] }
 0x627   :  { %2933 = vmatpush1.bf16.msra.mxu0 %v2255_v10  ;;  %3159 = vmatpush1.bf16.msra.mxu1 %v2257_v4  ;;  %v2343_v10 = vld [vmem:[#allocation5 + $0x760] sm:$0xff]  ;;  %v2352_v4 = vld [vmem:[#allocation5 + $0x7a8] sm:$0xff] }
 0x628   :  { %2934 = vmatprep.subr.bf16.mxu0 %v2264_v26  ;;  %3160 = vmatprep.subr.bf16.mxu1 %v2266_v34  ;;  %v2354_v26 = vld [vmem:[#allocation5 + $0x7b8] sm:$0xff]  ;;  %v2351_v34 = vld [vmem:[#allocation5 + $0x7a0] sm:$0xff] }
 0x629   :  { %2867 = vmatprep.mubr.bf16.mxu0 %v8193_v28  ;;  %3093 = vmatprep.mubr.bf16.mxu1 %v8193_v28  ;;  %v2281_v28 = vld [vmem:[#allocation5 + $0x570] sm:$0xff] }
 0x62b   :  { %2935 = vmatpush1.bf16.msra.mxu0 %v2263_v29  ;;  %3161 = vmatpush1.bf16.msra.mxu1 %v2265_v19  ;;  %v2353_v29 = vld [vmem:[#allocation5 + $0x7b0] sm:$0xff]  ;;  %v2360_v19 = vld [vmem:[#allocation5 + $0x7e8] sm:$0xff] }
 0x62c   :  { %2936 = vmatprep.subr.bf16.mxu0 %v2272_v12  ;;  %3162 = vmatprep.subr.bf16.mxu1 %v2274_v15  ;;  %v2359_v12 = vld [vmem:[#allocation5 + $0x7e0] sm:$0xff] }
 0x62e   :  { %2868 = vmatmul.mubr.bf16.gmra.mrb[56].mxu0 %v8191_v17  ;;  %3094 = vmatmul.mubr.bf16.gmra.mrb[136].mxu1 %v8191_v17  ;;  %v2298_v17 = vld [vmem:[#allocation5 + $0x5f8] sm:$0xff] }
 0x62f   :  { %2937 = vmatpush1.bf16.msra.mxu0 %v2271_v43  ;;  %3163 = vmatpush1.bf16.msra.mxu1 %v2273_v37 }
 0x630   :  { %2938 = vmatprep.subr.bf16.mxu0 %v2280_v21  ;;  %3164 = vmatprep.subr.bf16.mxu1 %v2282_v51 }
 0x631   :  { %2877 = vmatprep.mubr.bf16.mxu0 %v8201_v23  ;;  %3103 = vmatprep.mubr.bf16.mxu1 %v8201_v23  ;;  %v2297_v23 = vld [vmem:[#allocation5 + $0x5f0] sm:$0xff] }
 0x633   :  { %2939 = vmatpush1.bf16.msra.mxu0 %v2279_v3  ;;  %3165 = vmatpush1.bf16.msra.mxu1 %v2281_v28 }
 0x634   :  { %2940 = vmatprep.subr.bf16.mxu0 %v2288_v54  ;;  %3166 = vmatprep.subr.bf16.mxu1 %v2290_v5 }
 0x636   :  { %2878 = vmatmul.mubr.bf16.gmra.mrb[60].mxu0 %v8199_v57  ;;  %3104 = vmatmul.mubr.bf16.gmra.mrb[140].mxu1 %v8199_v57  ;;  %v2314_v57 = vld [vmem:[#allocation5 + $0x678] sm:$0xff] }
 0x637   :  { %2941 = vmatpush1.bf16.msra.mxu0 %v2287_v27  ;;  %3167 = vmatpush1.bf16.msra.mxu1 %v2289_v46 }
 0x638   :  { %2942 = vmatprep.subr.bf16.mxu0 %v2296_v24  ;;  %3168 = vmatprep.subr.bf16.mxu1 %v2298_v17 }
 0x639   :  { %2887 = vmatprep.mubr.bf16.mxu0 %v8209_v6  ;;  %3113 = vmatprep.mubr.bf16.mxu1 %v8209_v6  ;;  %v2313_v6 = vld [vmem:[#allocation5 + $0x670] sm:$0xff] }
 0x63b   :  { %2943 = vmatpush1.bf16.msra.mxu0 %v2295_v25  ;;  %3169 = vmatpush1.bf16.msra.mxu1 %v2297_v23 }
 0x63c   :  { %2944 = vmatprep.subr.bf16.mxu0 %v2304_v38  ;;  %3170 = vmatprep.subr.bf16.mxu1 %v2306_v55 }
 0x63e   :  { %2888 = vmatmul.mubr.bf16.gmra.mrb[64].mxu0 %v8207_v59  ;;  %3114 = vmatmul.mubr.bf16.gmra.mrb[144].mxu1 %v8207_v59  ;;  %v2330_v59 = vld [vmem:[#allocation5 + $0x6f8] sm:$0xff] }
 0x63f   :  { %2945 = vmatpush1.bf16.msra.mxu0 %v2303_v8  ;;  %3171 = vmatpush1.bf16.msra.mxu1 %v2305_v11 }
 0x640   :  { %2946 = vmatprep.subr.bf16.mxu0 %v2312_v9  ;;  %3172 = vmatprep.subr.bf16.mxu1 %v2314_v57 }
 0x641   :  { %2897 = vmatprep.mubr.bf16.mxu0 %v8217_v31  ;;  %3123 = vmatprep.mubr.bf16.mxu1 %v8217_v31  ;;  %v2329_v31 = vld [vmem:[#allocation5 + $0x6f0] sm:$0xff] }
 0x643   :  { %2947 = vmatpush1.bf16.msra.mxu0 %v2311_v0  ;;  %3173 = vmatpush1.bf16.msra.mxu1 %v2313_v6 }
 0x644   :  { %2948 = vmatprep.subr.bf16.mxu0 %v2320_v45  ;;  %3174 = vmatprep.subr.bf16.mxu1 %v2322_v47 }
 0x646   :  { %2898 = vmatmul.mubr.bf16.gmra.mrb[68].mxu0 %v8215_v56  ;;  %3124 = vmatmul.mubr.bf16.gmra.mrb[148].mxu1 %v8215_v56  ;;  %v2346_v56 = vld [vmem:[#allocation5 + $0x778] sm:$0xff] }
 0x647   :  { %2949 = vmatpush1.bf16.msra.mxu0 %v2319_v50  ;;  %3175 = vmatpush1.bf16.msra.mxu1 %v2321_v60 }
 0x648   :  { %2950 = vmatprep.subr.bf16.mxu0 %v2328_v13  ;;  %3176 = vmatprep.subr.bf16.mxu1 %v2330_v59 }
 0x649   :  { %2907 = vmatprep.mubr.bf16.mxu0 %v8225_v41  ;;  %3133 = vmatprep.mubr.bf16.mxu1 %v8225_v41  ;;  %v2345_v41 = vld [vmem:[#allocation5 + $0x770] sm:$0xff] }
 0x64b   :  { %2951 = vmatpush1.bf16.msra.mxu0 %v2327_v42  ;;  %3177 = vmatpush1.bf16.msra.mxu1 %v2329_v31 }
 0x64c   :  { %2952 = vmatprep.subr.bf16.mxu0 %v2336_v1  ;;  %3178 = vmatprep.subr.bf16.mxu1 %v2338_v20 }
 0x64e   :  { %2908 = vmatmul.mubr.bf16.gmra.mrb[72].mxu0 %v8223_v40  ;;  %3134 = vmatmul.mubr.bf16.gmra.mrb[152].mxu1 %v8223_v40  ;;  %v2362_v40 = vld [vmem:[#allocation5 + $0x7f8] sm:$0xff] }
 0x64f   :  { %2953 = vmatpush1.bf16.msra.mxu0 %v2335_v39  ;;  %3179 = vmatpush1.bf16.msra.mxu1 %v2337_v62 }
 0x650   :  { %2954 = vmatprep.subr.bf16.mxu0 %v2344_v14  ;;  %3180 = vmatprep.subr.bf16.mxu1 %v2346_v56 }
 0x651   :  { %2917 = vmatprep.mubr.bf16.mxu0 %v8233_v18  ;;  %3143 = vmatprep.mubr.bf16.mxu1 %v8233_v18  ;;  %v2361_v18 = vld [vmem:[#allocation5 + $0x7f0] sm:$0xff] }
 0x653   :  { %2955 = vmatpush1.bf16.msra.mxu0 %v2343_v10  ;;  %3181 = vmatpush1.bf16.msra.mxu1 %v2345_v41 }
 0x654   :  { %2956 = vmatprep.subr.bf16.mxu0 %v2352_v4  ;;  %3182 = vmatprep.subr.bf16.mxu1 %v2354_v26 }
 0x656   :  { %2918 = vmatmul.mubr.bf16.gmra.mrb[76].mxu0 %v8231_v48  ;;  %3144 = vmatmul.mubr.bf16.gmra.mrb[156].mxu1 %v8231_v48 }
 0x657   :  { %2957 = vmatpush1.bf16.msra.mxu0 %v2351_v34  ;;  %3183 = vmatpush1.bf16.msra.mxu1 %v2353_v29 }
 0x658   :  { %2958 = vmatprep.subr.bf16.mxu0 %v2360_v19  ;;  %3184 = vmatprep.subr.bf16.mxu1 %v2362_v40 }
 0x659   :  { %2960 = vmatprep.mubr.bf16.mxu0 %v12813_v22  ;;  %3186 = vmatprep.mubr.bf16.mxu1 %v12813_v22 }
 0x65b   :  { %2959 = vmatpush1.bf16.msra.mxu0 %v2359_v12  ;;  %3185 = vmatpush1.bf16.msra.mxu1 %v2361_v18 }
 0x65e   :  { %2961 = vmatmul.mubr.bf16.vlgmr.msra.gmra.mrb[48].mxu0 %v12814_v16  ;;  %3187 = vmatmul.mubr.bf16.vlgmr.msra.gmra.mrb[128].mxu1 %v12814_v16 }
 0x65f   :  { %2970 = vmatprep.mubr.bf16.mxu0 %v8186_v58  ;;  %3196 = vmatprep.mubr.bf16.mxu1 %v8186_v58 }
 0x666   :  { %2971 = vmatmul.mubr.bf16.gmra.mrb[52].mxu0 %v8178_v52  ;;  %3197 = vmatmul.mubr.bf16.gmra.mrb[132].mxu1 %v8178_v52 }
 0x667   :  { %2980 = vmatprep.mubr.bf16.mxu0 %v8197_v44  ;;  %3206 = vmatprep.mubr.bf16.mxu1 %v8197_v44 }
 0x66e   :  { %2981 = vmatmul.mubr.bf16.gmra.mrb[56].mxu0 %v8195_v35  ;;  %3207 = vmatmul.mubr.bf16.gmra.mrb[136].mxu1 %v8195_v35 }
 0x66f   :  { %2990 = vmatprep.mubr.bf16.mxu0 %v8205_v36  ;;  %3216 = vmatprep.mubr.bf16.mxu1 %v8205_v36 }
 0x676   :  { %2991 = vmatmul.mubr.bf16.gmra.mrb[60].mxu0 %v8203_v7  ;;  %3217 = vmatmul.mubr.bf16.gmra.mrb[140].mxu1 %v8203_v7 }
 0x677   :  { %3000 = vmatprep.mubr.bf16.mxu0 %v8213_v61  ;;  %3226 = vmatprep.mubr.bf16.mxu1 %v8213_v61 }
 0x67e   :  { %3001 = vmatmul.mubr.bf16.gmra.mrb[64].mxu0 %v8211_v53  ;;  %3227 = vmatmul.mubr.bf16.gmra.mrb[144].mxu1 %v8211_v53 }
 0x67f   :  { %3010 = vmatprep.mubr.bf16.mxu0 %v8221_v30  ;;  %3236 = vmatprep.mubr.bf16.mxu1 %v8221_v30 }
 0x686   :  { %3011 = vmatmul.mubr.bf16.gmra.mrb[68].mxu0 %v8219_v33  ;;  %3237 = vmatmul.mubr.bf16.gmra.mrb[148].mxu1 %v8219_v33 }
 0x687   :  { %3020 = vmatprep.mubr.bf16.mxu0 %v8229_v63  ;;  %3246 = vmatprep.mubr.bf16.mxu1 %v8229_v63 }
 0x68e   :  { %3021 = vmatmul.mubr.bf16.gmra.mrb[72].mxu0 %v8227_v49  ;;  %3247 = vmatmul.mubr.bf16.gmra.mrb[152].mxu1 %v8227_v49 }
 0x68f   :  { %3030 = vmatprep.mubr.bf16.mxu0 %v8237_v32  ;;  %3256 = vmatprep.mubr.bf16.mxu1 %v8237_v32 }
 0x696   :  { %3031 = vmatmul.mubr.bf16.gmra.mrb[76].mxu0 %v8235_v2  ;;  %3257 = vmatmul.mubr.bf16.gmra.mrb[156].mxu1 %v8235_v2 }
 0x6b1   :  { %v8367_v52 = vpop.f32.mrb[16].mxu0  ;;  %v8369_v58 = vpop.f32.mrb[96].mxu1 }
 0x6b2   :  { %v8371_v35 = vpop.f32.mrb[17].mxu0  ;;  %v8373_v44 = vpop.f32.mrb[97].mxu1 }
 0x6b3   :  { %12815 = vst [vmem:[#allocation43_spill] sm:$0xff] %v8373_v44  ;;  %v8375_v7 = vpop.f32.mrb[18].mxu0  ;;  %v8377_v36 = vpop.f32.mrb[98].mxu1 }
 0x6b4   :  { %v3269_v53 = vadd.f32 %v8375_v7, %v8367_v52  ;;  %v3311_v61 = vadd.f32 %v8377_v36, %v8369_v58  ;;  %v8383_v33 = vpop.f32.mrb[19].mxu0  ;;  %v8385_v30 = vpop.f32.mrb[99].mxu1 }
 0x6b5   :  { %12816 = vst [vmem:[#allocation100_spill] sm:$0xff] %v8385_v30  ;;  %v3290_v49 = vadd.f32 %v8383_v33, %v8371_v35  ;;  %v3332_v63 = vadd.f32 %v8385_v30, %v8373_v44 }
 0x6b9   :  { %v8391_v48 = vpop.f32.mrb[20].mxu0  ;;  %v8393_v2 = vpop.f32.mrb[100].mxu1 }
 0x6ba   :  { %v3270_v32 = vadd.f32 %v3269_v53, %v8391_v48  ;;  %v3312_v22 = vadd.f32 %v3311_v61, %v8393_v2  ;;  %v8397_v16 = vpop.f32.mrb[21].mxu0  ;;  %v8399_v15 = vpop.f32.mrb[101].mxu1 }
 0x6bb   :  { %12817 = vst [vmem:[#allocation69_spill] sm:$0xff] %v8399_v15  ;;  %v3291_v43 = vadd.f32 %v3290_v49, %v8397_v16  ;;  %v3333_v37 = vadd.f32 %v3332_v63, %v8399_v15  ;;  %v8403_v21 = vpop.f32.mrb[22].mxu0  ;;  %v8405_v51 = vpop.f32.mrb[102].mxu1 }
 0x6bc   :  { %v3271_v3 = vadd.f32 %v3270_v32, %v8403_v21  ;;  %v3313_v28 = vadd.f32 %v3312_v22, %v8405_v51  ;;  %v8409_v54 = vpop.f32.mrb[23].mxu0  ;;  %v8411_v5 = vpop.f32.mrb[103].mxu1 }
 0x6bd   :  { %12818 = vst [vmem:[#allocation31_spill] sm:$0xff] %v8411_v5  ;;  %v3292_v27 = vadd.f32 %v3291_v43, %v8409_v54  ;;  %v3334_v46 = vadd.f32 %v3333_v37, %v8411_v5 }
 0x6c1   :  { %v8415_v24 = vpop.f32.mrb[24].mxu0  ;;  %v8417_v17 = vpop.f32.mrb[104].mxu1 }
 0x6c2   :  { %v3272_v25 = vadd.f32 %v3271_v3, %v8415_v24  ;;  %v3314_v23 = vadd.f32 %v3313_v28, %v8417_v17  ;;  %v8421_v38 = vpop.f32.mrb[25].mxu0  ;;  %v8423_v55 = vpop.f32.mrb[105].mxu1 }
 0x6c3   :  { %12819 = vst [vmem:[#allocation101_spill] sm:$0xff] %v8423_v55  ;;  %v3293_v8 = vadd.f32 %v3292_v27, %v8421_v38  ;;  %v3335_v11 = vadd.f32 %v3334_v46, %v8423_v55  ;;  %v8427_v9 = vpop.f32.mrb[26].mxu0  ;;  %v8429_v57 = vpop.f32.mrb[106].mxu1 }
 0x6c4   :  { %v3273_v0 = vadd.f32 %v3272_v25, %v8427_v9  ;;  %v3315_v6 = vadd.f32 %v3314_v23, %v8429_v57  ;;  %v8433_v45 = vpop.f32.mrb[27].mxu0  ;;  %v8435_v47 = vpop.f32.mrb[107].mxu1 }
 0x6c5   :  { %12820 = vst [vmem:[#allocation44_spill] sm:$0xff] %v8433_v45  ;;  %12821 = vst [vmem:[#allocation70_spill] sm:$0xff] %v8435_v47  ;;  %v3294_v50 = vadd.f32 %v3293_v8, %v8433_v45  ;;  %v3336_v60 = vadd.f32 %v3335_v11, %v8435_v47 }
 0x6c9   :  { %v8439_v13 = vpop.f32.mrb[28].mxu0  ;;  %v8441_v59 = vpop.f32.mrb[108].mxu1 }
 0x6ca   :  { %v3274_v42 = vadd.f32 %v3273_v0, %v8439_v13  ;;  %v3316_v31 = vadd.f32 %v3315_v6, %v8441_v59  ;;  %v8445_v1 = vpop.f32.mrb[29].mxu0  ;;  %v8447_v20 = vpop.f32.mrb[109].mxu1 }
 0x6cb   :  { %12822 = vst [vmem:[#allocation32_spill] sm:$0xff] %v8445_v1  ;;  %12823 = vst [vmem:[#allocation45_spill] sm:$0xff] %v8447_v20  ;;  %v3295_v39 = vadd.f32 %v3294_v50, %v8445_v1  ;;  %v3337_v62 = vadd.f32 %v3336_v60, %v8447_v20  ;;  %v8451_v14 = vpop.f32.mrb[30].mxu0  ;;  %v8453_v56 = vpop.f32.mrb[110].mxu1 }
 0x6cc   :  { %v3275_v10 = vadd.f32 %v3274_v42, %v8451_v14  ;;  %v3317_v41 = vadd.f32 %v3316_v31, %v8453_v56  ;;  %v8457_v4 = vpop.f32.mrb[31].mxu0  ;;  %v8459_v26 = vpop.f32.mrb[111].mxu1 }
 0x6cd   :  { %12824 = vst [vmem:[#allocation72_spill] sm:$0xff] %v8457_v4  ;;  %12825 = vst [vmem:[#allocation33_spill] sm:$0xff] %v8459_v26  ;;  %v3296_v34 = vadd.f32 %v3295_v39, %v8457_v4  ;;  %v3338_v29 = vadd.f32 %v3337_v62, %v8459_v26 }
 0x6d1   :  { %v8463_v19 = vpop.f32.mrb[32].mxu0  ;;  %v8465_v40 = vpop.f32.mrb[112].mxu1 }
 0x6d2   :  { %v3276_v12 = vadd.f32 %v3275_v10, %v8463_v19  ;;  %v3318_v18 = vadd.f32 %v3317_v41, %v8465_v40  ;;  %v8469_v53 = vpop.f32.mrb[33].mxu0  ;;  %v8471_v61 = vpop.f32.mrb[113].mxu1 }
 0x6d3   :  { %12826 = vst [vmem:[#allocation71_spill] sm:$0xff] %v8469_v53  ;;  %12827 = vst [vmem:[#allocation46_spill] sm:$0xff] %v8471_v61  ;;  %v3297_v49 = vadd.f32 %v3296_v34, %v8469_v53  ;;  %v3339_v63 = vadd.f32 %v3338_v29, %v8471_v61  ;;  %v8475_v32 = vpop.f32.mrb[34].mxu0  ;;  %v8477_v22 = vpop.f32.mrb[114].mxu1 }
 0x6d4   :  { %v3277_v43 = vadd.f32 %v3276_v12, %v8475_v32  ;;  %v3319_v37 = vadd.f32 %v3318_v18, %v8477_v22  ;;  %v8481_v3 = vpop.f32.mrb[35].mxu0  ;;  %v8483_v28 = vpop.f32.mrb[115].mxu1 }
 0x6d5   :  { %12828 = vst [vmem:[#allocation73_spill] sm:$0xff] %v8481_v3  ;;  %12829 = vst [vmem:[#allocation34_spill] sm:$0xff] %v8483_v28  ;;  %v3298_v27 = vadd.f32 %v3297_v49, %v8481_v3  ;;  %v3340_v46 = vadd.f32 %v3339_v63, %v8483_v28 }
 0x6d9   :  { %v8487_v25 = vpop.f32.mrb[36].mxu0  ;;  %v8489_v23 = vpop.f32.mrb[116].mxu1 }
 0x6da   :  { %v3278_v8 = vadd.f32 %v3277_v43, %v8487_v25  ;;  %v3320_v11 = vadd.f32 %v3319_v37, %v8489_v23  ;;  %v8493_v0 = vpop.f32.mrb[37].mxu0  ;;  %v8495_v6 = vpop.f32.mrb[117].mxu1 }
 0x6db   :  { %12830 = vst [vmem:[#allocation74_spill] sm:$0xff] %v8493_v0  ;;  %12831 = vst [vmem:[#allocation47_spill] sm:$0xff] %v8495_v6  ;;  %v3299_v50 = vadd.f32 %v3298_v27, %v8493_v0  ;;  %v3341_v60 = vadd.f32 %v3340_v46, %v8495_v6  ;;  %v8499_v42 = vpop.f32.mrb[38].mxu0  ;;  %v8501_v31 = vpop.f32.mrb[118].mxu1 }
 0x6dc   :  { %v3279_v39 = vadd.f32 %v3278_v8, %v8499_v42  ;;  %v3321_v62 = vadd.f32 %v3320_v11, %v8501_v31  ;;  %v8505_v10 = vpop.f32.mrb[39].mxu0  ;;  %v8507_v41 = vpop.f32.mrb[119].mxu1 }
 0x6dd   :  { %12832 = vst [vmem:[#allocation35_spill] sm:$0xff] %v8505_v10  ;;  %12833 = vst [vmem:[#allocation102_spill] sm:$0xff] %v8507_v41  ;;  %v3300_v34 = vadd.f32 %v3299_v50, %v8505_v10  ;;  %v3342_v29 = vadd.f32 %v3341_v60, %v8507_v41 }
 0x6e1   :  { %v8511_v12 = vpop.f32.mrb[40].mxu0  ;;  %v8513_v18 = vpop.f32.mrb[120].mxu1 }
 0x6e2   :  { %v3280_v49 = vadd.f32 %v3279_v39, %v8511_v12  ;;  %v3322_v63 = vadd.f32 %v3321_v62, %v8513_v18  ;;  %v8517_v43 = vpop.f32.mrb[41].mxu0  ;;  %v8519_v37 = vpop.f32.mrb[121].mxu1 }
 0x6e3   :  { %12834 = vst [vmem:[#allocation48_spill] sm:$0xff] %v8517_v43  ;;  %12835 = vst [vmem:[#allocation103_spill] sm:$0xff] %v8519_v37  ;;  %v3301_v27 = vadd.f32 %v3300_v34, %v8517_v43  ;;  %v3343_v46 = vadd.f32 %v3342_v29, %v8519_v37  ;;  %v2574_v8 = vpop.f32.mrb[42].mxu0  ;;  %v8523_v11 = vpop.f32.mrb[122].mxu1 }
 0x6e4   :  { %v3281_v50 = vadd.f32 %v3280_v49, %v2574_v8  ;;  %v3323_v60 = vadd.f32 %v3322_v63, %v8523_v11  ;;  %v8526_v41 = vpop.f32.mrb[43].mxu0  ;;  %v8528_v6 = vpop.f32.mrb[123].mxu1 }
 0x6e5   :  { %12836 = vst [vmem:[#allocation75_spill] sm:$0xff] %v8526_v41  ;;  %12837 = vst [vmem:[#allocation36_spill] sm:$0xff] %v8528_v6  ;;  %v3302_v39 = vadd.f32 %v3301_v27, %v8526_v41  ;;  %v3344_v62 = vadd.f32 %v3343_v46, %v8528_v6 }
 0x6e9   :  { %v2580_v28 = vpop.f32.mrb[44].mxu0  ;;  %v8532_v61 = vpop.f32.mrb[124].mxu1 }
 0x6ea   :  { %v3282_v34 = vadd.f32 %v3281_v50, %v2580_v28  ;;  %v3324_v29 = vadd.f32 %v3323_v60, %v8532_v61  ;;  %v8535_v37 = vpop.f32.mrb[45].mxu0  ;;  %v8537_v26 = vpop.f32.mrb[125].mxu1 }
 0x6eb   :  { %12838 = vst [vmem:[#allocation104_spill] sm:$0xff] %v8535_v37  ;;  %12839 = vst [vmem:[#allocation49_spill] sm:$0xff] %v8537_v26  ;;  %v3303_v49 = vadd.f32 %v3302_v39, %v8535_v37  ;;  %v3345_v63 = vadd.f32 %v3344_v62, %v8537_v26  ;;  %v2584_v20 = vpop.f32.mrb[46].mxu0  ;;  %v8541_v47 = vpop.f32.mrb[126].mxu1 }
 0x6ec   :  { %v3283_v27 = vadd.f32 %v3282_v34, %v2584_v20  ;;  %v3325_v46 = vadd.f32 %v3324_v29, %v8541_v47  ;;  %v8544_v6 = vpop.f32.mrb[47].mxu0  ;;  %v8546_v55 = vpop.f32.mrb[127].mxu1 }
 0x6ed   :  { %12840 = vst [vmem:[#allocation105_spill] sm:$0xff] %v8544_v6  ;;  %12841 = vst [vmem:[#allocation76_spill] sm:$0xff] %v8546_v55  ;;  %v3304_v50 = vadd.f32 %v3303_v49, %v8544_v6  ;;  %v3346_v60 = vadd.f32 %v3345_v63, %v8546_v55 }
 0x6ee   :  { %v3284_v5 = vrot.slane %v3283_v27, 4  ;;  %v3326_v15 = vrot.slane %v3325_v46, 4 }
 0x6ef   :  { %v3305_v30 = vrot.slane %v3304_v50, 4  ;;  %v3347_v39 = vrot.slane %v3346_v60, 4 }
 0x6f0   :  { %v3285_v44 = vadd.f32 %v3284_v5, %v3283_v27  ;;  %v3327_v62 = vadd.f32 %v3326_v15, %v3325_v46 }
 0x6f1   :  { %v3306_v26 = vadd.f32 %v3305_v30, %v3304_v50  ;;  %v3348_v37 = vadd.f32 %v3347_v39, %v3346_v60 }
 0x6f2   :  { %v3286_v41 = vrot.slane %v3285_v44, 2  ;;  %v3328_v34 = vrot.slane %v3327_v62, 2 }
 0x6f3   :  { %v3307_v43 = vrot.slane %v3306_v26, 2  ;;  %v3349_v29 = vrot.slane %v3348_v37, 2 }
 0x6f4   :  { %v3287_v10 = vadd.f32 %v3286_v41, %v3285_v44  ;;  %v3329_v0 = vadd.f32 %v3328_v34, %v3327_v62 }
 0x6f5   :  { %v3308_v4 = vadd.f32 %v3307_v43, %v3306_v26  ;;  %v3350_v49 = vadd.f32 %v3349_v29, %v3348_v37 }
 0x6f6   :  { %v3288_v3 = vrot.slane %v3287_v10, 1  ;;  %v3330_v53 = vrot.slane %v3329_v0, 1 }
 0x6f7   :  { %v3309_v1 = vrot.slane %v3308_v4, 1  ;;  %v3351_v45 = vrot.slane %v3350_v49, 1 }
 0x6f8   :  { %v3289_v6 = vadd.f32 %v3288_v3, %v3287_v10  ;;  %v3331_v55 = vadd.f32 %v3330_v53, %v3329_v0 }
 0x6f9   :  { %v3310_v10 = vadd.f32 %v3309_v1, %v3308_v4  ;;  %v3352_v41 = vadd.f32 %v3351_v45, %v3350_v49 }
 0x6fa   :  { %v3437_v63 = vmul.f32 0.0078125, %v3289_v6 }
 0x6fb   :  { %v8659_v46 = vmul.f32 0.0078125, %v3352_v41 }
 0x6fc   :  { %v8551_v5 = vsub.f32 %v8367_v52, %v3437_v63  ;;  %v8554_v30 = vsub.f32 %v8375_v7, %v3437_v63  ;;  %v8557_v15 = vsub.f32 %v8391_v48, %v3437_v63  ;;  %v8560_v44 = vsub.f32 %v8403_v21, %v3437_v63 }
 0x6fd   :  { %v8563_v26 = vsub.f32 %v8415_v24, %v3437_v63  ;;  %v8566_v3 = vsub.f32 %v8427_v9, %v3437_v63  ;;  %v8569_v53 = vsub.f32 %v8439_v13, %v3437_v63  ;;  %v8572_v52 = vsub.f32 %v8451_v14, %v3437_v63 }
 0x6fe   :  { %12842 = vst [vmem:[#allocation78_spill] sm:$0xff] %v8551_v5  ;;  %12843 = vst [vmem:[#allocation37_spill] sm:$0xff] %v8554_v30  ;;  %v8575_v7 = vsub.f32 %v8463_v19, %v3437_v63  ;;  %v8578_v48 = vsub.f32 %v8475_v32, %v3437_v63  ;;  %v8581_v21 = vsub.f32 %v8487_v25, %v3437_v63  ;;  %v3439_v25 = vmul.f32 0.0078125, %v3331_v55 }
 0x6ff   :  { %12844 = vst [vmem:[#allocation79_spill] sm:$0xff] %v8557_v15  ;;  %12845 = vst [vmem:[#allocation80_spill] sm:$0xff] %v8560_v44  ;;  %v8584_v24 = vsub.f32 %v8499_v42, %v3437_v63  ;;  %v8587_v9 = vsub.f32 %v8511_v12, %v3437_v63  ;;  %v8589_v13 = vsub.f32 %v2574_v8, %v3437_v63 }
 0x700   :  { %12846 = vst [vmem:[#allocation77_spill] sm:$0xff] %v8563_v26  ;;  %12847 = vst [vmem:[#allocation81_spill] sm:$0xff] %v8566_v3  ;;  %v8591_v0 = vsub.f32 %v2580_v28, %v3437_v63  ;;  %v8593_v14 = vsub.f32 %v2584_v20, %v3437_v63  ;;  %v3573_v19 = vmul.f32 %v8551_v5, %v8551_v5 }
 0x701   :  { %12848 = vst [vmem:[#allocation50_spill] sm:$0xff] %v8569_v53  ;;  %12849 = vst [vmem:[#allocation82_spill] sm:$0xff] %v8572_v52  ;;  %v3581_v32 = vmul.f32 %v8554_v30, %v8554_v30  ;;  %v3589_v6 = vmul.f32 %v8557_v15, %v8557_v15  ;;  %v3597_v42 = vmul.f32 %v8560_v44, %v8560_v44 }
 0x702   :  { %12850 = vst [vmem:[#allocation52_spill] sm:$0xff] %v8575_v7  ;;  %12851 = vst [vmem:[#allocation87_spill] sm:$0xff] %v8578_v48  ;;  %v8604_v28 = vsub.f32 %v8369_v58, %v3439_v25  ;;  %v8607_v20 = vsub.f32 %v8377_v36, %v3439_v25  ;;  %v8610_v43 = vsub.f32 %v8393_v2, %v3439_v25 }
 0x703   :  { %12852 = vst [vmem:[#allocation38_spill] sm:$0xff] %v8581_v21  ;;  %12853 = vst [vmem:[#allocation83_spill] sm:$0xff] %v8584_v24  ;;  %v3701_v12 = vadd.f32 %v3581_v32, %v3573_v19  ;;  %v8613_v55 = vsub.f32 %v8405_v51, %v3439_v25  ;;  %v8616_v37 = vsub.f32 %v8417_v17, %v3439_v25 }
 0x704   :  { %12854 = vst [vmem:[#allocation40_spill] sm:$0xff] %v8587_v9  ;;  %12855 = vst [vmem:[#allocation88_spill] sm:$0xff] %v8589_v13  ;;  %v8619_v8 = vsub.f32 %v8429_v57, %v3439_v25  ;;  %v8622_v45 = vsub.f32 %v8441_v59, %v3439_v25  ;;  %v8625_v1 = vsub.f32 %v8453_v56, %v3439_v25 }
 0x705   :  { %12856 = vst [vmem:[#allocation51_spill] sm:$0xff] %v8591_v0  ;;  %12857 = vst [vmem:[#allocation84_spill] sm:$0xff] %v8593_v14  ;;  %v3702_v58 = vadd.f32 %v3701_v12, %v3589_v6  ;;  %v8628_v36 = vsub.f32 %v8465_v40, %v3439_v25  ;;  %v8631_v2 = vsub.f32 %v8477_v22, %v3439_v25  ;;  %v12879_v12 = vld [vmem:[#allocation44_spill] sm:$0xff] }
 0x706   :  { %12858 = vst [vmem:[#allocation53_spill] sm:$0xff] %v8604_v28  ;;  %12859 = vst [vmem:[#allocation89_spill] sm:$0xff] %v8607_v20  ;;  %v8634_v51 = vsub.f32 %v8489_v23, %v3439_v25  ;;  %v8637_v17 = vsub.f32 %v8501_v31, %v3439_v25  ;;  %v8640_v57 = vsub.f32 %v8513_v18, %v3439_v25  ;;  %v3438_v18 = vmul.f32 0.0078125, %v3310_v10 }
 0x707   :  { %12860 = vst [vmem:[#allocation39_spill] sm:$0xff] %v8610_v43  ;;  %12861 = vst [vmem:[#allocation86_spill] sm:$0xff] %v8613_v55  ;;  %v8643_v59 = vsub.f32 %v8523_v11, %v3439_v25  ;;  %v3605_v56 = vmul.f32 %v8563_v26, %v8563_v26  ;;  %v3703_v4 = vadd.f32 %v3702_v58, %v3597_v42 }
 0x708   :  { %12862 = vst [vmem:[#allocation41_spill] sm:$0xff] %v8616_v37  ;;  %12863 = vst [vmem:[#allocation90_spill] sm:$0xff] %v8619_v8  ;;  %v8648_v40 = vsub.f32 %v8532_v61, %v3439_v25  ;;  %v8651_v22 = vsub.f32 %v8541_v47, %v3439_v25  ;;  %v3575_v23 = vmul.f32 %v8604_v28, %v8604_v28 }
 0x709   :  { %12864 = vst [vmem:[#allocation54_spill] sm:$0xff] %v8622_v45  ;;  %12865 = vst [vmem:[#allocation91_spill] sm:$0xff] %v8625_v1  ;;  %v3583_v31 = vmul.f32 %v8607_v20, %v8607_v20  ;;  %v3613_v11 = vmul.f32 %v8566_v3, %v8566_v3  ;;  %v3704_v27 = vadd.f32 %v3703_v4, %v3605_v56  ;;  %v12881_v56 = vld [vmem:[#allocation32_spill] sm:$0xff] }
 0x70a   :  { %12866 = vst [vmem:[#allocation59_spill] sm:$0xff] %v8628_v36  ;;  %12867 = vst [vmem:[#allocation95_spill] sm:$0xff] %v8631_v2  ;;  %v3621_v61 = vmul.f32 %v8569_v53, %v8569_v53  ;;  %v3629_v47 = vmul.f32 %v8572_v52, %v8572_v52  ;;  %v3637_v50 = vmul.f32 %v8575_v7, %v8575_v7  ;;  %v12883_v4 = vld [vmem:[#allocation72_spill] sm:$0xff]  ;;  %v12907_v7 = vld [vmem:[#allocation31_spill] sm:$0xff] }
 0x70b   :  { %12868 = vst [vmem:[#allocation42_spill] sm:$0xff] %v8634_v51  ;;  %12869 = vst [vmem:[#allocation92_spill] sm:$0xff] %v8637_v17  ;;  %v3645_v60 = vmul.f32 %v8578_v48, %v8578_v48  ;;  %v3653_v39 = vmul.f32 %v8581_v21, %v8581_v21  ;;  %v3705_v62 = vadd.f32 %v3704_v27, %v3613_v11  ;;  %v12887_v11 = vld [vmem:[#allocation73_spill] sm:$0xff]  ;;  %v12889_v27 = vld [vmem:[#allocation74_spill] sm:$0xff] }
 0x70c   :  { %12870 = vst [vmem:[#allocation60_spill] sm:$0xff] %v8640_v57  ;;  %12871 = vst [vmem:[#allocation96_spill] sm:$0xff] %v8643_v59  ;;  %v3591_v34 = vmul.f32 %v8610_v43, %v8610_v43  ;;  %v3599_v29 = vmul.f32 %v8613_v55, %v8613_v55  ;;  %v3607_v49 = vmul.f32 %v8616_v37, %v8616_v37  ;;  %v12899_v21 = vld [vmem:[#allocation105_spill] sm:$0xff] }
 0x70d   :  { %12872 = vst [vmem:[#allocation55_spill] sm:$0xff] %v8648_v40  ;;  %12873 = vst [vmem:[#allocation93_spill] sm:$0xff] %v8651_v22  ;;  %v3743_v63 = vadd.f32 %v3583_v31, %v3575_v23  ;;  %v8678_v19 = vsub.f32 %v8371_v35, %v3438_v18  ;;  %v8681_v32 = vsub.f32 %v8383_v33, %v3438_v18  ;;  %v12885_v31 = vld [vmem:[#allocation71_spill] sm:$0xff] }
 0x70e   :  { %v3706_v25 = vadd.f32 %v3705_v62, %v3621_v61  ;;  %v8684_v6 = vsub.f32 %v8397_v16, %v3438_v18  ;;  %v8687_v42 = vsub.f32 %v8409_v54, %v3438_v18  ;;  %v8690_v10 = vsub.f32 %v8421_v38, %v3438_v18  ;;  %v12891_v62 = vld [vmem:[#allocation35_spill] sm:$0xff] }
 0x70f   :  { %12874 = vst [vmem:[#allocation61_spill] sm:$0xff] %v8678_v19  ;;  %12875 = vst [vmem:[#allocation97_spill] sm:$0xff] %v8681_v32  ;;  %v3744_v41 = vadd.f32 %v3743_v63, %v3591_v34  ;;  %v8693_v58 = vsub.f32 %v12879_v12, %v3438_v18  ;;  %v8696_v35 = vsub.f32 %v12881_v56, %v3438_v18  ;;  %v12893_v63 = vld [vmem:[#allocation48_spill] sm:$0xff]  ;;  %v12895_v56 = vld [vmem:[#allocation75_spill] sm:$0xff] }
 0x710   :  { %12876 = vst [vmem:[#allocation58_spill] sm:$0xff] %v8684_v6  ;;  %12877 = vst [vmem:[#allocation94_spill] sm:$0xff] %v8687_v42  ;;  %v8699_v33 = vsub.f32 %v12883_v4, %v3438_v18  ;;  %v3707_v23 = vadd.f32 %v3706_v25, %v3629_v47  ;;  %v8702_v16 = vsub.f32 %v12885_v31, %v3438_v18  ;;  %v12897_v31 = vld [vmem:[#allocation104_spill] sm:$0xff] }
 0x711   :  { %12878 = vst [vmem:[#allocation62_spill] sm:$0xff] %v8690_v10  ;;  %12880 = vst [vmem:[#allocation98_spill] sm:$0xff] %v8693_v58  ;;  %v8705_v54 = vsub.f32 %v12887_v11, %v3438_v18  ;;  %v8708_v38 = vsub.f32 %v12889_v27, %v3438_v18  ;;  %v3745_v61 = vadd.f32 %v3744_v41, %v3599_v29 }
 0x712   :  { %12882 = vst [vmem:[#allocation63_spill] sm:$0xff] %v8696_v35  ;;  %12884 = vst [vmem:[#allocation99_spill] sm:$0xff] %v8699_v33  ;;  %v8711_v34 = vsub.f32 %v12891_v62, %v3438_v18  ;;  %v8714_v12 = vsub.f32 %v12893_v63, %v3438_v18  ;;  %v8717_v4 = vsub.f32 %v12895_v56, %v3438_v18 }
 0x713   :  { %12886 = vst [vmem:[#allocation85_spill] sm:$0xff] %v8702_v16  ;;  %12888 = vst [vmem:[#allocation64_spill] sm:$0xff] %v8705_v54  ;;  %v3661_v47 = vmul.f32 %v8584_v24, %v8584_v24  ;;  %v3708_v25 = vadd.f32 %v3707_v23, %v3637_v50  ;;  %v8722_v11 = vsub.f32 %v12897_v31, %v3438_v18 }
 0x714   :  { %12890 = vst [vmem:[#allocation68_spill] sm:$0xff] %v8708_v38  ;;  %12892 = vst [vmem:[#allocation67_spill] sm:$0xff] %v8711_v34  ;;  %v8725_v27 = vsub.f32 %v12899_v21, %v3438_v18  ;;  %v3669_v29 = vmul.f32 %v8587_v9, %v8587_v9  ;;  %v3677_v41 = vmul.f32 %v8589_v13, %v8589_v13 }
 0x715   :  { %12894 = vst [vmem:[#allocation66_spill] sm:$0xff] %v8714_v12  ;;  %12896 = vst [vmem:[#allocation65_spill] sm:$0xff] %v8717_v4  ;;  %v3615_v62 = vmul.f32 %v8619_v8, %v8619_v8  ;;  %v3746_v63 = vadd.f32 %v3745_v61, %v3607_v49  ;;  %v3685_v56 = vmul.f32 %v8591_v0, %v8591_v0 }
 0x716   :  { %12898 = vst [vmem:[#allocation44_spill] sm:$0xff] %v8722_v11  ;;  %12900 = vst [vmem:[#allocation32_spill] sm:$0xff] %v8725_v27  ;;  %v3709_v50 = vadd.f32 %v3708_v25, %v3645_v60  ;;  %v3574_v23 = vmul.f32 %v8678_v19, %v8678_v19  ;;  %v3582_v21 = vmul.f32 %v8681_v32, %v8681_v32 }
 0x717   :  { %v3693_v18 = vmul.f32 %v8593_v14, %v8593_v14  ;;  %v3623_v31 = vmul.f32 %v8622_v45, %v8622_v45  ;;  %v3631_v13 = vmul.f32 %v8625_v1, %v8625_v1  ;;  %v3747_v49 = vadd.f32 %v3746_v63, %v3615_v62 }
 0x718   :  { %v3710_v61 = vadd.f32 %v3709_v50, %v3653_v39  ;;  %v3639_v60 = vmul.f32 %v8628_v36, %v8628_v36  ;;  %v3647_v25 = vmul.f32 %v8631_v2, %v8631_v2  ;;  %v3655_v0 = vmul.f32 %v8634_v51, %v8634_v51  ;;  %v12901_v50 = vld [vmem:[#allocation43_spill] sm:$0xff]  ;;  %v12903_v2 = vld [vmem:[#allocation100_spill] sm:$0xff] }
 0x719   :  { %v3748_v9 = vadd.f32 %v3747_v49, %v3623_v31  ;;  %v3590_v14 = vmul.f32 %v8684_v6, %v8684_v6  ;;  %v3598_v24 = vmul.f32 %v8687_v42, %v8687_v42  ;;  %v3606_v62 = vmul.f32 %v8690_v10, %v8690_v10  ;;  %v12905_v49 = vld [vmem:[#allocation69_spill] sm:$0xff] }
 0x71a   :  { %v3711_v39 = vadd.f32 %v3710_v61, %v3661_v47  ;;  %v3722_v63 = vadd.f32 %v3582_v21, %v3574_v23  ;;  %v8759_v48 = vsub.f32 %v12901_v50, %v8659_v46  ;;  %v8763_v36 = vsub.f32 %v12903_v2, %v8659_v46  ;;  %v12909_v47 = vld [vmem:[#allocation101_spill] sm:$0xff]  ;;  %v12911_v50 = vld [vmem:[#allocation70_spill] sm:$0xff] }
 0x71b   :  { %v3749_v31 = vadd.f32 %v3748_v9, %v3631_v13  ;;  %v8767_v51 = vsub.f32 %v12905_v49, %v8659_v46  ;;  %v8771_v1 = vsub.f32 %v12907_v7, %v8659_v46  ;;  %v8775_v23 = vsub.f32 %v12909_v47, %v8659_v46  ;;  %v12913_v9 = vld [vmem:[#allocation45_spill] sm:$0xff]  ;;  %v12917_v7 = vld [vmem:[#allocation46_spill] sm:$0xff]  ;;  %v12921_v47 = vld [vmem:[#allocation47_spill] sm:$0xff] }
 0x71c   :  { %12902 = vst [vmem:[#allocation72_spill] sm:$0xff] %v8759_v48  ;;  %12904 = vst [vmem:[#allocation71_spill] sm:$0xff] %v8763_v36  ;;  %v3712_v21 = vadd.f32 %v3711_v39, %v3669_v29  ;;  %v3723_v61 = vadd.f32 %v3722_v63, %v3590_v14  ;;  %v8779_v52 = vsub.f32 %v12911_v50, %v8659_v46  ;;  %v12915_v49 = vld [vmem:[#allocation33_spill] sm:$0xff]  ;;  %v12919_v29 = vld [vmem:[#allocation34_spill] sm:$0xff] }
 0x71d   :  { %12906 = vst [vmem:[#allocation73_spill] sm:$0xff] %v8767_v51  ;;  %12908 = vst [vmem:[#allocation74_spill] sm:$0xff] %v8771_v1  ;;  %v8783_v13 = vsub.f32 %v12913_v9, %v8659_v46  ;;  %v3750_v2 = vadd.f32 %v3749_v31, %v3639_v60  ;;  %v8787_v45 = vsub.f32 %v12915_v49, %v8659_v46  ;;  %v12923_v60 = vld [vmem:[#allocation102_spill] sm:$0xff]  ;;  %v12925_v49 = vld [vmem:[#allocation103_spill] sm:$0xff] }
 0x71e   :  { %12910 = vst [vmem:[#allocation35_spill] sm:$0xff] %v8775_v23  ;;  %12912 = vst [vmem:[#allocation48_spill] sm:$0xff] %v8779_v52  ;;  %v8791_v53 = vsub.f32 %v12917_v7, %v8659_v46  ;;  %v8795_v14 = vsub.f32 %v12919_v29, %v8659_v46  ;;  %v3713_v39 = vadd.f32 %v3712_v21, %v3677_v41  ;;  %v12927_v7 = vld [vmem:[#allocation36_spill] sm:$0xff]  ;;  %v12929_v41 = vld [vmem:[#allocation49_spill] sm:$0xff] }
 0x71f   :  { %12914 = vst [vmem:[#allocation75_spill] sm:$0xff] %v8783_v13  ;;  %12916 = vst [vmem:[#allocation104_spill] sm:$0xff] %v8787_v45  ;;  %v3724_v63 = vadd.f32 %v3723_v61, %v3598_v24  ;;  %v8799_v50 = vsub.f32 %v12921_v47, %v8659_v46  ;;  %v8803_v31 = vsub.f32 %v12923_v60, %v8659_v46  ;;  %v12931_v47 = vld [vmem:[#allocation76_spill] sm:$0xff] }
 0x720   :  { %12918 = vst [vmem:[#allocation105_spill] sm:$0xff] %v8791_v53  ;;  %12920 = vst [vmem:[#allocation43_spill] sm:$0xff] %v8795_v14  ;;  %v3751_v9 = vadd.f32 %v3750_v2, %v3647_v25  ;;  %v8807_v8 = vsub.f32 %v12925_v49, %v8659_v46  ;;  %v8811_v3 = vsub.f32 %v12927_v7, %v8659_v46 }
 0x721   :  { %12922 = vst [vmem:[#allocation100_spill] sm:$0xff] %v8799_v50  ;;  %12924 = vst [vmem:[#allocation69_spill] sm:$0xff] %v8803_v31  ;;  %v8815_v24 = vsub.f32 %v12929_v41, %v8659_v46  ;;  %v3714_v21 = vadd.f32 %v3713_v39, %v3685_v56  ;;  %v3614_v61 = vmul.f32 %v8693_v58, %v8693_v58 }
 0x722   :  { %12926 = vst [vmem:[#allocation31_spill] sm:$0xff] %v8807_v8  ;;  %12928 = vst [vmem:[#allocation101_spill] sm:$0xff] %v8811_v3  ;;  %v3725_v29 = vadd.f32 %v3724_v63, %v3606_v62  ;;  %v8821_v25 = vsub.f32 %v12931_v47, %v8659_v46  ;;  %v3663_v2 = vmul.f32 %v8637_v17, %v8637_v17 }
 0x723   :  { %12930 = vst [vmem:[#allocation70_spill] sm:$0xff] %v8815_v24  ;;  %v3752_v60 = vadd.f32 %v3751_v9, %v3655_v0  ;;  %v3715_v49 = vadd.f32 %v3714_v21, %v3693_v18  ;;  %v3622_v7 = vmul.f32 %v8696_v35, %v8696_v35  ;;  %v3671_v56 = vmul.f32 %v8640_v57, %v8640_v57 }
 0x724   :  { %12932 = vst [vmem:[#allocation45_spill] sm:$0xff] %v8821_v25  ;;  %v3726_v37 = vadd.f32 %v3725_v29, %v3614_v61  ;;  %v3576_v62 = vmul.f32 %v8759_v48, %v8759_v48  ;;  %v3584_v46 = vmul.f32 %v8763_v36, %v8763_v36  ;;  %v3630_v63 = vmul.f32 %v8699_v33, %v8699_v33 }
 0x725   :  { %v3753_v39 = vadd.f32 %v3752_v60, %v3663_v2  ;;  %v3679_v0 = vmul.f32 %v8643_v59, %v8643_v59  ;;  %v3716_v9 = vrot.slane %v3715_v49, 4  ;;  %v3638_v21 = vmul.f32 %v8702_v16, %v8702_v16 }
 0x726   :  { %v3727_v41 = vadd.f32 %v3726_v37, %v3622_v7  ;;  %v3687_v29 = vmul.f32 %v8648_v40, %v8648_v40  ;;  %v3592_v2 = vmul.f32 %v8767_v51, %v8767_v51  ;;  %v3764_v60 = vadd.f32 %v3584_v46, %v3576_v62 }
 0x727   :  { %v3754_v18 = vadd.f32 %v3753_v39, %v3671_v56  ;;  %v3646_v37 = vmul.f32 %v8705_v54, %v8705_v54  ;;  %v3695_v56 = vmul.f32 %v8651_v22, %v8651_v22  ;;  %v3600_v59 = vmul.f32 %v8771_v1, %v8771_v1 }
 0x728   :  { %v3728_v61 = vadd.f32 %v3727_v41, %v3630_v63  ;;  %v3765_v63 = vadd.f32 %v3764_v60, %v3592_v2  ;;  %v3717_v41 = vadd.f32 %v3716_v9, %v3715_v49  ;;  %v3608_v62 = vmul.f32 %v8775_v23, %v8775_v23 }
 0x729   :  { %v3755_v47 = vadd.f32 %v3754_v18, %v3679_v0  ;;  %v3654_v0 = vmul.f32 %v8708_v38, %v8708_v38  ;;  %v3670_v49 = vmul.f32 %v8714_v12, %v8714_v12  ;;  %v3624_v2 = vmul.f32 %v8783_v13, %v8783_v13 }
 0x72a   :  { %v3729_v7 = vadd.f32 %v3728_v61, %v3638_v21  ;;  %v3766_v46 = vadd.f32 %v3765_v63, %v3600_v59  ;;  %v3662_v21 = vmul.f32 %v8711_v34, %v8711_v34  ;;  %v3718_v22 = vrot.slane %v3717_v41, 2 }
 0x72b   :  { %v3756_v39 = vadd.f32 %v3755_v47, %v3687_v29  ;;  %v3616_v29 = vmul.f32 %v8779_v52, %v8779_v52  ;;  %v3678_v59 = vmul.f32 %v8717_v4, %v8717_v4  ;;  %v3686_v63 = vmul.f32 %v8722_v11, %v8722_v11 }
 0x72c   :  { %v3730_v18 = vadd.f32 %v3729_v7, %v3646_v37  ;;  %v3767_v47 = vadd.f32 %v3766_v46, %v3608_v62  ;;  %v3632_v7 = vmul.f32 %v8787_v45, %v8787_v45  ;;  %v3640_v62 = vmul.f32 %v8791_v53, %v8791_v53 }
 0x72d   :  { %v3757_v40 = vadd.f32 %v3756_v39, %v3695_v56  ;;  %v3719_v39 = vadd.f32 %v3718_v22, %v3717_v41  ;;  %v3648_v41 = vmul.f32 %v8795_v14, %v8795_v14  ;;  %v3696_v16 = vmul.f32 %v8821_v25, %v8821_v25 }
 0x72e   :  { %v3731_v61 = vadd.f32 %v3730_v18, %v3654_v0  ;;  %v3768_v60 = vadd.f32 %v3767_v47, %v3616_v29  ;;  %v3694_v29 = vmul.f32 %v8725_v27, %v8725_v27 }
 0x72f   :  { %v3758_v18 = vrot.slane %v3757_v40, 4 }
 0x730   :  { %v3732_v9 = vadd.f32 %v3731_v61, %v3662_v21  ;;  %v3769_v56 = vadd.f32 %v3768_v60, %v3624_v2 }
 0x731   :  { %v8869_v21 = vpop.f32.mrb[48].mxu0  ;;  %v8871_v61 = vpop.f32.mrb[128].mxu1  ;;  %v3759_v11 = vadd.f32 %v3758_v18, %v3757_v40 }
 0x732   :  { %v3733_v37 = vadd.f32 %v3732_v9, %v3670_v49  ;;  %v3770_v46 = vadd.f32 %v3769_v56, %v3632_v7  ;;  %v8875_v49 = vpop.f32.mrb[49].mxu0  ;;  %v8877_v22 = vpop.f32.mrb[129].mxu1  ;;  %v3656_v9 = vmul.f32 %v8799_v50, %v8799_v50  ;;  %v3672_v50 = vmul.f32 %v8807_v8, %v8807_v8 }
 0x733   :  { %12933 = vst [vmem:[#allocation33_spill] sm:$0xff] %v8877_v22  ;;  %v8883_v60 = vpop.f32.mrb[50].mxu0  ;;  %v3760_v34 = vrot.slane %v3759_v11, 2 }
 0x734   :  { %v3734_v0 = vadd.f32 %v3733_v37, %v3678_v59  ;;  %v3771_v2 = vadd.f32 %v3770_v46, %v3640_v62  ;;  %v8885_v59 = vpop.f32.mrb[130].mxu1  ;;  %v3720_v37 = vrot.slane %v3719_v39, 1  ;;  %v3353_v56 = vadd.f32 %v8883_v60, %v8869_v21 }
 0x735   :  { %v8893_v27 = vpop.f32.mrb[131].mxu1 }
 0x736   :  { %v3735_v47 = vadd.f32 %v3734_v0, %v3686_v63  ;;  %v3395_v63 = vadd.f32 %v8885_v59, %v8871_v61  ;;  %v8891_v0 = vpop.f32.mrb[51].mxu0  ;;  %12934 = vst [vmem:[#allocation46_spill] sm:$0xff] %v8893_v27  ;;  %v3772_v4 = vadd.f32 %v3771_v2, %v3648_v41  ;;  %v3416_v46 = vadd.f32 %v8893_v27, %v8877_v22 }
 0x737   :  { %v3374_v62 = vadd.f32 %v8891_v0, %v8875_v49  ;;  %v3721_v12 = vadd.f32 %v3720_v37, %v3719_v39  ;;  %v3680_v2 = vmul.f32 %v8811_v3, %v8811_v3  ;;  %v3688_v39 = vmul.f32 %v8815_v24, %v8815_v24 }
 0x738   :  { %v3736_v7 = vadd.f32 %v3735_v47, %v3694_v29  ;;  %v3664_v29 = vmul.f32 %v8803_v31, %v8803_v31  ;;  %v3773_v47 = vadd.f32 %v3772_v4, %v3656_v9  ;;  %v3761_v24 = vadd.f32 %v3760_v34, %v3759_v11 }
 0x739   :  { %v8903_v40 = vpop.f32.mrb[52].mxu0  ;;  %v8905_v18 = vpop.f32.mrb[132].mxu1  ;;  %v3869_v3 = vmul.f32 0.0078125, %v3721_v12 }
 0x73a   :  { %v3737_v57 = vrot.slane %v3736_v7, 4  ;;  %v3774_v38 = vadd.f32 %v3773_v47, %v3664_v29  ;;  %v3354_v14 = vadd.f32 %v3353_v56, %v8903_v40  ;;  %v3396_v31 = vadd.f32 %v3395_v63, %v8905_v18  ;;  %v8911_v4 = vpop.f32.mrb[53].mxu0 }
 0x73b   :  { %v3375_v37 = vadd.f32 %v3374_v62, %v8911_v4  ;;  %v8919_v29 = vpop.f32.mrb[54].mxu0 }
 0x73c   :  { %v3738_v17 = vadd.f32 %v3737_v57, %v3736_v7  ;;  %v8913_v57 = vpop.f32.mrb[133].mxu1  ;;  %v3775_v9 = vadd.f32 %v3774_v38, %v3672_v50  ;;  %v3355_v63 = vadd.f32 %v3354_v14, %v8919_v29  ;;  %v8925_v54 = vpop.f32.mrb[55].mxu0  ;;  %v3762_v14 = vrot.slane %v3761_v24, 1 }
 0x73d   :  { %12935 = vst [vmem:[#allocation34_spill] sm:$0xff] %v8913_v57  ;;  %v3417_v7 = vadd.f32 %v3416_v46, %v8913_v57  ;;  %v8921_v47 = vpop.f32.mrb[134].mxu1  ;;  %v3376_v50 = vadd.f32 %v3375_v37, %v8925_v54 }
 0x73e   :  { %v3739_v41 = vrot.slane %v3738_v17, 2  ;;  %v3397_v8 = vadd.f32 %v3396_v31, %v8921_v47  ;;  %v8927_v53 = vpop.f32.mrb[135].mxu1  ;;  %v3776_v38 = vadd.f32 %v3775_v9, %v3680_v2 }
 0x73f   :  { %12936 = vst [vmem:[#allocation47_spill] sm:$0xff] %v8927_v53  ;;  %v3418_v62 = vadd.f32 %v3417_v7, %v8927_v53 }
 0x740   :  { %v3740_v56 = vadd.f32 %v3739_v41, %v3738_v17  ;;  %v3777_v12 = vadd.f32 %v3776_v38, %v3688_v39  ;;  %v3877_v17 = vadd.f32 0.8, %v3869_v3 }
 0x741   :  { %v8933_v31 = vpop.f32.mrb[56].mxu0  ;;  %v8935_v33 = vpop.f32.mrb[136].mxu1 }
 0x742   :  { %v3741_v46 = vrot.slane %v3740_v56, 1  ;;  %v3778_v45 = vadd.f32 %v3777_v12, %v3696_v16  ;;  %v3356_v34 = vadd.f32 %v3355_v63, %v8933_v31  ;;  %v3398_v11 = vadd.f32 %v3397_v8, %v8935_v33  ;;  %v8939_v2 = vpop.f32.mrb[57].mxu0  ;;  %v8941_v9 = vpop.f32.mrb[137].mxu1 }
 0x743   :  { %12937 = vst [vmem:[#allocation102_spill] sm:$0xff] %v8941_v9  ;;  %v3377_v39 = vadd.f32 %v3376_v50, %v8939_v2  ;;  %v3419_v3 = vadd.f32 %v3418_v62, %v8941_v9  ;;  %v8945_v7 = vpop.f32.mrb[58].mxu0  ;;  %v8947_v16 = vpop.f32.mrb[138].mxu1  ;;  %5773 = vrsqrt.f32 %v3877_v17  ;;  %v3763_v12 = vadd.f32 %v3762_v14, %v3761_v24 }
 0x744   :  { %v3742_v41 = vadd.f32 %v3741_v46, %v3740_v56  ;;  %v3779_v37 = vrot.slane %v3778_v45, 4  ;;  %v3357_v38 = vadd.f32 %v3356_v34, %v8945_v7  ;;  %v3399_v63 = vadd.f32 %v3398_v11, %v8947_v16  ;;  %v8951_v8 = vpop.f32.mrb[59].mxu0  ;;  %v8953_v46 = vpop.f32.mrb[139].mxu1 }
 0x745   :  { %12938 = vst [vmem:[#allocation103_spill] sm:$0xff] %v8951_v8  ;;  %12939 = vst [vmem:[#allocation36_spill] sm:$0xff] %v8953_v46  ;;  %v3378_v50 = vadd.f32 %v3377_v39, %v8951_v8  ;;  %v3420_v62 = vadd.f32 %v3419_v3, %v8953_v46  ;;  %v3871_v35 = vmul.f32 0.0078125, %v3763_v12 }
 0x746   :  { %v3870_v13 = vmul.f32 0.0078125, %v3742_v41  ;;  %v3780_v41 = vadd.f32 %v3779_v37, %v3778_v45 }
 0x747   :  { %v3879_v12 = vadd.f32 0.8, %v3871_v35 }
 0x748   :  { %v3878_v56 = vadd.f32 0.8, %v3870_v13  ;;  %v3781_v25 = vrot.slane %v3780_v41, 2 }
 0x749   :  { %v8957_v17 = vpop.f32.mrb[60].mxu0  ;;  %v8959_v13 = vpop.f32.mrb[140].mxu1 }
 0x74a   :  { %5775 = vrsqrt.f32 %v3878_v56  ;;  %v3782_v52 = vadd.f32 %v3781_v25, %v3780_v41  ;;  %v3358_v34 = vadd.f32 %v3357_v38, %v8957_v17  ;;  %v3400_v11 = vadd.f32 %v3399_v63, %v8959_v13  ;;  %v8963_v58 = vpop.f32.mrb[61].mxu0  ;;  %v8965_v24 = vpop.f32.mrb[141].mxu1 }
 0x74b   :  { %12940 = vst [vmem:[#allocation49_spill] sm:$0xff] %v8963_v58  ;;  %12941 = vst [vmem:[#allocation76_spill] sm:$0xff] %v8965_v24  ;;  %v3379_v14 = vadd.f32 %v3378_v50, %v8963_v58  ;;  %v3421_v37 = vadd.f32 %v3420_v62, %v8965_v24  ;;  %v8969_v39 = vpop.f32.mrb[62].mxu0  ;;  %v8971_v25 = vpop.f32.mrb[142].mxu1  ;;  %5777 = vrsqrt.f32 %v3879_v12 }
 0x74c   :  { %v3783_v45 = vrot.slane %v3782_v52, 1  ;;  %v3359_v3 = vadd.f32 %v3358_v34, %v8969_v39  ;;  %v3401_v56 = vadd.f32 %v3400_v11, %v8971_v25  ;;  %v8975_v38 = vpop.f32.mrb[63].mxu0  ;;  %v8977_v63 = vpop.f32.mrb[143].mxu1 }
 0x74d   :  { %12942 = vst [vmem:[#allocation106_spill] sm:$0xff] %v8975_v38  ;;  %12943 = vst [vmem:[#allocation107_spill] sm:$0xff] %v8977_v63  ;;  %v3380_v23 = vadd.f32 %v3379_v14, %v8975_v38  ;;  %v3422_v50 = vadd.f32 %v3421_v37, %v8977_v63  ;;  %v5774_v10 = vpop.eup %5773 }
 0x74e   :  { %v3784_v41 = vadd.f32 %v3783_v45, %v3782_v52 }
 0x750   :  { %v3872_v62 = vmul.f32 0.0078125, %v3784_v41 }
 0x751   :  { %v8981_v42 = vpop.f32.mrb[64].mxu0  ;;  %v8983_v34 = vpop.f32.mrb[144].mxu1 }
 0x752   :  { %v3880_v55 = vadd.f32 0.8, %v3872_v62  ;;  %v3360_v11 = vadd.f32 %v3359_v3, %v8981_v42  ;;  %v3402_v44 = vadd.f32 %v3401_v56, %v8983_v34  ;;  %v8987_v35 = vpop.f32.mrb[65].mxu0  ;;  %v8989_v52 = vpop.f32.mrb[145].mxu1 }
 0x753   :  { %12944 = vst [vmem:[#allocation108_spill] sm:$0xff] %v8987_v35  ;;  %12945 = vst [vmem:[#allocation109_spill] sm:$0xff] %v8989_v52  ;;  %v3381_v45 = vadd.f32 %v3380_v23, %v8987_v35  ;;  %v3423_v14 = vadd.f32 %v3422_v50, %v8989_v52  ;;  %v8993_v37 = vpop.f32.mrb[66].mxu0 }
 0x754   :  { %v5776_v26 = vpop.eup %5775  ;;  %5779 = vrsqrt.f32 %v3880_v55  ;;  %v8999_v3 = vpop.f32.mrb[67].mxu0 }
 0x755   :  { %v3901_v1 = vcombine.low %v5774_v10, %v5776_v26  ;;  %v8995_v26 = vpop.f32.mrb[146].mxu1  ;;  %v3361_v10 = vadd.f32 %v3360_v11, %v8993_v37  ;;  %12946 = vst [vmem:[#allocation110_spill] sm:$0xff] %v8999_v3  ;;  %v3382_v41 = vadd.f32 %v3381_v45, %v8999_v3 }
 0x756   :  { %v3403_v12 = vadd.f32 %v3402_v44, %v8995_v26  ;;  %v9001_v56 = vpop.f32.mrb[147].mxu1  ;;  %v5778_v44 = vpop.eup %5777 }
 0x757   :  { %12947 = vst [vmem:[#allocation111_spill] sm:$0xff] %v9001_v56  ;;  %v3424_v55 = vadd.f32 %v3423_v14, %v9001_v56 }
 0x759   :  { %v9005_v62 = vpop.f32.mrb[68].mxu0  ;;  %v9007_v23 = vpop.f32.mrb[148].mxu1 }
 0x75a   :  { %v3362_v50 = vadd.f32 %v3361_v10, %v9005_v62  ;;  %v3404_v51 = vadd.f32 %v3403_v12, %v9007_v23  ;;  %v9011_v43 = vpop.f32.mrb[69].mxu0  ;;  %v9013_v11 = vpop.f32.mrb[149].mxu1 }
 0x75b   :  { %12948 = vst [vmem:[#allocation112_spill] sm:$0xff] %v9011_v43  ;;  %12949 = vst [vmem:[#allocation113_spill] sm:$0xff] %v9013_v11  ;;  %v3383_v6 = vadd.f32 %v3382_v41, %v9011_v43  ;;  %v3425_v15 = vadd.f32 %v3424_v55, %v9013_v11  ;;  %v9017_v45 = vpop.f32.mrb[70].mxu0  ;;  %v9019_v14 = vpop.f32.mrb[150].mxu1  ;;  %v12952_v41 = vld [vmem:[#allocation28_spill] sm:$0xff] }
 0x75c   :  { %v3363_v36 = vadd.f32 %v3362_v50, %v9017_v45  ;;  %v3405_v20 = vadd.f32 %v3404_v51, %v9019_v14  ;;  %v9023_v10 = vpop.f32.mrb[71].mxu0  ;;  %v9025_v12 = vpop.f32.mrb[151].mxu1  ;;  %v9030_v28 = vrot.slane %v3901_v1, %v12952_v41 }
 0x75d   :  { %12950 = vst [vmem:[#allocation114_spill] sm:$0xff] %v9023_v10  ;;  %12951 = vst [vmem:[#allocation115_spill] sm:$0xff] %v9025_v12  ;;  %v3384_v30 = vadd.f32 %v3383_v6, %v9023_v10  ;;  %v3426_v48 = vadd.f32 %v3425_v15, %v9025_v12 }
 0x75e   :  { %v5780_v32 = vpop.eup %5779  ;;  %12953 = vst [vmem:[#allocation116_spill] sm:$0xff] %v9030_v28 }
 0x75f   :  { %v3902_v55 = vcombine.low %v5778_v44, %v5780_v32 }
 0x761   :  { %v9033_v19 = vrot.slane %v3902_v55, %v12952_v41  ;;  %v9035_v5 = vpop.f32.mrb[72].mxu0  ;;  %v9037_v50 = vpop.f32.mrb[152].mxu1 }
 0x762   :  { %v3364_v11 = vadd.f32 %v3363_v36, %v9035_v5  ;;  %v3406_v6 = vadd.f32 %v3405_v20, %v9037_v50  ;;  %v9043_v56 = vpop.f32.mrb[73].mxu0  ;;  %v9045_v15 = vpop.f32.mrb[153].mxu1 }
 0x763   :  { %12954 = vst [vmem:[#allocation117_spill] sm:$0xff] %v9033_v19  ;;  %12955 = vst [vmem:[#allocation118_spill] sm:$0xff] %v9043_v56  ;;  %v3385_v1 = vadd.f32 %v3384_v30, %v9043_v56  ;;  %v3427_v32 = vadd.f32 %v3426_v48, %v9045_v15  ;;  %v3026_v44 = vpop.f32.mrb[74].mxu0  ;;  %v9049_v55 = vpop.f32.mrb[154].mxu1 }
 0x764   :  { %12956 = vst [vmem:[#allocation119_spill] sm:$0xff] %v9045_v15  ;;  %v3365_v41 = vadd.f32 %v3364_v11, %v3026_v44  ;;  %v3407_v12 = vadd.f32 %v3406_v6, %v9049_v55  ;;  %v9052_v52 = vpop.f32.mrb[75].mxu0  ;;  %v9054_v51 = vpop.f32.mrb[155].mxu1 }
 0x765   :  { %12957 = vst [vmem:[#allocation120_spill] sm:$0xff] %v9052_v52  ;;  %12958 = vst [vmem:[#allocation121_spill] sm:$0xff] %v9054_v51  ;;  %v3386_v20 = vadd.f32 %v3385_v1, %v9052_v52  ;;  %v3428_v36 = vadd.f32 %v3427_v32, %v9054_v51 }
 0x769   :  { %v3032_v19 = vpop.f32.mrb[76].mxu0  ;;  %v9058_v28 = vpop.f32.mrb[156].mxu1 }
 0x76a   :  { %v3366_v30 = vadd.f32 %v3365_v41, %v3032_v19  ;;  %v3408_v48 = vadd.f32 %v3407_v12, %v9058_v28  ;;  %v9061_v15 = vpop.f32.mrb[77].mxu0  ;;  %v9063_v63 = vpop.f32.mrb[157].mxu1 }
 0x76b   :  { %12959 = vst [vmem:[#allocation122_spill] sm:$0xff] %v9061_v15  ;;  %12960 = vst [vmem:[#allocation123_spill] sm:$0xff] %v9063_v63  ;;  %v3387_v11 = vadd.f32 %v3386_v20, %v9061_v15  ;;  %v3429_v6 = vadd.f32 %v3428_v36, %v9063_v63  ;;  %v3036_v24 = vpop.f32.mrb[78].mxu0  ;;  %v9067_v46 = vpop.f32.mrb[158].mxu1 }
 0x76c   :  { %v3367_v1 = vadd.f32 %v3366_v30, %v3036_v24  ;;  %v3409_v32 = vadd.f32 %v3408_v48, %v9067_v46  ;;  %v9070_v51 = vpop.f32.mrb[79].mxu0  ;;  %v9072_v9 = vpop.f32.mrb[159].mxu1 }
 0x76d   :  { %12961 = vst [vmem:[#allocation124_spill] sm:$0xff] %v9070_v51  ;;  %12962 = vst [vmem:[#allocation125_spill] sm:$0xff] %v9072_v9  ;;  %v3388_v12 = vadd.f32 %v3387_v11, %v9070_v51  ;;  %v3430_v41 = vadd.f32 %v3429_v6, %v9072_v9 }
 0x76e   :  { %v3368_v53 = vrot.slane %v3367_v1, 4  ;;  %v3410_v57 = vrot.slane %v3409_v32, 4 }
 0x76f   :  { %v3389_v27 = vrot.slane %v3388_v12, 4  ;;  %v3431_v20 = vrot.slane %v3430_v41, 4 }
 0x770   :  { %v3369_v22 = vadd.f32 %v3368_v53, %v3367_v1  ;;  %v3411_v36 = vadd.f32 %v3410_v57, %v3409_v32 }
 0x771   :  { %v3390_v63 = vadd.f32 %v3389_v27, %v3388_v12  ;;  %v3432_v15 = vadd.f32 %v3431_v20, %v3430_v41 }
 0x772   :  { %v3370_v52 = vrot.slane %v3369_v22, 2  ;;  %v3412_v30 = vrot.slane %v3411_v36, 2 }
 0x773   :  { %v3391_v56 = vrot.slane %v3390_v63, 2  ;;  %v3433_v48 = vrot.slane %v3432_v15, 2 }
 0x774   :  { %v3371_v10 = vadd.f32 %v3370_v52, %v3369_v22  ;;  %v3413_v43 = vadd.f32 %v3412_v30, %v3411_v36 }
 0x775   :  { %v3392_v38 = vadd.f32 %v3391_v56, %v3390_v63  ;;  %v3434_v11 = vadd.f32 %v3433_v48, %v3432_v15 }
 0x776   :  { %v3372_v3 = vrot.slane %v3371_v10, 1  ;;  %v3414_v35 = vrot.slane %v3413_v43, 1 }
 0x777   :  { %v3393_v58 = vrot.slane %v3392_v38, 1  ;;  %v3435_v8 = vrot.slane %v3434_v11, 1 }
 0x778   :  { %v3373_v51 = vadd.f32 %v3372_v3, %v3371_v10  ;;  %v3415_v9 = vadd.f32 %v3414_v35, %v3413_v43 }
 0x77a   :  { %v3441_v6 = vmul.f32 0.0078125, %v3373_v51  ;;  %v3443_v3 = vmul.f32 0.0078125, %v3415_v9 }
 0x77c   :  { %v9077_v53 = vsub.f32 %v8869_v21, %v3441_v6  ;;  %v9080_v27 = vsub.f32 %v8883_v60, %v3441_v6  ;;  %v9083_v57 = vsub.f32 %v8903_v40, %v3441_v6  ;;  %v9086_v22 = vsub.f32 %v8919_v29, %v3441_v6 }
 0x77d   :  { %v9089_v63 = vsub.f32 %v8933_v31, %v3441_v6  ;;  %v9092_v52 = vsub.f32 %v8945_v7, %v3441_v6  ;;  %v9095_v43 = vsub.f32 %v8957_v17, %v3441_v6  ;;  %v9098_v21 = vsub.f32 %v8969_v39, %v3441_v6 }
 0x77e   :  { %v9101_v60 = vsub.f32 %v8981_v42, %v3441_v6  ;;  %v9104_v40 = vsub.f32 %v8993_v37, %v3441_v6  ;;  %v9107_v29 = vsub.f32 %v9005_v62, %v3441_v6  ;;  %v9110_v31 = vsub.f32 %v9017_v45, %v3441_v6 }
 0x77f   :  { %12963 = vst [vmem:[#allocation126_spill] sm:$0xff] %v9092_v52  ;;  %12964 = vst [vmem:[#allocation127_spill] sm:$0xff] %v9095_v43  ;;  %v9113_v7 = vsub.f32 %v9035_v5, %v3441_v6  ;;  %v9115_v17 = vsub.f32 %v3026_v44, %v3441_v6  ;;  %v9117_v35 = vsub.f32 %v3032_v19, %v3441_v6 }
 0x780   :  { %12965 = vst [vmem:[#allocation128_spill] sm:$0xff] %v9098_v21  ;;  %12966 = vst [vmem:[#allocation129_spill] sm:$0xff] %v9101_v60  ;;  %v9119_v39 = vsub.f32 %v3036_v24, %v3441_v6  ;;  %v3577_v42 = vmul.f32 %v9077_v53, %v9077_v53  ;;  %v3585_v37 = vmul.f32 %v9080_v27, %v9080_v27 }
 0x781   :  { %12967 = vst [vmem:[#allocation130_spill] sm:$0xff] %v9104_v40  ;;  %12968 = vst [vmem:[#allocation131_spill] sm:$0xff] %v9107_v29  ;;  %v3593_v56 = vmul.f32 %v9083_v57, %v9083_v57  ;;  %v3601_v5 = vmul.f32 %v9086_v22, %v9086_v22  ;;  %v3394_v62 = vadd.f32 %v3393_v58, %v3392_v38 }
 0x782   :  { %12969 = vst [vmem:[#allocation132_spill] sm:$0xff] %v9110_v31  ;;  %12970 = vst [vmem:[#allocation133_spill] sm:$0xff] %v9113_v7  ;;  %v3436_v45 = vadd.f32 %v3435_v8, %v3434_v11  ;;  %v3785_v10 = vadd.f32 %v3585_v37, %v3577_v42  ;;  %v9130_v19 = vsub.f32 %v8871_v61, %v3443_v3 }
 0x783   :  { %12971 = vst [vmem:[#allocation134_spill] sm:$0xff] %v9115_v17  ;;  %12972 = vst [vmem:[#allocation135_spill] sm:$0xff] %v9117_v35  ;;  %v9133_v24 = vsub.f32 %v8885_v59, %v3443_v3  ;;  %v9136_v51 = vsub.f32 %v8905_v18, %v3443_v3  ;;  %v9139_v9 = vsub.f32 %v8921_v47, %v3443_v3 }
 0x784   :  { %12973 = vst [vmem:[#allocation136_spill] sm:$0xff] %v9119_v39  ;;  %v9142_v15 = vsub.f32 %v8935_v33, %v3443_v3  ;;  %v9145_v44 = vsub.f32 %v8947_v16, %v3443_v3  ;;  %v9148_v58 = vsub.f32 %v8959_v13, %v3443_v3  ;;  %v3786_v61 = vadd.f32 %v3785_v10, %v3593_v56  ;;  %v12984_v10 = vld [vmem:[#allocation103_spill] sm:$0xff] }
 0x785   :  { %v9151_v8 = vsub.f32 %v8971_v25, %v3443_v3  ;;  %v9154_v59 = vsub.f32 %v8983_v34, %v3443_v3  ;;  %v9157_v18 = vsub.f32 %v8995_v26, %v3443_v3  ;;  %v9160_v47 = vsub.f32 %v9007_v23, %v3443_v3 }
 0x786   :  { %12974 = vst [vmem:[#allocation137_spill] sm:$0xff] %v9142_v15  ;;  %12975 = vst [vmem:[#allocation138_spill] sm:$0xff] %v9145_v44  ;;  %v9163_v33 = vsub.f32 %v9019_v14, %v3443_v3  ;;  %v9166_v16 = vsub.f32 %v9037_v50, %v3443_v3  ;;  %v9169_v13 = vsub.f32 %v9049_v55, %v3443_v3  ;;  %v3442_v50 = vmul.f32 0.0078125, %v3394_v62 }
 0x787   :  { %12976 = vst [vmem:[#allocation139_spill] sm:$0xff] %v9148_v58  ;;  %12977 = vst [vmem:[#allocation140_spill] sm:$0xff] %v9151_v8  ;;  %v3609_v25 = vmul.f32 %v9089_v63, %v9089_v63  ;;  %v3787_v38 = vadd.f32 %v3786_v61, %v3601_v5  ;;  %v9174_v34 = vsub.f32 %v9058_v28, %v3443_v3  ;;  %v9185_v32 = vmul.f32 0.0078125, %v3436_v45 }
 0x788   :  { %12978 = vst [vmem:[#allocation141_spill] sm:$0xff] %v9154_v59  ;;  %12979 = vst [vmem:[#allocation142_spill] sm:$0xff] %v9157_v18  ;;  %v9177_v26 = vsub.f32 %v9067_v46, %v3443_v3  ;;  %v3579_v23 = vmul.f32 %v9130_v19, %v9130_v19  ;;  %v3587_v14 = vmul.f32 %v9133_v24, %v9133_v24 }
 0x789   :  { %12980 = vst [vmem:[#allocation143_spill] sm:$0xff] %v9160_v47  ;;  %12981 = vst [vmem:[#allocation144_spill] sm:$0xff] %v9169_v13  ;;  %v3617_v55 = vmul.f32 %v9092_v52, %v9092_v52  ;;  %v3788_v1 = vadd.f32 %v3787_v38, %v3609_v25  ;;  %v3625_v28 = vmul.f32 %v9095_v43, %v9095_v43  ;;  %v12985_v25 = vld [vmem:[#allocation49_spill] sm:$0xff]  ;;  %v12986_v38 = vld [vmem:[#allocation106_spill] sm:$0xff] }
 0x78a   :  { %12982 = vst [vmem:[#allocation145_spill] sm:$0xff] %v9174_v34  ;;  %12983 = vst [vmem:[#allocation146_spill] sm:$0xff] %v9177_v26  ;;  %v3633_v46 = vmul.f32 %v9098_v21, %v9098_v21  ;;  %v3641_v12 = vmul.f32 %v9101_v60, %v9101_v60  ;;  %v3649_v41 = vmul.f32 %v9104_v40, %v9104_v40 }
 0x78b   :  { %v3657_v20 = vmul.f32 %v9107_v29, %v9107_v29  ;;  %v3789_v36 = vadd.f32 %v3788_v1, %v3617_v55  ;;  %v3595_v30 = vmul.f32 %v9136_v51, %v9136_v51  ;;  %v3603_v48 = vmul.f32 %v9139_v9, %v9139_v9  ;;  %v12988_v55 = vld [vmem:[#allocation110_spill] sm:$0xff]  ;;  %v12989_v1 = vld [vmem:[#allocation112_spill] sm:$0xff] }
 0x78c   :  { %v3611_v11 = vmul.f32 %v9142_v15, %v9142_v15  ;;  %v3827_v6 = vadd.f32 %v3587_v14, %v3579_v23  ;;  %v9204_v42 = vsub.f32 %v8875_v49, %v3442_v50  ;;  %v9207_v37 = vsub.f32 %v8891_v0, %v3442_v50  ;;  %v12987_v14 = vld [vmem:[#allocation108_spill] sm:$0xff] }
 0x78d   :  { %v3790_v3 = vadd.f32 %v3789_v36, %v3625_v28  ;;  %v9210_v56 = vsub.f32 %v8911_v4, %v3442_v50  ;;  %v9213_v5 = vsub.f32 %v8925_v54, %v3442_v50  ;;  %v9216_v62 = vsub.f32 %v8939_v2, %v3442_v50  ;;  %v12990_v36 = vld [vmem:[#allocation114_spill] sm:$0xff]  ;;  %v12994_v29 = vld [vmem:[#allocation124_spill] sm:$0xff] }
 0x78e   :  { %v3828_v45 = vadd.f32 %v3827_v6, %v3595_v30  ;;  %v9219_v61 = vsub.f32 %v12984_v10, %v3442_v50  ;;  %v9222_v49 = vsub.f32 %v12985_v25, %v3442_v50  ;;  %v9225_v0 = vsub.f32 %v12986_v38, %v3442_v50  ;;  %v12991_v6 = vld [vmem:[#allocation118_spill] sm:$0xff]  ;;  %v12992_v25 = vld [vmem:[#allocation120_spill] sm:$0xff] }
 0x78f   :  { %v3791_v23 = vadd.f32 %v3790_v3, %v3633_v46  ;;  %v9228_v4 = vsub.f32 %v12987_v14, %v3442_v50  ;;  %v9231_v54 = vsub.f32 %v12988_v55, %v3442_v50  ;;  %v9234_v2 = vsub.f32 %v12989_v1, %v3442_v50  ;;  %v12993_v14 = vld [vmem:[#allocation122_spill] sm:$0xff] }
 0x790   :  { %v3829_v28 = vadd.f32 %v3828_v45, %v3603_v48  ;;  %v9237_v30 = vsub.f32 %v12990_v36, %v3442_v50  ;;  %v9240_v10 = vsub.f32 %v12991_v6, %v3442_v50  ;;  %v9243_v38 = vsub.f32 %v12992_v25, %v3442_v50 }
 0x791   :  { %v3665_v46 = vmul.f32 %v9110_v31, %v9110_v31  ;;  %v3792_v3 = vadd.f32 %v3791_v23, %v3641_v12  ;;  %v9248_v55 = vsub.f32 %v12993_v14, %v3442_v50  ;;  %v9251_v1 = vsub.f32 %v12994_v29, %v3442_v50 }
 0x792   :  { %v3673_v48 = vmul.f32 %v9113_v7, %v9113_v7  ;;  %v3681_v45 = vmul.f32 %v9115_v17, %v9115_v17  ;;  %v3619_v36 = vmul.f32 %v9145_v44, %v9145_v44  ;;  %v3830_v6 = vadd.f32 %v3829_v28, %v3611_v11 }
 0x793   :  { %12995 = vst [vmem:[#allocation103_spill] sm:$0xff] %v9251_v1  ;;  %v3689_v25 = vmul.f32 %v9117_v35, %v9117_v35  ;;  %v3793_v12 = vadd.f32 %v3792_v3, %v3649_v41  ;;  %v3578_v23 = vmul.f32 %v9204_v42, %v9204_v42  ;;  %v3586_v29 = vmul.f32 %v9207_v37, %v9207_v37 }
 0x794   :  { %v3697_v50 = vmul.f32 %v9119_v39, %v9119_v39  ;;  %v3627_v14 = vmul.f32 %v9148_v58, %v9148_v58  ;;  %v3635_v44 = vmul.f32 %v9151_v8, %v9151_v8  ;;  %v3831_v11 = vadd.f32 %v3830_v6, %v3619_v36 }
 0x795   :  { %v3794_v28 = vadd.f32 %v3793_v12, %v3657_v20  ;;  %v3643_v41 = vmul.f32 %v9154_v59, %v9154_v59  ;;  %v3651_v3 = vmul.f32 %v9157_v18, %v9157_v18  ;;  %v3659_v35 = vmul.f32 %v9160_v47, %v9160_v47  ;;  %v12996_v12 = vld [vmem:[#allocation33_spill] sm:$0xff]  ;;  %v12997_v18 = vld [vmem:[#allocation46_spill] sm:$0xff]  ;;  %v12999_v59 = vld [vmem:[#allocation47_spill] sm:$0xff] }
 0x796   :  { %v3832_v17 = vadd.f32 %v3831_v11, %v3627_v14  ;;  %v3594_v39 = vmul.f32 %v9210_v56, %v9210_v56  ;;  %v3602_v7 = vmul.f32 %v9213_v5, %v9213_v5  ;;  %v3610_v36 = vmul.f32 %v9216_v62, %v9216_v62  ;;  %v12998_v11 = vld [vmem:[#allocation34_spill] sm:$0xff] }
 0x797   :  { %v3795_v20 = vadd.f32 %v3794_v28, %v3665_v46  ;;  %v3806_v6 = vadd.f32 %v3586_v29, %v3578_v23  ;;  %v9285_v31 = vsub.f32 %v12996_v12, %v9185_v32  ;;  %v9289_v40 = vsub.f32 %v12997_v18, %v9185_v32  ;;  %v13000_v46 = vld [vmem:[#allocation102_spill] sm:$0xff]  ;;  %v13001_v12 = vld [vmem:[#allocation36_spill] sm:$0xff] }
 0x798   :  { %v3833_v14 = vadd.f32 %v3832_v17, %v3635_v44  ;;  %v9293_v47 = vsub.f32 %v12998_v11, %v9185_v32  ;;  %v9297_v60 = vsub.f32 %v12999_v59, %v9185_v32  ;;  %v9301_v23 = vsub.f32 %v13000_v46, %v9185_v32  ;;  %v13003_v17 = vld [vmem:[#allocation76_spill] sm:$0xff]  ;;  %v13004_v11 = vld [vmem:[#allocation107_spill] sm:$0xff]  ;;  %v13005_v59 = vld [vmem:[#allocation109_spill] sm:$0xff] }
 0x799   :  { %v3796_v29 = vadd.f32 %v3795_v20, %v3673_v48  ;;  %v3807_v28 = vadd.f32 %v3806_v6, %v3594_v39  ;;  %v9305_v8 = vsub.f32 %v13001_v12, %v9185_v32  ;;  %v9309_v44 = vsub.f32 %v13003_v17, %v9185_v32  ;;  %v13006_v48 = vld [vmem:[#allocation111_spill] sm:$0xff]  ;;  %v13007_v46 = vld [vmem:[#allocation113_spill] sm:$0xff] }
 0x79a   :  { %v3834_v18 = vadd.f32 %v3833_v14, %v3643_v41  ;;  %v9313_v21 = vsub.f32 %v13004_v11, %v9185_v32  ;;  %v9317_v58 = vsub.f32 %v13005_v59, %v9185_v32  ;;  %v9321_v39 = vsub.f32 %v13006_v48, %v9185_v32  ;;  %v13008_v41 = vld [vmem:[#allocation115_spill] sm:$0xff]  ;;  %v13010_v59 = vld [vmem:[#allocation121_spill] sm:$0xff] }
 0x79b   :  { %13002 = vst [vmem:[#allocation49_spill] sm:$0xff] %v9305_v8  ;;  %v3797_v20 = vadd.f32 %v3796_v29, %v3681_v45  ;;  %v3808_v6 = vadd.f32 %v3807_v28, %v3602_v7  ;;  %v9325_v12 = vsub.f32 %v13007_v46, %v9185_v32  ;;  %v9329_v14 = vsub.f32 %v13008_v41, %v9185_v32  ;;  %v13009_v11 = vld [vmem:[#allocation119_spill] sm:$0xff]  ;;  %v13013_v46 = vld [vmem:[#allocation125_spill] sm:$0xff] }
 0x79c   :  { %v3835_v17 = vadd.f32 %v3834_v18, %v3651_v3  ;;  %v9333_v43 = vsub.f32 %v13009_v11, %v9185_v32  ;;  %v9337_v52 = vsub.f32 %v13010_v59, %v9185_v32  ;;  %v13011_v45 = vld [vmem:[#allocation123_spill] sm:$0xff]  ;;  %v3618_v28 = vmul.f32 %v9219_v61, %v9219_v61 }
 0x79d   :  { %v9341_v7 = vsub.f32 %v13011_v45, %v9185_v32  ;;  %v3798_v29 = vadd.f32 %v3797_v20, %v3689_v25  ;;  %v3809_v48 = vadd.f32 %v3808_v6, %v3610_v36  ;;  %v9347_v3 = vsub.f32 %v13013_v46, %v9185_v32 }
 0x79e   :  { %v3667_v18 = vmul.f32 %v9163_v33, %v9163_v33  ;;  %v3836_v41 = vadd.f32 %v3835_v17, %v3659_v35  ;;  %v3626_v59 = vmul.f32 %v9222_v49, %v9222_v49  ;;  %v3675_v25 = vmul.f32 %v9166_v16, %v9166_v16 }
 0x79f   :  { %13012 = vst [vmem:[#allocation106_spill] sm:$0xff] %v9341_v7  ;;  %13014 = vst [vmem:[#allocation108_spill] sm:$0xff] %v9347_v3  ;;  %v3799_v11 = vadd.f32 %v3798_v29, %v3697_v50  ;;  %v3810_v15 = vadd.f32 %v3809_v48, %v3618_v28  ;;  %v3580_v36 = vmul.f32 %v9285_v31, %v9285_v31 }
 0x7a0   :  { %v3837_v20 = vadd.f32 %v3836_v41, %v3667_v18  ;;  %v3588_v32 = vmul.f32 %v9289_v40, %v9289_v40  ;;  %v3634_v6 = vmul.f32 %v9225_v0, %v9225_v0  ;;  %v3683_v35 = vmul.f32 %v9169_v13, %v9169_v13 }
 0x7a1   :  { %v3811_v45 = vadd.f32 %v3810_v15, %v3626_v59  ;;  %v3800_v17 = vrot.slane %v3799_v11, 4  ;;  %v3642_v29 = vmul.f32 %v9228_v4, %v9228_v4  ;;  %v3691_v48 = vmul.f32 %v9174_v34, %v9174_v34 }
 0x7a2   :  { %v3838_v50 = vadd.f32 %v3837_v20, %v3675_v25  ;;  %v3596_v18 = vmul.f32 %v9293_v47, %v9293_v47  ;;  %v3848_v41 = vadd.f32 %v3588_v32, %v3580_v36  ;;  %v3650_v15 = vmul.f32 %v9231_v54, %v9231_v54 }
 0x7a3   :  { %v3812_v28 = vadd.f32 %v3811_v45, %v3634_v6  ;;  %v3699_v25 = vmul.f32 %v9177_v26, %v9177_v26  ;;  %v3604_v13 = vmul.f32 %v9297_v60, %v9297_v60  ;;  %v3801_v45 = vadd.f32 %v3800_v17, %v3799_v11 }
 0x7a4   :  { %v3839_v46 = vadd.f32 %v3838_v50, %v3683_v35  ;;  %v3849_v6 = vadd.f32 %v3848_v41, %v3596_v18  ;;  %v3658_v35 = vmul.f32 %v9234_v2, %v9234_v2  ;;  %v3612_v36 = vmul.f32 %v9301_v23, %v9301_v23 }
 0x7a5   :  { %v3813_v59 = vadd.f32 %v3812_v28, %v3642_v29  ;;  %v3666_v29 = vmul.f32 %v9237_v30, %v9237_v30  ;;  %v3802_v26 = vrot.slane %v3801_v45, 2  ;;  %v3674_v11 = vmul.f32 %v9240_v10, %v9240_v10 }
 0x7a6   :  { %v3840_v20 = vadd.f32 %v3839_v46, %v3691_v48  ;;  %v3850_v32 = vadd.f32 %v3849_v6, %v3604_v13  ;;  %v3620_v48 = vmul.f32 %v9305_v8, %v9305_v8  ;;  %v3628_v18 = vmul.f32 %v9309_v44, %v9309_v44 }
 0x7a7   :  { %v3814_v50 = vadd.f32 %v3813_v59, %v3650_v15  ;;  %v3682_v13 = vmul.f32 %v9243_v38, %v9243_v38  ;;  %v3636_v59 = vmul.f32 %v9313_v21, %v9313_v21  ;;  %v3690_v6 = vmul.f32 %v9248_v55, %v9248_v55 }
 0x7a8   :  { %v3841_v34 = vadd.f32 %v3840_v20, %v3699_v25  ;;  %v3851_v46 = vadd.f32 %v3850_v32, %v3612_v36  ;;  %v3803_v20 = vadd.f32 %v3802_v26, %v3801_v45  ;;  %v3644_v36 = vmul.f32 %v9317_v58, %v9317_v58 }
 0x7a9   :  { %v3815_v28 = vadd.f32 %v3814_v50, %v3658_v35  ;;  %v3660_v45 = vmul.f32 %v9325_v12, %v9325_v12 }
 0x7aa   :  { %v3852_v41 = vadd.f32 %v3851_v46, %v3620_v48  ;;  %v3842_v50 = vrot.slane %v3841_v34, 4  ;;  %v3652_v48 = vmul.f32 %v9321_v39, %v9321_v39 }
 0x7ab   :  { %v3816_v17 = vadd.f32 %v3815_v28, %v3666_v29  ;;  %v3698_v29 = vmul.f32 %v9251_v1, %v9251_v1 }
 0x7ac   :  { %v3853_v25 = vadd.f32 %v3852_v41, %v3628_v18  ;;  %v3843_v26 = vadd.f32 %v3842_v50, %v3841_v34  ;;  %v3684_v34 = vmul.f32 %v9337_v52, %v9337_v52 }
 0x7ad   :  { %v3817_v15 = vadd.f32 %v3816_v17, %v3674_v11  ;;  %v3804_v11 = vrot.slane %v3803_v20, 1 }
 0x7ae   :  { %v3854_v32 = vadd.f32 %v3853_v25, %v3636_v59  ;;  %v3844_v8 = vrot.slane %v3843_v26, 2 }
 0x7af   :  { %v3818_v35 = vadd.f32 %v3817_v15, %v3682_v13  ;;  %v3668_v13 = vmul.f32 %v9329_v14, %v9329_v14  ;;  %v3805_v59 = vadd.f32 %v3804_v11, %v3803_v20  ;;  %v3700_v20 = vmul.f32 %v9347_v3, %v9347_v3 }
 0x7b0   :  { %v3855_v46 = vadd.f32 %v3854_v32, %v3644_v36 }
 0x7b1   :  { %v3819_v28 = vadd.f32 %v3818_v35, %v3690_v6  ;;  %v3676_v6 = vmul.f32 %v9333_v43, %v9333_v43  ;;  %v3873_v32 = vmul.f32 0.0078125, %v3805_v59 }
 0x7b2   :  { %v3856_v18 = vadd.f32 %v3855_v46, %v3652_v48  ;;  %v3692_v48 = vmul.f32 %v9341_v7, %v9341_v7 }
 0x7b3   :  { %v3820_v17 = vadd.f32 %v3819_v28, %v3698_v29  ;;  %v3845_v28 = vadd.f32 %v3844_v8, %v3843_v26 }
 0x7b4   :  { %v3857_v15 = vadd.f32 %v3856_v18, %v3660_v45 }
 0x7b5   :  { %v3821_v41 = vrot.slane %v3820_v17, 4 }
 0x7b6   :  { %v3858_v35 = vadd.f32 %v3857_v15, %v3668_v13 }
 0x7b7   :  { %v3822_v25 = vadd.f32 %v3821_v41, %v3820_v17  ;;  %v3881_v17 = vadd.f32 0.8, %v3873_v32  ;;  %v3846_v41 = vrot.slane %v3845_v28, 1 }
 0x7b8   :  { %v3859_v50 = vadd.f32 %v3858_v35, %v3676_v6 }
 0x7b9   :  { %v3823_v36 = vrot.slane %v3822_v25, 2  ;;  %5781 = vrsqrt.f32 %v3881_v17  ;;  %v3847_v59 = vadd.f32 %v3846_v41, %v3845_v28  ;;  %v13017_v41 = vld [vmem:[#allocation117_spill] sm:$0xff] }
 0x7ba   :  { %v3860_v46 = vadd.f32 %v3859_v50, %v3684_v34 }
 0x7bb   :  { %v3824_v29 = vadd.f32 %v3823_v36, %v3822_v25  ;;  %v3875_v26 = vmul.f32 0.0078125, %v3847_v59 }
 0x7bc   :  { %v3861_v11 = vadd.f32 %v3860_v46, %v3692_v48 }
 0x7bd   :  { %v3825_v45 = vrot.slane %v3824_v29, 1  ;;  %v3883_v34 = vadd.f32 0.8, %v3875_v26 }
 0x7be   :  { %v3862_v13 = vadd.f32 %v3861_v11, %v3700_v20  ;;  %v13015_v20 = vld [vmem:[#allocation28_spill] sm:$0xff] }
 0x7bf   :  { %v3826_v18 = vadd.f32 %v3825_v45, %v3824_v29 }
 0x7c0   :  { %v3863_v1 = vrot.slane %v3862_v13, 4 }
 0x7c1   :  { %v3874_v15 = vmul.f32 0.0078125, %v3826_v18  ;;  %v13016_v18 = vld [vmem:[#allocation116_spill] sm:$0xff] }
 0x7c2   :  { %v3864_v25 = vadd.f32 %v3863_v1, %v3862_v13  ;;  %v13018_v13 = vcombine.low %v13016_v18, %v13017_v41 }
 0x7c3   :  { %v3882_v6 = vadd.f32 0.8, %v3874_v15  ;;  %v5782_v7 = vpop.eup %5781 }
 0x7c4   :  { %v3865_v8 = vrot.slane %v3864_v25, 2  ;;  %v3941_v15 = vrot.slane %v13018_v13, %v13015_v20 }
 0x7c5   :  { %5783 = vrsqrt.f32 %v3882_v6 }
 0x7c6   :  { %v3866_v35 = vadd.f32 %v3865_v8, %v3864_v25  ;;  %5785 = vrsqrt.f32 %v3883_v34  ;;  %v13019_v25 = vld [vmem:[#allocation27_spill] sm:$0xff] }
 0x7c7   :  { %v3971_v8 = vsub.s32 4, %v13019_v25  ;;  %v3975_v26 = vsub.s32 5, %v13019_v25 }
 0x7c8   :  { %v3867_v36 = vrot.slane %v3866_v35, 1 }
 0x7ca   :  { %v3868_v50 = vadd.f32 %v3867_v36, %v3866_v35  ;;  %v3979_v35 = vsub.s32 6, %v13019_v25  ;;  %v3983_v36 = vsub.s32 7, %v13019_v25  ;;  %v13026_v25 = vld [vmem:[#allocation78_spill] sm:$0xff] }
 0x7cc   :  { %v3876_v3 = vmul.f32 0.0078125, %v3868_v50  ;;  %v13020_v50 = vld [vmem:[#allocation29_spill] sm:$0xff] }
 0x7ce   :  { %v3884_v29 = vadd.f32 0.8, %v3876_v3  ;;  %v3268_v3 = vld [vmem:[%s11955_s13] sm:$0xff] }
 0x7cf   :  { %v5784_v48 = vpop.eup %5783 }
 0x7d0   :  { %v3903_v32 = vcombine.low %v5782_v7, %v5784_v48  ;;  %5787 = vrsqrt.f32 %v3884_v29  ;;  %v5786_v46 = vpop.eup %5785  ;;  %v3267_v7 = vld [vmem:[%s11954_s12] sm:$0xff]  ;;  %v9429_v48 = vrot.slane %v3268_v3, %v13020_v50 }
 0x7d2   :  { %v3925_v11 = vrot.slane %v3903_v32, %v13015_v20  ;;  %v13021_v32 = vld [vmem:[#allocation30_spill] sm:$0xff] }
 0x7d3   :  { %v9432_v29 = vrot.slane %v3268_v3, %v13021_v32 }
 0x7da   :  { %v5788_v45 = vpop.eup %5787 }
 0x7db   :  { %v3904_v28 = vcombine.low %v5786_v46, %v5788_v45  ;;  %v13022_v46 = vld [vmem:[#allocation56_spill] sm:$0xff] }
 0x7dc   :  { %v9435_v45 = vrot.slane %v3268_v3, %v13022_v46 }
 0x7dd   :  { %v3932_v1 = vrot.slane %v3904_v28, %v13015_v20  ;;  %v9440_v28 = vrot.slane %v3268_v3, %v3971_v8 }
 0x7df   :  { %v3934_v17 = vcombine.low %v3925_v11, %v3932_v1  ;;  %13024 = vst [vmem:[#allocation110_spill] sm:$0xff] %v9440_v28  ;;  %v9442_v1 = vrot.slane %v3268_v3, %v3975_v26  ;;  %v13031_v28 = vld [vmem:[#allocation72_spill] sm:$0xff] }
 0x7e1   :  { %v3948_v6 = vrot.slane %v3934_v17, %v13015_v20  ;;  %v13023_v20 = vld [vmem:[#allocation57_spill] sm:$0xff]  ;;  %13025 = vst [vmem:[#allocation112_spill] sm:$0xff] %v9442_v1 }
 0x7e2   :  { %v9438_v11 = vrot.slane %v3268_v3, %v13023_v20 }
 0x7e3   :  { %v3949_v59 = vcombine.low %v3941_v15, %v3948_v6 }
 0x7e5   :  { %v3951_v34 = vmul.f32 %v3949_v59, %v3267_v7 }
 0x7e7   :  { %v9445_v17 = vrot.slane %v3951_v34, %v13020_v50  ;;  %v9448_v18 = vrot.slane %v3951_v34, %v13021_v32  ;;  %v9451_v41 = vrot.slane %v3951_v34, %v13022_v46  ;;  %v9454_v13 = vrot.slane %v3951_v34, %v13023_v20  ;;  %v13027_v32 = vld [vmem:[#allocation61_spill] sm:$0xff] }
 0x7e8   :  { %v9456_v15 = vrot.slane %v3951_v34, %v3971_v8  ;;  %v9458_v6 = vrot.slane %v3951_v34, %v3975_v26  ;;  %v9460_v7 = vrot.slane %v3951_v34, %v3979_v35  ;;  %v9462_v59 = vrot.slane %v3951_v34, %v3983_v36  ;;  %v13030_v8 = vld [vmem:[#allocation53_spill] sm:$0xff] }
 0x7e9   :  { %v9466_v50 = vmul.f32 %v9445_v17, %v13026_v25  ;;  %v9470_v1 = vmul.f32 %v9448_v18, %v13027_v32  ;;  %v9472_v46 = vrot.slane %v3268_v3, %v3979_v35  ;;  %v9474_v20 = vrot.slane %v3268_v3, %v3983_v36  ;;  %v13032_v36 = vld [vmem:[#allocation37_spill] sm:$0xff] }
 0x7ea   :  { %v9478_v26 = vmul.f32 %v9451_v41, %v13030_v8  ;;  %v9482_v34 = vmul.f32 %v9454_v13, %v13031_v28  ;;  %v9486_v25 = vmul.f32 %v9456_v15, %v9077_v53  ;;  %v9490_v32 = vmul.f32 %v9458_v6, %v9204_v42  ;;  %v13033_v8 = vld [vmem:[#allocation97_spill] sm:$0xff] }
 0x7eb   :  { %13028 = vst [vmem:[#allocation114_spill] sm:$0xff] %v9472_v46  ;;  %13029 = vst [vmem:[#allocation118_spill] sm:$0xff] %v9474_v20  ;;  %v9494_v3 = vmul.f32 %v9460_v7, %v9130_v19  ;;  %v9498_v35 = vmul.f32 %v9462_v59, %v9285_v31  ;;  %v9502_v28 = vmul.f32 %v9445_v17, %v13032_v36  ;;  %v13034_v20 = vld [vmem:[#allocation89_spill] sm:$0xff]  ;;  %v13036_v46 = vld [vmem:[#allocation71_spill] sm:$0xff] }
 0x7ec   :  { %v9506_v53 = vmul.f32 %v9448_v18, %v13033_v8  ;;  %v9510_v42 = vmul.f32 %v9451_v41, %v13034_v20  ;;  %v9514_v19 = vmul.f32 %v9454_v13, %v13036_v46  ;;  %v9518_v31 = vmul.f32 %v9456_v15, %v9080_v27 }
 0x7ed   :  { %v9522_v36 = vmul.f32 %v9458_v6, %v9207_v37  ;;  %v9526_v8 = vmul.f32 %v9460_v7, %v9133_v24  ;;  %v9530_v20 = vmul.f32 %v9462_v59, %v9289_v40  ;;  %v9550_v40 = vmul.f32 %v9456_v15, %v9083_v57 }
 0x7ee   :  { %13035 = vst [vmem:[#allocation120_spill] sm:$0xff] %v9510_v42  ;;  %13037 = vst [vmem:[#allocation122_spill] sm:$0xff] %v9514_v19  ;;  %v13040_v42 = vld [vmem:[#allocation79_spill] sm:$0xff]  ;;  %v13041_v19 = vld [vmem:[#allocation58_spill] sm:$0xff] }
 0x7ef   :  { %13038 = vst [vmem:[#allocation124_spill] sm:$0xff] %v9518_v31  ;;  %13039 = vst [vmem:[#allocation33_spill] sm:$0xff] %v9522_v36  ;;  %v9534_v46 = vmul.f32 %v9445_v17, %v13040_v42  ;;  %v9538_v27 = vmul.f32 %v9448_v18, %v13041_v19  ;;  %v13042_v31 = vld [vmem:[#allocation39_spill] sm:$0xff]  ;;  %v13044_v36 = vld [vmem:[#allocation73_spill] sm:$0xff]  ;;  %v9554_v42 = vmul.f32 %v9458_v6, %v9210_v56 }
 0x7f0   :  { %v9542_v37 = vmul.f32 %v9451_v41, %v13042_v31  ;;  %v9546_v24 = vmul.f32 %v9454_v13, %v13044_v36  ;;  %13046 = vst [vmem:[#allocation47_spill] sm:$0xff] %v9550_v40  ;;  %v9558_v19 = vmul.f32 %v9460_v7, %v9136_v51  ;;  %v9562_v31 = vmul.f32 %v9462_v59, %v9293_v47  ;;  %v13050_v40 = vld [vmem:[#allocation86_spill] sm:$0xff] }
 0x7f1   :  { %13047 = vst [vmem:[#allocation102_spill] sm:$0xff] %v9554_v42  ;;  %v9574_v56 = vmul.f32 %v9451_v41, %v13050_v40  ;;  %v13052_v42 = vld [vmem:[#allocation74_spill] sm:$0xff]  ;;  %v9582_v47 = vmul.f32 %v9456_v15, %v9086_v22  ;;  %v9594_v40 = vmul.f32 %v9462_v59, %v9297_v60  ;;  %v9614_v60 = vmul.f32 %v9456_v15, %v9089_v63 }
 0x7f2   :  { %13043 = vst [vmem:[#allocation46_spill] sm:$0xff] %v9542_v37  ;;  %13045 = vst [vmem:[#allocation34_spill] sm:$0xff] %v9546_v24  ;;  %v13048_v37 = vld [vmem:[#allocation80_spill] sm:$0xff]  ;;  %v13049_v24 = vld [vmem:[#allocation94_spill] sm:$0xff]  ;;  %v9578_v51 = vmul.f32 %v9454_v13, %v13052_v42 }
 0x7f3   :  { %v9566_v36 = vmul.f32 %v9445_v17, %v13048_v37  ;;  %v9570_v57 = vmul.f32 %v9448_v18, %v13049_v24  ;;  %13051 = vst [vmem:[#allocation36_spill] sm:$0xff] %v9574_v56  ;;  %13054 = vst [vmem:[#allocation107_spill] sm:$0xff] %v9582_v47  ;;  %v9586_v37 = vmul.f32 %v9458_v6, %v9213_v5  ;;  %v13056_v56 = vld [vmem:[#allocation77_spill] sm:$0xff] }
 0x7f4   :  { %13053 = vst [vmem:[#allocation76_spill] sm:$0xff] %v9578_v51  ;;  %v9590_v24 = vmul.f32 %v9460_v7, %v9139_v9  ;;  %v9598_v42 = vmul.f32 %v9445_v17, %v13056_v56  ;;  %v13058_v51 = vld [vmem:[#allocation62_spill] sm:$0xff]  ;;  %v13059_v47 = vld [vmem:[#allocation41_spill] sm:$0xff]  ;;  %13063 = vst [vmem:[#allocation119_spill] sm:$0xff] %v9614_v60  ;;  %v9618_v56 = vmul.f32 %v9458_v6, %v9216_v62 }
 0x7f5   :  { %13055 = vst [vmem:[#allocation109_spill] sm:$0xff] %v9586_v37  ;;  %v9602_v22 = vmul.f32 %v9448_v18, %v13058_v51  ;;  %v9606_v5 = vmul.f32 %v9451_v41, %v13059_v47  ;;  %v13061_v37 = vld [vmem:[#allocation35_spill] sm:$0xff]  ;;  %v9626_v47 = vmul.f32 %v9462_v59, %v9301_v23  ;;  %v13071_v60 = vld [vmem:[#allocation90_spill] sm:$0xff] }
 0x7f6   :  { %13057 = vst [vmem:[#allocation111_spill] sm:$0xff] %v9598_v42  ;;  %v9610_v9 = vmul.f32 %v9454_v13, %v13061_v37  ;;  %13064 = vst [vmem:[#allocation121_spill] sm:$0xff] %v9618_v56  ;;  %v13065_v42 = vld [vmem:[#allocation137_spill] sm:$0xff]  ;;  %v9638_v62 = vmul.f32 %v9451_v41, %v13071_v60  ;;  %v13073_v56 = vld [vmem:[#allocation48_spill] sm:$0xff] }
 0x7f7   :  { %13060 = vst [vmem:[#allocation113_spill] sm:$0xff] %v9606_v5  ;;  %v9622_v51 = vmul.f32 %v9460_v7, %v13065_v42  ;;  %v13067_v5 = vld [vmem:[#allocation81_spill] sm:$0xff]  ;;  %v9642_v42 = vmul.f32 %v9454_v13, %v13073_v56 }
 0x7f8   :  { %13062 = vst [vmem:[#allocation115_spill] sm:$0xff] %v9610_v9  ;;  %v9630_v37 = vmul.f32 %v9445_v17, %v13067_v5  ;;  %v13069_v9 = vld [vmem:[#allocation98_spill] sm:$0xff]  ;;  %13072 = vst [vmem:[#allocation116_spill] sm:$0xff] %v9638_v62  ;;  %v9650_v5 = vmul.f32 %v9458_v6, %v9219_v61 }
 0x7f9   :  { %13066 = vst [vmem:[#allocation123_spill] sm:$0xff] %v9622_v51  ;;  %v9634_v63 = vmul.f32 %v9448_v18, %v13069_v9  ;;  %13074 = vst [vmem:[#allocation117_spill] sm:$0xff] %v9642_v42  ;;  %v13075_v51 = vld [vmem:[#allocation126_spill] sm:$0xff]  ;;  %v13082_v42 = vld [vmem:[#allocation75_spill] sm:$0xff] }
 0x7fa   :  { %13068 = vst [vmem:[#allocation125_spill] sm:$0xff] %v9630_v37  ;;  %v9646_v23 = vmul.f32 %v9456_v15, %v13075_v51  ;;  %v13077_v37 = vld [vmem:[#allocation50_spill] sm:$0xff]  ;;  %v9666_v51 = vmul.f32 %v9454_v13, %v13082_v42 }
 0x7fb   :  { %13070 = vst [vmem:[#allocation28_spill] sm:$0xff] %v9634_v63  ;;  %v9654_v9 = vmul.f32 %v9445_v17, %v13077_v37  ;;  %v13079_v63 = vld [vmem:[#allocation63_spill] sm:$0xff]  ;;  %v13080_v62 = vld [vmem:[#allocation54_spill] sm:$0xff]  ;;  %v9674_v37 = vmul.f32 %v9458_v6, %v9222_v49 }
 0x7fc   :  { %13076 = vst [vmem:[#allocation27_spill] sm:$0xff] %v9646_v23  ;;  %v9658_v60 = vmul.f32 %v9448_v18, %v13079_v63  ;;  %v9662_v56 = vmul.f32 %v9451_v41, %v13080_v62  ;;  %13083 = vst [vmem:[#allocation78_spill] sm:$0xff] %v9666_v51  ;;  %v13084_v23 = vld [vmem:[#allocation127_spill] sm:$0xff]  ;;  %v9682_v62 = vmul.f32 %v9462_v59, %v9309_v44 }
 0x7fd   :  { %13078 = vst [vmem:[#allocation56_spill] sm:$0xff] %v9654_v9  ;;  %v9670_v61 = vmul.f32 %v9456_v15, %v13084_v23  ;;  %13086 = vst [vmem:[#allocation53_spill] sm:$0xff] %v9674_v37  ;;  %v13087_v9 = vld [vmem:[#allocation139_spill] sm:$0xff]  ;;  %v13094_v37 = vld [vmem:[#allocation104_spill] sm:$0xff] }
 0x7fe   :  { %13081 = vst [vmem:[#allocation57_spill] sm:$0xff] %v9662_v56  ;;  %v9678_v63 = vmul.f32 %v9460_v7, %v13087_v9  ;;  %v13089_v56 = vld [vmem:[#allocation82_spill] sm:$0xff]  ;;  %v13091_v51 = vld [vmem:[#allocation99_spill] sm:$0xff]  ;;  %v9698_v9 = vmul.f32 %v9454_v13, %v13094_v37 }
 0x7ff   :  { %13085 = vst [vmem:[#allocation61_spill] sm:$0xff] %v9670_v61  ;;  %v9686_v42 = vmul.f32 %v9445_v17, %v13089_v56  ;;  %v9690_v23 = vmul.f32 %v9448_v18, %v13091_v51  ;;  %v13092_v61 = vld [vmem:[#allocation91_spill] sm:$0xff]  ;;  %v9706_v56 = vmul.f32 %v9458_v6, %v9225_v0 }
 0x800   :  { %13088 = vst [vmem:[#allocation72_spill] sm:$0xff] %v9678_v63  ;;  %v9694_v49 = vmul.f32 %v9451_v41, %v13092_v61  ;;  %13095 = vst [vmem:[#allocation89_spill] sm:$0xff] %v9698_v9  ;;  %v13096_v63 = vld [vmem:[#allocation128_spill] sm:$0xff]  ;;  %v9714_v61 = vmul.f32 %v9462_v59, %v9313_v21  ;;  %v13103_v9 = vld [vmem:[#allocation85_spill] sm:$0xff] }
 0x801   :  { %13090 = vst [vmem:[#allocation37_spill] sm:$0xff] %v9686_v42  ;;  %v9702_v44 = vmul.f32 %v9456_v15, %v13096_v63  ;;  %13098 = vst [vmem:[#allocation79_spill] sm:$0xff] %v9706_v56  ;;  %v13099_v42 = vld [vmem:[#allocation140_spill] sm:$0xff]  ;;  %v9722_v63 = vmul.f32 %v9448_v18, %v13103_v9  ;;  %v13106_v56 = vld [vmem:[#allocation105_spill] sm:$0xff] }
 0x802   :  { %13093 = vst [vmem:[#allocation97_spill] sm:$0xff] %v9694_v49  ;;  %v9710_v51 = vmul.f32 %v9460_v7, %v13099_v42  ;;  %v13101_v49 = vld [vmem:[#allocation52_spill] sm:$0xff]  ;;  %v9730_v42 = vmul.f32 %v9454_v13, %v13106_v56 }
 0x803   :  { %13097 = vst [vmem:[#allocation71_spill] sm:$0xff] %v9702_v44  ;;  %v9718_v37 = vmul.f32 %v9445_v17, %v13101_v49  ;;  %v13104_v44 = vld [vmem:[#allocation59_spill] sm:$0xff]  ;;  %v9738_v49 = vmul.f32 %v9458_v6, %v9228_v4 }
 0x804   :  { %13100 = vst [vmem:[#allocation58_spill] sm:$0xff] %v9710_v51  ;;  %v9726_v0 = vmul.f32 %v9451_v41, %v13104_v44  ;;  %13107 = vst [vmem:[#allocation80_spill] sm:$0xff] %v9730_v42  ;;  %v13108_v51 = vld [vmem:[#allocation129_spill] sm:$0xff]  ;;  %v9746_v44 = vmul.f32 %v9462_v59, %v9317_v58  ;;  %v13115_v42 = vld [vmem:[#allocation64_spill] sm:$0xff] }
 0x805   :  { %13102 = vst [vmem:[#allocation39_spill] sm:$0xff] %v9718_v37  ;;  %v9734_v21 = vmul.f32 %v9456_v15, %v13108_v51  ;;  %13110 = vst [vmem:[#allocation86_spill] sm:$0xff] %v9738_v49  ;;  %v13111_v37 = vld [vmem:[#allocation141_spill] sm:$0xff]  ;;  %v9754_v51 = vmul.f32 %v9448_v18, %v13115_v42  ;;  %v13118_v49 = vld [vmem:[#allocation43_spill] sm:$0xff] }
 0x806   :  { %13105 = vst [vmem:[#allocation73_spill] sm:$0xff] %v9726_v0  ;;  %v9742_v9 = vmul.f32 %v9460_v7, %v13111_v37  ;;  %v13113_v0 = vld [vmem:[#allocation87_spill] sm:$0xff]  ;;  %v9762_v37 = vmul.f32 %v9454_v13, %v13118_v49 }
 0x807   :  { %13109 = vst [vmem:[#allocation94_spill] sm:$0xff] %v9734_v21  ;;  %v9750_v56 = vmul.f32 %v9445_v17, %v13113_v0  ;;  %v13116_v21 = vld [vmem:[#allocation95_spill] sm:$0xff]  ;;  %v9770_v0 = vmul.f32 %v9458_v6, %v9231_v54 }
 0x808   :  { %13112 = vst [vmem:[#allocation74_spill] sm:$0xff] %v9742_v9  ;;  %v9758_v4 = vmul.f32 %v9451_v41, %v13116_v21  ;;  %13119 = vst [vmem:[#allocation41_spill] sm:$0xff] %v9762_v37  ;;  %v13120_v9 = vld [vmem:[#allocation130_spill] sm:$0xff]  ;;  %v9778_v21 = vmul.f32 %v9462_v59, %v9321_v39  ;;  %v13127_v37 = vld [vmem:[#allocation68_spill] sm:$0xff] }
 0x809   :  { %13114 = vst [vmem:[#allocation77_spill] sm:$0xff] %v9750_v56  ;;  %v9766_v58 = vmul.f32 %v9456_v15, %v13120_v9  ;;  %13122 = vst [vmem:[#allocation137_spill] sm:$0xff] %v9770_v0  ;;  %v13123_v56 = vld [vmem:[#allocation142_spill] sm:$0xff]  ;;  %v9786_v9 = vmul.f32 %v9448_v18, %v13127_v37  ;;  %v13130_v0 = vld [vmem:[#allocation100_spill] sm:$0xff] }
 0x80a   :  { %13117 = vst [vmem:[#allocation62_spill] sm:$0xff] %v9758_v4  ;;  %v9774_v42 = vmul.f32 %v9460_v7, %v13123_v56  ;;  %v13125_v4 = vld [vmem:[#allocation38_spill] sm:$0xff]  ;;  %v9794_v56 = vmul.f32 %v9454_v13, %v13130_v0 }
 0x80b   :  { %13121 = vst [vmem:[#allocation35_spill] sm:$0xff] %v9766_v58  ;;  %v9782_v49 = vmul.f32 %v9445_v17, %v13125_v4  ;;  %v13128_v58 = vld [vmem:[#allocation42_spill] sm:$0xff]  ;;  %v9802_v4 = vmul.f32 %v9458_v6, %v9234_v2 }
 0x80c   :  { %13124 = vst [vmem:[#allocation81_spill] sm:$0xff] %v9774_v42  ;;  %v9790_v54 = vmul.f32 %v9451_v41, %v13128_v58  ;;  %13131 = vst [vmem:[#allocation48_spill] sm:$0xff] %v9794_v56  ;;  %v13132_v42 = vld [vmem:[#allocation131_spill] sm:$0xff]  ;;  %v9810_v58 = vmul.f32 %v9462_v59, %v9325_v12 }
 0x80d   :  { %13126 = vst [vmem:[#allocation98_spill] sm:$0xff] %v9782_v49  ;;  %v9798_v39 = vmul.f32 %v9456_v15, %v13132_v42  ;;  %13134 = vst [vmem:[#allocation50_spill] sm:$0xff] %v9802_v4  ;;  %v13135_v49 = vld [vmem:[#allocation143_spill] sm:$0xff]  ;;  %v13141_v4 = vld [vmem:[#allocation69_spill] sm:$0xff] }
 0x80e   :  { %13129 = vst [vmem:[#allocation90_spill] sm:$0xff] %v9790_v54  ;;  %v9806_v37 = vmul.f32 %v9460_v7, %v13135_v49  ;;  %v13137_v54 = vld [vmem:[#allocation83_spill] sm:$0xff]  ;;  %v9826_v49 = vmul.f32 %v9454_v13, %v13141_v4 }
 0x80f   :  { %13133 = vst [vmem:[#allocation126_spill] sm:$0xff] %v9798_v39  ;;  %v9814_v0 = vmul.f32 %v9445_v17, %v13137_v54  ;;  %v13138_v56 = vld [vmem:[#allocation67_spill] sm:$0xff]  ;;  %v13139_v39 = vld [vmem:[#allocation92_spill] sm:$0xff]  ;;  %v9834_v54 = vmul.f32 %v9458_v6, %v9237_v30 }
 0x810   :  { %13136 = vst [vmem:[#allocation63_spill] sm:$0xff] %v9806_v37  ;;  %v9818_v42 = vmul.f32 %v9448_v18, %v13138_v56  ;;  %v9822_v2 = vmul.f32 %v9451_v41, %v13139_v39  ;;  %13142 = vst [vmem:[#allocation75_spill] sm:$0xff] %v9826_v49  ;;  %v13143_v37 = vld [vmem:[#allocation132_spill] sm:$0xff]  ;;  %v9838_v56 = vmul.f32 %v9460_v7, %v9163_v33  ;;  %v13148_v49 = vld [vmem:[#allocation66_spill] sm:$0xff] }
 0x811   :  { %v9830_v12 = vmul.f32 %v9456_v15, %v13143_v37  ;;  %13145 = vst [vmem:[#allocation139_spill] sm:$0xff] %v9834_v54  ;;  %v9842_v39 = vmul.f32 %v9462_v59, %v9329_v14  ;;  %v9850_v37 = vmul.f32 %v9448_v18, %v13148_v49  ;;  %v13151_v54 = vld [vmem:[#allocation31_spill] sm:$0xff]  ;;  %v9870_v49 = vmul.f32 %v9460_v7, %v9166_v16 }
 0x812   :  { %13140 = vst [vmem:[#allocation54_spill] sm:$0xff] %v9822_v2  ;;  %13146 = vst [vmem:[#allocation82_spill] sm:$0xff] %v9838_v56  ;;  %v13147_v2 = vld [vmem:[#allocation40_spill] sm:$0xff]  ;;  %v9858_v33 = vmul.f32 %v9454_v13, %v13151_v54  ;;  %v13153_v56 = vld [vmem:[#allocation133_spill] sm:$0xff] }
 0x813   :  { %13144 = vst [vmem:[#allocation127_spill] sm:$0xff] %v9830_v12  ;;  %v9846_v4 = vmul.f32 %v9445_v17, %v13147_v2  ;;  %v13149_v12 = vld [vmem:[#allocation60_spill] sm:$0xff]  ;;  %v9862_v14 = vmul.f32 %v9456_v15, %v13153_v56  ;;  %v9866_v2 = vmul.f32 %v9458_v6, %v9240_v10  ;;  %13156 = vst [vmem:[#allocation140_spill] sm:$0xff] %v9870_v49  ;;  %v13164_v49 = vld [vmem:[#allocation134_spill] sm:$0xff] }
 0x814   :  { %v9854_v30 = vmul.f32 %v9451_v41, %v13149_v12  ;;  %13152 = vst [vmem:[#allocation91_spill] sm:$0xff] %v9858_v33  ;;  %v9874_v12 = vmul.f32 %v9462_v59, %v9333_v43  ;;  %v13159_v33 = vld [vmem:[#allocation65_spill] sm:$0xff]  ;;  %v9894_v43 = vmul.f32 %v9456_v15, %v13164_v49 }
 0x815   :  { %13154 = vst [vmem:[#allocation104_spill] sm:$0xff] %v9862_v14  ;;  %13155 = vst [vmem:[#allocation128_spill] sm:$0xff] %v9866_v2  ;;  %v9882_v56 = vmul.f32 %v9448_v18, %v13159_v33  ;;  %v13160_v14 = vld [vmem:[#allocation96_spill] sm:$0xff]  ;;  %v13162_v2 = vld [vmem:[#allocation101_spill] sm:$0xff] }
 0x816   :  { %13150 = vst [vmem:[#allocation99_spill] sm:$0xff] %v9854_v30  ;;  %v13157_v30 = vld [vmem:[#allocation88_spill] sm:$0xff]  ;;  %v9886_v10 = vmul.f32 %v9451_v41, %v13160_v14  ;;  %v9890_v16 = vmul.f32 %v9454_v13, %v13162_v2  ;;  %13165 = vst [vmem:[#allocation105_spill] sm:$0xff] %v9894_v43  ;;  %v9906_v14 = vmul.f32 %v9462_v59, %v9337_v52  ;;  %v13173_v43 = vld [vmem:[#allocation55_spill] sm:$0xff] }
 0x817   :  { %v9878_v54 = vmul.f32 %v9445_v17, %v13157_v30  ;;  %v9898_v30 = vmul.f32 %v9458_v6, %v9243_v38  ;;  %v9918_v38 = vmul.f32 %v9451_v41, %v13173_v43 }
 0x818   :  { %13161 = vst [vmem:[#allocation85_spill] sm:$0xff] %v9886_v10  ;;  %13163 = vst [vmem:[#allocation59_spill] sm:$0xff] %v9890_v16  ;;  %v13169_v10 = vld [vmem:[#allocation51_spill] sm:$0xff]  ;;  %v13171_v16 = vld [vmem:[#allocation44_spill] sm:$0xff] }
 0x819   :  { %13158 = vst [vmem:[#allocation52_spill] sm:$0xff] %v9878_v54  ;;  %13166 = vst [vmem:[#allocation129_spill] sm:$0xff] %v9898_v30  ;;  %v13167_v54 = vld [vmem:[#allocation144_spill] sm:$0xff]  ;;  %v9910_v2 = vmul.f32 %v9445_v17, %v13169_v10  ;;  %v9914_v49 = vmul.f32 %v9448_v18, %v13171_v16  ;;  %v13175_v30 = vld [vmem:[#allocation70_spill] sm:$0xff]  ;;  %v9930_v10 = vmul.f32 %v9458_v6, %v9248_v55 }
 0x81a   :  { %v9902_v33 = vmul.f32 %v9460_v7, %v13167_v54  ;;  %13174 = vst [vmem:[#allocation95_spill] sm:$0xff] %v9918_v38  ;;  %v9922_v54 = vmul.f32 %v9454_v13, %v13175_v30  ;;  %v13184_v38 = vld [vmem:[#allocation84_spill] sm:$0xff] }
 0x81b   :  { %13170 = vst [vmem:[#allocation87_spill] sm:$0xff] %v9910_v2  ;;  %13172 = vst [vmem:[#allocation64_spill] sm:$0xff] %v9914_v49  ;;  %v13180_v2 = vld [vmem:[#allocation145_spill] sm:$0xff]  ;;  %v13182_v49 = vld [vmem:[#allocation106_spill] sm:$0xff]  ;;  %v9942_v30 = vmul.f32 %v9445_v17, %v13184_v38 }
 0x81c   :  { %13168 = vst [vmem:[#allocation141_spill] sm:$0xff] %v9902_v33  ;;  %13176 = vst [vmem:[#allocation43_spill] sm:$0xff] %v9922_v54  ;;  %v13177_v33 = vld [vmem:[#allocation135_spill] sm:$0xff]  ;;  %v9934_v16 = vmul.f32 %v9460_v7, %v13180_v2  ;;  %v9938_v43 = vmul.f32 %v9462_v59, %v13182_v49  ;;  %v13185_v54 = vld [vmem:[#allocation32_spill] sm:$0xff] }
 0x81d   :  { %v9926_v52 = vmul.f32 %v9456_v15, %v13177_v33  ;;  %13179 = vst [vmem:[#allocation142_spill] sm:$0xff] %v9930_v10  ;;  %v9946_v33 = vmul.f32 %v9448_v18, %v13185_v54  ;;  %v13187_v10 = vld [vmem:[#allocation45_spill] sm:$0xff]  ;;  %v13191_v38 = vld [vmem:[#allocation146_spill] sm:$0xff]  ;;  %v13192_v54 = vld [vmem:[#allocation108_spill] sm:$0xff] }
 0x81e   :  { %13181 = vst [vmem:[#allocation38_spill] sm:$0xff] %v9934_v16  ;;  %13183 = vst [vmem:[#allocation68_spill] sm:$0xff] %v9938_v43  ;;  %v9954_v2 = vmul.f32 %v9454_v13, %v13187_v10  ;;  %v13189_v16 = vld [vmem:[#allocation136_spill] sm:$0xff]  ;;  %v13190_v43 = vld [vmem:[#allocation103_spill] sm:$0xff]  ;;  %v9966_v18 = vmul.f32 %v9460_v7, %v13191_v38 }
 0x81f   :  { %13178 = vst [vmem:[#allocation130_spill] sm:$0xff] %v9926_v52  ;;  %v13186_v52 = vld [vmem:[#allocation93_spill] sm:$0xff]  ;;  %v9958_v49 = vmul.f32 %v9456_v15, %v13189_v16  ;;  %v9962_v17 = vmul.f32 %v9458_v6, %v13190_v43  ;;  %v9978_v15 = vadd.f32 %v9429_v48, %v9466_v50  ;;  %v9982_v6 = vadd.f32 %v9432_v29, %v9470_v1 }
 0x820   :  { %v9950_v55 = vmul.f32 %v9451_v41, %v13186_v52  ;;  %13188 = vst [vmem:[#allocation42_spill] sm:$0xff] %v9954_v2  ;;  %v9970_v41 = vmul.f32 %v9462_v59, %v13192_v54  ;;  %v13193_v52 = vld [vmem:[#allocation138_spill] sm:$0xff]  ;;  %v13194_v10 = vld [vmem:[#allocation49_spill] sm:$0xff]  ;;  %v9986_v16 = vadd.f32 %v9435_v45, %v9478_v26  ;;  %v9990_v43 = vadd.f32 %v9438_v11, %v9482_v34 }
 0x821   :  { %v4039_v13 = vmul.f32 %v9460_v7, %v13193_v52  ;;  %v4040_v2 = vmul.f32 %v9462_v59, %v13194_v10  ;;  %13195 = vst [vmem:[#allocation100_spill] sm:$0xff] %v9978_v15  ;;  %13196 = vst [vmem:[#allocation131_spill] sm:$0xff] %v9982_v6  ;;  %v13199_v7 = vld [vmem:[#allocation110_spill] sm:$0xff]  ;;  %v13201_v59 = vld [vmem:[#allocation112_spill] sm:$0xff]  ;;  %v10010_v34 = vadd.f32 %v9429_v48, %v9502_v28 }
 0x822   :  { %13197 = vst [vmem:[#allocation143_spill] sm:$0xff] %v9986_v16  ;;  %13198 = vst [vmem:[#allocation83_spill] sm:$0xff] %v9990_v43  ;;  %v9994_v38 = vadd.f32 %v13199_v7, %v9486_v25  ;;  %v9998_v50 = vadd.f32 %v13201_v59, %v9490_v32  ;;  %v13203_v54 = vld [vmem:[#allocation114_spill] sm:$0xff]  ;;  %v10014_v25 = vadd.f32 %v9432_v29, %v9506_v53  ;;  %v13209_v10 = vld [vmem:[#allocation120_spill] sm:$0xff] }
 0x823   :  { %v10002_v1 = vadd.f32 %v13203_v54, %v9494_v3  ;;  %v13205_v52 = vld [vmem:[#allocation118_spill] sm:$0xff]  ;;  %13207 = vst [vmem:[#allocation40_spill] sm:$0xff] %v10010_v34  ;;  %v10018_v32 = vadd.f32 %v9435_v45, %v13209_v10  ;;  %v10034_v53 = vadd.f32 %v13203_v54, %v9526_v8 }
 0x824   :  { %13200 = vst [vmem:[#allocation67_spill] sm:$0xff] %v9994_v38  ;;  %13202 = vst [vmem:[#allocation92_spill] sm:$0xff] %v9998_v50  ;;  %v10006_v26 = vadd.f32 %v13205_v52, %v9498_v35  ;;  %v13211_v50 = vld [vmem:[#allocation122_spill] sm:$0xff]  ;;  %v10038_v10 = vadd.f32 %v13205_v52, %v9530_v20 }
 0x825   :  { %13204 = vst [vmem:[#allocation69_spill] sm:$0xff] %v10002_v1  ;;  %13208 = vst [vmem:[#allocation66_spill] sm:$0xff] %v10014_v25  ;;  %v10022_v3 = vadd.f32 %v9438_v11, %v13211_v50  ;;  %v13213_v1 = vld [vmem:[#allocation124_spill] sm:$0xff]  ;;  %v10042_v50 = vadd.f32 %v9429_v48, %v9534_v46 }
 0x826   :  { %13206 = vst [vmem:[#allocation132_spill] sm:$0xff] %v10006_v26  ;;  %13210 = vst [vmem:[#allocation60_spill] sm:$0xff] %v10018_v32  ;;  %v10026_v35 = vadd.f32 %v13199_v7, %v13213_v1  ;;  %v13215_v26 = vld [vmem:[#allocation33_spill] sm:$0xff]  ;;  %v10046_v1 = vadd.f32 %v9432_v29, %v9538_v27  ;;  %v10066_v27 = vadd.f32 %v13203_v54, %v9558_v19 }
 0x827   :  { %13212 = vst [vmem:[#allocation31_spill] sm:$0xff] %v10022_v3  ;;  %v10030_v28 = vadd.f32 %v13201_v59, %v13215_v26  ;;  %13217 = vst [vmem:[#allocation65_spill] sm:$0xff] %v10034_v53  ;;  %v13225_v53 = vld [vmem:[#allocation47_spill] sm:$0xff] }
 0x828   :  { %13214 = vst [vmem:[#allocation133_spill] sm:$0xff] %v10026_v35  ;;  %13218 = vst [vmem:[#allocation96_spill] sm:$0xff] %v10038_v10  ;;  %v13221_v35 = vld [vmem:[#allocation46_spill] sm:$0xff]  ;;  %v10058_v20 = vadd.f32 %v13199_v7, %v13225_v53  ;;  %v10078_v53 = vadd.f32 %v9432_v29, %v9570_v57  ;;  %v10098_v57 = vadd.f32 %v13203_v54, %v9590_v24 }
 0x829   :  { %13216 = vst [vmem:[#allocation88_spill] sm:$0xff] %v10030_v28  ;;  %13219 = vst [vmem:[#allocation101_spill] sm:$0xff] %v10042_v50  ;;  %v10050_v26 = vadd.f32 %v9435_v45, %v13221_v35  ;;  %v13223_v28 = vld [vmem:[#allocation34_spill] sm:$0xff]  ;;  %v10070_v35 = vadd.f32 %v13205_v52, %v9562_v31 }
 0x82a   :  { %13220 = vst [vmem:[#allocation134_spill] sm:$0xff] %v10046_v1  ;;  %v10054_v8 = vadd.f32 %v9438_v11, %v13223_v28  ;;  %13226 = vst [vmem:[#allocation44_spill] sm:$0xff] %v10058_v20  ;;  %v13227_v10 = vld [vmem:[#allocation102_spill] sm:$0xff]  ;;  %v10074_v28 = vadd.f32 %v9429_v48, %v9566_v36  ;;  %v13233_v20 = vld [vmem:[#allocation36_spill] sm:$0xff] }
 0x82b   :  { %13222 = vst [vmem:[#allocation144_spill] sm:$0xff] %v10050_v26  ;;  %v10062_v46 = vadd.f32 %v13201_v59, %v13227_v10  ;;  %13229 = vst [vmem:[#allocation70_spill] sm:$0xff] %v10066_v27  ;;  %v10082_v10 = vadd.f32 %v9435_v45, %v13233_v20  ;;  %v13237_v27 = vld [vmem:[#allocation107_spill] sm:$0xff]  ;;  %v10102_v20 = vadd.f32 %v13205_v52, %v9594_v40 }
 0x82c   :  { %13224 = vst [vmem:[#allocation51_spill] sm:$0xff] %v10054_v8  ;;  %13230 = vst [vmem:[#allocation135_spill] sm:$0xff] %v10070_v35  ;;  %v10090_v31 = vadd.f32 %v13199_v7, %v13237_v27  ;;  %v13239_v35 = vld [vmem:[#allocation109_spill] sm:$0xff]  ;;  %v10110_v27 = vadd.f32 %v9432_v29, %v9602_v22 }
 0x82d   :  { %13228 = vst [vmem:[#allocation55_spill] sm:$0xff] %v10062_v46  ;;  %13231 = vst [vmem:[#allocation145_spill] sm:$0xff] %v10074_v28  ;;  %v13235_v46 = vld [vmem:[#allocation76_spill] sm:$0xff]  ;;  %v10094_v36 = vadd.f32 %v13201_v59, %v13239_v35 }
 0x82e   :  { %13232 = vst [vmem:[#allocation106_spill] sm:$0xff] %v10078_v53  ;;  %13234 = vst [vmem:[#allocation84_spill] sm:$0xff] %v10082_v10  ;;  %v10086_v19 = vadd.f32 %v9438_v11, %v13235_v46  ;;  %v13243_v10 = vld [vmem:[#allocation111_spill] sm:$0xff] }
 0x82f   :  { %13238 = vst [vmem:[#allocation93_spill] sm:$0xff] %v10090_v31  ;;  %13240 = vst [vmem:[#allocation45_spill] sm:$0xff] %v10094_v36  ;;  %v10106_v46 = vadd.f32 %v9429_v48, %v13243_v10  ;;  %v13246_v31 = vld [vmem:[#allocation113_spill] sm:$0xff]  ;;  %v13248_v36 = vld [vmem:[#allocation115_spill] sm:$0xff] }
 0x830   :  { %13236 = vst [vmem:[#allocation32_spill] sm:$0xff] %v10086_v19  ;;  %13241 = vst [vmem:[#allocation136_spill] sm:$0xff] %v10098_v57  ;;  %v10114_v35 = vadd.f32 %v9435_v45, %v13246_v31  ;;  %v10118_v24 = vadd.f32 %v9438_v11, %v13248_v36  ;;  %v13250_v57 = vld [vmem:[#allocation119_spill] sm:$0xff]  ;;  %v10134_v31 = vadd.f32 %v13205_v52, %v9626_v47 }
 0x831   :  { %13242 = vst [vmem:[#allocation103_spill] sm:$0xff] %v10102_v20  ;;  %13244 = vst [vmem:[#allocation146_spill] sm:$0xff] %v10106_v46  ;;  %v10122_v40 = vadd.f32 %v13199_v7, %v13250_v57  ;;  %v13252_v20 = vld [vmem:[#allocation121_spill] sm:$0xff]  ;;  %v13254_v46 = vld [vmem:[#allocation123_spill] sm:$0xff] }
 0x832   :  { %13245 = vst [vmem:[#allocation108_spill] sm:$0xff] %v10110_v27  ;;  %13247 = vst [vmem:[#allocation138_spill] sm:$0xff] %v10114_v35  ;;  %v10126_v10 = vadd.f32 %v13201_v59, %v13252_v20  ;;  %v10130_v22 = vadd.f32 %v13203_v54, %v13254_v46  ;;  %v13257_v35 = vld [vmem:[#allocation125_spill] sm:$0xff] }
 0x833   :  { %13249 = vst [vmem:[#allocation49_spill] sm:$0xff] %v10118_v24  ;;  %13251 = vst [vmem:[#allocation110_spill] sm:$0xff] %v10122_v40  ;;  %v10138_v36 = vadd.f32 %v9429_v48, %v13257_v35  ;;  %v13259_v24 = vld [vmem:[#allocation28_spill] sm:$0xff]  ;;  %v10158_v35 = vadd.f32 %v13201_v59, %v9650_v5  ;;  %v13275_v5 = vld [vmem:[#allocation78_spill] sm:$0xff] }
 0x834   :  { %13253 = vst [vmem:[#allocation112_spill] sm:$0xff] %v10126_v10  ;;  %13255 = vst [vmem:[#allocation114_spill] sm:$0xff] %v10130_v22  ;;  %v10142_v57 = vadd.f32 %v9432_v29, %v13259_v24  ;;  %v13261_v40 = vld [vmem:[#allocation116_spill] sm:$0xff]  ;;  %v13263_v10 = vld [vmem:[#allocation117_spill] sm:$0xff]  ;;  %v10164_v24 = vadd.f32 %v13205_v52, %v4040_v2 }
 0x835   :  { %13256 = vst [vmem:[#allocation118_spill] sm:$0xff] %v10134_v31  ;;  %13258 = vst [vmem:[#allocation120_spill] sm:$0xff] %v10138_v36  ;;  %v10146_v20 = vadd.f32 %v9435_v45, %v13261_v40  ;;  %v10150_v46 = vadd.f32 %v9438_v11, %v13263_v10  ;;  %v13265_v22 = vld [vmem:[#allocation27_spill] sm:$0xff]  ;;  %v10161_v36 = vadd.f32 %v13203_v54, %v4039_v13  ;;  %v13270_v40 = vld [vmem:[#allocation56_spill] sm:$0xff] }
 0x836   :  { %13260 = vst [vmem:[#allocation122_spill] sm:$0xff] %v10142_v57  ;;  %v10154_v47 = vadd.f32 %v13199_v7, %v13265_v22  ;;  %13267 = vst [vmem:[#allocation34_spill] sm:$0xff] %v10158_v35  ;;  %v10172_v10 = vadd.f32 %v9432_v29, %v9658_v60  ;;  %v13273_v22 = vld [vmem:[#allocation57_spill] sm:$0xff]  ;;  %v10180_v35 = vadd.f32 %v9438_v11, %v13275_v5 }
 0x837   :  { %13262 = vst [vmem:[#allocation124_spill] sm:$0xff] %v10146_v20  ;;  %13264 = vst [vmem:[#allocation33_spill] sm:$0xff] %v10150_v46  ;;  %v10168_v20 = vadd.f32 %v9429_v48, %v13270_v40  ;;  %v13277_v13 = vld [vmem:[#allocation61_spill] sm:$0xff] }
 0x838   :  { %13266 = vst [vmem:[#allocation46_spill] sm:$0xff] %v10154_v47  ;;  %13268 = vst [vmem:[#allocation47_spill] sm:$0xff] %v10161_v36  ;;  %v10176_v47 = vadd.f32 %v9435_v45, %v13273_v22  ;;  %v10184_v2 = vadd.f32 %v13199_v7, %v13277_v13  ;;  %v10196_v22 = vadd.f32 %v13205_v52, %v9682_v62 }
 0x839   :  { %13269 = vst [vmem:[#allocation102_spill] sm:$0xff] %v10164_v24  ;;  %13271 = vst [vmem:[#allocation36_spill] sm:$0xff] %v10168_v20  ;;  %v13279_v24 = vld [vmem:[#allocation53_spill] sm:$0xff]  ;;  %v13281_v20 = vld [vmem:[#allocation72_spill] sm:$0xff]  ;;  %v10204_v13 = vadd.f32 %v9432_v29, %v9690_v23 }
 0x83a   :  { %13272 = vst [vmem:[#allocation76_spill] sm:$0xff] %v10172_v10  ;;  %13274 = vst [vmem:[#allocation107_spill] sm:$0xff] %v10176_v47  ;;  %v10188_v40 = vadd.f32 %v13201_v59, %v13279_v24  ;;  %v10192_v60 = vadd.f32 %v13203_v54, %v13281_v20  ;;  %v13284_v47 = vld [vmem:[#allocation37_spill] sm:$0xff] }
 0x83b   :  { %13276 = vst [vmem:[#allocation109_spill] sm:$0xff] %v10180_v35  ;;  %13278 = vst [vmem:[#allocation111_spill] sm:$0xff] %v10184_v2  ;;  %v10200_v5 = vadd.f32 %v9429_v48, %v13284_v47  ;;  %v13286_v2 = vld [vmem:[#allocation97_spill] sm:$0xff] }
 0x83c   :  { %13280 = vst [vmem:[#allocation113_spill] sm:$0xff] %v10188_v40  ;;  %13282 = vst [vmem:[#allocation115_spill] sm:$0xff] %v10192_v60  ;;  %v10208_v24 = vadd.f32 %v9435_v45, %v13286_v2  ;;  %v13288_v40 = vld [vmem:[#allocation89_spill] sm:$0xff]  ;;  %v13290_v60 = vld [vmem:[#allocation71_spill] sm:$0xff]  ;;  %v10228_v2 = vadd.f32 %v13205_v52, %v9714_v61 }
 0x83d   :  { %13283 = vst [vmem:[#allocation119_spill] sm:$0xff] %v10196_v22  ;;  %13285 = vst [vmem:[#allocation121_spill] sm:$0xff] %v10200_v5  ;;  %v10212_v20 = vadd.f32 %v9438_v11, %v13288_v40  ;;  %v10216_v62 = vadd.f32 %v13199_v7, %v13290_v60  ;;  %v13292_v22 = vld [vmem:[#allocation79_spill] sm:$0xff]  ;;  %v13294_v5 = vld [vmem:[#allocation58_spill] sm:$0xff]  ;;  %v10236_v60 = vadd.f32 %v9432_v29, %v9722_v63 }
 0x83e   :  { %13287 = vst [vmem:[#allocation123_spill] sm:$0xff] %v10208_v24  ;;  %v10220_v47 = vadd.f32 %v13201_v59, %v13292_v22  ;;  %v10224_v23 = vadd.f32 %v13203_v54, %v13294_v5  ;;  %13296 = vst [vmem:[#allocation27_spill] sm:$0xff] %v10228_v2  ;;  %v13297_v24 = vld [vmem:[#allocation39_spill] sm:$0xff]  ;;  %v13306_v2 = vld [vmem:[#allocation86_spill] sm:$0xff] }
 0x83f   :  { %13289 = vst [vmem:[#allocation125_spill] sm:$0xff] %v10212_v20  ;;  %13291 = vst [vmem:[#allocation28_spill] sm:$0xff] %v10216_v62  ;;  %v10232_v40 = vadd.f32 %v9429_v48, %v13297_v24  ;;  %v13300_v62 = vld [vmem:[#allocation73_spill] sm:$0xff]  ;;  %v10252_v24 = vadd.f32 %v13201_v59, %v13306_v2 }
 0x840   :  { %13293 = vst [vmem:[#allocation116_spill] sm:$0xff] %v10220_v47  ;;  %13295 = vst [vmem:[#allocation117_spill] sm:$0xff] %v10224_v23  ;;  %v10240_v22 = vadd.f32 %v9435_v45, %v13300_v62  ;;  %v13302_v47 = vld [vmem:[#allocation80_spill] sm:$0xff]  ;;  %v13304_v23 = vld [vmem:[#allocation94_spill] sm:$0xff]  ;;  %v10260_v62 = vadd.f32 %v13205_v52, %v9746_v44 }
 0x841   :  { %13298 = vst [vmem:[#allocation56_spill] sm:$0xff] %v10232_v40  ;;  %13299 = vst [vmem:[#allocation57_spill] sm:$0xff] %v10236_v60  ;;  %v10244_v5 = vadd.f32 %v9438_v11, %v13302_v47  ;;  %v10248_v61 = vadd.f32 %v13199_v7, %v13304_v23  ;;  %v13308_v40 = vld [vmem:[#allocation74_spill] sm:$0xff]  ;;  %v10268_v23 = vadd.f32 %v9432_v29, %v9754_v51 }
 0x842   :  { %13301 = vst [vmem:[#allocation78_spill] sm:$0xff] %v10240_v22  ;;  %13307 = vst [vmem:[#allocation72_spill] sm:$0xff] %v10252_v24  ;;  %v10256_v63 = vadd.f32 %v13203_v54, %v13308_v40  ;;  %v13311_v22 = vld [vmem:[#allocation77_spill] sm:$0xff] }
 0x843   :  { %13303 = vst [vmem:[#allocation61_spill] sm:$0xff] %v10244_v5  ;;  %13305 = vst [vmem:[#allocation53_spill] sm:$0xff] %v10248_v61  ;;  %v10264_v47 = vadd.f32 %v9429_v48, %v13311_v22  ;;  %v13314_v61 = vld [vmem:[#allocation62_spill] sm:$0xff]  ;;  %v13316_v24 = vld [vmem:[#allocation41_spill] sm:$0xff] }
 0x844   :  { %13309 = vst [vmem:[#allocation37_spill] sm:$0xff] %v10256_v63  ;;  %13310 = vst [vmem:[#allocation97_spill] sm:$0xff] %v10260_v62  ;;  %v10272_v2 = vadd.f32 %v9435_v45, %v13314_v61  ;;  %v10276_v40 = vadd.f32 %v9438_v11, %v13316_v24  ;;  %v13318_v63 = vld [vmem:[#allocation35_spill] sm:$0xff]  ;;  %v13320_v62 = vld [vmem:[#allocation137_spill] sm:$0xff]  ;;  %v10292_v61 = vadd.f32 %v13205_v52, %v9778_v21 }
 0x845   :  { %13312 = vst [vmem:[#allocation89_spill] sm:$0xff] %v10264_v47  ;;  %13313 = vst [vmem:[#allocation71_spill] sm:$0xff] %v10268_v23  ;;  %v10280_v44 = vadd.f32 %v13199_v7, %v13318_v63  ;;  %v10284_v22 = vadd.f32 %v13201_v59, %v13320_v62  ;;  %v13322_v47 = vld [vmem:[#allocation81_spill] sm:$0xff]  ;;  %v10300_v63 = vadd.f32 %v9432_v29, %v9786_v9 }
 0x846   :  { %13315 = vst [vmem:[#allocation79_spill] sm:$0xff] %v10272_v2  ;;  %13317 = vst [vmem:[#allocation58_spill] sm:$0xff] %v10276_v40  ;;  %v10288_v51 = vadd.f32 %v13203_v54, %v13322_v47  ;;  %v13325_v2 = vld [vmem:[#allocation98_spill] sm:$0xff] }
 0x847   :  { %13319 = vst [vmem:[#allocation39_spill] sm:$0xff] %v10280_v44  ;;  %13321 = vst [vmem:[#allocation73_spill] sm:$0xff] %v10284_v22  ;;  %v10296_v24 = vadd.f32 %v9429_v48, %v13325_v2  ;;  %v13328_v44 = vld [vmem:[#allocation90_spill] sm:$0xff]  ;;  %v13330_v22 = vld [vmem:[#allocation48_spill] sm:$0xff] }
 0x848   :  { %13323 = vst [vmem:[#allocation80_spill] sm:$0xff] %v10288_v51  ;;  %13324 = vst [vmem:[#allocation94_spill] sm:$0xff] %v10292_v61  ;;  %v10304_v62 = vadd.f32 %v9435_v45, %v13328_v44  ;;  %v10308_v47 = vadd.f32 %v9438_v11, %v13330_v22  ;;  %v13332_v51 = vld [vmem:[#allocation126_spill] sm:$0xff]  ;;  %v10324_v44 = vadd.f32 %v13205_v52, %v9810_v58 }
 0x849   :  { %13326 = vst [vmem:[#allocation86_spill] sm:$0xff] %v10296_v24  ;;  %13327 = vst [vmem:[#allocation74_spill] sm:$0xff] %v10300_v63  ;;  %v10312_v21 = vadd.f32 %v13199_v7, %v13332_v51  ;;  %v13334_v61 = vld [vmem:[#allocation50_spill] sm:$0xff]  ;;  %v13336_v24 = vld [vmem:[#allocation63_spill] sm:$0xff]  ;;  %v10328_v22 = vadd.f32 %v9429_v48, %v9814_v0  ;;  %v10332_v51 = vadd.f32 %v9432_v29, %v9818_v42 }
 0x84a   :  { %13329 = vst [vmem:[#allocation77_spill] sm:$0xff] %v10304_v62  ;;  %13331 = vst [vmem:[#allocation62_spill] sm:$0xff] %v10308_v47  ;;  %v10316_v2 = vadd.f32 %v13201_v59, %v13334_v61  ;;  %v10320_v9 = vadd.f32 %v13203_v54, %v13336_v24  ;;  %v13444_v47 = vld [vmem:[#allocation93_spill] sm:$0xff] }
 0x84b   :  { %13333 = vst [vmem:[#allocation41_spill] sm:$0xff] %v10312_v21  ;;  %13338 = vst [vmem:[#allocation81_spill] sm:$0xff] %v10324_v44  ;;  %v13341_v21 = vld [vmem:[#allocation54_spill] sm:$0xff]  ;;  %v13347_v44 = vld [vmem:[#allocation139_spill] sm:$0xff]  ;;  %v10585_v62 = vmul.f32 0.2, %v13444_v47 }
 0x84c   :  { %13335 = vst [vmem:[#allocation35_spill] sm:$0xff] %v10316_v2  ;;  %13337 = vst [vmem:[#allocation137_spill] sm:$0xff] %v10320_v9  ;;  %v10336_v61 = vadd.f32 %v9435_v45, %v13341_v21  ;;  %v13343_v2 = vld [vmem:[#allocation75_spill] sm:$0xff]  ;;  %v10348_v0 = vadd.f32 %v13201_v59, %v13347_v44  ;;  %v10356_v21 = vadd.f32 %v13205_v52, %v9842_v39  ;;  %v13446_v63 = vld [vmem:[#allocation45_spill] sm:$0xff] }
 0x84d   :  { %13339 = vst [vmem:[#allocation98_spill] sm:$0xff] %v10328_v22  ;;  %13340 = vst [vmem:[#allocation90_spill] sm:$0xff] %v10332_v51  ;;  %v10340_v24 = vadd.f32 %v9438_v11, %v13343_v2  ;;  %v13345_v9 = vld [vmem:[#allocation127_spill] sm:$0xff]  ;;  %v13349_v22 = vld [vmem:[#allocation82_spill] sm:$0xff]  ;;  %v10360_v2 = vadd.f32 %v9429_v48, %v9846_v4 }
 0x84e   :  { %13342 = vst [vmem:[#allocation48_spill] sm:$0xff] %v10336_v61  ;;  %v10344_v58 = vadd.f32 %v13199_v7, %v13345_v9  ;;  %13348 = vst [vmem:[#allocation63_spill] sm:$0xff] %v10348_v0  ;;  %v10352_v42 = vadd.f32 %v13203_v54, %v13349_v22  ;;  %v10364_v9 = vadd.f32 %v9432_v29, %v9850_v37  ;;  %v13356_v0 = vld [vmem:[#allocation91_spill] sm:$0xff]  ;;  %v10574_v61 = vmul.f32 0.2, %v10078_v53  ;;  %v13441_v51 = vld [vmem:[#allocation84_spill] sm:$0xff] }
 0x84f   :  { %13344 = vst [vmem:[#allocation126_spill] sm:$0xff] %v10340_v24  ;;  %13351 = vst [vmem:[#allocation75_spill] sm:$0xff] %v10356_v21  ;;  %v10372_v22 = vadd.f32 %v9438_v11, %v13356_v0  ;;  %v13360_v21 = vld [vmem:[#allocation128_spill] sm:$0xff]  ;;  %v13437_v24 = vld [vmem:[#allocation135_spill] sm:$0xff] }
 0x850   :  { %13346 = vst [vmem:[#allocation50_spill] sm:$0xff] %v10344_v58  ;;  %13350 = vst [vmem:[#allocation54_spill] sm:$0xff] %v10352_v42  ;;  %v13354_v58 = vld [vmem:[#allocation99_spill] sm:$0xff]  ;;  %v13358_v42 = vld [vmem:[#allocation104_spill] sm:$0xff]  ;;  %v10380_v4 = vadd.f32 %v13201_v59, %v13360_v21 }
 0x851   :  { %13352 = vst [vmem:[#allocation127_spill] sm:$0xff] %v10360_v2  ;;  %13353 = vst [vmem:[#allocation139_spill] sm:$0xff] %v10364_v9  ;;  %v10368_v44 = vadd.f32 %v9435_v45, %v13354_v58  ;;  %v10376_v39 = vadd.f32 %v13199_v7, %v13358_v42  ;;  %v13362_v2 = vld [vmem:[#allocation140_spill] sm:$0xff]  ;;  %v10388_v58 = vadd.f32 %v13205_v52, %v9874_v12  ;;  %v13457_v47 = vld [vmem:[#allocation49_spill] sm:$0xff] }
 0x852   :  { %13357 = vst [vmem:[#allocation99_spill] sm:$0xff] %v10372_v22  ;;  %13361 = vst [vmem:[#allocation104_spill] sm:$0xff] %v10380_v4  ;;  %v10384_v37 = vadd.f32 %v13203_v54, %v13362_v2  ;;  %v10396_v42 = vadd.f32 %v9432_v29, %v9882_v56  ;;  %v13370_v4 = vld [vmem:[#allocation59_spill] sm:$0xff]  ;;  %v13435_v22 = vld [vmem:[#allocation70_spill] sm:$0xff] }
 0x853   :  { %13355 = vst [vmem:[#allocation82_spill] sm:$0xff] %v10368_v44  ;;  %13359 = vst [vmem:[#allocation91_spill] sm:$0xff] %v10376_v39  ;;  %v13365_v44 = vld [vmem:[#allocation52_spill] sm:$0xff]  ;;  %v13368_v39 = vld [vmem:[#allocation85_spill] sm:$0xff]  ;;  %v10404_v2 = vadd.f32 %v9438_v11, %v13370_v4  ;;  %v10563_v9 = vmul.f32 0.2, %v13435_v22 }
 0x854   :  { %13363 = vst [vmem:[#allocation128_spill] sm:$0xff] %v10384_v37  ;;  %13364 = vst [vmem:[#allocation140_spill] sm:$0xff] %v10388_v58  ;;  %v10392_v0 = vadd.f32 %v9429_v48, %v13365_v44  ;;  %v10400_v21 = vadd.f32 %v9435_v45, %v13368_v39  ;;  %v13372_v37 = vld [vmem:[#allocation105_spill] sm:$0xff]  ;;  %v10420_v39 = vadd.f32 %v13205_v52, %v9906_v14  ;;  %v13534_v22 = vld [vmem:[#allocation74_spill] sm:$0xff] }
 0x855   :  { %13367 = vst [vmem:[#allocation147_spill] sm:$0xff] %v10396_v42  ;;  %13371 = vst [vmem:[#allocation59_spill] sm:$0xff] %v10404_v2  ;;  %v10408_v12 = vadd.f32 %v13199_v7, %v13372_v37  ;;  %v13374_v58 = vld [vmem:[#allocation129_spill] sm:$0xff]  ;;  %v13381_v2 = vld [vmem:[#allocation64_spill] sm:$0xff] }
 0x856   :  { %13366 = vst [vmem:[#allocation52_spill] sm:$0xff] %v10392_v0  ;;  %13369 = vst [vmem:[#allocation85_spill] sm:$0xff] %v10400_v21  ;;  %v10412_v44 = vadd.f32 %v13201_v59, %v13374_v58  ;;  %v13376_v0 = vld [vmem:[#allocation141_spill] sm:$0xff]  ;;  %v13379_v21 = vld [vmem:[#allocation87_spill] sm:$0xff]  ;;  %v10428_v37 = vadd.f32 %v9432_v29, %v13381_v2 }
 0x857   :  { %13373 = vst [vmem:[#allocation105_spill] sm:$0xff] %v10408_v12  ;;  %v10416_v56 = vadd.f32 %v13203_v54, %v13376_v0  ;;  %13378 = vst [vmem:[#allocation148_spill] sm:$0xff] %v10420_v39  ;;  %v10424_v4 = vadd.f32 %v9429_v48, %v13379_v21  ;;  %v13383_v12 = vld [vmem:[#allocation95_spill] sm:$0xff]  ;;  %v13389_v39 = vld [vmem:[#allocation142_spill] sm:$0xff] }
 0x858   :  { %13375 = vst [vmem:[#allocation129_spill] sm:$0xff] %v10412_v44  ;;  %13382 = vst [vmem:[#allocation64_spill] sm:$0xff] %v10428_v37  ;;  %v10432_v58 = vadd.f32 %v9435_v45, %v13383_v12  ;;  %v13385_v44 = vld [vmem:[#allocation43_spill] sm:$0xff]  ;;  %v10444_v21 = vadd.f32 %v13201_v59, %v13389_v39  ;;  %v13393_v37 = vld [vmem:[#allocation68_spill] sm:$0xff]  ;;  %v10464_v39 = vadd.f32 %v9435_v45, %v9950_v55  ;;  %v10486_v45 = vmul.f32 0.2, %v9982_v6 }
 0x859   :  { %13377 = vst [vmem:[#allocation141_spill] sm:$0xff] %v10416_v56  ;;  %13380 = vst [vmem:[#allocation87_spill] sm:$0xff] %v10424_v4  ;;  %v10436_v0 = vadd.f32 %v9438_v11, %v13385_v44  ;;  %v13387_v56 = vld [vmem:[#allocation130_spill] sm:$0xff]  ;;  %v10452_v12 = vadd.f32 %v13205_v52, %v13393_v37  ;;  %v10456_v44 = vadd.f32 %v9429_v48, %v9942_v30  ;;  %v10483_v30 = vmul.f32 0.2, %v9978_v15  ;;  %v13425_v15 = vld [vmem:[#allocation96_spill] sm:$0xff] }
 0x85a   :  { %13384 = vst [vmem:[#allocation95_spill] sm:$0xff] %v10432_v58  ;;  %v10440_v14 = vadd.f32 %v13199_v7, %v13387_v56  ;;  %13390 = vst [vmem:[#allocation142_spill] sm:$0xff] %v10444_v21  ;;  %v13391_v4 = vld [vmem:[#allocation38_spill] sm:$0xff]  ;;  %v10460_v56 = vadd.f32 %v9432_v29, %v9946_v33  ;;  %v10472_v37 = vadd.f32 %v13199_v7, %v9958_v49  ;;  %v10496_v55 = vmul.f32 0.2, %v9990_v43  ;;  %v13411_v7 = vld [vmem:[#allocation69_spill] sm:$0xff] }
 0x85b   :  { %13386 = vst [vmem:[#allocation43_spill] sm:$0xff] %v10436_v0  ;;  %v10448_v2 = vadd.f32 %v13203_v54, %v13391_v4  ;;  %13394 = vst [vmem:[#allocation68_spill] sm:$0xff] %v10452_v12  ;;  %v13398_v21 = vld [vmem:[#allocation42_spill] sm:$0xff]  ;;  %v10476_v48 = vadd.f32 %v13201_v59, %v9962_v17  ;;  %v10480_v29 = vadd.f32 %v13203_v54, %v9966_v18  ;;  %v10499_v49 = vmul.f32 0.2, %v9994_v38  ;;  %v13409_v17 = vld [vmem:[#allocation92_spill] sm:$0xff] }
 0x85c   :  { %13388 = vst [vmem:[#allocation130_spill] sm:$0xff] %v10440_v14  ;;  %13395 = vst [vmem:[#allocation149_spill] sm:$0xff] %v10456_v44  ;;  %v10468_v4 = vadd.f32 %v9438_v11, %v13398_v21  ;;  %v10489_v11 = vmul.f32 0.2, %v9986_v16  ;;  %v10493_v33 = vadd.f32 %v13205_v52, %v9970_v41  ;;  %v10502_v18 = vmul.f32 0.2, %v13409_v17 }
 0x85d   :  { %13392 = vst [vmem:[#allocation38_spill] sm:$0xff] %v10448_v2  ;;  %13396 = vst [vmem:[#allocation150_spill] sm:$0xff] %v10460_v56  ;;  %v10505_v59 = vmul.f32 0.2, %v13411_v7  ;;  %v13413_v54 = vld [vmem:[#allocation132_spill] sm:$0xff]  ;;  %v13423_v12 = vld [vmem:[#allocation65_spill] sm:$0xff] }
 0x85e   :  { %13397 = vst [vmem:[#allocation151_spill] sm:$0xff] %v10464_v39  ;;  %13399 = vst [vmem:[#allocation42_spill] sm:$0xff] %v10468_v4  ;;  %v10508_v21 = vmul.f32 0.2, %v13413_v54  ;;  %v10516_v52 = vmul.f32 0.2, %v10014_v25 }
 0x85f   :  { %13400 = vst [vmem:[#allocation152_spill] sm:$0xff] %v10472_v37  ;;  %13401 = vst [vmem:[#allocation153_spill] sm:$0xff] %v10476_v48  ;;  %v10522_v48 = vmul.f32 0.2, %v10022_v3  ;;  %v13419_v4 = vld [vmem:[#allocation133_spill] sm:$0xff]  ;;  %v13421_v56 = vld [vmem:[#allocation88_spill] sm:$0xff] }
 0x860   :  { %13402 = vst [vmem:[#allocation154_spill] sm:$0xff] %v10480_v29  ;;  %13403 = vst [vmem:[#allocation155_spill] sm:$0xff] %v10483_v30  ;;  %v10511_v29 = vmul.f32 0.2, %v10010_v34  ;;  %v10527_v39 = vmul.f32 0.2, %v13419_v4 }
 0x861   :  { %13404 = vst [vmem:[#allocation156_spill] sm:$0xff] %v10486_v45  ;;  %13405 = vst [vmem:[#allocation157_spill] sm:$0xff] %v10489_v11  ;;  %v10530_v44 = vmul.f32 0.2, %v13421_v56  ;;  %v10533_v41 = vmul.f32 0.2, %v13423_v12 }
 0x862   :  { %13406 = vst [vmem:[#allocation158_spill] sm:$0xff] %v10493_v33  ;;  %13407 = vst [vmem:[#allocation159_spill] sm:$0xff] %v10496_v55  ;;  %v10519_v33 = vmul.f32 0.2, %v10018_v32  ;;  %v10538_v2 = vmul.f32 0.2, %v13425_v15 }
 0x863   :  { %13408 = vst [vmem:[#allocation160_spill] sm:$0xff] %v10499_v49  ;;  %13410 = vst [vmem:[#allocation161_spill] sm:$0xff] %v10502_v18  ;;  %v10541_v14 = vmul.f32 0.2, %v10042_v50  ;;  %v10544_v37 = vmul.f32 0.2, %v10046_v1 }
 0x864   :  { %13412 = vst [vmem:[#allocation162_spill] sm:$0xff] %v10505_v59  ;;  %13414 = vst [vmem:[#allocation163_spill] sm:$0xff] %v10508_v21  ;;  %v10549_v6 = vmul.f32 0.2, %v10050_v26  ;;  %v10552_v0 = vmul.f32 0.2, %v10054_v8 }
 0x865   :  { %13415 = vst [vmem:[#allocation164_spill] sm:$0xff] %v10511_v29  ;;  %13416 = vst [vmem:[#allocation165_spill] sm:$0xff] %v10516_v52  ;;  %v13431_v58 = vld [vmem:[#allocation44_spill] sm:$0xff]  ;;  %v13433_v16 = vld [vmem:[#allocation55_spill] sm:$0xff]  ;;  %v10566_v45 = vmul.f32 0.2, %v13437_v24 }
 0x866   :  { %13417 = vst [vmem:[#allocation166_spill] sm:$0xff] %v10519_v33  ;;  %13418 = vst [vmem:[#allocation167_spill] sm:$0xff] %v10522_v48  ;;  %v10555_v30 = vmul.f32 0.2, %v13431_v58  ;;  %v10560_v42 = vmul.f32 0.2, %v13433_v16 }
 0x867   :  { %13420 = vst [vmem:[#allocation168_spill] sm:$0xff] %v10527_v39  ;;  %13422 = vst [vmem:[#allocation169_spill] sm:$0xff] %v10530_v44  ;;  %v10571_v43 = vmul.f32 0.2, %v10074_v28  ;;  %v10577_v11 = vmul.f32 0.2, %v13441_v51 }
 0x868   :  { %13424 = vst [vmem:[#allocation170_spill] sm:$0xff] %v10533_v41  ;;  %13426 = vst [vmem:[#allocation171_spill] sm:$0xff] %v10538_v2  ;;  %v10582_v38 = vmul.f32 0.2, %v10086_v19  ;;  %v10588_v55 = vmul.f32 0.2, %v13446_v63 }
 0x869   :  { %13427 = vst [vmem:[#allocation172_spill] sm:$0xff] %v10541_v14  ;;  %13428 = vst [vmem:[#allocation173_spill] sm:$0xff] %v10544_v37  ;;  %v13448_v17 = vld [vmem:[#allocation136_spill] sm:$0xff]  ;;  %v13450_v51 = vld [vmem:[#allocation103_spill] sm:$0xff]  ;;  %v10604_v7 = vmul.f32 0.2, %v10110_v27 }
 0x86a   :  { %13429 = vst [vmem:[#allocation174_spill] sm:$0xff] %v10549_v6  ;;  %13430 = vst [vmem:[#allocation175_spill] sm:$0xff] %v10552_v0  ;;  %v10593_v53 = vmul.f32 0.2, %v13448_v17  ;;  %v13455_v63 = vld [vmem:[#allocation138_spill] sm:$0xff]  ;;  %v13469_v25 = vld [vmem:[#allocation124_spill] sm:$0xff] }
 0x86b   :  { %13432 = vst [vmem:[#allocation176_spill] sm:$0xff] %v10555_v30  ;;  %13434 = vst [vmem:[#allocation177_spill] sm:$0xff] %v10560_v42  ;;  %v10610_v18 = vmul.f32 0.2, %v13457_v47  ;;  %v13459_v54 = vld [vmem:[#allocation110_spill] sm:$0xff]  ;;  %v13466_v47 = vld [vmem:[#allocation120_spill] sm:$0xff] }
 0x86c   :  { %13436 = vst [vmem:[#allocation178_spill] sm:$0xff] %v10563_v9  ;;  %13438 = vst [vmem:[#allocation179_spill] sm:$0xff] %v10566_v45  ;;  %v10626_v34 = vmul.f32 0.2, %v10134_v31  ;;  %v10632_v21 = vmul.f32 0.2, %v10142_v57 }
 0x86d   :  { %13439 = vst [vmem:[#allocation180_spill] sm:$0xff] %v10571_v43  ;;  %13440 = vst [vmem:[#allocation181_spill] sm:$0xff] %v10574_v61  ;;  %v13452_v61 = vld [vmem:[#allocation146_spill] sm:$0xff]  ;;  %v10651_v57 = vmul.f32 0.2, %v10161_v36  ;;  %v13479_v3 = vld [vmem:[#allocation36_spill] sm:$0xff] }
 0x86e   :  { %13442 = vst [vmem:[#allocation182_spill] sm:$0xff] %v10577_v11  ;;  %13443 = vst [vmem:[#allocation183_spill] sm:$0xff] %v10582_v38  ;;  %v10596_v11 = vmul.f32 0.2, %v13450_v51  ;;  %v10599_v49 = vmul.f32 0.2, %v13452_v61 }
 0x86f   :  { %13445 = vst [vmem:[#allocation184_spill] sm:$0xff] %v10585_v62  ;;  %13447 = vst [vmem:[#allocation185_spill] sm:$0xff] %v10588_v55  ;;  %v10607_v55 = vmul.f32 0.2, %v13455_v63  ;;  %v10615_v51 = vmul.f32 0.2, %v13459_v54 }
 0x870   :  { %13449 = vst [vmem:[#allocation186_spill] sm:$0xff] %v10593_v53  ;;  %13451 = vst [vmem:[#allocation187_spill] sm:$0xff] %v10596_v11  ;;  %v13461_v61 = vld [vmem:[#allocation112_spill] sm:$0xff]  ;;  %v13463_v11 = vld [vmem:[#allocation114_spill] sm:$0xff]  ;;  %v10670_v4 = vmul.f32 0.2, %v10180_v35 }
 0x871   :  { %13453 = vst [vmem:[#allocation188_spill] sm:$0xff] %v10599_v49  ;;  %13454 = vst [vmem:[#allocation189_spill] sm:$0xff] %v10604_v7  ;;  %v10618_v49 = vmul.f32 0.2, %v13461_v61  ;;  %v10621_v59 = vmul.f32 0.2, %v13463_v11 }
 0x872   :  { %13456 = vst [vmem:[#allocation190_spill] sm:$0xff] %v10607_v55  ;;  %13458 = vst [vmem:[#allocation191_spill] sm:$0xff] %v10610_v18  ;;  %v10629_v18 = vmul.f32 0.2, %v13466_v47  ;;  %v10637_v61 = vmul.f32 0.2, %v13469_v25 }
 0x873   :  { %13460 = vst [vmem:[#allocation192_spill] sm:$0xff] %v10615_v51  ;;  %13462 = vst [vmem:[#allocation193_spill] sm:$0xff] %v10618_v49  ;;  %v10640_v11 = vmul.f32 0.2, %v10150_v46  ;;  %v13474_v32 = vld [vmem:[#allocation34_spill] sm:$0xff]  ;;  %v13487_v36 = vld [vmem:[#allocation113_spill] sm:$0xff] }
 0x874   :  { %13464 = vst [vmem:[#allocation194_spill] sm:$0xff] %v10621_v59  ;;  %13465 = vst [vmem:[#allocation195_spill] sm:$0xff] %v10626_v34  ;;  %v13472_v59 = vld [vmem:[#allocation46_spill] sm:$0xff]  ;;  %v10648_v47 = vmul.f32 0.2, %v13474_v32  ;;  %v13489_v56 = vld [vmem:[#allocation115_spill] sm:$0xff] }
 0x875   :  { %13467 = vst [vmem:[#allocation196_spill] sm:$0xff] %v10629_v18  ;;  %13468 = vst [vmem:[#allocation197_spill] sm:$0xff] %v10632_v21  ;;  %v10643_v29 = vmul.f32 0.2, %v13472_v59  ;;  %v13477_v21 = vld [vmem:[#allocation102_spill] sm:$0xff]  ;;  %v13497_v15 = vld [vmem:[#allocation28_spill] sm:$0xff] }
 0x876   :  { %13470 = vst [vmem:[#allocation198_spill] sm:$0xff] %v10637_v61  ;;  %13471 = vst [vmem:[#allocation199_spill] sm:$0xff] %v10640_v11  ;;  %v10654_v52 = vmul.f32 0.2, %v13477_v21  ;;  %v10659_v46 = vmul.f32 0.2, %v13479_v3 }
 0x877   :  { %13473 = vst [vmem:[#allocation200_spill] sm:$0xff] %v10643_v29  ;;  %13475 = vst [vmem:[#allocation34_spill] sm:$0xff] %v10648_v47  ;;  %v10662_v59 = vmul.f32 0.2, %v10172_v10  ;;  %v13482_v29 = vld [vmem:[#allocation107_spill] sm:$0xff]  ;;  %v13508_v1 = vld [vmem:[#allocation78_spill] sm:$0xff] }
 0x878   :  { %13476 = vst [vmem:[#allocation201_spill] sm:$0xff] %v10651_v57  ;;  %13478 = vst [vmem:[#allocation202_spill] sm:$0xff] %v10654_v52  ;;  %v10665_v33 = vmul.f32 0.2, %v13482_v29  ;;  %v13485_v21 = vld [vmem:[#allocation111_spill] sm:$0xff]  ;;  %v13513_v26 = vld [vmem:[#allocation72_spill] sm:$0xff] }
 0x879   :  { %13480 = vst [vmem:[#allocation203_spill] sm:$0xff] %v10659_v46  ;;  %13481 = vst [vmem:[#allocation204_spill] sm:$0xff] %v10662_v59  ;;  %v10673_v52 = vmul.f32 0.2, %v13485_v21  ;;  %v10676_v48 = vmul.f32 0.2, %v13487_v36 }
 0x87a   :  { %13483 = vst [vmem:[#allocation205_spill] sm:$0xff] %v10665_v33  ;;  %13484 = vst [vmem:[#allocation206_spill] sm:$0xff] %v10670_v4  ;;  %v10681_v10 = vmul.f32 0.2, %v13489_v56  ;;  %v13491_v29 = vld [vmem:[#allocation119_spill] sm:$0xff]  ;;  %v13493_v59 = vld [vmem:[#allocation121_spill] sm:$0xff] }
 0x87b   :  { %13486 = vst [vmem:[#allocation207_spill] sm:$0xff] %v10673_v52  ;;  %13488 = vst [vmem:[#allocation208_spill] sm:$0xff] %v10676_v48  ;;  %v10684_v33 = vmul.f32 0.2, %v13491_v29  ;;  %v10687_v39 = vmul.f32 0.2, %v13493_v59 }
 0x87c   :  { %13490 = vst [vmem:[#allocation209_spill] sm:$0xff] %v10681_v10  ;;  %v10692_v12 = vmul.f32 0.2, %v10204_v13  ;;  %v13495_v36 = vld [vmem:[#allocation123_spill] sm:$0xff]  ;;  %v10698_v44 = vmul.f32 0.2, %v10212_v20 }
 0x87d   :  { %13492 = vst [vmem:[#allocation210_spill] sm:$0xff] %v10684_v33  ;;  %13494 = vst [vmem:[#allocation211_spill] sm:$0xff] %v10687_v39  ;;  %v10695_v48 = vmul.f32 0.2, %v13495_v36  ;;  %v10703_v29 = vmul.f32 0.2, %v13497_v15 }
 0x87e   :  { %13496 = vst [vmem:[#allocation212_spill] sm:$0xff] %v10698_v44  ;;  %v13499_v59 = vld [vmem:[#allocation116_spill] sm:$0xff]  ;;  %v13501_v33 = vld [vmem:[#allocation117_spill] sm:$0xff]  ;;  %v13503_v50 = vld [vmem:[#allocation27_spill] sm:$0xff]  ;;  %v10720_v2 = vmul.f32 0.2, %v10236_v60 }
 0x87f   :  { %13498 = vst [vmem:[#allocation213_spill] sm:$0xff] %v10703_v29  ;;  %v10706_v39 = vmul.f32 0.2, %v13499_v59  ;;  %v10709_v41 = vmul.f32 0.2, %v13501_v33  ;;  %v13505_v20 = vld [vmem:[#allocation56_spill] sm:$0xff] }
 0x880   :  { %v10714_v36 = vmul.f32 0.2, %v13503_v50  ;;  %v10717_v44 = vmul.f32 0.2, %v13505_v20  ;;  %13507 = vst [vmem:[#allocation218_spill] sm:$0xff] %v10720_v2  ;;  %v13515_v60 = vld [vmem:[#allocation37_spill] sm:$0xff] }
 0x881   :  { %13500 = vst [vmem:[#allocation214_spill] sm:$0xff] %v10706_v39  ;;  %13502 = vst [vmem:[#allocation215_spill] sm:$0xff] %v10709_v41  ;;  %v10725_v59 = vmul.f32 0.2, %v13508_v1  ;;  %v10728_v33 = vmul.f32 0.2, %v10244_v5 }
 0x882   :  { %13504 = vst [vmem:[#allocation216_spill] sm:$0xff] %v10714_v36  ;;  %13506 = vst [vmem:[#allocation217_spill] sm:$0xff] %v10717_v44  ;;  %v13511_v41 = vld [vmem:[#allocation53_spill] sm:$0xff]  ;;  %v10736_v20 = vmul.f32 0.2, %v13513_v26  ;;  %v13528_v16 = vld [vmem:[#allocation80_spill] sm:$0xff] }
 0x883   :  { %13509 = vst [vmem:[#allocation219_spill] sm:$0xff] %v10725_v59  ;;  %13510 = vst [vmem:[#allocation220_spill] sm:$0xff] %v10728_v33  ;;  %v10731_v14 = vmul.f32 0.2, %v13511_v41  ;;  %v10739_v2 = vmul.f32 0.2, %v13515_v60 }
 0x884   :  { %13514 = vst [vmem:[#allocation222_spill] sm:$0xff] %v10736_v20  ;;  %v13517_v44 = vld [vmem:[#allocation97_spill] sm:$0xff]  ;;  %v10750_v41 = vmul.f32 0.2, %v10268_v23  ;;  %v10758_v58 = vmul.f32 0.2, %v10276_v40 }
 0x885   :  { %13512 = vst [vmem:[#allocation221_spill] sm:$0xff] %v10731_v14  ;;  %13516 = vst [vmem:[#allocation223_spill] sm:$0xff] %v10739_v2  ;;  %v10742_v37 = vmul.f32 0.2, %v13517_v44  ;;  %v13519_v8 = vld [vmem:[#allocation89_spill] sm:$0xff]  ;;  %v13521_v14 = vld [vmem:[#allocation79_spill] sm:$0xff] }
 0x886   :  { %v10747_v5 = vmul.f32 0.2, %v13519_v8  ;;  %13520 = vst [vmem:[#allocation89_spill] sm:$0xff] %v10750_v41  ;;  %v10753_v6 = vmul.f32 0.2, %v13521_v14  ;;  %13523 = vst [vmem:[#allocation226_spill] sm:$0xff] %v10758_v58 }
 0x887   :  { %13518 = vst [vmem:[#allocation224_spill] sm:$0xff] %v10742_v37  ;;  %v13524_v44 = vld [vmem:[#allocation39_spill] sm:$0xff]  ;;  %v13526_v60 = vld [vmem:[#allocation73_spill] sm:$0xff]  ;;  %v10769_v23 = vmul.f32 0.2, %v13528_v16  ;;  %v13530_v14 = vld [vmem:[#allocation94_spill] sm:$0xff] }
 0x888   :  { %13522 = vst [vmem:[#allocation225_spill] sm:$0xff] %v10753_v6  ;;  %v10761_v37 = vmul.f32 0.2, %v13524_v44  ;;  %v10764_v0 = vmul.f32 0.2, %v13526_v60  ;;  %v13532_v41 = vld [vmem:[#allocation86_spill] sm:$0xff] }
 0x889   :  { %13529 = vst [vmem:[#allocation229_spill] sm:$0xff] %v10769_v23  ;;  %v10772_v6 = vmul.f32 0.2, %v13530_v14  ;;  %v10775_v30 = vmul.f32 0.2, %v13532_v41  ;;  %v13536_v60 = vld [vmem:[#allocation77_spill] sm:$0xff] }
 0x88a   :  { %13525 = vst [vmem:[#allocation227_spill] sm:$0xff] %v10761_v37  ;;  %13527 = vst [vmem:[#allocation228_spill] sm:$0xff] %v10764_v0  ;;  %v10780_v44 = vmul.f32 0.2, %v13534_v22  ;;  %v10783_v0 = vmul.f32 0.2, %v13536_v60 }
 0x88b   :  { %13531 = vst [vmem:[#allocation230_spill] sm:$0xff] %v10772_v6  ;;  %13533 = vst [vmem:[#allocation231_spill] sm:$0xff] %v10775_v30  ;;  %v13538_v37 = vld [vmem:[#allocation62_spill] sm:$0xff]  ;;  %v13542_v14 = vld [vmem:[#allocation41_spill] sm:$0xff] }
 0x88c   :  { %13535 = vst [vmem:[#allocation232_spill] sm:$0xff] %v10780_v44  ;;  %13537 = vst [vmem:[#allocation233_spill] sm:$0xff] %v10783_v0  ;;  %v10786_v42 = vmul.f32 0.2, %v13538_v37  ;;  %v10791_v6 = vmul.f32 0.2, %v13542_v14 }
 0x88d   :  { %v13544_v41 = vld [vmem:[#allocation35_spill] sm:$0xff]  ;;  %v13546_v23 = vld [vmem:[#allocation137_spill] sm:$0xff]  ;;  %v13552_v37 = vld [vmem:[#allocation98_spill] sm:$0xff] }
 0x88e   :  { %13539 = vst [vmem:[#allocation234_spill] sm:$0xff] %v10786_v42  ;;  %13543 = vst [vmem:[#allocation235_spill] sm:$0xff] %v10791_v6  ;;  %v10794_v30 = vmul.f32 0.2, %v13544_v41  ;;  %v10797_v9 = vmul.f32 0.2, %v13546_v23 }
 0x88f   :  { %v13550_v60 = vld [vmem:[#allocation81_spill] sm:$0xff]  ;;  %v10805_v42 = vmul.f32 0.2, %v13552_v37  ;;  %v13554_v44 = vld [vmem:[#allocation90_spill] sm:$0xff]  ;;  %v13556_v24 = vld [vmem:[#allocation48_spill] sm:$0xff] }
 0x890   :  { %13545 = vst [vmem:[#allocation236_spill] sm:$0xff] %v10794_v30  ;;  %13547 = vst [vmem:[#allocation237_spill] sm:$0xff] %v10797_v9  ;;  %v10802_v0 = vmul.f32 0.2, %v13550_v60  ;;  %v10808_v16 = vmul.f32 0.2, %v13554_v44 }
 0x891   :  { %13553 = vst [vmem:[#allocation239_spill] sm:$0xff] %v10805_v42  ;;  %v10813_v41 = vmul.f32 0.2, %v13556_v24  ;;  %v13558_v23 = vld [vmem:[#allocation126_spill] sm:$0xff]  ;;  %v13563_v37 = vld [vmem:[#allocation63_spill] sm:$0xff]  ;;  %v13599_v19 = vld [vmem:[#allocation105_spill] sm:$0xff] }
 0x892   :  { %13551 = vst [vmem:[#allocation238_spill] sm:$0xff] %v10802_v0  ;;  %13555 = vst [vmem:[#allocation240_spill] sm:$0xff] %v10808_v16  ;;  %v10816_v9 = vmul.f32 0.2, %v13558_v23  ;;  %v13560_v30 = vld [vmem:[#allocation50_spill] sm:$0xff]  ;;  %v13567_v60 = vld [vmem:[#allocation75_spill] sm:$0xff] }
 0x893   :  { %13557 = vst [vmem:[#allocation241_spill] sm:$0xff] %v10813_v41  ;;  %v10819_v22 = vmul.f32 0.2, %v13560_v30  ;;  %v10824_v42 = vmul.f32 0.2, %v13563_v37  ;;  %v13565_v44 = vld [vmem:[#allocation54_spill] sm:$0xff] }
 0x894   :  { %13559 = vst [vmem:[#allocation242_spill] sm:$0xff] %v10816_v9  ;;  %v10827_v16 = vmul.f32 0.2, %v13565_v44  ;;  %v10830_v45 = vmul.f32 0.2, %v13567_v60  ;;  %v13571_v23 = vld [vmem:[#allocation127_spill] sm:$0xff] }
 0x895   :  { %13561 = vst [vmem:[#allocation243_spill] sm:$0xff] %v10819_v22  ;;  %13564 = vst [vmem:[#allocation244_spill] sm:$0xff] %v10824_v42  ;;  %v10835_v9 = vmul.f32 0.2, %v13571_v23  ;;  %v13573_v30 = vld [vmem:[#allocation139_spill] sm:$0xff]  ;;  %v13575_v41 = vld [vmem:[#allocation82_spill] sm:$0xff] }
 0x896   :  { %13566 = vst [vmem:[#allocation245_spill] sm:$0xff] %v10827_v16  ;;  %13568 = vst [vmem:[#allocation246_spill] sm:$0xff] %v10830_v45  ;;  %v10838_v22 = vmul.f32 0.2, %v13573_v30  ;;  %v10841_v28 = vmul.f32 0.2, %v13575_v41 }
 0x897   :  { %13572 = vst [vmem:[#allocation247_spill] sm:$0xff] %v10835_v9  ;;  %v13577_v43 = vld [vmem:[#allocation99_spill] sm:$0xff]  ;;  %v13581_v16 = vld [vmem:[#allocation104_spill] sm:$0xff]  ;;  %v13619_v63 = vld [vmem:[#allocation142_spill] sm:$0xff] }
 0x898   :  { %13574 = vst [vmem:[#allocation248_spill] sm:$0xff] %v10838_v22  ;;  %13576 = vst [vmem:[#allocation249_spill] sm:$0xff] %v10841_v28  ;;  %v10846_v44 = vmul.f32 0.2, %v13577_v43  ;;  %v13579_v60 = vld [vmem:[#allocation91_spill] sm:$0xff]  ;;  %v13585_v30 = vld [vmem:[#allocation128_spill] sm:$0xff] }
 0x899   :  { %v10849_v45 = vmul.f32 0.2, %v13579_v60  ;;  %v10852_v24 = vmul.f32 0.2, %v13581_v16  ;;  %v10857_v22 = vmul.f32 0.2, %v13585_v30 }
 0x89a   :  { %13578 = vst [vmem:[#allocation250_spill] sm:$0xff] %v10846_v44  ;;  %v13587_v41 = vld [vmem:[#allocation140_spill] sm:$0xff]  ;;  %v13593_v60 = vld [vmem:[#allocation147_spill] sm:$0xff]  ;;  %v13595_v16 = vld [vmem:[#allocation85_spill] sm:$0xff] }
 0x89b   :  { %13580 = vst [vmem:[#allocation251_spill] sm:$0xff] %v10849_v45  ;;  %13582 = vst [vmem:[#allocation252_spill] sm:$0xff] %v10852_v24  ;;  %v10860_v28 = vmul.f32 0.2, %v13587_v41  ;;  %v13589_v9 = vld [vmem:[#allocation52_spill] sm:$0xff]  ;;  %v13597_v44 = vld [vmem:[#allocation59_spill] sm:$0xff] }
 0x89c   :  { %13586 = vst [vmem:[#allocation253_spill] sm:$0xff] %v10857_v22  ;;  %v10863_v62 = vmul.f32 0.2, %v13589_v9  ;;  %v10868_v45 = vmul.f32 0.2, %v13593_v60  ;;  %v13601_v9 = vld [vmem:[#allocation129_spill] sm:$0xff] }
 0x89d   :  { %13588 = vst [vmem:[#allocation254_spill] sm:$0xff] %v10860_v28  ;;  %v10871_v24 = vmul.f32 0.2, %v13595_v16  ;;  %v10874_v23 = vmul.f32 0.2, %v13597_v44  ;;  %v13603_v28 = vld [vmem:[#allocation141_spill] sm:$0xff] }
 0x89e   :  { %13590 = vst [vmem:[#allocation255_spill] sm:$0xff] %v10863_v62  ;;  %13594 = vst [vmem:[#allocation147_spill] sm:$0xff] %v10868_v45  ;;  %v10879_v41 = vmul.f32 0.2, %v13599_v19  ;;  %v10882_v62 = vmul.f32 0.2, %v13601_v9 }
 0x89f   :  { %13596 = vst [vmem:[#allocation256_spill] sm:$0xff] %v10871_v24  ;;  %13598 = vst [vmem:[#allocation257_spill] sm:$0xff] %v10874_v23  ;;  %v10885_v43 = vmul.f32 0.2, %v13603_v28  ;;  %v13605_v17 = vld [vmem:[#allocation148_spill] sm:$0xff]  ;;  %v13607_v44 = vld [vmem:[#allocation87_spill] sm:$0xff] }
 0x8a0   :  { %13600 = vst [vmem:[#allocation258_spill] sm:$0xff] %v10879_v41  ;;  %13602 = vst [vmem:[#allocation259_spill] sm:$0xff] %v10882_v62  ;;  %v10890_v16 = vmul.f32 0.2, %v13605_v17  ;;  %v10893_v23 = vmul.f32 0.2, %v13607_v44 }
 0x8a1   :  { %13604 = vst [vmem:[#allocation260_spill] sm:$0xff] %v10885_v43  ;;  %v13609_v24 = vld [vmem:[#allocation64_spill] sm:$0xff]  ;;  %v13613_v9 = vld [vmem:[#allocation95_spill] sm:$0xff]  ;;  %v13617_v41 = vld [vmem:[#allocation130_spill] sm:$0xff]  ;;  %v10912_v44 = vmul.f32 0.2, %v13619_v63 }
 0x8a2   :  { %13606 = vst [vmem:[#allocation261_spill] sm:$0xff] %v10890_v16  ;;  %13608 = vst [vmem:[#allocation262_spill] sm:$0xff] %v10893_v23  ;;  %v10896_v38 = vmul.f32 0.2, %v13609_v24  ;;  %v10901_v62 = vmul.f32 0.2, %v13613_v9 }
 0x8a3   :  { %v13615_v28 = vld [vmem:[#allocation43_spill] sm:$0xff]  ;;  %v10907_v53 = vmul.f32 0.2, %v13617_v41  ;;  %13620 = vst [vmem:[#allocation267_spill] sm:$0xff] %v10912_v44  ;;  %v13621_v24 = vld [vmem:[#allocation38_spill] sm:$0xff]  ;;  %v13623_v23 = vld [vmem:[#allocation68_spill] sm:$0xff] }
 0x8a4   :  { %13610 = vst [vmem:[#allocation263_spill] sm:$0xff] %v10896_v38  ;;  %13614 = vst [vmem:[#allocation264_spill] sm:$0xff] %v10901_v62  ;;  %v10904_v43 = vmul.f32 0.2, %v13615_v28  ;;  %v10915_v38 = vmul.f32 0.2, %v13621_v24 }
 0x8a5   :  { %13618 = vst [vmem:[#allocation266_spill] sm:$0xff] %v10907_v53  ;;  %v10918_v19 = vmul.f32 0.2, %v13623_v23  ;;  %v13626_v28 = vld [vmem:[#allocation149_spill] sm:$0xff]  ;;  %v13627_v41 = vld [vmem:[#allocation150_spill] sm:$0xff]  ;;  %v13629_v9 = vld [vmem:[#allocation151_spill] sm:$0xff] }
 0x8a6   :  { %13616 = vst [vmem:[#allocation265_spill] sm:$0xff] %v10904_v43  ;;  %13622 = vst [vmem:[#allocation268_spill] sm:$0xff] %v10915_v38  ;;  %v10923_v43 = vmul.f32 0.2, %v13626_v28  ;;  %v10926_v53 = vmul.f32 0.2, %v13627_v41 }
 0x8a7   :  { %13624 = vst [vmem:[#allocation269_spill] sm:$0xff] %v10918_v19  ;;  %v10929_v55 = vmul.f32 0.2, %v13629_v9  ;;  %v13633_v24 = vld [vmem:[#allocation42_spill] sm:$0xff]  ;;  %v13635_v23 = vld [vmem:[#allocation152_spill] sm:$0xff]  ;;  %v13637_v44 = vld [vmem:[#allocation153_spill] sm:$0xff] }
 0x8a8   :  { %13628 = vst [vmem:[#allocation149_spill] sm:$0xff] %v10926_v53  ;;  %v10934_v38 = vmul.f32 0.2, %v13633_v24  ;;  %v10937_v19 = vmul.f32 0.2, %v13635_v23  ;;  %v13639_v7 = vld [vmem:[#allocation154_spill] sm:$0xff] }
 0x8a9   :  { %13630 = vst [vmem:[#allocation270_spill] sm:$0xff] %v10929_v55  ;;  %v10940_v27 = vmul.f32 0.2, %v13637_v44  ;;  %v10945_v41 = vmul.f32 0.2, %v13639_v7  ;;  %v13641_v9 = vld [vmem:[#allocation158_spill] sm:$0xff] }
 0x8aa   :  { %13634 = vst [vmem:[#allocation271_spill] sm:$0xff] %v10934_v38  ;;  %13636 = vst [vmem:[#allocation272_spill] sm:$0xff] %v10937_v19  ;;  %v10948_v55 = vmul.f32 0.2, %v13641_v9  ;;  %v13643_v63 = vld [vmem:[#allocation120_spill] sm:$0xff]  ;;  %v13645_v24 = vld [vmem:[#allocation122_spill] sm:$0xff] }
 0x8ab   :  { %13638 = vst [vmem:[#allocation273_spill] sm:$0xff] %v10940_v27  ;;  %13640 = vst [vmem:[#allocation274_spill] sm:$0xff] %v10945_v41  ;;  %v13646_v44 = vld [vmem:[#allocation33_spill] sm:$0xff]  ;;  %v13647_v19 = vld [vmem:[#allocation200_spill] sm:$0xff] }
 0x8ac   :  { %13642 = vst [vmem:[#allocation275_spill] sm:$0xff] %v10948_v55  ;;  %v13648_v49 = vld [vmem:[#allocation46_spill] sm:$0xff]  ;;  %v13649_v9 = vld [vmem:[#allocation47_spill] sm:$0xff]  ;;  %v13653_v23 = vld [vmem:[#allocation76_spill] sm:$0xff] }
 0x8ad   :  { %v13651_v51 = vld [vmem:[#allocation102_spill] sm:$0xff]  ;;  %v13654_v25 = vld [vmem:[#allocation205_spill] sm:$0xff]  ;;  %v13655_v27 = vld [vmem:[#allocation107_spill] sm:$0xff] }
 0x8ae   :  { %v13660_v3 = vld [vmem:[#allocation211_spill] sm:$0xff]  ;;  %v13661_v61 = vld [vmem:[#allocation121_spill] sm:$0xff]  ;;  %v13663_v35 = vld [vmem:[#allocation212_spill] sm:$0xff] }
 0x8af   :  { %v13662_v34 = vld [vmem:[#allocation123_spill] sm:$0xff]  ;;  %v13664_v31 = vld [vmem:[#allocation125_spill] sm:$0xff]  ;;  %v13665_v18 = vld [vmem:[#allocation116_spill] sm:$0xff] }
 0x8b0   :  { %v13666_v56 = vld [vmem:[#allocation215_spill] sm:$0xff]  ;;  %v13667_v46 = vld [vmem:[#allocation117_spill] sm:$0xff]  ;;  %v13669_v11 = vld [vmem:[#allocation56_spill] sm:$0xff] }
 0x8b1   :  { %v13671_v4 = vld [vmem:[#allocation57_spill] sm:$0xff]  ;;  %v13683_v7 = vld [vmem:[#allocation39_spill] sm:$0xff]  ;;  %v13689_v21 = vld [vmem:[#allocation94_spill] sm:$0xff] }
 0x8b2   :  { %v13685_v36 = vld [vmem:[#allocation73_spill] sm:$0xff]  ;;  %v13703_v59 = vld [vmem:[#allocation239_spill] sm:$0xff]  ;;  %v13704_v1 = vld [vmem:[#allocation98_spill] sm:$0xff] }
 0x8b3   :  { %v13714_v57 = vld [vmem:[#allocation54_spill] sm:$0xff]  ;;  %v13716_v52 = vld [vmem:[#allocation75_spill] sm:$0xff]  ;;  %v13732_v39 = vld [vmem:[#allocation52_spill] sm:$0xff] }
 0x8b4   :  { %v13720_v40 = vld [vmem:[#allocation139_spill] sm:$0xff]  ;;  %v13734_v14 = vld [vmem:[#allocation85_spill] sm:$0xff]  ;;  %v13746_v2 = vld [vmem:[#allocation64_spill] sm:$0xff] }
 0x8b5   :  { %v13731_v29 = vld [vmem:[#allocation255_spill] sm:$0xff]  ;;  %v13762_v0 = vld [vmem:[#allocation42_spill] sm:$0xff]  ;;  %v13770_v45 = vld [vmem:[#allocation100_spill] sm:$0xff] }
 0x8b6   :  { %v13744_v20 = vld [vmem:[#allocation87_spill] sm:$0xff]  ;;  %v13773_v26 = vld [vmem:[#allocation40_spill] sm:$0xff]  ;;  %v13780_v22 = vld [vmem:[#allocation66_spill] sm:$0xff] }
 0x8b7   :  { %v13771_v62 = vld [vmem:[#allocation155_spill] sm:$0xff]  ;;  %v13774_v42 = vld [vmem:[#allocation164_spill] sm:$0xff]  ;;  %v13781_v30 = vld [vmem:[#allocation165_spill] sm:$0xff] }
 0x8b8   :  { %v13772_v53 = vmax.f32 %v13770_v45, %v13771_v62  ;;  %v13775_v54 = vmax.f32 %v13773_v26, %v13774_v42  ;;  %v13777_v38 = vld [vmem:[#allocation131_spill] sm:$0xff]  ;;  %v13778_v37 = vld [vmem:[#allocation156_spill] sm:$0xff]  ;;  %v13782_v50 = vmax.f32 %v13780_v22, %v13781_v30  ;;  %v13785_v41 = vld [vmem:[#allocation157_spill] sm:$0xff] }
 0x8b9   :  { %v13779_v10 = vmax.f32 %v13777_v38, %v13778_v37  ;;  %v13784_v17 = vld [vmem:[#allocation143_spill] sm:$0xff]  ;;  %v13787_v58 = vld [vmem:[#allocation60_spill] sm:$0xff]  ;;  %v13788_v6 = vld [vmem:[#allocation166_spill] sm:$0xff] }
 0x8ba   :  { %v11132_v47 = vpack.c.bf16 %v13775_v54, %v13772_v53  ;;  %v13786_v33 = vmax.f32 %v13784_v17, %v13785_v41  ;;  %v13789_v15 = vmax.f32 %v13787_v58, %v13788_v6  ;;  %v13791_v45 = vld [vmem:[#allocation83_spill] sm:$0xff]  ;;  %v13799_v22 = vld [vmem:[#allocation160_spill] sm:$0xff]  ;;  %v13806_v6 = vld [vmem:[#allocation161_spill] sm:$0xff] }
 0x8bb   :  { %v11140_v55 = vpack.c.bf16 %v13782_v50, %v13779_v10  ;;  %v13792_v26 = vld [vmem:[#allocation159_spill] sm:$0xff]  ;;  %v13801_v10 = vld [vmem:[#allocation133_spill] sm:$0xff]  ;;  %v13802_v30 = vld [vmem:[#allocation168_spill] sm:$0xff] }
 0x8bc   :  { %13776 = vst [vmem:[#allocation120_spill] sm:$0xff] %v11132_v47  ;;  %v11148_v62 = vpack.c.bf16 %v13789_v15, %v13786_v33  ;;  %v13793_v53 = vmax.f32 %v13791_v45, %v13792_v26  ;;  %v13794_v42 = vld [vmem:[#allocation31_spill] sm:$0xff]  ;;  %v13805_v41 = vld [vmem:[#allocation92_spill] sm:$0xff]  ;;  %v13809_v33 = vld [vmem:[#allocation169_spill] sm:$0xff] }
 0x8bd   :  { %13783 = vst [vmem:[#allocation122_spill] sm:$0xff] %v11140_v55  ;;  %v13795_v54 = vld [vmem:[#allocation167_spill] sm:$0xff]  ;;  %v13803_v55 = vmax.f32 %v13801_v10, %v13802_v30  ;;  %v13807_v15 = vmax.f32 %v13805_v41, %v13806_v6  ;;  %v13808_v58 = vld [vmem:[#allocation88_spill] sm:$0xff]  ;;  %v13812_v26 = vld [vmem:[#allocation69_spill] sm:$0xff] }
 0x8be   :  { %13790 = vst [vmem:[#allocation33_spill] sm:$0xff] %v11148_v62  ;;  %v13796_v47 = vmax.f32 %v13794_v42, %v13795_v54  ;;  %v13798_v37 = vld [vmem:[#allocation67_spill] sm:$0xff]  ;;  %v13810_v62 = vmax.f32 %v13808_v58, %v13809_v33  ;;  %v13813_v42 = vld [vmem:[#allocation162_spill] sm:$0xff]  ;;  %v13826_v6 = vld [vmem:[#allocation101_spill] sm:$0xff] }
 0x8bf   :  { %v13800_v50 = vmax.f32 %v13798_v37, %v13799_v22  ;;  %v13816_v54 = vld [vmem:[#allocation170_spill] sm:$0xff]  ;;  %v13819_v22 = vld [vmem:[#allocation132_spill] sm:$0xff]  ;;  %v13820_v10 = vld [vmem:[#allocation163_spill] sm:$0xff] }
 0x8c0   :  { %v11156_v38 = vpack.c.bf16 %v13796_v47, %v13793_v53  ;;  %v11172_v45 = vpack.c.bf16 %v13810_v62, %v13807_v15  ;;  %v13814_v47 = vmax.f32 %v13812_v26, %v13813_v42  ;;  %v13815_v53 = vld [vmem:[#allocation65_spill] sm:$0xff]  ;;  %v13823_v30 = vld [vmem:[#allocation171_spill] sm:$0xff]  ;;  %v13827_v58 = vld [vmem:[#allocation172_spill] sm:$0xff] }
 0x8c1   :  { %v11164_v17 = vpack.c.bf16 %v13803_v55, %v13800_v50  ;;  %v13821_v55 = vmax.f32 %v13819_v22, %v13820_v10  ;;  %v13822_v50 = vld [vmem:[#allocation96_spill] sm:$0xff]  ;;  %v13828_v62 = vmax.f32 %v13826_v6, %v13827_v58  ;;  %v13829_v15 = vld [vmem:[#allocation145_spill] sm:$0xff]  ;;  %v13833_v42 = vld [vmem:[#allocation134_spill] sm:$0xff] }
 0x8c2   :  { %13797 = vst [vmem:[#allocation200_spill] sm:$0xff] %v11156_v38  ;;  %13811 = vst [vmem:[#allocation47_spill] sm:$0xff] %v11172_v45  ;;  %v13817_v38 = vmax.f32 %v13815_v53, %v13816_v54  ;;  %v13830_v33 = vld [vmem:[#allocation180_spill] sm:$0xff]  ;;  %v13834_v53 = vld [vmem:[#allocation173_spill] sm:$0xff] }
 0x8c3   :  { %13804 = vst [vmem:[#allocation46_spill] sm:$0xff] %v11164_v17  ;;  %v13824_v17 = vmax.f32 %v13822_v50, %v13823_v30  ;;  %v13831_v45 = vmax.f32 %v13829_v15, %v13830_v33  ;;  %v13837_v54 = vld [vmem:[#allocation181_spill] sm:$0xff]  ;;  %v13840_v10 = vld [vmem:[#allocation144_spill] sm:$0xff]  ;;  %v13841_v50 = vld [vmem:[#allocation174_spill] sm:$0xff] }
 0x8c4   :  { %v11180_v37 = vpack.c.bf16 %v13817_v38, %v13814_v47  ;;  %v13835_v38 = vmax.f32 %v13833_v42, %v13834_v53  ;;  %v13836_v47 = vld [vmem:[#allocation106_spill] sm:$0xff]  ;;  %v13847_v58 = vld [vmem:[#allocation51_spill] sm:$0xff]  ;;  %v13854_v53 = vld [vmem:[#allocation44_spill] sm:$0xff] }
 0x8c5   :  { %v11188_v41 = vpack.c.bf16 %v13824_v17, %v13821_v55  ;;  %v11196_v26 = vpack.c.bf16 %v13831_v45, %v13828_v62  ;;  %v13842_v17 = vmax.f32 %v13840_v10, %v13841_v50  ;;  %v13843_v55 = vld [vmem:[#allocation84_spill] sm:$0xff]  ;;  %v13844_v30 = vld [vmem:[#allocation182_spill] sm:$0xff]  ;;  %v13848_v15 = vld [vmem:[#allocation175_spill] sm:$0xff] }
 0x8c6   :  { %13818 = vst [vmem:[#allocation102_spill] sm:$0xff] %v11180_v37  ;;  %v13838_v37 = vmax.f32 %v13836_v47, %v13837_v54  ;;  %v13849_v45 = vmax.f32 %v13847_v58, %v13848_v15  ;;  %v13850_v62 = vld [vmem:[#allocation32_spill] sm:$0xff]  ;;  %v13851_v33 = vld [vmem:[#allocation183_spill] sm:$0xff]  ;;  %v13867_v15 = vld [vmem:[#allocation70_spill] sm:$0xff] }
 0x8c7   :  { %13825 = vst [vmem:[#allocation76_spill] sm:$0xff] %v11188_v41  ;;  %13832 = vst [vmem:[#allocation205_spill] sm:$0xff] %v11196_v26  ;;  %v13845_v41 = vmax.f32 %v13843_v55, %v13844_v30  ;;  %v13852_v26 = vmax.f32 %v13850_v62, %v13851_v33  ;;  %v13855_v47 = vld [vmem:[#allocation176_spill] sm:$0xff]  ;;  %v13861_v50 = vld [vmem:[#allocation55_spill] sm:$0xff] }
 0x8c8   :  { %v11204_v22 = vpack.c.bf16 %v13838_v37, %v13835_v38  ;;  %v13856_v37 = vmax.f32 %v13854_v53, %v13855_v47  ;;  %v13857_v38 = vld [vmem:[#allocation93_spill] sm:$0xff]  ;;  %v13858_v54 = vld [vmem:[#allocation184_spill] sm:$0xff]  ;;  %v13868_v62 = vld [vmem:[#allocation178_spill] sm:$0xff] }
 0x8c9   :  { %v11212_v6 = vpack.c.bf16 %v13845_v41, %v13842_v17  ;;  %v11220_v42 = vpack.c.bf16 %v13852_v26, %v13849_v45  ;;  %v13862_v55 = vld [vmem:[#allocation177_spill] sm:$0xff]  ;;  %v13869_v26 = vmax.f32 %v13867_v15, %v13868_v62  ;;  %v13870_v45 = vld [vmem:[#allocation136_spill] sm:$0xff]  ;;  %v13871_v33 = vld [vmem:[#allocation186_spill] sm:$0xff] }
 0x8ca   :  { %13839 = vst [vmem:[#allocation107_spill] sm:$0xff] %v11204_v22  ;;  %v13859_v22 = vmax.f32 %v13857_v38, %v13858_v54  ;;  %v13863_v41 = vmax.f32 %v13861_v50, %v13862_v55  ;;  %v13864_v17 = vld [vmem:[#allocation45_spill] sm:$0xff]  ;;  %v13873_v47 = vld [vmem:[#allocation135_spill] sm:$0xff]  ;;  %v13879_v55 = vld [vmem:[#allocation146_spill] sm:$0xff] }
 0x8cb   :  { %13846 = vst [vmem:[#allocation211_spill] sm:$0xff] %v11212_v6  ;;  %13853 = vst [vmem:[#allocation121_spill] sm:$0xff] %v11220_v42  ;;  %v13865_v30 = vld [vmem:[#allocation185_spill] sm:$0xff]  ;;  %v13872_v42 = vmax.f32 %v13870_v45, %v13871_v33  ;;  %v13874_v38 = vld [vmem:[#allocation179_spill] sm:$0xff] }
 0x8cc   :  { %v11228_v10 = vpack.c.bf16 %v13859_v22, %v13856_v37  ;;  %v13866_v6 = vmax.f32 %v13864_v17, %v13865_v30  ;;  %v13875_v22 = vmax.f32 %v13873_v47, %v13874_v38  ;;  %v13876_v37 = vld [vmem:[#allocation103_spill] sm:$0xff]  ;;  %v13880_v16 = vld [vmem:[#allocation188_spill] sm:$0xff]  ;;  %v13885_v62 = vld [vmem:[#allocation189_spill] sm:$0xff] }
 0x8cd   :  { %v11244_v53 = vpack.c.bf16 %v13872_v42, %v13869_v26  ;;  %v13877_v54 = vld [vmem:[#allocation187_spill] sm:$0xff]  ;;  %v13881_v17 = vmax.f32 %v13879_v55, %v13880_v16  ;;  %v13884_v15 = vld [vmem:[#allocation108_spill] sm:$0xff]  ;;  %v13887_v42 = vld [vmem:[#allocation197_spill] sm:$0xff] }
 0x8ce   :  { %13860 = vst [vmem:[#allocation123_spill] sm:$0xff] %v11228_v10  ;;  %v11236_v58 = vpack.c.bf16 %v13866_v6, %v13863_v41  ;;  %v13878_v10 = vmax.f32 %v13876_v37, %v13877_v54  ;;  %v13882_v6 = vld [vmem:[#allocation196_spill] sm:$0xff]  ;;  %v13886_v45 = vmax.f32 %v13884_v15, %v13885_v62  ;;  %v13888_v26 = vmax.f32 %v13645_v24, %v13887_v42  ;;  %v13889_v47 = vld [vmem:[#allocation138_spill] sm:$0xff]  ;;  %v13895_v55 = vld [vmem:[#allocation49_spill] sm:$0xff] }
 0x8cf   :  { %v13883_v41 = vmax.f32 %v13643_v63, %v13882_v6  ;;  %v13890_v38 = vld [vmem:[#allocation190_spill] sm:$0xff]  ;;  %v13896_v63 = vld [vmem:[#allocation191_spill] sm:$0xff]  ;;  %v13901_v24 = vld [vmem:[#allocation192_spill] sm:$0xff]  ;;  %v13903_v42 = vmax.f32 %v13648_v49, %v13647_v19 }
 0x8d0   :  { %v4561_v50 = vpack.c.bf16 %v13878_v10, %v13875_v22  ;;  %v11266_v33 = vpack.c.bf16 %v13888_v26, %v13886_v45  ;;  %v13891_v37 = vmax.f32 %v13889_v47, %v13890_v38  ;;  %v13892_v10 = vld [vmem:[#allocation124_spill] sm:$0xff]  ;;  %v13893_v22 = vld [vmem:[#allocation198_spill] sm:$0xff]  ;;  %v13898_v6 = vld [vmem:[#allocation199_spill] sm:$0xff] }
 0x8d1   :  { %v11258_v30 = vpack.c.bf16 %v13883_v41, %v13881_v17  ;;  %v13894_v54 = vmax.f32 %v13892_v10, %v13893_v22  ;;  %v13897_v17 = vmax.f32 %v13895_v55, %v13896_v63  ;;  %v13899_v41 = vmax.f32 %v13646_v44, %v13898_v6  ;;  %v13900_v62 = vld [vmem:[#allocation110_spill] sm:$0xff]  ;;  %v13904_v47 = vld [vmem:[#allocation112_spill] sm:$0xff]  ;;  %v13905_v38 = vld [vmem:[#allocation193_spill] sm:$0xff] }
 0x8d2   :  { %v13902_v45 = vmax.f32 %v13900_v62, %v13901_v24  ;;  %v13907_v10 = vld [vmem:[#allocation34_spill] sm:$0xff]  ;;  %v13915_v19 = vld [vmem:[#allocation195_spill] sm:$0xff] }
 0x8d3   :  { %v11274_v16 = vpack.c.bf16 %v13894_v54, %v13891_v37  ;;  %v11282_v15 = vpack.c.bf16 %v13899_v41, %v13897_v17  ;;  %v13906_v37 = vmax.f32 %v13904_v47, %v13905_v38  ;;  %v13908_v22 = vmax.f32 %v13474_v32, %v13907_v10  ;;  %v13909_v55 = vld [vmem:[#allocation114_spill] sm:$0xff]  ;;  %v13912_v17 = vld [vmem:[#allocation201_spill] sm:$0xff]  ;;  %v13919_v47 = vld [vmem:[#allocation36_spill] sm:$0xff] }
 0x8d4   :  { %v11290_v26 = vpack.c.bf16 %v13903_v42, %v13902_v45  ;;  %v13910_v44 = vld [vmem:[#allocation194_spill] sm:$0xff]  ;;  %v13913_v6 = vmax.f32 %v13649_v9, %v13912_v17  ;;  %v13920_v32 = vld [vmem:[#allocation203_spill] sm:$0xff]  ;;  %v13923_v9 = vld [vmem:[#allocation204_spill] sm:$0xff] }
 0x8d5   :  { %v11298_v54 = vpack.c.bf16 %v13908_v22, %v13906_v37  ;;  %v13911_v63 = vmax.f32 %v13909_v55, %v13910_v44  ;;  %v13914_v62 = vld [vmem:[#allocation118_spill] sm:$0xff]  ;;  %v13921_v38 = vmax.f32 %v13919_v47, %v13920_v32  ;;  %v13922_v37 = vmax.f32 %v13661_v61, %v13660_v3 }
 0x8d6   :  { %v13916_v49 = vmax.f32 %v13914_v62, %v13915_v19  ;;  %v13917_v24 = vld [vmem:[#allocation202_spill] sm:$0xff]  ;;  %v13924_v22 = vmax.f32 %v13653_v23, %v13923_v9  ;;  %v13925_v55 = vmax.f32 %v10204_v13, %v10692_v12  ;;  %v13931_v62 = vmax.f32 %v13664_v31, %v13663_v35  ;;  %v13932_v19 = vld [vmem:[#allocation111_spill] sm:$0xff]  ;;  %v13945_v31 = vld [vmem:[#allocation209_spill] sm:$0xff] }
 0x8d7   :  { %v11306_v41 = vpack.c.bf16 %v13913_v6, %v13911_v63  ;;  %v13918_v45 = vmax.f32 %v13651_v51, %v13917_v24  ;;  %v11322_v10 = vpack.c.bf16 %v13922_v37, %v13921_v38  ;;  %v13926_v51 = vmax.f32 %v13655_v27, %v13654_v25  ;;  %v13928_v6 = vld [vmem:[#allocation109_spill] sm:$0xff]  ;;  %v13929_v3 = vld [vmem:[#allocation206_spill] sm:$0xff]  ;;  %v13933_v13 = vld [vmem:[#allocation207_spill] sm:$0xff] }
 0x8d8   :  { %v11330_v44 = vpack.c.bf16 %v13925_v55, %v13924_v22  ;;  %v13927_v63 = vmax.f32 %v13662_v34, %v10695_v48  ;;  %v13930_v61 = vmax.f32 %v13928_v6, %v13929_v3  ;;  %v13934_v12 = vmax.f32 %v13932_v19, %v13933_v13  ;;  %v13936_v24 = vld [vmem:[#allocation213_spill] sm:$0xff]  ;;  %v13940_v34 = vld [vmem:[#allocation208_spill] sm:$0xff]  ;;  %v13942_v47 = vld [vmem:[#allocation214_spill] sm:$0xff] }
 0x8d9   :  { %v11314_v42 = vpack.c.bf16 %v13918_v45, %v13916_v49  ;;  %v13935_v49 = vld [vmem:[#allocation28_spill] sm:$0xff]  ;;  %v13939_v27 = vld [vmem:[#allocation113_spill] sm:$0xff]  ;;  %v13943_v32 = vmax.f32 %v13665_v18, %v13942_v47  ;;  %v13944_v37 = vld [vmem:[#allocation115_spill] sm:$0xff]  ;;  %v13947_v9 = vmax.f32 %v13667_v46, %v13666_v56  ;;  %v13956_v13 = vmax.f32 %v13519_v8, %v10747_v5 }
 0x8da   :  { %v11338_v17 = vpack.c.bf16 %v13927_v63, %v13926_v51  ;;  %v11346_v23 = vpack.c.bf16 %v13931_v62, %v13930_v61  ;;  %v13937_v45 = vmax.f32 %v13935_v49, %v13936_v24  ;;  %v13941_v48 = vmax.f32 %v13939_v27, %v13940_v34  ;;  %v13948_v55 = vld [vmem:[#allocation119_spill] sm:$0xff]  ;;  %v13949_v51 = vld [vmem:[#allocation210_spill] sm:$0xff]  ;;  %v13952_v3 = vld [vmem:[#allocation216_spill] sm:$0xff] }
 0x8db   :  { %v13946_v35 = vmax.f32 %v13944_v37, %v13945_v31  ;;  %v13950_v63 = vmax.f32 %v13948_v55, %v13949_v51  ;;  %v13951_v6 = vld [vmem:[#allocation27_spill] sm:$0xff]  ;;  %v13954_v18 = vld [vmem:[#allocation217_spill] sm:$0xff]  ;;  %v13957_v46 = vld [vmem:[#allocation218_spill] sm:$0xff] }
 0x8dc   :  { %v11354_v25 = vpack.c.bf16 %v13937_v45, %v13934_v12  ;;  %v11362_v38 = vpack.c.bf16 %v13943_v32, %v13941_v48  ;;  %v13953_v61 = vmax.f32 %v13951_v6, %v13952_v3  ;;  %v13955_v19 = vmax.f32 %v13669_v11, %v13954_v18  ;;  %v13959_v49 = vld [vmem:[#allocation71_spill] sm:$0xff]  ;;  %v13960_v24 = vld [vmem:[#allocation89_spill] sm:$0xff]  ;;  %v13962_v34 = vld [vmem:[#allocation78_spill] sm:$0xff] }
 0x8dd   :  { %v11370_v22 = vpack.c.bf16 %v13947_v9, %v13946_v35  ;;  %v13958_v56 = vmax.f32 %v13671_v4, %v13957_v46  ;;  %v13961_v45 = vmax.f32 %v13959_v49, %v13960_v24  ;;  %v13963_v48 = vld [vmem:[#allocation219_spill] sm:$0xff]  ;;  %v13966_v37 = vld [vmem:[#allocation225_spill] sm:$0xff]  ;;  %v13969_v8 = vld [vmem:[#allocation220_spill] sm:$0xff] }
 0x8de   :  { %13938 = vst [vmem:[#allocation212_spill] sm:$0xff] %v11354_v25  ;;  %v11378_v62 = vpack.c.bf16 %v13953_v61, %v13950_v63  ;;  %v11386_v12 = vpack.c.bf16 %v13956_v13, %v13955_v19  ;;  %v13964_v47 = vmax.f32 %v13962_v34, %v13963_v48  ;;  %v13965_v32 = vld [vmem:[#allocation79_spill] sm:$0xff]  ;;  %v13968_v35 = vld [vmem:[#allocation61_spill] sm:$0xff]  ;;  %v13971_v9 = vld [vmem:[#allocation58_spill] sm:$0xff] }
 0x8df   :  { %v11394_v27 = vpack.c.bf16 %v13961_v45, %v13958_v56  ;;  %v13967_v31 = vmax.f32 %v13965_v32, %v13966_v37  ;;  %v13970_v5 = vmax.f32 %v13968_v35, %v13969_v8  ;;  %v13972_v55 = vld [vmem:[#allocation226_spill] sm:$0xff]  ;;  %v13974_v63 = vld [vmem:[#allocation53_spill] sm:$0xff]  ;;  %v13977_v61 = vld [vmem:[#allocation227_spill] sm:$0xff] }
 0x8e0   :  { %v13973_v51 = vmax.f32 %v13971_v9, %v13972_v55  ;;  %v13975_v6 = vld [vmem:[#allocation221_spill] sm:$0xff]  ;;  %v13978_v18 = vmax.f32 %v13683_v7, %v13977_v61  ;;  %v13980_v13 = vld [vmem:[#allocation72_spill] sm:$0xff]  ;;  %v13981_v46 = vld [vmem:[#allocation222_spill] sm:$0xff] }
 0x8e1   :  { %v11402_v11 = vpack.c.bf16 %v13967_v31, %v13964_v47  ;;  %v13976_v3 = vmax.f32 %v13974_v63, %v13975_v6  ;;  %v13982_v56 = vmax.f32 %v13980_v13, %v13981_v46  ;;  %v13983_v49 = vld [vmem:[#allocation228_spill] sm:$0xff]  ;;  %v13986_v34 = vld [vmem:[#allocation37_spill] sm:$0xff]  ;;  %v13987_v48 = vld [vmem:[#allocation223_spill] sm:$0xff] }
 0x8e2   :  { %v11410_v4 = vpack.c.bf16 %v13973_v51, %v13970_v5  ;;  %v13984_v24 = vmax.f32 %v13685_v36, %v13983_v49  ;;  %v13988_v47 = vmax.f32 %v13986_v34, %v13987_v48  ;;  %v13989_v32 = vld [vmem:[#allocation80_spill] sm:$0xff]  ;;  %v13990_v37 = vld [vmem:[#allocation229_spill] sm:$0xff]  ;;  %v13995_v9 = vld [vmem:[#allocation230_spill] sm:$0xff] }
 0x8e3   :  { %v11418_v19 = vpack.c.bf16 %v13978_v18, %v13976_v3  ;;  %v13991_v31 = vmax.f32 %v13989_v32, %v13990_v37  ;;  %v13992_v8 = vld [vmem:[#allocation97_spill] sm:$0xff]  ;;  %v13993_v7 = vld [vmem:[#allocation224_spill] sm:$0xff]  ;;  %v13996_v55 = vmax.f32 %v13689_v21, %v13995_v9  ;;  %v13997_v63 = vld [vmem:[#allocation86_spill] sm:$0xff]  ;;  %v14000_v3 = vmax.f32 %v13704_v1, %v13703_v59 }
 0x8e4   :  { %v11426_v45 = vpack.c.bf16 %v13984_v24, %v13982_v56  ;;  %v13994_v5 = vmax.f32 %v13992_v8, %v13993_v7  ;;  %v13998_v36 = vld [vmem:[#allocation231_spill] sm:$0xff]  ;;  %v14001_v18 = vld [vmem:[#allocation74_spill] sm:$0xff]  ;;  %v14002_v13 = vld [vmem:[#allocation232_spill] sm:$0xff] }
 0x8e5   :  { %13979 = vst [vmem:[#allocation125_spill] sm:$0xff] %v11418_v19  ;;  %v11434_v35 = vpack.c.bf16 %v13991_v31, %v13988_v47  ;;  %v13999_v6 = vmax.f32 %v13997_v63, %v13998_v36  ;;  %v14003_v46 = vmax.f32 %v14001_v18, %v14002_v13  ;;  %v14004_v56 = vld [vmem:[#allocation90_spill] sm:$0xff]  ;;  %v14005_v49 = vld [vmem:[#allocation240_spill] sm:$0xff]  ;;  %v14007_v48 = vld [vmem:[#allocation77_spill] sm:$0xff] }
 0x8e6   :  { %13985 = vst [vmem:[#allocation116_spill] sm:$0xff] %v11426_v45  ;;  %v11442_v51 = vpack.c.bf16 %v13996_v55, %v13994_v5  ;;  %v14006_v24 = vmax.f32 %v14004_v56, %v14005_v49  ;;  %v14008_v21 = vld [vmem:[#allocation233_spill] sm:$0xff]  ;;  %v14010_v32 = vld [vmem:[#allocation48_spill] sm:$0xff]  ;;  %v14013_v7 = vld [vmem:[#allocation62_spill] sm:$0xff] }
 0x8e7   :  { %v11450_v61 = vpack.c.bf16 %v14000_v3, %v13999_v6  ;;  %v14009_v47 = vmax.f32 %v14007_v48, %v14008_v21  ;;  %v14011_v37 = vld [vmem:[#allocation241_spill] sm:$0xff]  ;;  %v14014_v1 = vld [vmem:[#allocation234_spill] sm:$0xff]  ;;  %v14020_v6 = vld [vmem:[#allocation235_spill] sm:$0xff] }
 0x8e8   :  { %v11458_v34 = vpack.c.bf16 %v14006_v24, %v14003_v46  ;;  %v14012_v31 = vmax.f32 %v14010_v32, %v14011_v37  ;;  %v14015_v59 = vmax.f32 %v14013_v7, %v14014_v1  ;;  %v14016_v5 = vld [vmem:[#allocation126_spill] sm:$0xff]  ;;  %v14019_v36 = vld [vmem:[#allocation41_spill] sm:$0xff]  ;;  %v14023_v13 = vld [vmem:[#allocation243_spill] sm:$0xff] }
 0x8e9   :  { %v14017_v9 = vld [vmem:[#allocation242_spill] sm:$0xff]  ;;  %v14021_v3 = vmax.f32 %v14019_v36, %v14020_v6  ;;  %v14026_v49 = vld [vmem:[#allocation35_spill] sm:$0xff]  ;;  %v14027_v24 = vld [vmem:[#allocation236_spill] sm:$0xff] }
 0x8ea   :  { %v11466_v8 = vpack.c.bf16 %v14012_v31, %v14009_v47  ;;  %v14018_v55 = vmax.f32 %v14016_v5, %v14017_v9  ;;  %v14022_v18 = vld [vmem:[#allocation50_spill] sm:$0xff]  ;;  %v14028_v48 = vmax.f32 %v14026_v49, %v14027_v24  ;;  %v14029_v21 = vld [vmem:[#allocation63_spill] sm:$0xff]  ;;  %v14030_v47 = vld [vmem:[#allocation244_spill] sm:$0xff] }
 0x8eb   :  { %v14024_v46 = vmax.f32 %v14022_v18, %v14023_v13  ;;  %v14031_v32 = vmax.f32 %v14029_v21, %v14030_v47  ;;  %v14033_v31 = vld [vmem:[#allocation137_spill] sm:$0xff]  ;;  %v14039_v36 = vld [vmem:[#allocation238_spill] sm:$0xff]  ;;  %v14044_v49 = vld [vmem:[#allocation247_spill] sm:$0xff] }
 0x8ec   :  { %v11474_v63 = vpack.c.bf16 %v14018_v55, %v14015_v59  ;;  %v14034_v7 = vld [vmem:[#allocation237_spill] sm:$0xff] }
 0x8ed   :  { %v11482_v56 = vpack.c.bf16 %v14024_v46, %v14021_v3  ;;  %v11490_v37 = vpack.c.bf16 %v14031_v32, %v14028_v48  ;;  %v14035_v1 = vmax.f32 %v14033_v31, %v14034_v7  ;;  %v14036_v59 = vld [vmem:[#allocation245_spill] sm:$0xff]  ;;  %v14041_v3 = vld [vmem:[#allocation246_spill] sm:$0xff]  ;;  %v14043_v46 = vld [vmem:[#allocation127_spill] sm:$0xff]  ;;  %v14046_v48 = vmax.f32 %v13732_v39, %v13731_v29 }
 0x8ee   :  { %v14037_v5 = vmax.f32 %v13714_v57, %v14036_v59  ;;  %v14038_v55 = vld [vmem:[#allocation81_spill] sm:$0xff]  ;;  %v14042_v18 = vmax.f32 %v13716_v52, %v14041_v3  ;;  %v14045_v24 = vmax.f32 %v14043_v46, %v14044_v49  ;;  %v14047_v57 = vld [vmem:[#allocation248_spill] sm:$0xff]  ;;  %v14049_v32 = vld [vmem:[#allocation147_spill] sm:$0xff] }
 0x8ef   :  { %14025 = vst [vmem:[#allocation215_spill] sm:$0xff] %v11482_v56  ;;  %14032 = vst [vmem:[#allocation117_spill] sm:$0xff] %v11490_v37  ;;  %v14040_v6 = vmax.f32 %v14038_v55, %v14039_v36  ;;  %v14048_v47 = vmax.f32 %v13720_v40, %v14047_v57  ;;  %v14050_v31 = vmax.f32 %v13593_v60, %v14049_v32  ;;  %v14052_v52 = vld [vmem:[#allocation249_spill] sm:$0xff]  ;;  %v14057_v39 = vld [vmem:[#allocation250_spill] sm:$0xff] }
 0x8f0   :  { %v11498_v9 = vpack.c.bf16 %v14037_v5, %v14035_v1  ;;  %v11514_v21 = vpack.c.bf16 %v14046_v48, %v14045_v24  ;;  %v14051_v1 = vld [vmem:[#allocation82_spill] sm:$0xff]  ;;  %v14054_v5 = vld [vmem:[#allocation256_spill] sm:$0xff]  ;;  %v14059_v3 = vld [vmem:[#allocation59_spill] sm:$0xff] }
 0x8f1   :  { %v11506_v13 = vpack.c.bf16 %v14042_v18, %v14040_v6  ;;  %v11522_v7 = vpack.c.bf16 %v14050_v31, %v14048_v47  ;;  %v14053_v59 = vmax.f32 %v14051_v1, %v14052_v52  ;;  %v14055_v55 = vmax.f32 %v13734_v14, %v14054_v5  ;;  %v14056_v6 = vld [vmem:[#allocation99_spill] sm:$0xff]  ;;  %v14060_v18 = vld [vmem:[#allocation257_spill] sm:$0xff]  ;;  %v14066_v57 = vld [vmem:[#allocation258_spill] sm:$0xff] }
 0x8f2   :  { %v14058_v29 = vmax.f32 %v14056_v6, %v14057_v39  ;;  %v14061_v46 = vmax.f32 %v14059_v3, %v14060_v18  ;;  %v14062_v49 = vld [vmem:[#allocation91_spill] sm:$0xff]  ;;  %v14065_v48 = vld [vmem:[#allocation105_spill] sm:$0xff]  ;;  %v14069_v31 = vld [vmem:[#allocation104_spill] sm:$0xff] }
 0x8f3   :  { %v11530_v36 = vpack.c.bf16 %v14055_v55, %v14053_v59  ;;  %v14063_v60 = vld [vmem:[#allocation251_spill] sm:$0xff]  ;;  %v14067_v47 = vmax.f32 %v14065_v48, %v14066_v57  ;;  %v14070_v14 = vld [vmem:[#allocation252_spill] sm:$0xff]  ;;  %v14072_v52 = vld [vmem:[#allocation129_spill] sm:$0xff] }
 0x8f4   :  { %v11538_v40 = vpack.c.bf16 %v14061_v46, %v14058_v29  ;;  %v14064_v24 = vmax.f32 %v14062_v49, %v14063_v60  ;;  %v14071_v1 = vmax.f32 %v14069_v31, %v14070_v14  ;;  %v14073_v59 = vld [vmem:[#allocation259_spill] sm:$0xff]  ;;  %v14076_v6 = vld [vmem:[#allocation128_spill] sm:$0xff]  ;;  %v14077_v39 = vld [vmem:[#allocation253_spill] sm:$0xff] }
 0x8f5   :  { %v14074_v5 = vmax.f32 %v14072_v52, %v14073_v59  ;;  %v14078_v29 = vmax.f32 %v14076_v6, %v14077_v39  ;;  %v14079_v3 = vld [vmem:[#allocation141_spill] sm:$0xff]  ;;  %v14080_v18 = vld [vmem:[#allocation260_spill] sm:$0xff]  ;;  %v14083_v48 = vld [vmem:[#allocation254_spill] sm:$0xff]  ;;  %v14090_v52 = vmax.f32 %v13626_v28, %v10923_v43 }
 0x8f6   :  { %v11546_v32 = vpack.c.bf16 %v14067_v47, %v14064_v24  ;;  %v14081_v46 = vmax.f32 %v14079_v3, %v14080_v18  ;;  %v14082_v60 = vld [vmem:[#allocation140_spill] sm:$0xff]  ;;  %v14086_v47 = vld [vmem:[#allocation261_spill] sm:$0xff]  ;;  %v14088_v14 = vld [vmem:[#allocation262_spill] sm:$0xff] }
 0x8f7   :  { %v11554_v55 = vpack.c.bf16 %v14074_v5, %v14071_v1  ;;  %v14084_v24 = vmax.f32 %v14082_v60, %v14083_v48  ;;  %v14085_v57 = vld [vmem:[#allocation148_spill] sm:$0xff]  ;;  %v14089_v1 = vmax.f32 %v13744_v20, %v14088_v14  ;;  %v14091_v5 = vld [vmem:[#allocation263_spill] sm:$0xff]  ;;  %v14093_v39 = vld [vmem:[#allocation150_spill] sm:$0xff] }
 0x8f8   :  { %14068 = vst [vmem:[#allocation56_spill] sm:$0xff] %v11546_v32  ;;  %v11562_v49 = vpack.c.bf16 %v14081_v46, %v14078_v29  ;;  %v14087_v32 = vmax.f32 %v14085_v57, %v14086_v47  ;;  %v14092_v6 = vmax.f32 %v13746_v2, %v14091_v5  ;;  %v14094_v29 = vld [vmem:[#allocation149_spill] sm:$0xff]  ;;  %v14096_v46 = vld [vmem:[#allocation95_spill] sm:$0xff]  ;;  %v14097_v60 = vld [vmem:[#allocation264_spill] sm:$0xff] }
 0x8f9   :  { %14075 = vst [vmem:[#allocation57_spill] sm:$0xff] %v11554_v55  ;;  %v11578_v59 = vpack.c.bf16 %v14090_v52, %v14089_v1  ;;  %v14095_v3 = vmax.f32 %v14093_v39, %v14094_v29  ;;  %v14099_v48 = vld [vmem:[#allocation151_spill] sm:$0xff]  ;;  %v14103_v43 = vld [vmem:[#allocation265_spill] sm:$0xff]  ;;  %v14107_v52 = vld [vmem:[#allocation130_spill] sm:$0xff] }
 0x8fa   :  { %v11570_v31 = vpack.c.bf16 %v14087_v32, %v14084_v24  ;;  %v14098_v32 = vmax.f32 %v14096_v46, %v14097_v60  ;;  %v14100_v24 = vld [vmem:[#allocation270_spill] sm:$0xff]  ;;  %v14102_v47 = vld [vmem:[#allocation43_spill] sm:$0xff]  ;;  %v14110_v39 = vld [vmem:[#allocation152_spill] sm:$0xff] }
 0x8fb   :  { %v11586_v18 = vpack.c.bf16 %v14095_v3, %v14092_v6  ;;  %v14101_v57 = vmax.f32 %v14099_v48, %v14100_v24  ;;  %v14104_v28 = vmax.f32 %v14102_v47, %v14103_v43  ;;  %v14105_v14 = vld [vmem:[#allocation271_spill] sm:$0xff]  ;;  %v14108_v5 = vld [vmem:[#allocation266_spill] sm:$0xff]  ;;  %v14111_v29 = vld [vmem:[#allocation272_spill] sm:$0xff] }
 0x8fc   :  { %v14106_v1 = vmax.f32 %v13762_v0, %v14105_v14  ;;  %v14109_v6 = vmax.f32 %v14107_v52, %v14108_v5  ;;  %v14112_v3 = vmax.f32 %v14110_v39, %v14111_v29  ;;  %v14114_v60 = vld [vmem:[#allocation142_spill] sm:$0xff]  ;;  %v14115_v48 = vld [vmem:[#allocation267_spill] sm:$0xff]  ;;  %v14117_v24 = vld [vmem:[#allocation153_spill] sm:$0xff] }
 0x8fd   :  { %v11594_v20 = vpack.c.bf16 %v14101_v57, %v14098_v32  ;;  %v14116_v32 = vmax.f32 %v14114_v60, %v14115_v48  ;;  %v14118_v57 = vld [vmem:[#allocation273_spill] sm:$0xff]  ;;  %v14121_v43 = vld [vmem:[#allocation38_spill] sm:$0xff]  ;;  %v14122_v0 = vld [vmem:[#allocation268_spill] sm:$0xff] }
 0x8fe   :  { %v11602_v2 = vpack.c.bf16 %v14106_v1, %v14104_v28  ;;  %v11610_v46 = vpack.c.bf16 %v14112_v3, %v14109_v6  ;;  %v14119_v55 = vmax.f32 %v14117_v24, %v14118_v57  ;;  %v14123_v28 = vmax.f32 %v14121_v43, %v14122_v0  ;;  %v14124_v14 = vld [vmem:[#allocation154_spill] sm:$0xff]  ;;  %v14127_v5 = vld [vmem:[#allocation68_spill] sm:$0xff]  ;;  %v14128_v39 = vld [vmem:[#allocation269_spill] sm:$0xff] }
 0x8ff   :  { %v14125_v1 = vld [vmem:[#allocation274_spill] sm:$0xff]  ;;  %v14129_v6 = vmax.f32 %v14127_v5, %v14128_v39  ;;  %v14131_v3 = vld [vmem:[#allocation275_spill] sm:$0xff] }
 0x900   :  { %14113 = vst [vmem:[#allocation39_spill] sm:$0xff] %v11610_v46  ;;  %v11618_v47 = vpack.c.bf16 %v14119_v55, %v14116_v32  ;;  %v14126_v56 = vmax.f32 %v14124_v14, %v14125_v1  ;;  %v14130_v29 = vld [vmem:[#allocation158_spill] sm:$0xff] }
 0x901   :  { %v14132_v46 = vmax.f32 %v14130_v29, %v14131_v3 }
 0x902   :  { %14120 = vst [vmem:[#allocation73_spill] sm:$0xff] %v11618_v47  ;;  %v11626_v52 = vpack.c.bf16 %v14126_v56, %v14123_v28 }
 0x903   :  { %v11634_v60 = vpack.c.bf16 %v14132_v46, %v14129_v6 }
 0x904   :  { %5907 = dma.done.wait [#allocation7 + $0x4], 16384 }
 0x905   :  { %5908 = vsyncadd [#allocation7 + $0x4], 4294950912  ;;  %v14133_v55 = vld [vmem:[#allocation122_spill] sm:$0xff]  ;;  %5135 = vmatprep.mubr.bf16.mxu1 %v4561_v50  ;;  %v4615_v48 = vld [vmem:[#allocation6 + $0x8] sm:$0xff] }
 0x906   :  { %4786 = vmatprep.mubr.bf16.mxu0 %v14133_v55  ;;  %v4614_v32 = vld [vmem:[#allocation6] sm:$0xff]  ;;  %v4617_v24 = vld [vmem:[#allocation6 + $0x18] sm:$0xff]  ;;  %4754 = vmatprep.subr.bf16.mxu0 %v4615_v48  ;;  %v4616_v56 = vld [vmem:[#allocation6 + $0x10] sm:$0xff] }
 0x907   :  { %4755 = vmatpush1.bf16.msra.mxu0 %v4614_v32  ;;  %v4619_v57 = vld [vmem:[#allocation6 + $0x28] sm:$0xff]  ;;  %v4618_v43 = vld [vmem:[#allocation6 + $0x20] sm:$0xff]  ;;  %v4621_v0 = vld [vmem:[#allocation6 + $0x38] sm:$0xff] }
 0x908   :  { %4756 = vmatprep.subr.bf16.mxu0 %v4617_v24  ;;  %v4620_v46 = vld [vmem:[#allocation6 + $0x30] sm:$0xff]  ;;  %v4623_v28 = vld [vmem:[#allocation6 + $0x48] sm:$0xff]  ;;  %v4622_v14 = vld [vmem:[#allocation6 + $0x40] sm:$0xff] }
 0x909   :  { %v4625_v50 = vld [vmem:[#allocation6 + $0x58] sm:$0xff]  ;;  %v4624_v1 = vld [vmem:[#allocation6 + $0x50] sm:$0xff]  ;;  %v4627_v5 = vld [vmem:[#allocation6 + $0x68] sm:$0xff] }
 0x90a   :  { %v4626_v39 = vld [vmem:[#allocation6 + $0x60] sm:$0xff]  ;;  %v11637_v6 = vld [vmem:[#allocation6 + $0x308] sm:$0xff]  ;;  %v4629_v3 = vld [vmem:[#allocation6 + $0x78] sm:$0xff] }
 0x90b   :  { %4757 = vmatpush1.bf16.msra.mxu0 %v4616_v56  ;;  %v11639_v29 = vld [vmem:[#allocation6 + $0x300] sm:$0xff]  ;;  %5451 = vmatprep.subr.bf16.mxu1 %v11637_v6  ;;  %v11642_v55 = vld [vmem:[#allocation6 + $0x318] sm:$0xff]  ;;  %v11646_v48 = vld [vmem:[#allocation6 + $0x310] sm:$0xff] }
 0x90c   :  { %4758 = vmatprep.subr.bf16.mxu0 %v4619_v57  ;;  %5467 = vmatpush1.bf16.msra.mxu1 %v11639_v29  ;;  %v4628_v32 = vld [vmem:[#allocation6 + $0x70] sm:$0xff]  ;;  %v11648_v24 = vld [vmem:[#allocation6 + $0x328] sm:$0xff]  ;;  %v11652_v57 = vld [vmem:[#allocation6 + $0x320] sm:$0xff] }
 0x90d   :  { %5452 = vmatprep.subr.bf16.mxu1 %v11642_v55  ;;  %v4631_v56 = vld [vmem:[#allocation6 + $0x88] sm:$0xff]  ;;  %v4638_v47 = vld [vmem:[#allocation6 + $0xc0] sm:$0xff]  ;;  %v11678_v37 = vld [vmem:[#allocation6 + $0x378] sm:$0xff] }
 0x90e   :  { %14136 = vst [vmem:[#allocation98_spill] sm:$0xff] %v11678_v37  ;;  %v4640_v19 = vld [vmem:[#allocation6 + $0xd0] sm:$0xff]  ;;  %v11684_v45 = vld [vmem:[#allocation6 + $0x388] sm:$0xff]  ;;  %v4642_v25 = vld [vmem:[#allocation6 + $0xe0] sm:$0xff] }
 0x90f   :  { %4759 = vmatpush1.bf16.msra.mxu0 %v4618_v43  ;;  %v4630_v43 = vld [vmem:[#allocation6 + $0x80] sm:$0xff]  ;;  %14138 = vst [vmem:[#allocation75_spill] sm:$0xff] %v11684_v45 }
 0x910   :  { %4760 = vmatprep.subr.bf16.mxu0 %v4621_v0  ;;  %5468 = vmatpush1.bf16.msra.mxu1 %v11646_v48  ;;  %v11654_v0 = vld [vmem:[#allocation6 + $0x338] sm:$0xff] }
 0x911   :  { %5453 = vmatprep.subr.bf16.mxu1 %v11648_v24 }
 0x913   :  { %4761 = vmatpush1.bf16.msra.mxu0 %v4620_v46  ;;  %v4633_v46 = vld [vmem:[#allocation6 + $0x98] sm:$0xff] }
 0x914   :  { %4762 = vmatprep.subr.bf16.mxu0 %v4623_v28  ;;  %5469 = vmatpush1.bf16.msra.mxu1 %v11652_v57  ;;  %v11658_v28 = vld [vmem:[#allocation6 + $0x330] sm:$0xff] }
 0x915   :  { %5454 = vmatprep.subr.bf16.mxu1 %v11654_v0 }
 0x917   :  { %4763 = vmatpush1.bf16.msra.mxu0 %v4622_v14  ;;  %v4632_v14 = vld [vmem:[#allocation6 + $0x90] sm:$0xff] }
 0x918   :  { %4764 = vmatprep.subr.bf16.mxu0 %v4625_v50  ;;  %v11660_v50 = vld [vmem:[#allocation6 + $0x348] sm:$0xff]  ;;  %5470 = vmatpush1.bf16.msra.mxu1 %v11658_v28 }
 0x919   :  { %5455 = vmatprep.subr.bf16.mxu1 %v11660_v50 }
 0x91b   :  { %4765 = vmatpush1.bf16.msra.mxu0 %v4624_v1  ;;  %v4635_v1 = vld [vmem:[#allocation6 + $0xa8] sm:$0xff] }
 0x91c   :  { %4766 = vmatprep.subr.bf16.mxu0 %v4627_v5  ;;  %v11664_v5 = vld [vmem:[#allocation6 + $0x340] sm:$0xff] }
 0x91d   :  { %5471 = vmatpush1.bf16.msra.mxu1 %v11664_v5 }
 0x91f   :  { %4767 = vmatpush1.bf16.msra.mxu0 %v4626_v39  ;;  %v4634_v39 = vld [vmem:[#allocation6 + $0xa0] sm:$0xff] }
 0x920   :  { %4768 = vmatprep.subr.bf16.mxu0 %v4629_v3  ;;  %v11666_v3 = vld [vmem:[#allocation6 + $0x358] sm:$0xff] }
 0x921   :  { %5456 = vmatprep.subr.bf16.mxu1 %v11666_v3 }
 0x923   :  { %4769 = vmatpush1.bf16.msra.mxu0 %v4628_v32  ;;  %v4637_v32 = vld [vmem:[#allocation6 + $0xb8] sm:$0xff] }
 0x924   :  { %4770 = vmatprep.subr.bf16.mxu0 %v4631_v56  ;;  %v11670_v56 = vld [vmem:[#allocation6 + $0x350] sm:$0xff] }
 0x925   :  { %5472 = vmatpush1.bf16.msra.mxu1 %v11670_v56 }
 0x927   :  { %4771 = vmatpush1.bf16.msra.mxu0 %v4630_v43  ;;  %v4636_v43 = vld [vmem:[#allocation6 + $0xb0] sm:$0xff] }
 0x928   :  { %4772 = vmatprep.subr.bf16.mxu0 %v4633_v46  ;;  %v11672_v46 = vld [vmem:[#allocation6 + $0x368] sm:$0xff] }
 0x929   :  { %14134 = vst [vmem:[#allocation94_spill] sm:$0xff] %v11672_v46  ;;  %5457 = vmatprep.subr.bf16.mxu1 %v11672_v46  ;;  %v11707_v46 = vld [vmem:[#allocation6 + $0x3b0] sm:$0xff] }
 0x92b   :  { %4773 = vmatpush1.bf16.msra.mxu0 %v4632_v14  ;;  %v4639_v14 = vld [vmem:[#allocation6 + $0xc8] sm:$0xff] }
 0x92c   :  { %4774 = vmatprep.subr.bf16.mxu0 %v4635_v1  ;;  %v11676_v1 = vld [vmem:[#allocation6 + $0x360] sm:$0xff] }
 0x92d   :  { %14135 = vst [vmem:[#allocation239_spill] sm:$0xff] %v11676_v1  ;;  %5473 = vmatpush1.bf16.msra.mxu1 %v11676_v1  ;;  %v11690_v1 = vld [vmem:[#allocation6 + $0x398] sm:$0xff] }
 0x92e   :  { %5458 = vmatprep.subr.bf16.mxu1 %v11678_v37  ;;  %14140 = vst [vmem:[#allocation255_spill] sm:$0xff] %v11690_v1  ;;  %v4644_v37 = vld [vmem:[#allocation6 + $0xf0] sm:$0xff] }
 0x92f   :  { %4775 = vmatpush1.bf16.msra.mxu0 %v4634_v39  ;;  %v4641_v39 = vld [vmem:[#allocation6 + $0xd8] sm:$0xff] }
 0x930   :  { %4776 = vmatprep.subr.bf16.mxu0 %v4637_v32  ;;  %v11682_v32 = vld [vmem:[#allocation6 + $0x370] sm:$0xff] }
 0x931   :  { %14137 = vst [vmem:[#allocation54_spill] sm:$0xff] %v11682_v32  ;;  %5474 = vmatpush1.bf16.msra.mxu1 %v11682_v32  ;;  %v11696_v32 = vld [vmem:[#allocation6 + $0x3a8] sm:$0xff] }
 0x932   :  { %5459 = vmatprep.subr.bf16.mxu1 %v11684_v45  ;;  %14142 = vst [vmem:[#allocation85_spill] sm:$0xff] %v11696_v32  ;;  %v4646_v45 = vld [vmem:[#allocation6 + $0x100] sm:$0xff] }
 0x933   :  { %4777 = vmatpush1.bf16.msra.mxu0 %v4636_v43  ;;  %v4643_v43 = vld [vmem:[#allocation6 + $0xe8] sm:$0xff] }
 0x934   :  { %4778 = vmatprep.subr.bf16.mxu0 %v4639_v14  ;;  %v11688_v14 = vld [vmem:[#allocation6 + $0x380] sm:$0xff] }
 0x935   :  { %14139 = vst [vmem:[#allocation139_spill] sm:$0xff] %v11688_v14  ;;  %5475 = vmatpush1.bf16.msra.mxu1 %v11688_v14  ;;  %v4649_v14 = vld [vmem:[#allocation6 + $0x118] sm:$0xff] }
 0x936   :  { %5460 = vmatprep.subr.bf16.mxu1 %v11690_v1  ;;  %v14144_v1 = vld [vmem:[#allocation120_spill] sm:$0xff] }
 0x937   :  { %4779 = vmatpush1.bf16.msra.mxu0 %v4638_v47  ;;  %v4645_v47 = vld [vmem:[#allocation6 + $0xf8] sm:$0xff] }
 0x938   :  { %4780 = vmatprep.subr.bf16.mxu0 %v4641_v39  ;;  %v11694_v39 = vld [vmem:[#allocation6 + $0x390] sm:$0xff] }
 0x939   :  { %14141 = vst [vmem:[#allocation52_spill] sm:$0xff] %v11694_v39  ;;  %5476 = vmatpush1.bf16.msra.mxu1 %v11694_v39  ;;  %v14148_v39 = vld [vmem:[#allocation205_spill] sm:$0xff] }
 0x93a   :  { %5461 = vmatprep.subr.bf16.mxu1 %v11696_v32  ;;  %v11710_v32 = vld [vmem:[#allocation6 + $0x3c8] sm:$0xff] }
 0x93b   :  { %4781 = vmatpush1.bf16.msra.mxu0 %v4640_v19  ;;  %v4647_v19 = vld [vmem:[#allocation6 + $0x108] sm:$0xff]  ;;  %14146 = vst [vmem:[#allocation64_spill] sm:$0xff] %v11710_v32 }
 0x93c   :  { %4782 = vmatprep.subr.bf16.mxu0 %v4643_v43  ;;  %v11700_v43 = vld [vmem:[#allocation6 + $0x3a0] sm:$0xff] }
 0x93d   :  { %14143 = vst [vmem:[#allocation87_spill] sm:$0xff] %v11700_v43  ;;  %5477 = vmatpush1.bf16.msra.mxu1 %v11700_v43  ;;  %v4653_v43 = vld [vmem:[#allocation6 + $0x138] sm:$0xff] }
 0x93f   :  { %4783 = vmatpush1.bf16.msra.mxu0 %v4642_v25  ;;  %v11702_v25 = vld [vmem:[#allocation6 + $0x3b8] sm:$0xff] }
 0x940   :  { %4784 = vmatprep.subr.bf16.mxu0 %v4645_v47  ;;  %v14145_v47 = vld [vmem:[#allocation107_spill] sm:$0xff]  ;;  %5462 = vmatprep.subr.bf16.mxu1 %v11702_v25 }
 0x941   :  { %5478 = vmatpush1.bf16.msra.mxu1 %v11707_v46 }
 0x942   :  { %5463 = vmatprep.subr.bf16.mxu1 %v11710_v32  ;;  %v11724_v32 = vld [vmem:[#allocation6 + $0x3e8] sm:$0xff] }
 0x943   :  { %4785 = vmatpush1.bf16.msra.mxu0 %v4644_v37  ;;  %v4648_v37 = vld [vmem:[#allocation6 + $0x110] sm:$0xff]  ;;  %14150 = vst [vmem:[#allocation155_spill] sm:$0xff] %v11724_v32 }
 0x944   :  { %4867 = vmatprep.subr.bf16.mxu0 %v4647_v19  ;;  %v4651_v19 = vld [vmem:[#allocation6 + $0x128] sm:$0xff] }
 0x946   :  { %4787 = vmatmul.mubr.bf16.vlgmr.msra.gmra.mrb[80].mxu0 %v14144_v1  ;;  %v11714_v1 = vld [vmem:[#allocation6 + $0x3c0] sm:$0xff] }
 0x947   :  { %4868 = vmatpush1.bf16.msra.mxu0 %v4646_v45  ;;  %4796 = vmatprep.mubr.bf16.mxu0 %v14145_v47  ;;  %14147 = vst [vmem:[#allocation42_spill] sm:$0xff] %v11714_v1  ;;  %v4650_v45 = vld [vmem:[#allocation6 + $0x120] sm:$0xff]  ;;  %v11716_v47 = vld [vmem:[#allocation6 + $0x3d8] sm:$0xff] }
 0x948   :  { %4869 = vmatprep.subr.bf16.mxu0 %v4649_v14  ;;  %5479 = vmatpush1.bf16.msra.mxu1 %v11714_v1  ;;  %v11721_v14 = vld [vmem:[#allocation6 + $0x3d0] sm:$0xff]  ;;  %v4657_v1 = vld [vmem:[#allocation6 + $0x158] sm:$0xff] }
 0x949   :  { %14149 = vst [vmem:[#allocation100_spill] sm:$0xff] %v11721_v14  ;;  %5464 = vmatprep.subr.bf16.mxu1 %v11716_v47 }
 0x94b   :  { %4870 = vmatpush1.bf16.msra.mxu0 %v4648_v37  ;;  %v4652_v37 = vld [vmem:[#allocation6 + $0x130] sm:$0xff] }
 0x94c   :  { %4871 = vmatprep.subr.bf16.mxu0 %v4651_v19  ;;  %v4655_v19 = vld [vmem:[#allocation6 + $0x148] sm:$0xff]  ;;  %5480 = vmatpush1.bf16.msra.mxu1 %v11721_v14  ;;  %v4661_v14 = vld [vmem:[#allocation6 + $0x178] sm:$0xff] }
 0x94d   :  { %5465 = vmatprep.subr.bf16.mxu1 %v11724_v32  ;;  %v4659_v32 = vld [vmem:[#allocation6 + $0x168] sm:$0xff] }
 0x94e   :  { %4797 = vmatmul.mubr.bf16.gmra.mrb[84].mxu0 %v14148_v39  ;;  %v11728_v39 = vld [vmem:[#allocation6 + $0x3e0] sm:$0xff] }
 0x94f   :  { %4872 = vmatpush1.bf16.msra.mxu0 %v4650_v45  ;;  %4806 = vmatprep.mubr.bf16.mxu0 %v11266_v33  ;;  %v4654_v45 = vld [vmem:[#allocation6 + $0x140] sm:$0xff]  ;;  %v11730_v33 = vld [vmem:[#allocation6 + $0x3f8] sm:$0xff] }
 0x950   :  { %4873 = vmatprep.subr.bf16.mxu0 %v4653_v43  ;;  %5481 = vmatpush1.bf16.msra.mxu1 %v11728_v39  ;;  %v11735_v43 = vld [vmem:[#allocation6 + $0x3f0] sm:$0xff] }
 0x951   :  { %5466 = vmatprep.subr.bf16.mxu1 %v11730_v33 }
 0x953   :  { %4874 = vmatpush1.bf16.msra.mxu0 %v4652_v37  ;;  %v4656_v37 = vld [vmem:[#allocation6 + $0x150] sm:$0xff] }
 0x954   :  { %4875 = vmatprep.subr.bf16.mxu0 %v4655_v19  ;;  %5482 = vmatpush1.bf16.msra.mxu1 %v11735_v43  ;;  %v4658_v19 = vld [vmem:[#allocation6 + $0x160] sm:$0xff] }
 0x956   :  { %4807 = vmatmul.mubr.bf16.gmra.mrb[88].mxu0 %v11258_v30  ;;  %v4660_v30 = vld [vmem:[#allocation6 + $0x170] sm:$0xff] }
 0x957   :  { %4876 = vmatpush1.bf16.msra.mxu0 %v4654_v45  ;;  %4816 = vmatprep.mubr.bf16.mxu0 %v11330_v44  ;;  %v4663_v44 = vld [vmem:[#allocation6 + $0x188] sm:$0xff]  ;;  %v4665_v45 = vld [vmem:[#allocation6 + $0x198] sm:$0xff] }
 0x958   :  { %4877 = vmatprep.subr.bf16.mxu0 %v4657_v1  ;;  %5136 = vmatmul.mubr.bf16.vlgmr.msra.gmra.mrb[160].mxu1 %v11244_v53  ;;  %v4662_v1 = vld [vmem:[#allocation6 + $0x180] sm:$0xff]  ;;  %v4664_v53 = vld [vmem:[#allocation6 + $0x190] sm:$0xff] }
 0x959   :  { %5145 = vmatprep.mubr.bf16.mxu1 %v11314_v42  ;;  %v4667_v42 = vld [vmem:[#allocation6 + $0x1a8] sm:$0xff] }
 0x95b   :  { %4878 = vmatpush1.bf16.msra.mxu0 %v4656_v37  ;;  %v4682_v37 = vld [vmem:[#allocation6 + $0x220] sm:$0xff] }
 0x95c   :  { %4879 = vmatprep.subr.bf16.mxu0 %v4659_v32  ;;  %v4681_v32 = vld [vmem:[#allocation6 + $0x218] sm:$0xff] }
 0x95e   :  { %4817 = vmatmul.mubr.bf16.gmra.mrb[92].mxu0 %v11322_v10  ;;  %v4666_v10 = vld [vmem:[#allocation6 + $0x1a0] sm:$0xff] }
 0x95f   :  { %4880 = vmatpush1.bf16.msra.mxu0 %v4658_v19  ;;  %4826 = vmatprep.mubr.bf16.mxu0 %v11394_v27  ;;  %v4669_v27 = vld [vmem:[#allocation6 + $0x1b8] sm:$0xff] }
 0x960   :  { %4881 = vmatprep.subr.bf16.mxu0 %v4661_v14  ;;  %5146 = vmatmul.mubr.bf16.gmra.mrb[164].mxu1 %v11306_v41  ;;  %v4668_v41 = vld [vmem:[#allocation6 + $0x1b0] sm:$0xff]  ;;  %v4685_v19 = vld [vmem:[#allocation6 + $0x238] sm:$0xff] }
 0x961   :  { %5155 = vmatprep.mubr.bf16.mxu1 %v11378_v62  ;;  %v4671_v62 = vld [vmem:[#allocation6 + $0x1c8] sm:$0xff]  ;;  %v14152_v14 = vld [vmem:[#allocation33_spill] sm:$0xff] }
 0x963   :  { %4882 = vmatpush1.bf16.msra.mxu0 %v4660_v30  ;;  %v14154_v30 = vld [vmem:[#allocation211_spill] sm:$0xff] }
 0x964   :  { %4883 = vmatprep.subr.bf16.mxu0 %v4663_v44  ;;  %v4686_v44 = vld [vmem:[#allocation6 + $0x240] sm:$0xff] }
 0x966   :  { %4827 = vmatmul.mubr.bf16.gmra.mrb[96].mxu0 %v11386_v12  ;;  %v4670_v12 = vld [vmem:[#allocation6 + $0x1c0] sm:$0xff] }
 0x967   :  { %4884 = vmatpush1.bf16.msra.mxu0 %v4662_v1  ;;  %4836 = vmatprep.mubr.bf16.mxu0 %v11458_v34  ;;  %v4673_v34 = vld [vmem:[#allocation6 + $0x1d8] sm:$0xff] }
 0x968   :  { %4885 = vmatprep.subr.bf16.mxu0 %v4665_v45  ;;  %5156 = vmatmul.mubr.bf16.gmra.mrb[168].mxu1 %v11370_v22  ;;  %v4672_v22 = vld [vmem:[#allocation6 + $0x1d0] sm:$0xff]  ;;  %v4689_v1 = vld [vmem:[#allocation6 + $0x258] sm:$0xff] }
 0x969   :  { %5165 = vmatprep.mubr.bf16.mxu1 %v11442_v51  ;;  %v4675_v51 = vld [vmem:[#allocation6 + $0x1e8] sm:$0xff]  ;;  %v4688_v45 = vld [vmem:[#allocation6 + $0x250] sm:$0xff] }
 0x96b   :  { %4886 = vmatpush1.bf16.msra.mxu0 %v4664_v53  ;;  %v4690_v53 = vld [vmem:[#allocation6 + $0x260] sm:$0xff] }
 0x96c   :  { %4887 = vmatprep.subr.bf16.mxu0 %v4667_v42  ;;  %v4693_v42 = vld [vmem:[#allocation6 + $0x278] sm:$0xff] }
 0x96e   :  { %4837 = vmatmul.mubr.bf16.gmra.mrb[100].mxu0 %v11450_v61  ;;  %v4674_v61 = vld [vmem:[#allocation6 + $0x1e0] sm:$0xff] }
 0x96f   :  { %4888 = vmatpush1.bf16.msra.mxu0 %v4666_v10  ;;  %4846 = vmatprep.mubr.bf16.mxu0 %v11522_v7  ;;  %v4677_v7 = vld [vmem:[#allocation6 + $0x1f8] sm:$0xff]  ;;  %v4695_v10 = vld [vmem:[#allocation6 + $0x288] sm:$0xff] }
 0x970   :  { %4889 = vmatprep.subr.bf16.mxu0 %v4669_v27  ;;  %5166 = vmatmul.mubr.bf16.gmra.mrb[172].mxu1 %v11434_v35  ;;  %v14151_v35 = vld [vmem:[#allocation200_spill] sm:$0xff]  ;;  %v4697_v27 = vld [vmem:[#allocation6 + $0x298] sm:$0xff] }
 0x971   :  { %5175 = vmatprep.mubr.bf16.mxu1 %v11506_v13  ;;  %v4676_v13 = vld [vmem:[#allocation6 + $0x1f0] sm:$0xff] }
 0x973   :  { %4890 = vmatpush1.bf16.msra.mxu0 %v4668_v41  ;;  %v4699_v41 = vld [vmem:[#allocation6 + $0x2a8] sm:$0xff] }
 0x974   :  { %4891 = vmatprep.subr.bf16.mxu0 %v4671_v62  ;;  %v4701_v62 = vld [vmem:[#allocation6 + $0x2b8] sm:$0xff] }
 0x976   :  { %4847 = vmatmul.mubr.bf16.gmra.mrb[104].mxu0 %v11514_v21  ;;  %v4679_v21 = vld [vmem:[#allocation6 + $0x208] sm:$0xff] }
 0x977   :  { %4892 = vmatpush1.bf16.msra.mxu0 %v4670_v12  ;;  %4856 = vmatprep.mubr.bf16.mxu0 %v11586_v18  ;;  %v4678_v18 = vld [vmem:[#allocation6 + $0x200] sm:$0xff]  ;;  %v4703_v12 = vld [vmem:[#allocation6 + $0x2c8] sm:$0xff] }
 0x978   :  { %4893 = vmatprep.subr.bf16.mxu0 %v4673_v34  ;;  %5176 = vmatmul.mubr.bf16.gmra.mrb[176].mxu1 %v11498_v9  ;;  %v14153_v9 = vld [vmem:[#allocation121_spill] sm:$0xff] }
 0x979   :  { %5185 = vmatprep.mubr.bf16.mxu1 %v11570_v31  ;;  %v4680_v31 = vld [vmem:[#allocation6 + $0x210] sm:$0xff]  ;;  %v4705_v34 = vld [vmem:[#allocation6 + $0x2d8] sm:$0xff] }
 0x97b   :  { %4894 = vmatpush1.bf16.msra.mxu0 %v4672_v22  ;;  %v4707_v22 = vld [vmem:[#allocation6 + $0x2e8] sm:$0xff] }
 0x97c   :  { %4895 = vmatprep.subr.bf16.mxu0 %v4675_v51  ;;  %v4709_v51 = vld [vmem:[#allocation6 + $0x2f8] sm:$0xff] }
 0x97e   :  { %4857 = vmatmul.mubr.bf16.gmra.mrb[108].mxu0 %v11578_v59  ;;  %v4683_v59 = vld [vmem:[#allocation6 + $0x228] sm:$0xff] }
 0x97f   :  { %4896 = vmatpush1.bf16.msra.mxu0 %v4674_v61  ;;  %4899 = vmatprep.mubr.bf16.mxu0 %v14151_v35  ;;  %v4708_v61 = vld [vmem:[#allocation6 + $0x2f0] sm:$0xff]  ;;  %v14176_v35 = vld [vmem:[#allocation42_spill] sm:$0xff] }
 0x980   :  { %4897 = vmatprep.subr.bf16.mxu0 %v4677_v7  ;;  %5186 = vmatmul.mubr.bf16.gmra.mrb[180].mxu1 %v11562_v49  ;;  %v4684_v49 = vld [vmem:[#allocation6 + $0x230] sm:$0xff] }
 0x981   :  { %5195 = vmatprep.mubr.bf16.mxu1 %v11634_v60  ;;  %v4687_v60 = vld [vmem:[#allocation6 + $0x248] sm:$0xff] }
 0x982   :  { %v14175_v7 = vld [vmem:[#allocation56_spill] sm:$0xff] }
 0x983   :  { %4898 = vmatpush1.bf16.msra.mxu0 %v4676_v13  ;;  %v14177_v13 = vld [vmem:[#allocation73_spill] sm:$0xff] }
 0x984   :  { %4980 = vmatprep.subr.bf16.mxu0 %v4679_v21  ;;  %v14178_v21 = vld [vmem:[#allocation100_spill] sm:$0xff] }
 0x986   :  { %4900 = vmatmul.mubr.bf16.vlgmr.msra.gmra.mrb[80].mxu0 %v14152_v14 }
 0x987   :  { %4981 = vmatpush1.bf16.msra.mxu0 %v4678_v18  ;;  %4909 = vmatprep.mubr.bf16.mxu0 %v14153_v9  ;;  %v14179_v18 = vld [vmem:[#allocation155_spill] sm:$0xff] }
 0x988   :  { %4982 = vmatprep.subr.bf16.mxu0 %v4681_v32  ;;  %5196 = vmatmul.mubr.bf16.gmra.mrb[184].mxu1 %v11626_v52  ;;  %v4691_v52 = vld [vmem:[#allocation6 + $0x268] sm:$0xff] }
 0x989   :  { %v14180_v32 = vld [vmem:[#allocation39_spill] sm:$0xff] }
 0x98b   :  { %4983 = vmatpush1.bf16.msra.mxu0 %v4680_v31 }
 0x98c   :  { %4984 = vmatprep.subr.bf16.mxu0 %v4683_v59 }
 0x98e   :  { %4910 = vmatmul.mubr.bf16.gmra.mrb[84].mxu0 %v14154_v30 }
 0x98f   :  { %4985 = vmatpush1.bf16.msra.mxu0 %v4682_v37  ;;  %4919 = vmatprep.mubr.bf16.mxu0 %v11282_v15  ;;  %v4692_v15 = vld [vmem:[#allocation6 + $0x270] sm:$0xff] }
 0x990   :  { %4986 = vmatprep.subr.bf16.mxu0 %v4685_v19 }
 0x993   :  { %4987 = vmatpush1.bf16.msra.mxu0 %v4684_v49 }
 0x994   :  { %4988 = vmatprep.subr.bf16.mxu0 %v4687_v60 }
 0x996   :  { %4920 = vmatmul.mubr.bf16.gmra.mrb[88].mxu0 %v11274_v16  ;;  %v4694_v16 = vld [vmem:[#allocation6 + $0x280] sm:$0xff] }
 0x997   :  { %4989 = vmatpush1.bf16.msra.mxu0 %v4686_v44  ;;  %4929 = vmatprep.mubr.bf16.mxu0 %v11346_v23  ;;  %v4696_v23 = vld [vmem:[#allocation6 + $0x290] sm:$0xff] }
 0x998   :  { %4990 = vmatprep.subr.bf16.mxu0 %v4689_v1 }
 0x99b   :  { %4991 = vmatpush1.bf16.msra.mxu0 %v4688_v45 }
 0x99c   :  { %4992 = vmatprep.subr.bf16.mxu0 %v4691_v52 }
 0x99e   :  { %4930 = vmatmul.mubr.bf16.gmra.mrb[92].mxu0 %v11338_v17  ;;  %v4698_v17 = vld [vmem:[#allocation6 + $0x2a0] sm:$0xff] }
 0x99f   :  { %4993 = vmatpush1.bf16.msra.mxu0 %v4690_v53  ;;  %4939 = vmatprep.mubr.bf16.mxu0 %v11410_v4  ;;  %v4700_v4 = vld [vmem:[#allocation6 + $0x2b0] sm:$0xff] }
 0x9a0   :  { %4994 = vmatprep.subr.bf16.mxu0 %v4693_v42 }
 0x9a3   :  { %4995 = vmatpush1.bf16.msra.mxu0 %v4692_v15 }
 0x9a4   :  { %4996 = vmatprep.subr.bf16.mxu0 %v4695_v10 }
 0x9a6   :  { %4940 = vmatmul.mubr.bf16.gmra.mrb[96].mxu0 %v11402_v11  ;;  %v4702_v11 = vld [vmem:[#allocation6 + $0x2c0] sm:$0xff] }
 0x9a7   :  { %4997 = vmatpush1.bf16.msra.mxu0 %v4694_v16  ;;  %4949 = vmatprep.mubr.bf16.mxu0 %v11474_v63  ;;  %v4704_v63 = vld [vmem:[#allocation6 + $0x2d0] sm:$0xff] }
 0x9a8   :  { %4998 = vmatprep.subr.bf16.mxu0 %v4697_v27 }
 0x9ab   :  { %4999 = vmatpush1.bf16.msra.mxu0 %v4696_v23 }
 0x9ac   :  { %5000 = vmatprep.subr.bf16.mxu0 %v4699_v41 }
 0x9ae   :  { %4950 = vmatmul.mubr.bf16.gmra.mrb[100].mxu0 %v11466_v8  ;;  %v4706_v8 = vld [vmem:[#allocation6 + $0x2e0] sm:$0xff] }
 0x9af   :  { %5001 = vmatpush1.bf16.msra.mxu0 %v4698_v17  ;;  %4959 = vmatprep.mubr.bf16.mxu0 %v11538_v40  ;;  %v14155_v40 = vld [vmem:[#allocation47_spill] sm:$0xff] }
 0x9b0   :  { %5002 = vmatprep.subr.bf16.mxu0 %v4701_v62 }
 0x9b3   :  { %5003 = vmatpush1.bf16.msra.mxu0 %v4700_v4 }
 0x9b4   :  { %5004 = vmatprep.subr.bf16.mxu0 %v4703_v12  ;;  %v4742_v12 = vld [vmem:[%s11949_s7] sm:$0x3]  ;;  %s5931_s7 = smov [#allocation11]  }
 0x9b5   :  { %s5275_s24 = sshll.u32 %s5931_s7, 4  ;;  %s5276_s24 = int_to_ptr.vmem [resolvable:$true] %s5275_s24 }
 0x9b6   :  { %4960 = vmatmul.mubr.bf16.gmra.mrb[104].mxu0 %v11530_v36  ;;  %v14156_v36 = vld [vmem:[#allocation46_spill] sm:$0xff]  ;;  %s5875_s17 = scalar_lea.vmem %s5276_s24, 4096  ;;  %p5880_p9 = scmp.lt.s32.totalorder %s5276_s24, %s5276_s24 }
 0x9b7   :  { %5005 = vmatpush1.bf16.msra.mxu0 %v4702_v11  ;;  %4969 = vmatprep.mubr.bf16.mxu0 %v11602_v2  ;;  %v14159_v2 = vld [vmem:[#allocation212_spill] sm:$0xff]  ;;  %v14183_v11 = vld [vmem:[#allocation29_spill] sm:$0xff]  ;;  %p5876_p8 = scmp.ne.s32.totalorder %s5276_s24, %s5875_s17  ;;  %p5881_p10 = scmp.lt.s32.totalorder %s5875_s17, %s5875_s17 }
 0x9b8   :  { %5006 = vmatprep.subr.bf16.mxu0 %v4705_v34  ;;  %v11871_v34 = vrot.slane %v4742_v12, %v14183_v11 }
 0x9b9   :  { %p5882_p11 = por %p5881_p10, %p5880_p9 }
 0x9bb   :  { %5007 = vmatpush1.bf16.msra.mxu0 %v4704_v63  ;;  %v14184_v63 = vld [vmem:[#allocation30_spill] sm:$0xff]  ;;  %p5883_p12 = pnand %p5882_p11, %p5876_p8 }
 0x9bc   :  { %5008 = vmatprep.subr.bf16.mxu0 %v4707_v22  ;;  %v11874_v22 = vrot.slane %v4742_v12, %v14184_v63 }
 0x9be   :  { %4970 = vmatmul.mubr.bf16.gmra.mrb[108].mxu0 %v11594_v20  ;;  %v14157_v20 = vld [vmem:[#allocation123_spill] sm:$0xff] }
 0x9bf   :  { %5009 = vmatpush1.bf16.msra.mxu0 %v4706_v8  ;;  %5012 = vmatprep.mubr.bf16.mxu0 %v14155_v40 }
 0x9c0   :  { %5010 = vmatprep.subr.bf16.mxu0 %v4709_v51 }
 0x9c3   :  { %5011 = vmatpush1.bf16.msra.mxu0 %v4708_v61 }
 0x9c4   :  { %5093 = vmatprep.subr.bf16.mxu0 %v11637_v6  ;;  %v14161_v6 = vld [vmem:[#allocation116_spill] sm:$0xff] }
 0x9c6   :  { %5013 = vmatmul.mubr.bf16.vlgmr.msra.gmra.mrb[80].mxu0 %v14156_v36 }
 0x9c7   :  { %5094 = vmatpush1.bf16.msra.mxu0 %v11639_v29  ;;  %5022 = vmatprep.mubr.bf16.mxu0 %v11236_v58  ;;  %v14158_v58 = vld [vmem:[#allocation94_spill] sm:$0xff] }
 0x9c8   :  { %5095 = vmatprep.subr.bf16.mxu0 %v11642_v55  ;;  %v14162_v29 = vld [vmem:[#allocation98_spill] sm:$0xff] }
 0x9c9   :  { %v14163_v55 = vld [vmem:[#allocation54_spill] sm:$0xff] }
 0x9cb   :  { %5096 = vmatpush1.bf16.msra.mxu0 %v11646_v48  ;;  %v14165_v48 = vld [vmem:[#allocation125_spill] sm:$0xff] }
 0x9cc   :  { %5097 = vmatprep.subr.bf16.mxu0 %v11648_v24  ;;  %v14167_v24 = vld [vmem:[#allocation117_spill] sm:$0xff] }
 0x9ce   :  { %5023 = vmatmul.mubr.bf16.gmra.mrb[84].mxu0 %v14157_v20 }
 0x9cf   :  { %5098 = vmatpush1.bf16.msra.mxu0 %v11652_v57  ;;  %5032 = vmatprep.mubr.bf16.mxu0 %v11298_v54  ;;  %v14160_v54 = vld [vmem:[#allocation239_spill] sm:$0xff] }
 0x9d0   :  { %5099 = vmatprep.subr.bf16.mxu0 %v11654_v0  ;;  %v14168_v57 = vld [vmem:[#allocation255_spill] sm:$0xff]  ;;  %v14169_v0 = vld [vmem:[#allocation52_spill] sm:$0xff] }
 0x9d3   :  { %5100 = vmatpush1.bf16.msra.mxu0 %v11658_v28  ;;  %v14170_v28 = vld [vmem:[#allocation85_spill] sm:$0xff] }
 0x9d4   :  { %5101 = vmatprep.subr.bf16.mxu0 %v11660_v50  ;;  %v14171_v50 = vld [vmem:[#allocation215_spill] sm:$0xff] }
 0x9d6   :  { %5033 = vmatmul.mubr.bf16.gmra.mrb[88].mxu0 %v11290_v26  ;;  %v14164_v26 = vld [vmem:[#allocation75_spill] sm:$0xff] }
 0x9d7   :  { %5102 = vmatpush1.bf16.msra.mxu0 %v11664_v5  ;;  %5042 = vmatprep.mubr.bf16.mxu0 %v11362_v38  ;;  %v14166_v38 = vld [vmem:[#allocation139_spill] sm:$0xff] }
 0x9d8   :  { %5103 = vmatprep.subr.bf16.mxu0 %v11666_v3  ;;  %v14172_v5 = vld [vmem:[#allocation87_spill] sm:$0xff]  ;;  %v14173_v3 = vld [vmem:[#allocation57_spill] sm:$0xff] }
 0x9db   :  { %5104 = vmatpush1.bf16.msra.mxu0 %v11670_v56  ;;  %v14174_v56 = vld [vmem:[#allocation64_spill] sm:$0xff] }
 0x9dc   :  { %5105 = vmatprep.subr.bf16.mxu0 %v14158_v58 }
 0x9de   :  { %5043 = vmatmul.mubr.bf16.gmra.mrb[92].mxu0 %v14159_v2 }
 0x9df   :  { %5106 = vmatpush1.bf16.msra.mxu0 %v14160_v54  ;;  %5052 = vmatprep.mubr.bf16.mxu0 %v14161_v6 }
 0x9e0   :  { %5107 = vmatprep.subr.bf16.mxu0 %v14162_v29 }
 0x9e3   :  { %5108 = vmatpush1.bf16.msra.mxu0 %v14163_v55 }
 0x9e4   :  { %5109 = vmatprep.subr.bf16.mxu0 %v14164_v26 }
 0x9e6   :  { %5053 = vmatmul.mubr.bf16.gmra.mrb[96].mxu0 %v14165_v48 }
 0x9e7   :  { %5110 = vmatpush1.bf16.msra.mxu0 %v14166_v38  ;;  %5062 = vmatprep.mubr.bf16.mxu0 %v14167_v24 }
 0x9e8   :  { %5111 = vmatprep.subr.bf16.mxu0 %v14168_v57 }
 0x9eb   :  { %5112 = vmatpush1.bf16.msra.mxu0 %v14169_v0 }
 0x9ec   :  { %5113 = vmatprep.subr.bf16.mxu0 %v14170_v28 }
 0x9ee   :  { %5063 = vmatmul.mubr.bf16.gmra.mrb[100].mxu0 %v14171_v50 }
 0x9ef   :  { %5114 = vmatpush1.bf16.msra.mxu0 %v14172_v5  ;;  %5072 = vmatprep.mubr.bf16.mxu0 %v14173_v3 }
 0x9f0   :  { %5115 = vmatprep.subr.bf16.mxu0 %v11702_v25  ;;  %v14181_v25 = vld [vmem:[#allocation76_spill] sm:$0xff] }
 0x9f3   :  { %5116 = vmatpush1.bf16.msra.mxu0 %v11707_v46  ;;  %v14182_v46 = vld [vmem:[#allocation102_spill] sm:$0xff] }
 0x9f4   :  { %5117 = vmatprep.subr.bf16.mxu0 %v14174_v56 }
 0x9f6   :  { %5073 = vmatmul.mubr.bf16.gmra.mrb[104].mxu0 %v14175_v7 }
 0x9f7   :  { %5118 = vmatpush1.bf16.msra.mxu0 %v14176_v35  ;;  %5082 = vmatprep.mubr.bf16.mxu0 %v14177_v13 }
 0x9f8   :  { %5119 = vmatprep.subr.bf16.mxu0 %v11716_v47 }
 0x9fb   :  { %5120 = vmatpush1.bf16.msra.mxu0 %v14178_v21 }
 0x9fc   :  { %5121 = vmatprep.subr.bf16.mxu0 %v14179_v18 }
 0x9fe   :  { %5083 = vmatmul.mubr.bf16.gmra.mrb[108].mxu0 %v14180_v32 }
 0x9ff   :  { %5122 = vmatpush1.bf16.msra.mxu0 %v11728_v39  ;;  %5125 = vmatprep.mubr.bf16.mxu0 %v14181_v25 }
 0xa00   :  { %5123 = vmatprep.subr.bf16.mxu0 %v11730_v33 }
 0xa03   :  { %5124 = vmatpush1.bf16.msra.mxu0 %v11735_v43 }
 0xa06   :  { %5126 = vmatmul.mubr.bf16.vlgmr.msra.gmra.mrb[80].mxu0 %v14182_v46 }
 0xa2b   :  { %v5137_v14 = vpop.f32.mrb[160].mxu1 }
 0xa2c   :  { %v5139_v9 = vpop.f32.mrb[161].mxu1 }
 0xa2d   :  { %v5141_v31 = vpop.f32.mrb[162].mxu1 }
 0xa2e   :  { %v5143_v47 = vpop.f32.mrb[163].mxu1 }
 0xa33   :  { %v5147_v59 = vpop.f32.mrb[164].mxu1 }
 0xa34   :  { %v5149_v37 = vpop.f32.mrb[165].mxu1 }
 0xa35   :  { %v5151_v19 = vpop.f32.mrb[166].mxu1 }
 0xa36   :  { %v5153_v30 = vpop.f32.mrb[167].mxu1 }
 0xa3b   :  { %v11827_v49 = vpop.f32.mrb[168].mxu1 }
 0xa3c   :  { %v11829_v60 = vpop.f32.mrb[169].mxu1 }
 0xa3d   :  { %v11831_v39 = vpop.f32.mrb[170].mxu1 }
 0xa3e   :  { %v11833_v44 = vpop.f32.mrb[171].mxu1 }
 0xa43   :  { %v11835_v33 = vpop.f32.mrb[172].mxu1 }
 0xa44   :  { %v11837_v43 = vpop.f32.mrb[173].mxu1 }
 0xa45   :  { %v11839_v1 = vpop.f32.mrb[174].mxu1 }
 0xa46   :  { %v11841_v45 = vpop.f32.mrb[175].mxu1 }
 0xa4b   :  { %v11843_v52 = vpop.f32.mrb[176].mxu1 }
 0xa4c   :  { %v11845_v53 = vpop.f32.mrb[177].mxu1 }
 0xa4d   :  { %v11847_v42 = vpop.f32.mrb[178].mxu1 }
 0xa4e   :  { %v11849_v15 = vpop.f32.mrb[179].mxu1 }
 0xa53   :  { %v11851_v10 = vpop.f32.mrb[180].mxu1 }
 0xa54   :  { %v11853_v16 = vpop.f32.mrb[181].mxu1 }
 0xa55   :  { %v11855_v27 = vpop.f32.mrb[182].mxu1 }
 0xa56   :  { %v11857_v23 = vpop.f32.mrb[183].mxu1 }
 0xa5b   :  { %v11859_v41 = vpop.f32.mrb[184].mxu1 }
 0xa5c   :  { %v11861_v17 = vpop.f32.mrb[185].mxu1 }
 0xa5d   :  { %v11863_v62 = vpop.f32.mrb[186].mxu1 }
 0xa5e   :  { %v11865_v4 = vpop.f32.mrb[187].mxu1 }
 0xaa1   :  { %v5024_v8 = vpop.f32.mrb[84].mxu0 }
 0xaa2   :  { %v5487_v51 = vadd.f32 %v5024_v8, %v11871_v34  ;;  %v5026_v40 = vpop.f32.mrb[85].mxu0 }
 0xaa3   :  { %v5489_v61 = vadd.f32 %v5026_v40, %v11874_v22  ;;  %v5028_v36 = vpop.f32.mrb[86].mxu0 }
 0xaa4   :  { %v5491_v20 = vadd.f32 %v5028_v36, %v11871_v34  ;;  %v5488_v58 = vadd.f32 %v5487_v51, %v5137_v14  ;;  %v5030_v2 = vpop.f32.mrb[87].mxu0 }
 0xaa5   :  { %v5493_v54 = vadd.f32 %v5030_v2, %v11874_v22  ;;  %v5490_v6 = vadd.f32 %v5489_v61, %v5139_v9 }
 0xaa6   :  { %5789 = vtanh.f32 %v5488_v58  ;;  %v5492_v29 = vadd.f32 %v5491_v20, %v5141_v31 }
 0xaa7   :  { %5791 = vtanh.f32 %v5490_v6  ;;  %v5494_v55 = vadd.f32 %v5493_v54, %v5143_v47 }
 0xaa8   :  { %5793 = vtanh.f32 %v5492_v29 }
 0xaa9   :  { %5795 = vtanh.f32 %v5494_v55  ;;  %v5034_v26 = vpop.f32.mrb[88].mxu0 }
 0xaaa   :  { %v5495_v48 = vadd.f32 %v5034_v26, %v11871_v34  ;;  %v5036_v38 = vpop.f32.mrb[89].mxu0 }
 0xaab   :  { %v5497_v24 = vadd.f32 %v5036_v38, %v11874_v22  ;;  %v5038_v57 = vpop.f32.mrb[90].mxu0 }
 0xaac   :  { %v5499_v0 = vadd.f32 %v5038_v57, %v11871_v34  ;;  %v5496_v28 = vadd.f32 %v5495_v48, %v5147_v59  ;;  %v5040_v50 = vpop.f32.mrb[91].mxu0 }
 0xaad   :  { %v5501_v5 = vadd.f32 %v5040_v50, %v11874_v22  ;;  %v5498_v3 = vadd.f32 %v5497_v24, %v5149_v37 }
 0xaae   :  { %5797 = vtanh.f32 %v5496_v28  ;;  %v5500_v56 = vadd.f32 %v5499_v0, %v5151_v19 }
 0xaaf   :  { %5799 = vtanh.f32 %v5498_v3  ;;  %v5502_v7 = vadd.f32 %v5501_v5, %v5153_v30 }
 0xab0   :  { %v5790_v35 = vpop.eup %5789  ;;  %5801 = vtanh.f32 %v5500_v56 }
 0xab1   :  { %v5792_v13 = vpop.eup %5791  ;;  %5242 = vst [vmem:[#allocation11 + $0x20] sm:$0xff] %v5790_v35  ;;  %5803 = vtanh.f32 %v5502_v7  ;;  %v5044_v21 = vpop.f32.mrb[92].mxu0 }
 0xab2   :  { %v5794_v18 = vpop.eup %5793  ;;  %5243 = vst [vmem:[#allocation11 + $0x28] sm:$0xff] %v5792_v13  ;;  %v5503_v32 = vadd.f32 %v5044_v21, %v11871_v34  ;;  %v5046_v25 = vpop.f32.mrb[93].mxu0 }
 0xab3   :  { %v5796_v46 = vpop.eup %5795  ;;  %5244 = vst [vmem:[#allocation11 + $0x30] sm:$0xff] %v5794_v18  ;;  %v5505_v14 = vadd.f32 %v5046_v25, %v11874_v22  ;;  %v5048_v9 = vpop.f32.mrb[94].mxu0 }
 0xab4   :  { %5245 = vst [vmem:[#allocation11 + $0x38] sm:$0xff] %v5796_v46  ;;  %v5507_v31 = vadd.f32 %v5048_v9, %v11871_v34  ;;  %v5504_v47 = vadd.f32 %v5503_v32, %v11827_v49  ;;  %v5050_v59 = vpop.f32.mrb[95].mxu0 }
 0xab5   :  { %v5509_v37 = vadd.f32 %v5050_v59, %v11874_v22  ;;  %v5506_v19 = vadd.f32 %v5505_v14, %v11829_v60 }
 0xab6   :  { %5805 = vtanh.f32 %v5504_v47  ;;  %v5508_v30 = vadd.f32 %v5507_v31, %v11831_v39 }
 0xab7   :  { %5807 = vtanh.f32 %v5506_v19  ;;  %v5510_v12 = vadd.f32 %v5509_v37, %v11833_v44 }
 0xab8   :  { %v5798_v11 = vpop.eup %5797  ;;  %5809 = vtanh.f32 %v5508_v30 }
 0xab9   :  { %v5800_v63 = vpop.eup %5799  ;;  %5246 = vst [vmem:[#allocation11 + $0x40] sm:$0xff] %v5798_v11  ;;  %5811 = vtanh.f32 %v5510_v12  ;;  %v5054_v8 = vpop.f32.mrb[96].mxu0 }
 0xaba   :  { %v5802_v51 = vpop.eup %5801  ;;  %5247 = vst [vmem:[#allocation11 + $0x48] sm:$0xff] %v5800_v63  ;;  %v5511_v49 = vadd.f32 %v5054_v8, %v11871_v34  ;;  %v5056_v40 = vpop.f32.mrb[97].mxu0 }
 0xabb   :  { %v5804_v61 = vpop.eup %5803  ;;  %5248 = vst [vmem:[#allocation11 + $0x50] sm:$0xff] %v5802_v51  ;;  %v5513_v60 = vadd.f32 %v5056_v40, %v11874_v22  ;;  %v5058_v36 = vpop.f32.mrb[98].mxu0 }
 0xabc   :  { %5249 = vst [vmem:[#allocation11 + $0x58] sm:$0xff] %v5804_v61  ;;  %v5515_v39 = vadd.f32 %v5058_v36, %v11871_v34  ;;  %v5512_v44 = vadd.f32 %v5511_v49, %v11835_v33  ;;  %v5060_v20 = vpop.f32.mrb[99].mxu0 }
 0xabd   :  { %v5517_v58 = vadd.f32 %v5060_v20, %v11874_v22  ;;  %v5514_v2 = vadd.f32 %v5513_v60, %v11837_v43 }
 0xabe   :  { %5813 = vtanh.f32 %v5512_v44  ;;  %v5516_v54 = vadd.f32 %v5515_v39, %v11839_v1 }
 0xabf   :  { %5815 = vtanh.f32 %v5514_v2  ;;  %v5518_v6 = vadd.f32 %v5517_v58, %v11841_v45 }
 0xac0   :  { %v5806_v29 = vpop.eup %5805  ;;  %5817 = vtanh.f32 %v5516_v54 }
 0xac1   :  { %v5808_v55 = vpop.eup %5807  ;;  %5250 = vst [vmem:[#allocation11 + $0x60] sm:$0xff] %v5806_v29  ;;  %5819 = vtanh.f32 %v5518_v6  ;;  %v5064_v26 = vpop.f32.mrb[100].mxu0 }
 0xac2   :  { %v5810_v48 = vpop.eup %5809  ;;  %5251 = vst [vmem:[#allocation11 + $0x68] sm:$0xff] %v5808_v55  ;;  %v5519_v33 = vadd.f32 %v5064_v26, %v11871_v34  ;;  %v5066_v38 = vpop.f32.mrb[101].mxu0 }
 0xac3   :  { %v5812_v24 = vpop.eup %5811  ;;  %5252 = vst [vmem:[#allocation11 + $0x70] sm:$0xff] %v5810_v48  ;;  %v5521_v43 = vadd.f32 %v5066_v38, %v11874_v22  ;;  %v5068_v57 = vpop.f32.mrb[102].mxu0 }
 0xac4   :  { %5253 = vst [vmem:[#allocation11 + $0x78] sm:$0xff] %v5812_v24  ;;  %v5523_v1 = vadd.f32 %v5068_v57, %v11871_v34  ;;  %v5520_v45 = vadd.f32 %v5519_v33, %v11843_v52  ;;  %v5070_v0 = vpop.f32.mrb[103].mxu0 }
 0xac5   :  { %v5525_v28 = vadd.f32 %v5070_v0, %v11874_v22  ;;  %v5522_v50 = vadd.f32 %v5521_v43, %v11845_v53 }
 0xac6   :  { %5821 = vtanh.f32 %v5520_v45  ;;  %v5524_v5 = vadd.f32 %v5523_v1, %v11847_v42 }
 0xac7   :  { %5823 = vtanh.f32 %v5522_v50  ;;  %v5526_v3 = vadd.f32 %v5525_v28, %v11849_v15 }
 0xac8   :  { %v5814_v56 = vpop.eup %5813  ;;  %5825 = vtanh.f32 %v5524_v5 }
 0xac9   :  { %v5816_v7 = vpop.eup %5815  ;;  %5254 = vst [vmem:[#allocation11 + $0x80] sm:$0xff] %v5814_v56  ;;  %5827 = vtanh.f32 %v5526_v3  ;;  %v5074_v35 = vpop.f32.mrb[104].mxu0 }
 0xaca   :  { %v5818_v13 = vpop.eup %5817  ;;  %5255 = vst [vmem:[#allocation11 + $0x88] sm:$0xff] %v5816_v7  ;;  %v5527_v52 = vadd.f32 %v5074_v35, %v11871_v34  ;;  %v5076_v21 = vpop.f32.mrb[105].mxu0 }
 0xacb   :  { %v5820_v18 = vpop.eup %5819  ;;  %5256 = vst [vmem:[#allocation11 + $0x90] sm:$0xff] %v5818_v13  ;;  %v5529_v53 = vadd.f32 %v5076_v21, %v11874_v22  ;;  %v5078_v32 = vpop.f32.mrb[106].mxu0 }
 0xacc   :  { %5257 = vst [vmem:[#allocation11 + $0x98] sm:$0xff] %v5820_v18  ;;  %v5531_v42 = vadd.f32 %v5078_v32, %v11871_v34  ;;  %v5528_v15 = vadd.f32 %v5527_v52, %v11851_v10  ;;  %v5080_v25 = vpop.f32.mrb[107].mxu0 }
 0xacd   :  { %v5533_v46 = vadd.f32 %v5080_v25, %v11874_v22  ;;  %v5530_v14 = vadd.f32 %v5529_v53, %v11853_v16 }
 0xace   :  { %5829 = vtanh.f32 %v5528_v15  ;;  %v5532_v9 = vadd.f32 %v5531_v42, %v11855_v27 }
 0xacf   :  { %5831 = vtanh.f32 %v5530_v14  ;;  %v5534_v31 = vadd.f32 %v5533_v46, %v11857_v23 }
 0xad0   :  { %v5822_v47 = vpop.eup %5821  ;;  %5833 = vtanh.f32 %v5532_v9 }
 0xad1   :  { %v5824_v59 = vpop.eup %5823  ;;  %5258 = vst [vmem:[#allocation11 + $0xa0] sm:$0xff] %v5822_v47  ;;  %5835 = vtanh.f32 %v5534_v31  ;;  %v5084_v37 = vpop.f32.mrb[108].mxu0 }
 0xad2   :  { %v5826_v19 = vpop.eup %5825  ;;  %5259 = vst [vmem:[#allocation11 + $0xa8] sm:$0xff] %v5824_v59  ;;  %v5535_v10 = vadd.f32 %v5084_v37, %v11871_v34  ;;  %v5086_v30 = vpop.f32.mrb[109].mxu0 }
 0xad3   :  { %v5828_v12 = vpop.eup %5827  ;;  %5260 = vst [vmem:[#allocation11 + $0xb0] sm:$0xff] %v5826_v19  ;;  %v5537_v16 = vadd.f32 %v5086_v30, %v11874_v22  ;;  %v5088_v11 = vpop.f32.mrb[110].mxu0 }
 0xad4   :  { %5261 = vst [vmem:[#allocation11 + $0xb8] sm:$0xff] %v5828_v12  ;;  %v5539_v27 = vadd.f32 %v5088_v11, %v11871_v34  ;;  %v5536_v23 = vadd.f32 %v5535_v10, %v11859_v41  ;;  %v5090_v63 = vpop.f32.mrb[111].mxu0 }
 0xad5   :  { %v5541_v8 = vadd.f32 %v5090_v63, %v11874_v22  ;;  %v5538_v51 = vadd.f32 %v5537_v16, %v11861_v17 }
 0xad6   :  { %5837 = vtanh.f32 %v5536_v23  ;;  %v5540_v49 = vadd.f32 %v5539_v27, %v11863_v62 }
 0xad7   :  { %5839 = vtanh.f32 %v5538_v51  ;;  %v5542_v40 = vadd.f32 %v5541_v8, %v11865_v4 }
 0xad8   :  { %v5830_v61 = vpop.eup %5829  ;;  %5841 = vtanh.f32 %v5540_v49 }
 0xad9   :  { %v5832_v60 = vpop.eup %5831  ;;  %5262 = vst [vmem:[#allocation11 + $0xc0] sm:$0xff] %v5830_v61  ;;  %5843 = vtanh.f32 %v5542_v40  ;;  %v5127_v36 = vpop.f32.mrb[80].mxu0 }
 0xada   :  { %v5834_v39 = vpop.eup %5833  ;;  %5263 = vst [vmem:[#allocation11 + $0xc8] sm:$0xff] %v5832_v60  ;;  %v5483_v41 = vadd.f32 %v5127_v36, %v11871_v34  ;;  %v5129_v44 = vpop.f32.mrb[81].mxu0 }
 0xadb   :  { %v5836_v20 = vpop.eup %5835  ;;  %5264 = vst [vmem:[#allocation11 + $0xd0] sm:$0xff] %v5834_v39  ;;  %v5484_v17 = vadd.f32 %v5129_v44, %v11874_v22  ;;  %v5131_v58 = vpop.f32.mrb[82].mxu0 }
 0xadc   :  { %5265 = vst [vmem:[#allocation11 + $0xd8] sm:$0xff] %v5836_v20  ;;  %5845 = vtanh.f32 %v5483_v41  ;;  %v5485_v62 = vadd.f32 %v5131_v58, %v11871_v34  ;;  %v5133_v4 = vpop.f32.mrb[83].mxu0 }
 0xadd   :  { %5847 = vtanh.f32 %v5484_v17  ;;  %v5486_v2 = vadd.f32 %v5133_v4, %v11874_v22 }
 0xade   :  { %5849 = vtanh.f32 %v5485_v62 }
 0xadf   :  { %5851 = vtanh.f32 %v5486_v2 }
 0xae0   :  { %v5838_v54 = vpop.eup %5837 }
 0xae1   :  { %v5840_v6 = vpop.eup %5839  ;;  %5266 = vst [vmem:[#allocation11 + $0xe0] sm:$0xff] %v5838_v54 }
 0xae2   :  { %v5842_v29 = vpop.eup %5841  ;;  %5267 = vst [vmem:[#allocation11 + $0xe8] sm:$0xff] %v5840_v6 }
 0xae3   :  { %v5844_v55 = vpop.eup %5843  ;;  %5268 = vst [vmem:[#allocation11 + $0xf0] sm:$0xff] %v5842_v29 }
 0xae4   :  { %5269 = vst [vmem:[#allocation11 + $0xf8] sm:$0xff] %v5844_v55 }
 0xae6   :  { %v5846_v26 = vpop.eup %5845 }
 0xae7   :  { %v5848_v48 = vpop.eup %5847  ;;  %5238 = vst [vmem:[#allocation11] sm:$0xff] %v5846_v26 }
 0xae8   :  { %v5850_v34 = vpop.eup %5849  ;;  %5239 = vst [vmem:[#allocation11 + $0x8] sm:$0xff] %v5848_v48 }
 0xae9   :  { %v5852_v33 = vpop.eup %5851  ;;  %5240 = vst [vmem:[#allocation11 + $0x10] sm:$0xff] %v5850_v34 }
 0xaea   :  { %5241 = vst [vmem:[#allocation11 + $0x18] sm:$0xff] %v5852_v33 }
 0xaeb   :  { %5886 = shalt.err (!%p5883_p12)
}
 0xaec   :  { %s5887_s26 = scalar_lea.hbm %s11956_s14, 4096 }
 0xaed   :  { %p5888_p13 = scmp.ne.s32.totalorder %s11956_s14, %s5887_s26  ;;  %p5891_p0 = scmp.lt.u32.totalorder %s5887_s26, %s11956_s14 }
 0xaef   :  { %p5893_p1 = pnand %p5891_p0, %p5888_p13 }
 0xaf1   :  { %5896 = shalt.err (!%p5893_p1)
}
 0xaf2   :  { %s5932_s18 = smov 16  }
 0xaf3   :  { %5281 = dma.vmem_to_hbm [thread:$0]  %s5276_s24, 4096, %s11956_s14, [#allocation10], %s5918_s15, %s5918_s15, %s5932_s18  }
 0xaf4   :  { %5909 = dma.done.wait [#allocation10], 4096  }
 0xaf5   :  { %5910 = vsyncadd [#allocation10], 4294963200 }
 0xaf6   :  { %5285 = vsyncpa [#allocation9], 1 }
 0xaf7   :  { %5286 = vsyncpa [#allocation10], 1 }
 0xaf8   :  { %5287 = vsyncmov [#allocation7] }
 0xafb   :  { %s5288_s19 = vpop.sfrf %5287 }
 0xafc   :  { %p5366_p2 = scmp.ne.s32.totalorder %s5288_s19, 0 }
 0xafe   :  { %5292 = shalt.err (%p5366_p2)  }
 0xaff   :  { %5294 = vsyncmov [#allocation7 + $0x1] }
 0xb02   :  { %s5295_s20 = vpop.sfrf %5294 }
 0xb03   :  { %p5367_p3 = scmp.ne.s32.totalorder %s5295_s20, 0 }
 0xb05   :  { %5299 = shalt.err (%p5367_p3)  }
 0xb06   :  { %5301 = vsyncmov [#allocation7 + $0x2] }
 0xb09   :  { %s5302_s0 = vpop.sfrf %5301 }
 0xb0a   :  { %p5368_p4 = scmp.ne.s32.totalorder %s5302_s0, 0 }
 0xb0c   :  { %5306 = shalt.err (%p5368_p4)  }
 0xb0d   :  { %5308 = vsyncmov [#allocation7 + $0x3] }
 0xb10   :  { %s5309_s3 = vpop.sfrf %5308 }
 0xb11   :  { %p5369_p5 = scmp.ne.s32.totalorder %s5309_s3, 0 }
 0xb13   :  { %5313 = shalt.err (%p5369_p5)  }
 0xb14   :  { %5315 = vsyncmov [#allocation7 + $0x4] }
 0xb17   :  { %s5316_s14 = vpop.sfrf %5315 }
 0xb18   :  { %p5370_p6 = scmp.ne.s32.totalorder %s5316_s14, 0 }
 0xb1a   :  { %5320 = shalt.err (%p5370_p6)  }

</bundles_post_ra>
